<compile_context>
chip_gen: v7x
topology: tpu7x:2x2x1
jax: 0.10.0
libtpu: 0.0.40
codegen_flags: <defaults>
</compile_context>

<pallas_src>
import jax
import jax.numpy as jnp
from jax import lax
from jax.experimental import pallas as pl
from jax.experimental.pallas import tpu as pltpu

_LOG2 = 0.6931471805599453


def _round_up(n, m):
    return ((n + m - 1) // m) * m


def _vmem_capacity_bytes():
    """Best-effort per-core VMEM capacity (conservative fallback)."""
    try:
        cap = getattr(pltpu.get_tpu_info(), "vmem_capacity_bytes", None)
        if cap:
            return int(cap)
    except Exception:
        pass
    try:
        kind = jax.devices()[0].device_kind.lower()
        if "v5" in kind or "v6" in kind:
            return 128 * 1024 * 1024
        return 64 * 1024 * 1024          # v7x and unknown parts: be conservative
    except Exception:
        return 64 * 1024 * 1024


def mmgn_forward(x, W, biases, V, a, *, weight_dtype=jnp.bfloat16):
    """MMGN forward.  x:(B,D)  W:(M,D,H)  biases:(M,H)  V:(H,D)  a:(D,) -> (B,D)."""
    f32 = jnp.float32
    M, D, H = W.shape
    B = x.shape[0]

    Bp = _round_up(B, 8)            # sublane-dense batch
    Dp = _round_up(D, 128)          # lane-dense feature dim
    wbytes = jnp.dtype(weight_dtype).itemsize

    # ---- chunk sizing (per-generation VMEM aware) -------------------------
    cap = _vmem_capacity_bytes()
    budget = int(cap * 0.80)
    fixed = 4 * (2 * Bp * Dp        # resident x (worst case double buffered)
                 + 2 * Bp * Dp      # resident output partial
                 + 2 * H * Dp       # resident V
                 + 2 * Dp           # resident a
                 + 4 * Bp * Dp)     # f32 temporaries (vtx / vtvx / acc)
    # Bytes per module slot: its W+bias columns (double-buffered stream) plus the
    # ~4 live (Bp, H) f32 intermediates (z, t, lc, sig) those columns generate.
    per_slot = 2 * (Dp + 1) * H * wbytes + 4 * Bp * H * 4
    avail = max(budget - fixed, 128 * per_slot)
    Mcp = (avail // per_slot) // 128 * 128
    Mcp = int(max(128, min(Mcp, _round_up(M, 128))))   # modules per chunk (x128)
    # (For extremely large D*H per module even one 128-module slab may not fit;
    #  the vmem_limit below is simply set near the physical cap in that case.)

    C = H * Mcp                                         # slab columns per chunk
    n_chunks = -(-M // Mcp)
    num_splits = 2 if n_chunks >= 2 else 1              # both TCs on dual-core chips
    chunks_per_split = -(-n_chunks // num_splits)
    n_chunks_pad = num_splits * chunks_per_split
    M_pad = n_chunks_pad * Mcp

    # ---- weight / bias slabs: hidden-major columns, col = h*Mcp + m --------
    # Padded module slots have zero weights & bias -> z = 0 -> log_cosh = tanh = 0.
    Wt = jnp.pad(W.astype(f32), ((0, M_pad - M), (0, Dp - D), (0, 0)))   # (M_pad,Dp,H)
    Wt = Wt.reshape(n_chunks_pad, Mcp, Dp, H)
    Wt = jnp.transpose(Wt, (2, 0, 3, 1))                                 # (Dp,nc,H,Mcp)
    W_all = Wt.reshape(Dp, n_chunks_pad * C).astype(weight_dtype)

    bt = jnp.pad(biases.astype(f32), ((0, M_pad - M), (0, 0)))           # (M_pad, H)
    bt = bt.reshape(n_chunks_pad, Mcp, H)
    bt = jnp.transpose(bt, (0, 2, 1))                                    # (nc, H, Mcp)
    b_all = bt.reshape(1, n_chunks_pad * C).astype(weight_dtype)

    xp = jnp.pad(x.astype(f32), ((0, Bp - B), (0, Dp - D)))              # (Bp, Dp)
    Vp = jnp.pad(V.astype(f32), ((0, 0), (0, Dp - D)))                   # (H, Dp)
    ap = jnp.pad(a.astype(f32), (0, Dp - D)).reshape(1, Dp)              # (1, Dp)

    vmem_limit = int(cap * 0.88)

    # ---- kernel ------------------------------------------------------------
    def kernel(x_ref, w_ref, b_ref, v_ref, a_ref, o_ref):
        p = pl.program_id(0)                       # split (TensorCore) axis
        k = pl.program_id(1)                       # module-chunk axis (reduction)
        x_f32 = x_ref[...]                         # (Bp, Dp) f32, resident

        # First chunk of split 0 owns the a + (x @ V.T) @ V term; other splits
        # start from zero so the term is never added twice.
        @pl.when((k == 0) & (p == 0))
        def _init_main():
            v = v_ref[...]                                               # (H, Dp)
            vtx = lax.dot_general(x_f32, v, (((1,), (1,)), ((), ())),
                                  preferred_element_type=f32)            # (Bp, H)
            o_ref[...] = a_ref[...] + jnp.dot(vtx, v, preferred_element_type=f32)

        @pl.when((k == 0) & (p > 0))
        def _init_zero():
            o_ref[...] = jnp.zeros(o_ref.shape, o_ref.dtype)

        w = w_ref[...]                                                   # (Dp, C)
        xc = x_f32.astype(w.dtype)                                       # bf16 feed
        z = (jnp.dot(xc, w, preferred_element_type=f32)
             + b_ref[...].astype(f32))                                   # (Bp, C)

        az = jnp.abs(z)
        t = jnp.exp(-2.0 * az)                     # shared EUP exp for lc and tanh
        lc = az + jnp.log1p(t) - _LOG2             # log(cosh(z)), overflow-safe
        sig = (1.0 - t) * pl.reciprocal(1.0 + t, approx=True)
        sig = jnp.where(z < 0.0, -sig, sig)        # tanh(z)

        if Bp != B:   # keep batch-padding rows out of the per-module sums
            rows = lax.broadcasted_iota(jnp.int32, (Bp, 1), 0)
            lc = jnp.where(rows < B, lc, 0.0)

        # Per-module log-cosh sums.  Columns are hidden-major (col = h*Mcp + m),
        # so the module sum is H lane-aligned (1, Mcp) VPU adds -- no E matmuls.
        col_sum = jnp.sum(lc, axis=0, keepdims=True)          # (1, C)
        s_mod = col_sum[:, :Mcp]
        for h in range(1, H):
            s_mod = s_mod + col_sum[:, h * Mcp:(h + 1) * Mcp] # (1, Mcp)
        s_rep = jnp.concatenate([s_mod] * H, axis=1)          # (1, C) broadcast back

        # sum_m s_m * tanh(z_m) @ W_m.T  ==  (sig * s_rep) contracted with the
        # same slab over its column axis (no transpose materialized).
        scaled = (sig * s_rep).astype(w.dtype)
        o_ref[...] += lax.dot_general(scaled, w, (((1,), (1,)), ((), ())),
                                      preferred_element_type=f32)        # (Bp, Dp)

    # ---- pallas_call -------------------------------------------------------
    def _resident_spec(shape, single):
        if single:
            return pl.BlockSpec(shape, lambda p, k: (0, 0),
                                pipeline_mode=pl.Buffered(buffer_count=1))
        return pl.BlockSpec(shape, lambda p, k: (0, 0))

    def run(single_buffer_residents):
        in_specs = [
            _resident_spec((Bp, Dp), single_buffer_residents),            # x
            pl.BlockSpec((Dp, C), lambda p, k: (0, p * chunks_per_split + k)),  # W slab
            pl.BlockSpec((1, C), lambda p, k: (0, p * chunks_per_split + k)),   # bias slab
            _resident_spec((H, Dp), single_buffer_residents),             # V
            _resident_spec((1, Dp), single_buffer_residents),             # a
        ]
        call = pl.pallas_call(
            kernel,
            out_shape=jax.ShapeDtypeStruct((num_splits, Bp, Dp), f32),
            grid=(num_splits, chunks_per_split),
            in_specs=in_specs,
            # Per-split resident accumulator; the chunk axis is a reduction into
            # it, so it stays "arbitrary"; the split axis is "parallel" (both
            # TensorCores on v7x, harmless serial loop on single-core chips).
            out_specs=pl.BlockSpec((None, Bp, Dp), lambda p, k: (p, 0, 0)),
            compiler_params=pltpu.CompilerParams(
                dimension_semantics=("parallel", "arbitrary"),
                vmem_limit_bytes=vmem_limit),
        )
        return jax.block_until_ready(call(xp, W_all, b_all, Vp, ap))

    try:
        partial = run(True)
    except Exception:
        # pipeline_mode=pl.Buffered(1) not supported by this jax version:
        # fall back to default double buffering (identical results).
        partial = run(False)

    return jnp.sum(partial, axis=0)[:B, :D]


def mmgn_reference(x, W, biases, V, a):
    x = x.astype(jnp.float32)
    acc = jnp.zeros((x.shape[0], x.shape[1]), jnp.float32)
    for i in range(W.shape[0]):
        z = x @ W[i] + biases[i]
        acc = acc + jnp.sum(jnp.log(jnp.cosh(z))) * (jnp.tanh(z) @ W[i].T)
    return a[None, :] + (x @ V.T) @ V + acc


if __name__ == "__main__":
    # Small shapes consistent with the module (output_dim == input_dim so the
    # `a + VTVx + sum` broadcast matches the PyTorch forward exactly).
    batch, input_dim, hidden_dim, num_modules = 8, 16, 32, 4
    output_dim = input_dim

    key = jax.random.PRNGKey(0)
    kx, kw, kb, kv, ka = jax.random.split(key, 5)

    x = jax.random.normal(kx, (batch, input_dim), jnp.float32)
    W = jax.random.normal(kw, (num_modules, input_dim, hidden_dim), jnp.float32)
    biases = jax.random.normal(kb, (num_modules, hidden_dim), jnp.float32)
    V = jax.random.normal(kv, (hidden_dim, input_dim), jnp.float32)
    a = jax.random.normal(ka, (output_dim,), jnp.float32)

    ref = mmgn_reference(x, W, biases, V, a)
    scale = jnp.maximum(jnp.max(jnp.abs(ref)), 1.0)

    # f32 weight-stream verification path.
    out_f32 = jax.block_until_ready(
        mmgn_forward(x, W, biases, V, a, weight_dtype=jnp.float32))
    assert jnp.allclose(out_f32, ref, rtol=1e-2, atol=1e-3 * scale), (
        "Pallas MMGN kernel (f32 weights) mismatch vs reference")

    # Performance path: bf16 weight streaming with f32 accumulation.
    out_bf16 = jax.block_until_ready(mmgn_forward(x, W, biases, V, a))
    assert jnp.allclose(out_bf16, ref, rtol=2e-2, atol=1e-2 * scale), (
        "Pallas MMGN kernel (bf16 weights) mismatch vs reference")

    print("KERNEL_OK")
</pallas_src>

<mosaic_0001>
module attributes {stable_mosaic.version = 11 : i64} {
  func.func @kernel(%arg0: i32, %arg1: i32, %arg2: memref<8x128xf32, #tpu.memory_space<vmem>>, %arg3: memref<128x4096xf32, #tpu.memory_space<vmem>>, %arg4: memref<1x4096xf32, #tpu.memory_space<vmem>>, %arg5: memref<32x128xf32, #tpu.memory_space<vmem>>, %arg6: memref<1x128xf32, #tpu.memory_space<vmem>>, %arg7: memref<1x8x128xf32, #tpu.memory_space<vmem>>) attributes {dimension_semantics = [#tpu.dimension_semantics<parallel>, #tpu.dimension_semantics<arbitrary>], iteration_bounds = array<i64: 1, 1>, scalar_prefetch = 0 : i64, scratch_operands = 0 : i64, tpu.core_type = #tpu.core_type<tc>, window_params = [{pipeline_mode = #tpu.pipeline_mode<synchronous>, transform_indices = @transform_0, window_bounds = array<i64: 8, 128>}, {transform_indices = @transform_1, window_bounds = array<i64: 128, 4096>}, {transform_indices = @transform_2, window_bounds = array<i64: 1, 4096>}, {pipeline_mode = #tpu.pipeline_mode<synchronous>, transform_indices = @transform_3, window_bounds = array<i64: 32, 128>}, {pipeline_mode = #tpu.pipeline_mode<synchronous>, transform_indices = @transform_4, window_bounds = array<i64: 1, 128>}, {transform_indices = @transform_5, window_bounds = array<i64: 1, 8, 128>}]} {
    %c0 = arith.constant 0 : index
    %c0_0 = arith.constant 0 : index
    %0 = vector.load %arg2[%c0, %c0_0] : memref<8x128xf32, #tpu.memory_space<vmem>>, vector<8x128xf32>
    %c0_i32 = arith.constant 0 : i32
    %1 = arith.cmpi eq, %arg1, %c0_i32 : i32
    %c0_i32_1 = arith.constant 0 : i32
    %2 = arith.cmpi eq, %arg0, %c0_i32_1 : i32
    %3 = arith.andi %1, %2 : i1
    %4 = arith.extui %3 : i1 to i32
    %c0_i32_2 = arith.constant 0 : i32
    %5 = arith.cmpi ne, %4, %c0_i32_2 : i32
    scf.if %5 {
      %c0_24 = arith.constant 0 : index
      %c0_25 = arith.constant 0 : index
      %112 = vector.load %arg5[%c0_24, %c0_25] : memref<32x128xf32, #tpu.memory_space<vmem>>, vector<32x128xf32>
      %cst_26 = arith.constant dense<0.000000e+00> : vector<8x32xf32>
      %113 = tpu.matmul %0, %112, %cst_26 {dimension_numbers = #tpu.dot_dimension_numbers<[1], [1], [0], [0], [0, 0, 1, 0], [], []>} : vector<8x128xf32>, vector<32x128xf32>, vector<8x32xf32> -> vector<8x32xf32>
      %c0_27 = arith.constant 0 : index
      %c0_28 = arith.constant 0 : index
      %114 = vector.load %arg6[%c0_27, %c0_28] : memref<1x128xf32, #tpu.memory_space<vmem>>, vector<1x128xf32>
      %cst_29 = arith.constant dense<0.000000e+00> : vector<8x128xf32>
      %115 = tpu.matmul %113, %112, %cst_29 {dimension_numbers = #tpu.dot_dimension_numbers<[1], [0], [0], [1], [0, 0, 1, 1], [], []>} : vector<8x32xf32>, vector<32x128xf32>, vector<8x128xf32> -> vector<8x128xf32>
      %116 = vector.broadcast %114 : vector<1x128xf32> to vector<8x128xf32>
      %117 = arith.addf %116, %115 : vector<8x128xf32>
      %c0_30 = arith.constant 0 : index
      %c0_31 = arith.constant 0 : index
      %c0_32 = arith.constant 0 : index
      %118 = vector.load %arg7[%c0_30, %c0_31, %c0_32] : memref<1x8x128xf32, #tpu.memory_space<vmem>>, vector<1x8x128xf32>
      %119 = vector.shape_cast %118 : vector<1x8x128xf32> to vector<8x128xf32>
      %120 = vector.shape_cast %117 : vector<8x128xf32> to vector<1x8x128xf32>
      tpu.vector_store %arg7[%c0_30, %c0_31, %c0_32], %120 {strides = array<i32>} : memref<1x8x128xf32, #tpu.memory_space<vmem>>, vector<1x8x128xf32>,
    } else {
    }
    %c0_i32_3 = arith.constant 0 : i32
    %6 = arith.cmpi eq, %arg1, %c0_i32_3 : i32
    %c0_i32_4 = arith.constant 0 : i32
    %7 = arith.cmpi sgt, %arg0, %c0_i32_4 : i32
    %8 = arith.andi %6, %7 : i1
    %9 = arith.extui %8 : i1 to i32
    %c0_i32_5 = arith.constant 0 : i32
    %10 = arith.cmpi ne, %9, %c0_i32_5 : i32
    scf.if %10 {
      %cst_24 = arith.constant 0.000000e+00 : f32
      %112 = vector.broadcast %cst_24 : f32 to vector<8x128xf32>
      %c0_25 = arith.constant 0 : index
      %c0_26 = arith.constant 0 : index
      %c0_27 = arith.constant 0 : index
      %113 = vector.load %arg7[%c0_25, %c0_26, %c0_27] : memref<1x8x128xf32, #tpu.memory_space<vmem>>, vector<1x8x128xf32>
      %114 = vector.shape_cast %113 : vector<1x8x128xf32> to vector<8x128xf32>
      %115 = vector.shape_cast %112 : vector<8x128xf32> to vector<1x8x128xf32>
      tpu.vector_store %arg7[%c0_25, %c0_26, %c0_27], %115 {strides = array<i32>} : memref<1x8x128xf32, #tpu.memory_space<vmem>>, vector<1x8x128xf32>,
    } else {
    }
    %c0_6 = arith.constant 0 : index
    %c0_7 = arith.constant 0 : index
    %11 = vector.load %arg3[%c0_6, %c0_7] : memref<128x4096xf32, #tpu.memory_space<vmem>>, vector<128x4096xf32>
    %cst = arith.constant dense<0.000000e+00> : vector<8x4096xf32>
    %12 = tpu.matmul %0, %11, %cst {dimension_numbers = #tpu.dot_dimension_numbers<[1], [0], [0], [1], [0, 0, 1, 1], [], []>} : vector<8x128xf32>, vector<128x4096xf32>, vector<8x4096xf32> -> vector<8x4096xf32>
    %c0_8 = arith.constant 0 : index
    %c0_9 = arith.constant 0 : index
    %13 = vector.load %arg4[%c0_8, %c0_9] : memref<1x4096xf32, #tpu.memory_space<vmem>>, vector<1x4096xf32>
    %14 = vector.broadcast %13 : vector<1x4096xf32> to vector<8x4096xf32>
    %15 = arith.addf %12, %14 : vector<8x4096xf32>
    %16 = math.absf %15 : vector<8x4096xf32>
    %cst_10 = arith.constant -2.000000e+00 : f32
    %17 = vector.broadcast %cst_10 : f32 to vector<8x4096xf32>
    %18 = arith.mulf %17, %16 : vector<8x4096xf32>
    %19 = math.exp %18 : vector<8x4096xf32>
    %20 = math.log1p %19 : vector<8x4096xf32>
    %21 = arith.addf %16, %20 : vector<8x4096xf32>
    %cst_11 = arith.constant 0.693147182 : f32
    %22 = vector.broadcast %cst_11 : f32 to vector<8x4096xf32>
    %23 = arith.subf %21, %22 : vector<8x4096xf32>
    %cst_12 = arith.constant 1.000000e+00 : f32
    %24 = vector.broadcast %cst_12 : f32 to vector<8x4096xf32>
    %25 = arith.subf %24, %19 : vector<8x4096xf32>
    %cst_13 = arith.constant 1.000000e+00 : f32
    %26 = vector.broadcast %cst_13 : f32 to vector<8x4096xf32>
    %27 = arith.addf %26, %19 : vector<8x4096xf32>
    %28 = tpu.reciprocal %27 {approx = true} : vector<8x4096xf32> -> vector<8x4096xf32>
    %29 = arith.mulf %25, %28 : vector<8x4096xf32>
    %cst_14 = arith.constant 0.000000e+00 : f32
    %30 = vector.broadcast %cst_14 : f32 to vector<8x4096xf32>
    %31 = arith.cmpf olt, %15, %30 : vector<8x4096xf32>
    %cst_15 = arith.constant 0.000000e+00 : f32
    %32 = vector.broadcast %cst_15 : f32 to vector<8x4096xf32>
    %33 = arith.subf %32, %29 : vector<8x4096xf32>
    %34 = arith.select %31, %33, %29 : vector<8x4096xi1>, vector<8x4096xf32>
    %cst_16 = arith.constant dense<0.000000e+00> : vector<4096xf32>
    %35 = vector.multi_reduction <add>, %23, %cst_16 [0] : vector<8x4096xf32> to vector<4096xf32>
    %36 = vector.shape_cast %35 : vector<4096xf32> to vector<1x4096xf32>
    %37 = vector.extract_strided_slice %36 {offsets = [0, 0], sizes = [1, 128], strides = [1, 1]} : vector<1x4096xf32> to vector<1x128xf32>
    %38 = vector.extract_strided_slice %36 {offsets = [0, 128], sizes = [1, 128], strides = [1, 1]} : vector<1x4096xf32> to vector<1x128xf32>
    %39 = arith.addf %37, %38 : vector<1x128xf32>
    %40 = vector.extract_strided_slice %36 {offsets = [0, 256], sizes = [1, 128], strides = [1, 1]} : vector<1x4096xf32> to vector<1x128xf32>
    %41 = arith.addf %39, %40 : vector<1x128xf32>
    %42 = vector.extract_strided_slice %36 {offsets = [0, 384], sizes = [1, 128], strides = [1, 1]} : vector<1x4096xf32> to vector<1x128xf32>
    %43 = arith.addf %41, %42 : vector<1x128xf32>
    %44 = vector.extract_strided_slice %36 {offsets = [0, 512], sizes = [1, 128], strides = [1, 1]} : vector<1x4096xf32> to vector<1x128xf32>
    %45 = arith.addf %43, %44 : vector<1x128xf32>
    %46 = vector.extract_strided_slice %36 {offsets = [0, 640], sizes = [1, 128], strides = [1, 1]} : vector<1x4096xf32> to vector<1x128xf32>
    %47 = arith.addf %45, %46 : vector<1x128xf32>
    %48 = vector.extract_strided_slice %36 {offsets = [0, 768], sizes = [1, 128], strides = [1, 1]} : vector<1x4096xf32> to vector<1x128xf32>
    %49 = arith.addf %47, %48 : vector<1x128xf32>
    %50 = vector.extract_strided_slice %36 {offsets = [0, 896], sizes = [1, 128], strides = [1, 1]} : vector<1x4096xf32> to vector<1x128xf32>
    %51 = arith.addf %49, %50 : vector<1x128xf32>
    %52 = vector.extract_strided_slice %36 {offsets = [0, 1024], sizes = [1, 128], strides = [1, 1]} : vector<1x4096xf32> to vector<1x128xf32>
    %53 = arith.addf %51, %52 : vector<1x128xf32>
    %54 = vector.extract_strided_slice %36 {offsets = [0, 1152], sizes = [1, 128], strides = [1, 1]} : vector<1x4096xf32> to vector<1x128xf32>
    %55 = arith.addf %53, %54 : vector<1x128xf32>
    %56 = vector.extract_strided_slice %36 {offsets = [0, 1280], sizes = [1, 128], strides = [1, 1]} : vector<1x4096xf32> to vector<1x128xf32>
    %57 = arith.addf %55, %56 : vector<1x128xf32>
    %58 = vector.extract_strided_slice %36 {offsets = [0, 1408], sizes = [1, 128], strides = [1, 1]} : vector<1x4096xf32> to vector<1x128xf32>
    %59 = arith.addf %57, %58 : vector<1x128xf32>
    %60 = vector.extract_strided_slice %36 {offsets = [0, 1536], sizes = [1, 128], strides = [1, 1]} : vector<1x4096xf32> to vector<1x128xf32>
    %61 = arith.addf %59, %60 : vector<1x128xf32>
    %62 = vector.extract_strided_slice %36 {offsets = [0, 1664], sizes = [1, 128], strides = [1, 1]} : vector<1x4096xf32> to vector<1x128xf32>
    %63 = arith.addf %61, %62 : vector<1x128xf32>
    %64 = vector.extract_strided_slice %36 {offsets = [0, 1792], sizes = [1, 128], strides = [1, 1]} : vector<1x4096xf32> to vector<1x128xf32>
    %65 = arith.addf %63, %64 : vector<1x128xf32>
    %66 = vector.extract_strided_slice %36 {offsets = [0, 1920], sizes = [1, 128], strides = [1, 1]} : vector<1x4096xf32> to vector<1x128xf32>
    %67 = arith.addf %65, %66 : vector<1x128xf32>
    %68 = vector.extract_strided_slice %36 {offsets = [0, 2048], sizes = [1, 128], strides = [1, 1]} : vector<1x4096xf32> to vector<1x128xf32>
    %69 = arith.addf %67, %68 : vector<1x128xf32>
    %70 = vector.extract_strided_slice %36 {offsets = [0, 2176], sizes = [1, 128], strides = [1, 1]} : vector<1x4096xf32> to vector<1x128xf32>
    %71 = arith.addf %69, %70 : vector<1x128xf32>
    %72 = vector.extract_strided_slice %36 {offsets = [0, 2304], sizes = [1, 128], strides = [1, 1]} : vector<1x4096xf32> to vector<1x128xf32>
    %73 = arith.addf %71, %72 : vector<1x128xf32>
    %74 = vector.extract_strided_slice %36 {offsets = [0, 2432], sizes = [1, 128], strides = [1, 1]} : vector<1x4096xf32> to vector<1x128xf32>
    %75 = arith.addf %73, %74 : vector<1x128xf32>
    %76 = vector.extract_strided_slice %36 {offsets = [0, 2560], sizes = [1, 128], strides = [1, 1]} : vector<1x4096xf32> to vector<1x128xf32>
    %77 = arith.addf %75, %76 : vector<1x128xf32>
    %78 = vector.extract_strided_slice %36 {offsets = [0, 2688], sizes = [1, 128], strides = [1, 1]} : vector<1x4096xf32> to vector<1x128xf32>
    %79 = arith.addf %77, %78 : vector<1x128xf32>
    %80 = vector.extract_strided_slice %36 {offsets = [0, 2816], sizes = [1, 128], strides = [1, 1]} : vector<1x4096xf32> to vector<1x128xf32>
    %81 = arith.addf %79, %80 : vector<1x128xf32>
    %82 = vector.extract_strided_slice %36 {offsets = [0, 2944], sizes = [1, 128], strides = [1, 1]} : vector<1x4096xf32> to vector<1x128xf32>
    %83 = arith.addf %81, %82 : vector<1x128xf32>
    %84 = vector.extract_strided_slice %36 {offsets = [0, 3072], sizes = [1, 128], strides = [1, 1]} : vector<1x4096xf32> to vector<1x128xf32>
    %85 = arith.addf %83, %84 : vector<1x128xf32>
    %86 = vector.extract_strided_slice %36 {offsets = [0, 3200], sizes = [1, 128], strides = [1, 1]} : vector<1x4096xf32> to vector<1x128xf32>
    %87 = arith.addf %85, %86 : vector<1x128xf32>
    %88 = vector.extract_strided_slice %36 {offsets = [0, 3328], sizes = [1, 128], strides = [1, 1]} : vector<1x4096xf32> to vector<1x128xf32>
    %89 = arith.addf %87, %88 : vector<1x128xf32>
    %90 = vector.extract_strided_slice %36 {offsets = [0, 3456], sizes = [1, 128], strides = [1, 1]} : vector<1x4096xf32> to vector<1x128xf32>
    %91 = arith.addf %89, %90 : vector<1x128xf32>
    %92 = vector.extract_strided_slice %36 {offsets = [0, 3584], sizes = [1, 128], strides = [1, 1]} : vector<1x4096xf32> to vector<1x128xf32>
    %93 = arith.addf %91, %92 : vector<1x128xf32>
    %94 = vector.extract_strided_slice %36 {offsets = [0, 3712], sizes = [1, 128], strides = [1, 1]} : vector<1x4096xf32> to vector<1x128xf32>
    %95 = arith.addf %93, %94 : vector<1x128xf32>
    %96 = vector.extract_strided_slice %36 {offsets = [0, 3840], sizes = [1, 128], strides = [1, 1]} : vector<1x4096xf32> to vector<1x128xf32>
    %97 = arith.addf %95, %96 : vector<1x128xf32>
    %98 = vector.extract_strided_slice %36 {offsets = [0, 3968], sizes = [1, 128], strides = [1, 1]} : vector<1x4096xf32> to vector<1x128xf32>
    %99 = arith.addf %97, %98 : vector<1x128xf32>
    %100 = tpu.concatenate %99, %99, %99, %99, %99, %99, %99, %99, %99, %99, %99, %99, %99, %99, %99, %99 in 1 : vector<1x128xf32>, vector<1x128xf32>, vector<1x128xf32>, vector<1x128xf32>, vector<1x128xf32>, vector<1x128xf32>, vector<1x128xf32>, vector<1x128xf32>, vector<1x128xf32>, vector<1x128xf32>, vector<1x128xf32>, vector<1x128xf32>, vector<1x128xf32>, vector<1x128xf32>, vector<1x128xf32>, vector<1x128xf32> -> vector<1x2048xf32>
    %101 = tpu.concatenate %99, %99, %99, %99, %99, %99, %99, %99, %99, %99, %99, %99, %99, %99, %99, %99 in 1 : vector<1x128xf32>, vector<1x128xf32>, vector<1x128xf32>, vector<1x128xf32>, vector<1x128xf32>, vector<1x128xf32>, vector<1x128xf32>, vector<1x128xf32>, vector<1x128xf32>, vector<1x128xf32>, vector<1x128xf32>, vector<1x128xf32>, vector<1x128xf32>, vector<1x128xf32>, vector<1x128xf32>, vector<1x128xf32> -> vector<1x2048xf32>
    %102 = tpu.concatenate %100, %101 in 1 : vector<1x2048xf32>, vector<1x2048xf32> -> vector<1x4096xf32>
    %103 = vector.broadcast %102 : vector<1x4096xf32> to vector<8x4096xf32>
    %104 = arith.mulf %34, %103 : vector<8x4096xf32>
    %c0_17 = arith.constant 0 : index
    %c0_18 = arith.constant 0 : index
    %c0_19 = arith.constant 0 : index
    %105 = vector.load %arg7[%c0_17, %c0_18, %c0_19] : memref<1x8x128xf32, #tpu.memory_space<vmem>>, vector<1x8x128xf32>
    %106 = vector.shape_cast %105 : vector<1x8x128xf32> to vector<8x128xf32>
    %cst_20 = arith.constant dense<0.000000e+00> : vector<8x128xf32>
    %107 = tpu.matmul %104, %11, %cst_20 {dimension_numbers = #tpu.dot_dimension_numbers<[1], [1], [0], [0], [0, 0, 1, 0], [], []>} : vector<8x4096xf32>, vector<128x4096xf32>, vector<8x128xf32> -> vector<8x128xf32>
    %108 = arith.addf %106, %107 : vector<8x128xf32>
    %c0_21 = arith.constant 0 : index
    %c0_22 = arith.constant 0 : index
    %c0_23 = arith.constant 0 : index
    %109 = vector.load %arg7[%c0_21, %c0_22, %c0_23] : memref<1x8x128xf32, #tpu.memory_space<vmem>>, vector<1x8x128xf32>
    %110 = vector.shape_cast %109 : vector<1x8x128xf32> to vector<8x128xf32>
    %111 = vector.shape_cast %108 : vector<8x128xf32> to vector<1x8x128xf32>
    tpu.vector_store %arg7[%c0_21, %c0_22, %c0_23], %111 {strides = array<i32>} : memref<1x8x128xf32, #tpu.memory_space<vmem>>, vector<1x8x128xf32>,
    return
  }
  func.func @transform_0(%arg0: i32, %arg1: i32) -> (i32, i32) {
    %c0_i32 = arith.constant 0 : i32
    %c0_i32_0 = arith.constant 0 : i32
    %c0_i32_1 = arith.constant 0 : i32
    return %c0_i32, %c0_i32_0 : i32, i32
  }
  func.func @transform_1(%arg0: i32, %arg1: i32) -> (i32, i32) {
    %c1_i32 = arith.constant 1 : i32
    %0 = arith.muli %arg0, %c1_i32 : i32
    %1 = arith.addi %0, %arg1 : i32
    %c0_i32 = arith.constant 0 : i32
    %c0_i32_0 = arith.constant 0 : i32
    return %c0_i32, %1 : i32, i32
  }
  func.func @transform_2(%arg0: i32, %arg1: i32) -> (i32, i32) {
    %c1_i32 = arith.constant 1 : i32
    %0 = arith.muli %arg0, %c1_i32 : i32
    %1 = arith.addi %0, %arg1 : i32
    %c0_i32 = arith.constant 0 : i32
    %c0_i32_0 = arith.constant 0 : i32
    return %c0_i32, %1 : i32, i32
  }
  func.func @transform_3(%arg0: i32, %arg1: i32) -> (i32, i32) {
    %c0_i32 = arith.constant 0 : i32
    %c0_i32_0 = arith.constant 0 : i32
    %c0_i32_1 = arith.constant 0 : i32
    return %c0_i32, %c0_i32_0 : i32, i32
  }
  func.func @transform_4(%arg0: i32, %arg1: i32) -> (i32, i32) {
    %c0_i32 = arith.constant 0 : i32
    %c0_i32_0 = arith.constant 0 : i32
    %c0_i32_1 = arith.constant 0 : i32
    return %c0_i32, %c0_i32_0 : i32, i32
  }
  func.func @transform_5(%arg0: i32, %arg1: i32) -> (i32, i32, i32) {
    %c0_i32 = arith.constant 0 : i32
    %c0_i32_0 = arith.constant 0 : i32
    %c0_i32_1 = arith.constant 0 : i32
    return %arg0, %c0_i32, %c0_i32_0 : i32, i32, i32
  }
}

module attributes {stable_mosaic.version = 11 : i64} {
  func.func @kernel(%arg0: i32, %arg1: i32, %arg2: memref<8x128xf32, #tpu.memory_space<vmem>>, %arg3: memref<128x4096xf32, #tpu.memory_space<vmem>>, %arg4: memref<1x4096xf32, #tpu.memory_space<vmem>>, %arg5: memref<32x128xf32, #tpu.memory_space<vmem>>, %arg6: memref<1x128xf32, #tpu.memory_space<vmem>>, %arg7: memref<1x8x128xf32, #tpu.memory_space<vmem>>) attributes {dimension_semantics = [#tpu.dimension_semantics<parallel>, #tpu.dimension_semantics<arbitrary>], iteration_bounds = array<i64: 1, 1>, scalar_prefetch = 0 : i64, scratch_operands = 0 : i64, tpu.core_type = #tpu.core_type<tc>, window_params = [{pipeline_mode = #tpu.pipeline_mode<synchronous>, transform_indices = @transform_0, window_bounds = array<i64: 8, 128>}, {transform_indices = @transform_1, window_bounds = array<i64: 128, 4096>}, {transform_indices = @transform_2, window_bounds = array<i64: 1, 4096>}, {pipeline_mode = #tpu.pipeline_mode<synchronous>, transform_indices = @transform_3, window_bounds = array<i64: 32, 128>}, {pipeline_mode = #tpu.pipeline_mode<synchronous>, transform_indices = @transform_4, window_bounds = array<i64: 1, 128>}, {transform_indices = @transform_5, window_bounds = array<i64: 1, 8, 128>}]} {
    %c0 = arith.constant 0 : index
    %c0_0 = arith.constant 0 : index
    %0 = vector.load %arg2[%c0, %c0_0] : memref<8x128xf32, #tpu.memory_space<vmem>>, vector<8x128xf32>
    %c0_i32 = arith.constant 0 : i32
    %1 = arith.cmpi eq, %arg1, %c0_i32 : i32
    %c0_i32_1 = arith.constant 0 : i32
    %2 = arith.cmpi eq, %arg0, %c0_i32_1 : i32
    %3 = arith.andi %1, %2 : i1
    %4 = arith.extui %3 : i1 to i32
    %c0_i32_2 = arith.constant 0 : i32
    %5 = arith.cmpi ne, %4, %c0_i32_2 : i32
    scf.if %5 {
      %c0_24 = arith.constant 0 : index
      %c0_25 = arith.constant 0 : index
      %112 = vector.load %arg5[%c0_24, %c0_25] : memref<32x128xf32, #tpu.memory_space<vmem>>, vector<32x128xf32>
      %cst_26 = arith.constant dense<0.000000e+00> : vector<8x32xf32>
      %113 = tpu.matmul %0, %112, %cst_26 {dimension_numbers = #tpu.dot_dimension_numbers<[1], [1], [0], [0], [0, 0, 1, 0], [], []>} : vector<8x128xf32>, vector<32x128xf32>, vector<8x32xf32> -> vector<8x32xf32>
      %c0_27 = arith.constant 0 : index
      %c0_28 = arith.constant 0 : index
      %114 = vector.load %arg6[%c0_27, %c0_28] : memref<1x128xf32, #tpu.memory_space<vmem>>, vector<1x128xf32>
      %cst_29 = arith.constant dense<0.000000e+00> : vector<8x128xf32>
      %115 = tpu.matmul %113, %112, %cst_29 {dimension_numbers = #tpu.dot_dimension_numbers<[1], [0], [0], [1], [0, 0, 1, 1], [], []>} : vector<8x32xf32>, vector<32x128xf32>, vector<8x128xf32> -> vector<8x128xf32>
      %116 = vector.broadcast %114 : vector<1x128xf32> to vector<8x128xf32>
      %117 = arith.addf %116, %115 : vector<8x128xf32>
      %c0_30 = arith.constant 0 : index
      %c0_31 = arith.constant 0 : index
      %c0_32 = arith.constant 0 : index
      %118 = vector.load %arg7[%c0_30, %c0_31, %c0_32] : memref<1x8x128xf32, #tpu.memory_space<vmem>>, vector<1x8x128xf32>
      %119 = vector.shape_cast %118 : vector<1x8x128xf32> to vector<8x128xf32>
      %120 = vector.shape_cast %117 : vector<8x128xf32> to vector<1x8x128xf32>
      tpu.vector_store %arg7[%c0_30, %c0_31, %c0_32], %120 {strides = array<i32>} : memref<1x8x128xf32, #tpu.memory_space<vmem>>, vector<1x8x128xf32>,
    } else {
    }
    %c0_i32_3 = arith.constant 0 : i32
    %6 = arith.cmpi eq, %arg1, %c0_i32_3 : i32
    %c0_i32_4 = arith.constant 0 : i32
    %7 = arith.cmpi sgt, %arg0, %c0_i32_4 : i32
    %8 = arith.andi %6, %7 : i1
    %9 = arith.extui %8 : i1 to i32
    %c0_i32_5 = arith.constant 0 : i32
    %10 = arith.cmpi ne, %9, %c0_i32_5 : i32
    scf.if %10 {
      %cst_24 = arith.constant 0.000000e+00 : f32
      %112 = vector.broadcast %cst_24 : f32 to vector<8x128xf32>
      %c0_25 = arith.constant 0 : index
      %c0_26 = arith.constant 0 : index
      %c0_27 = arith.constant 0 : index
      %113 = vector.load %arg7[%c0_25, %c0_26, %c0_27] : memref<1x8x128xf32, #tpu.memory_space<vmem>>, vector<1x8x128xf32>
      %114 = vector.shape_cast %113 : vector<1x8x128xf32> to vector<8x128xf32>
      %115 = vector.shape_cast %112 : vector<8x128xf32> to vector<1x8x128xf32>
      tpu.vector_store %arg7[%c0_25, %c0_26, %c0_27], %115 {strides = array<i32>} : memref<1x8x128xf32, #tpu.memory_space<vmem>>, vector<1x8x128xf32>,
    } else {
    }
    %c0_6 = arith.constant 0 : index
    %c0_7 = arith.constant 0 : index
    %11 = vector.load %arg3[%c0_6, %c0_7] : memref<128x4096xf32, #tpu.memory_space<vmem>>, vector<128x4096xf32>
    %cst = arith.constant dense<0.000000e+00> : vector<8x4096xf32>
    %12 = tpu.matmul %0, %11, %cst {dimension_numbers = #tpu.dot_dimension_numbers<[1], [0], [0], [1], [0, 0, 1, 1], [], []>} : vector<8x128xf32>, vector<128x4096xf32>, vector<8x4096xf32> -> vector<8x4096xf32>
    %c0_8 = arith.constant 0 : index
    %c0_9 = arith.constant 0 : index
    %13 = vector.load %arg4[%c0_8, %c0_9] : memref<1x4096xf32, #tpu.memory_space<vmem>>, vector<1x4096xf32>
    %14 = vector.broadcast %13 : vector<1x4096xf32> to vector<8x4096xf32>
    %15 = arith.addf %12, %14 : vector<8x4096xf32>
    %16 = math.absf %15 : vector<8x4096xf32>
    %cst_10 = arith.constant -2.000000e+00 : f32
    %17 = vector.broadcast %cst_10 : f32 to vector<8x4096xf32>
    %18 = arith.mulf %17, %16 : vector<8x4096xf32>
    %19 = math.exp %18 : vector<8x4096xf32>
    %20 = math.log1p %19 : vector<8x4096xf32>
    %21 = arith.addf %16, %20 : vector<8x4096xf32>
    %cst_11 = arith.constant 0.693147182 : f32
    %22 = vector.broadcast %cst_11 : f32 to vector<8x4096xf32>
    %23 = arith.subf %21, %22 : vector<8x4096xf32>
    %cst_12 = arith.constant 1.000000e+00 : f32
    %24 = vector.broadcast %cst_12 : f32 to vector<8x4096xf32>
    %25 = arith.subf %24, %19 : vector<8x4096xf32>
    %cst_13 = arith.constant 1.000000e+00 : f32
    %26 = vector.broadcast %cst_13 : f32 to vector<8x4096xf32>
    %27 = arith.addf %26, %19 : vector<8x4096xf32>
    %28 = tpu.reciprocal %27 {approx = true} : vector<8x4096xf32> -> vector<8x4096xf32>
    %29 = arith.mulf %25, %28 : vector<8x4096xf32>
    %cst_14 = arith.constant 0.000000e+00 : f32
    %30 = vector.broadcast %cst_14 : f32 to vector<8x4096xf32>
    %31 = arith.cmpf olt, %15, %30 : vector<8x4096xf32>
    %cst_15 = arith.constant 0.000000e+00 : f32
    %32 = vector.broadcast %cst_15 : f32 to vector<8x4096xf32>
    %33 = arith.subf %32, %29 : vector<8x4096xf32>
    %34 = arith.select %31, %33, %29 : vector<8x4096xi1>, vector<8x4096xf32>
    %cst_16 = arith.constant dense<0.000000e+00> : vector<4096xf32>
    %35 = vector.multi_reduction <add>, %23, %cst_16 [0] : vector<8x4096xf32> to vector<4096xf32>
    %36 = vector.shape_cast %35 : vector<4096xf32> to vector<1x4096xf32>
    %37 = vector.extract_strided_slice %36 {offsets = [0, 0], sizes = [1, 128], strides = [1, 1]} : vector<1x4096xf32> to vector<1x128xf32>
    %38 = vector.extract_strided_slice %36 {offsets = [0, 128], sizes = [1, 128], strides = [1, 1]} : vector<1x4096xf32> to vector<1x128xf32>
    %39 = arith.addf %37, %38 : vector<1x128xf32>
    %40 = vector.extract_strided_slice %36 {offsets = [0, 256], sizes = [1, 128], strides = [1, 1]} : vector<1x4096xf32> to vector<1x128xf32>
    %41 = arith.addf %39, %40 : vector<1x128xf32>
    %42 = vector.extract_strided_slice %36 {offsets = [0, 384], sizes = [1, 128], strides = [1, 1]} : vector<1x4096xf32> to vector<1x128xf32>
    %43 = arith.addf %41, %42 : vector<1x128xf32>
    %44 = vector.extract_strided_slice %36 {offsets = [0, 512], sizes = [1, 128], strides = [1, 1]} : vector<1x4096xf32> to vector<1x128xf32>
    %45 = arith.addf %43, %44 : vector<1x128xf32>
    %46 = vector.extract_strided_slice %36 {offsets = [0, 640], sizes = [1, 128], strides = [1, 1]} : vector<1x4096xf32> to vector<1x128xf32>
    %47 = arith.addf %45, %46 : vector<1x128xf32>
    %48 = vector.extract_strided_slice %36 {offsets = [0, 768], sizes = [1, 128], strides = [1, 1]} : vector<1x4096xf32> to vector<1x128xf32>
    %49 = arith.addf %47, %48 : vector<1x128xf32>
    %50 = vector.extract_strided_slice %36 {offsets = [0, 896], sizes = [1, 128], strides = [1, 1]} : vector<1x4096xf32> to vector<1x128xf32>
    %51 = arith.addf %49, %50 : vector<1x128xf32>
    %52 = vector.extract_strided_slice %36 {offsets = [0, 1024], sizes = [1, 128], strides = [1, 1]} : vector<1x4096xf32> to vector<1x128xf32>
    %53 = arith.addf %51, %52 : vector<1x128xf32>
    %54 = vector.extract_strided_slice %36 {offsets = [0, 1152], sizes = [1, 128], strides = [1, 1]} : vector<1x4096xf32> to vector<1x128xf32>
    %55 = arith.addf %53, %54 : vector<1x128xf32>
    %56 = vector.extract_strided_slice %36 {offsets = [0, 1280], sizes = [1, 128], strides = [1, 1]} : vector<1x4096xf32> to vector<1x128xf32>
    %57 = arith.addf %55, %56 : vector<1x128xf32>
    %58 = vector.extract_strided_slice %36 {offsets = [0, 1408], sizes = [1, 128], strides = [1, 1]} : vector<1x4096xf32> to vector<1x128xf32>
    %59 = arith.addf %57, %58 : vector<1x128xf32>
    %60 = vector.extract_strided_slice %36 {offsets = [0, 1536], sizes = [1, 128], strides = [1, 1]} : vector<1x4096xf32> to vector<1x128xf32>
    %61 = arith.addf %59, %60 : vector<1x128xf32>
    %62 = vector.extract_strided_slice %36 {offsets = [0, 1664], sizes = [1, 128], strides = [1, 1]} : vector<1x4096xf32> to vector<1x128xf32>
    %63 = arith.addf %61, %62 : vector<1x128xf32>
    %64 = vector.extract_strided_slice %36 {offsets = [0, 1792], sizes = [1, 128], strides = [1, 1]} : vector<1x4096xf32> to vector<1x128xf32>
    %65 = arith.addf %63, %64 : vector<1x128xf32>
    %66 = vector.extract_strided_slice %36 {offsets = [0, 1920], sizes = [1, 128], strides = [1, 1]} : vector<1x4096xf32> to vector<1x128xf32>
    %67 = arith.addf %65, %66 : vector<1x128xf32>
    %68 = vector.extract_strided_slice %36 {offsets = [0, 2048], sizes = [1, 128], strides = [1, 1]} : vector<1x4096xf32> to vector<1x128xf32>
    %69 = arith.addf %67, %68 : vector<1x128xf32>
    %70 = vector.extract_strided_slice %36 {offsets = [0, 2176], sizes = [1, 128], strides = [1, 1]} : vector<1x4096xf32> to vector<1x128xf32>
    %71 = arith.addf %69, %70 : vector<1x128xf32>
    %72 = vector.extract_strided_slice %36 {offsets = [0, 2304], sizes = [1, 128], strides = [1, 1]} : vector<1x4096xf32> to vector<1x128xf32>
    %73 = arith.addf %71, %72 : vector<1x128xf32>
    %74 = vector.extract_strided_slice %36 {offsets = [0, 2432], sizes = [1, 128], strides = [1, 1]} : vector<1x4096xf32> to vector<1x128xf32>
    %75 = arith.addf %73, %74 : vector<1x128xf32>
    %76 = vector.extract_strided_slice %36 {offsets = [0, 2560], sizes = [1, 128], strides = [1, 1]} : vector<1x4096xf32> to vector<1x128xf32>
    %77 = arith.addf %75, %76 : vector<1x128xf32>
    %78 = vector.extract_strided_slice %36 {offsets = [0, 2688], sizes = [1, 128], strides = [1, 1]} : vector<1x4096xf32> to vector<1x128xf32>
    %79 = arith.addf %77, %78 : vector<1x128xf32>
    %80 = vector.extract_strided_slice %36 {offsets = [0, 2816], sizes = [1, 128], strides = [1, 1]} : vector<1x4096xf32> to vector<1x128xf32>
    %81 = arith.addf %79, %80 : vector<1x128xf32>
    %82 = vector.extract_strided_slice %36 {offsets = [0, 2944], sizes = [1, 128], strides = [1, 1]} : vector<1x4096xf32> to vector<1x128xf32>
    %83 = arith.addf %81, %82 : vector<1x128xf32>
    %84 = vector.extract_strided_slice %36 {offsets = [0, 3072], sizes = [1, 128], strides = [1, 1]} : vector<1x4096xf32> to vector<1x128xf32>
    %85 = arith.addf %83, %84 : vector<1x128xf32>
    %86 = vector.extract_strided_slice %36 {offsets = [0, 3200], sizes = [1, 128], strides = [1, 1]} : vector<1x4096xf32> to vector<1x128xf32>
    %87 = arith.addf %85, %86 : vector<1x128xf32>
    %88 = vector.extract_strided_slice %36 {offsets = [0, 3328], sizes = [1, 128], strides = [1, 1]} : vector<1x4096xf32> to vector<1x128xf32>
    %89 = arith.addf %87, %88 : vector<1x128xf32>
    %90 = vector.extract_strided_slice %36 {offsets = [0, 3456], sizes = [1, 128], strides = [1, 1]} : vector<1x4096xf32> to vector<1x128xf32>
    %91 = arith.addf %89, %90 : vector<1x128xf32>
    %92 = vector.extract_strided_slice %36 {offsets = [0, 3584], sizes = [1, 128], strides = [1, 1]} : vector<1x4096xf32> to vector<1x128xf32>
    %93 = arith.addf %91, %92 : vector<1x128xf32>
    %94 = vector.extract_strided_slice %36 {offsets = [0, 3712], sizes = [1, 128], strides = [1, 1]} : vector<1x4096xf32> to vector<1x128xf32>
    %95 = arith.addf %93, %94 : vector<1x128xf32>
    %96 = vector.extract_strided_slice %36 {offsets = [0, 3840], sizes = [1, 128], strides = [1, 1]} : vector<1x4096xf32> to vector<1x128xf32>
    %97 = arith.addf %95, %96 : vector<1x128xf32>
    %98 = vector.extract_strided_slice %36 {offsets = [0, 3968], sizes = [1, 128], strides = [1, 1]} : vector<1x4096xf32> to vector<1x128xf32>
    %99 = arith.addf %97, %98 : vector<1x128xf32>
    %100 = tpu.concatenate %99, %99, %99, %99, %99, %99, %99, %99, %99, %99, %99, %99, %99, %99, %99, %99 in 1 : vector<1x128xf32>, vector<1x128xf32>, vector<1x128xf32>, vector<1x128xf32>, vector<1x128xf32>, vector<1x128xf32>, vector<1x128xf32>, vector<1x128xf32>, vector<1x128xf32>, vector<1x128xf32>, vector<1x128xf32>, vector<1x128xf32>, vector<1x128xf32>, vector<1x128xf32>, vector<1x128xf32>, vector<1x128xf32> -> vector<1x2048xf32>
    %101 = tpu.concatenate %99, %99, %99, %99, %99, %99, %99, %99, %99, %99, %99, %99, %99, %99, %99, %99 in 1 : vector<1x128xf32>, vector<1x128xf32>, vector<1x128xf32>, vector<1x128xf32>, vector<1x128xf32>, vector<1x128xf32>, vector<1x128xf32>, vector<1x128xf32>, vector<1x128xf32>, vector<1x128xf32>, vector<1x128xf32>, vector<1x128xf32>, vector<1x128xf32>, vector<1x128xf32>, vector<1x128xf32>, vector<1x128xf32> -> vector<1x2048xf32>
    %102 = tpu.concatenate %100, %101 in 1 : vector<1x2048xf32>, vector<1x2048xf32> -> vector<1x4096xf32>
    %103 = vector.broadcast %102 : vector<1x4096xf32> to vector<8x4096xf32>
    %104 = arith.mulf %34, %103 : vector<8x4096xf32>
    %c0_17 = arith.constant 0 : index
    %c0_18 = arith.constant 0 : index
    %c0_19 = arith.constant 0 : index
    %105 = vector.load %arg7[%c0_17, %c0_18, %c0_19] : memref<1x8x128xf32, #tpu.memory_space<vmem>>, vector<1x8x128xf32>
    %106 = vector.shape_cast %105 : vector<1x8x128xf32> to vector<8x128xf32>
    %cst_20 = arith.constant dense<0.000000e+00> : vector<8x128xf32>
    %107 = tpu.matmul %104, %11, %cst_20 {dimension_numbers = #tpu.dot_dimension_numbers<[1], [1], [0], [0], [0, 0, 1, 0], [], []>} : vector<8x4096xf32>, vector<128x4096xf32>, vector<8x128xf32> -> vector<8x128xf32>
    %108 = arith.addf %106, %107 : vector<8x128xf32>
    %c0_21 = arith.constant 0 : index
    %c0_22 = arith.constant 0 : index
    %c0_23 = arith.constant 0 : index
    %109 = vector.load %arg7[%c0_21, %c0_22, %c0_23] : memref<1x8x128xf32, #tpu.memory_space<vmem>>, vector<1x8x128xf32>
    %110 = vector.shape_cast %109 : vector<1x8x128xf32> to vector<8x128xf32>
    %111 = vector.shape_cast %108 : vector<8x128xf32> to vector<1x8x128xf32>
    tpu.vector_store %arg7[%c0_21, %c0_22, %c0_23], %111 {strides = array<i32>} : memref<1x8x128xf32, #tpu.memory_space<vmem>>, vector<1x8x128xf32>,
    return
  }
  func.func @transform_0(%arg0: i32, %arg1: i32) -> (i32, i32) {
    %c0_i32 = arith.constant 0 : i32
    %c0_i32_0 = arith.constant 0 : i32
    %c0_i32_1 = arith.constant 0 : i32
    return %c0_i32, %c0_i32_0 : i32, i32
  }
  func.func @transform_1(%arg0: i32, %arg1: i32) -> (i32, i32) {
    %c1_i32 = arith.constant 1 : i32
    %0 = arith.muli %arg0, %c1_i32 : i32
    %1 = arith.addi %0, %arg1 : i32
    %c0_i32 = arith.constant 0 : i32
    %c0_i32_0 = arith.constant 0 : i32
    return %c0_i32, %1 : i32, i32
  }
  func.func @transform_2(%arg0: i32, %arg1: i32) -> (i32, i32) {
    %c1_i32 = arith.constant 1 : i32
    %0 = arith.muli %arg0, %c1_i32 : i32
    %1 = arith.addi %0, %arg1 : i32
    %c0_i32 = arith.constant 0 : i32
    %c0_i32_0 = arith.constant 0 : i32
    return %c0_i32, %1 : i32, i32
  }
  func.func @transform_3(%arg0: i32, %arg1: i32) -> (i32, i32) {
    %c0_i32 = arith.constant 0 : i32
    %c0_i32_0 = arith.constant 0 : i32
    %c0_i32_1 = arith.constant 0 : i32
    return %c0_i32, %c0_i32_0 : i32, i32
  }
  func.func @transform_4(%arg0: i32, %arg1: i32) -> (i32, i32) {
    %c0_i32 = arith.constant 0 : i32
    %c0_i32_0 = arith.constant 0 : i32
    %c0_i32_1 = arith.constant 0 : i32
    return %c0_i32, %c0_i32_0 : i32, i32
  }
  func.func @transform_5(%arg0: i32, %arg1: i32) -> (i32, i32, i32) {
    %c0_i32 = arith.constant 0 : i32
    %c0_i32_0 = arith.constant 0 : i32
    %c0_i32_1 = arith.constant 0 : i32
    return %arg0, %c0_i32, %c0_i32_0 : i32, i32, i32
  }
}

</mosaic_0001>

<bundles_post_ra>
// kernel: tpu_custom_call.1
= control target key start
LH: loop header
LB: loop body
LE: loop exit
PB: predicated region body
PF: predicated region fallthrough
CT: control target
= control target key end

     0   :  { %10 = vsyncpa [#allocation3], 0  ;;  %s7766_s0 = inlined_call_operand.hbm [shape: f32[8,128], index: 0, kind: input, shape index: {}]   ;;  %s7767_s1 = inlined_call_operand.hbm [shape: f32[128,4096], index: 1, kind: input, shape index: {}]   ;;  %s7768_s2 = inlined_call_operand.hbm [shape: f32[1,4096], index: 2, kind: input, shape index: {}]   ;;  %s7769_s3 = inlined_call_operand.hbm [shape: f32[32,128], index: 3, kind: input, shape index: {}]   ;;  %s7770_s4 = inlined_call_operand.hbm [shape: f32[1,128], index: 4, kind: input, shape index: {}]   ;;  %s7771_s5 = inlined_call_operand.hbm [shape: f32[1,8,128], index: 5, kind: output, shape index: {}]  }
   0x1   :  { %11 = vsyncpa [#allocation6], 0 }
   0x2   :  { %12 = vsyncpa [#allocation9], 0 }
   0x3   :  { %13 = vsyncpa [#allocation4], 0  ;;  %s5672_s18 = smov [#allocation5]   ;;  %s5532_s22 = scalar_lea.hbm %s7767_s1, 65536 }
   0x4   :  { %s33_s19 = sshll.u32 %s5672_s18, 4  ;;  %p5533_p0 = scmp.ne.s32.totalorder %s7767_s1, %s5532_s22  ;;  %s34_s19 = int_to_ptr.vmem [resolvable:$true] %s33_s19 }
   0x5   :  { %p5536_p1 = scmp.lt.u32.totalorder %s5532_s22, %s7767_s1 }
   0x7   :  { %p5538_p2 = pnand %p5536_p1, %p5533_p0 }
   0x9   :  { %5541 = shalt.err (!%p5538_p2)
}
   0xa   :  { %s5542_s27 = scalar_lea.vmem %s34_s19, 65536  ;;  %p5547_p4 = scmp.lt.s32.totalorder %s34_s19, %s34_s19 }
   0xb   :  { %p5543_p3 = scmp.ne.s32.totalorder %s34_s19, %s5542_s27  ;;  %p5548_p5 = scmp.lt.s32.totalorder %s5542_s27, %s5542_s27 }
   0xd   :  { %p5549_p6 = por %p5548_p5, %p5547_p4 }
   0xf   :  { %p5550_p7 = pnand %p5549_p6, %p5543_p3 }
  0x11   :  { %5553 = shalt.err (!%p5550_p7)
}
  0x12   :  { %s5673_s28 = smov 4096   ;;  %s5674_s29 = smov 256  }
  0x13   :  { %39 = dma.hbm_to_vmem [thread:$0]  %s7767_s1, 65536, %s34_s19, [#allocation6], %s5673_s28, %s5673_s28, %s5674_s29  }
  0x14   :  { %s5675_s7 = smov [#allocation8]   ;;  %s5554_s11 = scalar_lea.hbm %s7769_s3, 512 }
  0x15   :  { %s59_s8 = sshll.u32 %s5675_s7, 4  ;;  %p5555_p8 = scmp.ne.s32.totalorder %s7769_s3, %s5554_s11  ;;  %s60_s8 = int_to_ptr.vmem [resolvable:$true] %s59_s8 }
  0x16   :  { %p5558_p9 = scmp.lt.u32.totalorder %s5554_s11, %s7769_s3 }
  0x18   :  { %p5560_p10 = pnand %p5558_p9, %p5555_p8 }
  0x1a   :  { %5563 = shalt.err (!%p5560_p10)
}
  0x1b   :  { %s5564_s16 = scalar_lea.vmem %s60_s8, 512  ;;  %p5569_p12 = scmp.lt.s32.totalorder %s60_s8, %s60_s8 }
  0x1c   :  { %p5565_p11 = scmp.ne.s32.totalorder %s60_s8, %s5564_s16  ;;  %p5570_p13 = scmp.lt.s32.totalorder %s5564_s16, %s5564_s16 }
  0x1e   :  { %p5571_p0 = por %p5570_p13, %p5569_p12 }
  0x20   :  { %p5572_p1 = pnand %p5571_p0, %p5565_p11 }
  0x22   :  { %5575 = shalt.err (!%p5572_p1)
}
  0x23   :  { %s5676_s1 = smov 128   ;;  %s5677_s17 = smov 8  }
  0x24   :  { %65 = dma.hbm_to_vmem [thread:$0]  %s7769_s3, 512, %s60_s8, [#allocation9], %s5676_s1, %s5676_s1, %s5677_s17  }
  0x25   :  { %s5678_s20 = smov [#allocation2]   ;;  %s5679_s22 = smov [#allocation7]  }
  0x26   :  { %s20_s21 = sshll.u32 %s5678_s20, 4  ;;  %s50_s23 = sshll.u32 %s5679_s22, 4  ;;  %s21_s21 = int_to_ptr.vmem [resolvable:$true] %s20_s21  ;;  %s51_s23 = int_to_ptr.vmem [resolvable:$true] %s50_s23 }
  0x27   :  { %s5576_s26 = scalar_lea.hbm %s7766_s0, 128 }
  0x28   :  { %p5577_p2 = scmp.ne.s32.totalorder %s7766_s0, %s5576_s26  ;;  %p5580_p3 = scmp.lt.u32.totalorder %s5576_s26, %s7766_s0 }
  0x2a   :  { %p5582_p4 = pnand %p5580_p3, %p5577_p2 }
  0x2c   :  { %5585 = shalt.err (!%p5582_p4)
}
  0x2d   :  { %s5586_s3 = scalar_lea.vmem %s21_s21, 128  ;;  %p5591_p6 = scmp.lt.s32.totalorder %s21_s21, %s21_s21 }
  0x2e   :  { %p5587_p5 = scmp.ne.s32.totalorder %s21_s21, %s5586_s3  ;;  %p5592_p7 = scmp.lt.s32.totalorder %s5586_s3, %s5586_s3 }
  0x30   :  { %p5593_p8 = por %p5592_p7, %p5591_p6 }
  0x32   :  { %p5594_p9 = pnand %p5593_p8, %p5587_p5 }
  0x34   :  { %5597 = shalt.err (!%p5594_p9)
}
  0x35   :  { %23 = dma.hbm_to_vmem [thread:$0]  %s7766_s0, 128, %s21_s21, [#allocation3]  }
  0x36   :  { %s5598_s10 = scalar_lea.hbm %s7768_s2, 512 }
  0x37   :  { %p5599_p10 = scmp.ne.s32.totalorder %s7768_s2, %s5598_s10  ;;  %p5602_p11 = scmp.lt.u32.totalorder %s5598_s10, %s7768_s2 }
  0x39   :  { %p5604_p12 = pnand %p5602_p11, %p5599_p10 }
  0x3b   :  { %5607 = shalt.err (!%p5604_p12)
}
  0x3c   :  { %s5608_s15 = scalar_lea.vmem %s51_s23, 512  ;;  %p5613_p0 = scmp.lt.s32.totalorder %s51_s23, %s51_s23 }
  0x3d   :  { %p5609_p13 = scmp.ne.s32.totalorder %s51_s23, %s5608_s15  ;;  %p5614_p1 = scmp.lt.s32.totalorder %s5608_s15, %s5608_s15 }
  0x3f   :  { %p5615_p2 = por %p5614_p1, %p5613_p0 }
  0x41   :  { %p5616_p3 = pnand %p5615_p2, %p5609_p13 }
  0x43   :  { %5619 = shalt.err (!%p5616_p3)
}
  0x44   :  { %53 = dma.hbm_to_vmem [thread:$0]  %s7768_s2, 512, %s51_s23, [#allocation6]  }
  0x45   :  { %s5680_s1 = smov [#allocation10]   ;;  %s5620_s20 = scalar_lea.hbm %s7770_s4, 16 }
  0x46   :  { %s72_s17 = sshll.u32 %s5680_s1, 4  ;;  %p5621_p4 = scmp.ne.s32.totalorder %s7770_s4, %s5620_s20  ;;  %s73_s17 = int_to_ptr.vmem [resolvable:$true] %s72_s17 }
  0x47   :  { %p5624_p5 = scmp.lt.u32.totalorder %s5620_s20, %s7770_s4 }
  0x49   :  { %p5626_p6 = pnand %p5624_p5, %p5621_p4 }
  0x4b   :  { %5629 = shalt.err (!%p5626_p6)
}
  0x4c   :  { %s5630_s26 = scalar_lea.vmem %s73_s17, 16  ;;  %s5634_s2 = scalar_lea.vmem %s73_s17, 32 }
  0x4d   :  { %p5631_p7 = scmp.ne.s32.totalorder %s73_s17, %s5630_s26  ;;  %p5635_p8 = scmp.lt.s32.totalorder %s73_s17, %s73_s17 }
  0x4e   :  { %p5636_p9 = scmp.lt.s32.totalorder %s5634_s2, %s5630_s26 }
  0x50   :  { %p5637_p10 = por %p5636_p9, %p5635_p8 }
  0x52   :  { %p5638_p11 = pnand %p5637_p10, %p5631_p7 }
  0x54   :  { %5641 = shalt.err (!%p5638_p11)
}
  0x55   :  { %75 = dma.hbm_to_vmem [thread:$0]  %s7770_s4, 16, %s73_s17, [#allocation9]  }
  0x56   :  { %5664 = dma.done.wait [#allocation3], 128  }
  0x57   :  { %5665 = vsyncadd [#allocation3], 4294967168 }
  0x58   :  { %5666 = dma.done.wait [#allocation6], 66048  }
  0x59   :  { %5667 = vsyncadd [#allocation6], 4294901248 }
  0x5a   :  { %5668 = dma.done.wait [#allocation9], 528  }
  0x5b   :  { %5669 = vsyncadd [#allocation9], 4294966768  ;;  %v5681_v0 = vmov 0.0|0.0   ;;  %vm5682_vm0 = vmmov 0   ;;  %v7773_v1 = vmov 0.0   ;;  %v102_v2 = vld [vmem:[#allocation8] sm:$0xff] }
  0x5c   :  { %4250 = vmatprep.subr.bf16.mxu0 %v5681_v0  ;;  %4236 = vmatprep.mubr.msk.f32.mxu0 %vm5682_vm0, %v7773_v1  ;;  %v103_v3 = vld [vmem:[#allocation8 + $0x8] sm:$0xff]  ;;  %v104_v5 = vld [vmem:[#allocation8 + $0x10] sm:$0xff]  ;;  %v105_v6 = vld [vmem:[#allocation8 + $0x18] sm:$0xff]  ;;  %vm177_vm1 = vcmask 261120   ;;  %s5684_s4 = smov [#allocation11]  }
  0x5d   :  { %4256 = vmatprep.subr.bf16.mxu1 %v5681_v0  ;;  %4247 = vmatprep.mubr.msk.f32.mxu1 %vm5682_vm0, %v7773_v1  ;;  %v4251_v4 = vpack.c.bf16 %v103_v3, %v102_v2  ;;  %v4254_v7 = vpack.c.bf16 %v105_v6, %v104_v5  ;;  %v268_v8 = vld [vmem:[#allocation5 + $0x18] sm:$0xff]  ;;  %v267_v11 = vld [vmem:[#allocation5 + $0x10] sm:$0xff]  ;;  %v266_v63 = vld [vmem:[#allocation5 + $0x8] sm:$0xff]  ;;  %s4173_s28 = sshll.u32 %s5684_s4, 4  ;;  %s4174_s28 = int_to_ptr.vmem [resolvable:$true] %s4173_s28 }
  0x5e   :  { %v300_v9 = vld [vmem:[#allocation5 + $0x118] sm:$0xff]  ;;  %v299_v12 = vld [vmem:[#allocation5 + $0x110] sm:$0xff]  ;;  %s5642_s29 = scalar_lea.vmem %s4174_s28, 128  ;;  %p5647_p13 = scmp.lt.s32.totalorder %s4174_s28, %s4174_s28 }
  0x5f   :  { %4252 = vmatpush3.bf16.xpose.msra.mxu0 %v4251_v4  ;;  %4258 = vmatpush3.bf16.msra.mxu1 %v4251_v4  ;;  %v5777_v10 = vpack.c.bf16 %v300_v9, %v268_v8  ;;  %v332_v13 = vld [vmem:[#allocation5 + $0x218] sm:$0xff]  ;;  %v5782_v16 = vpack.c.bf16 %v299_v12, %v267_v11  ;;  %v331_v18 = vld [vmem:[#allocation5 + $0x210] sm:$0xff]  ;;  %p5643_p12 = scmp.ne.s32.totalorder %s4174_s28, %s5642_s29  ;;  %p5648_p0 = scmp.lt.s32.totalorder %s5642_s29, %s5642_s29 }
  0x60   :  { %4253 = vmatprep.subr.bf16.mxu0 %v5681_v0  ;;  %4259 = vmatprep.subr.bf16.mxu1 %v5681_v0  ;;  %v364_v14 = vld [vmem:[#allocation5 + $0x318] sm:$0xff]  ;;  %v363_v19 = vld [vmem:[#allocation5 + $0x310] sm:$0xff]  ;;  %v298_v0 = vld [vmem:[#allocation5 + $0x108] sm:$0xff] }
  0x61   :  { %v5780_v15 = vld [vmem:[#allocation2] sm:$0xff]  ;;  %8039 = vst [vmem:[#allocation16_spill] sm:$0xff] %v5782_v16  ;;  %v5784_v17 = vpack.c.bf16 %v364_v14, %v332_v13  ;;  %v5788_v22 = vpack.c.bf16 %v363_v19, %v331_v18  ;;  %v395_v24 = vld [vmem:[#allocation5 + $0x410] sm:$0xff]  ;;  %v5837_v2 = vpack.c.bf16 %v298_v0, %v266_v63  ;;  %p5649_p1 = por %p5648_p0, %p5647_p13 }
  0x62   :  { %v396_v20 = vld [vmem:[#allocation5 + $0x418] sm:$0xff]  ;;  %v427_v25 = vld [vmem:[#allocation5 + $0x510] sm:$0xff] }
  0x63   :  { %4261 = vmatpush3.bf16.msra.mxu1 %v4254_v7  ;;  %8040 = vst [vmem:[#allocation17_spill] sm:$0xff] %v5784_v17  ;;  %v428_v21 = vld [vmem:[#allocation5 + $0x518] sm:$0xff]  ;;  %8041 = vst [vmem:[#allocation18_spill] sm:$0xff] %v5788_v22  ;;  %v5795_v28 = vpack.c.bf16 %v427_v25, %v395_v24  ;;  %v459_v30 = vld [vmem:[#allocation5 + $0x610] sm:$0xff]  ;;  %p5650_p2 = pnand %p5649_p1, %p5643_p12 }
  0x64   :  { %v5792_v23 = vpack.c.bf16 %v428_v21, %v396_v20  ;;  %v460_v26 = vld [vmem:[#allocation5 + $0x618] sm:$0xff]  ;;  %v491_v31 = vld [vmem:[#allocation5 + $0x710] sm:$0xff]  ;;  %4263 = vmatprep.subr.bf16.mxu1 %v5837_v2 }
  0x65   :  { %v492_v27 = vld [vmem:[#allocation5 + $0x718] sm:$0xff]  ;;  %8043 = vst [vmem:[#allocation20_spill] sm:$0xff] %v5795_v28  ;;  %v5801_v34 = vpack.c.bf16 %v491_v31, %v459_v30  ;;  %v523_v36 = vld [vmem:[#allocation5 + $0x810] sm:$0xff] }
  0x66   :  { %8042 = vst [vmem:[#allocation19_spill] sm:$0xff] %v5792_v23  ;;  %v5798_v29 = vpack.c.bf16 %v492_v27, %v460_v26  ;;  %v524_v32 = vld [vmem:[#allocation5 + $0x818] sm:$0xff]  ;;  %v555_v37 = vld [vmem:[#allocation5 + $0x910] sm:$0xff] }
  0x67   :  { %4255 = vmatpush3.bf16.xpose.msra.mxu0 %v4254_v7  ;;  %v556_v33 = vld [vmem:[#allocation5 + $0x918] sm:$0xff]  ;;  %8045 = vst [vmem:[#allocation22_spill] sm:$0xff] %v5801_v34  ;;  %v5807_v40 = vpack.c.bf16 %v555_v37, %v523_v36  ;;  %v587_v42 = vld [vmem:[#allocation5 + $0xa10] sm:$0xff] }
  0x68   :  { %4295 = vmatprep.subr.bf16.mxu0 %v5777_v10  ;;  %8044 = vst [vmem:[#allocation21_spill] sm:$0xff] %v5798_v29  ;;  %v5804_v35 = vpack.c.bf16 %v556_v33, %v524_v32  ;;  %v588_v38 = vld [vmem:[#allocation5 + $0xa18] sm:$0xff]  ;;  %v619_v43 = vld [vmem:[#allocation5 + $0xb10] sm:$0xff] }
  0x69   :  { %v620_v39 = vld [vmem:[#allocation5 + $0xb18] sm:$0xff]  ;;  %8047 = vst [vmem:[#allocation24_spill] sm:$0xff] %v5807_v40  ;;  %v5813_v46 = vpack.c.bf16 %v619_v43, %v587_v42  ;;  %v651_v48 = vld [vmem:[#allocation5 + $0xc10] sm:$0xff] }
  0x6a   :  { %8046 = vst [vmem:[#allocation23_spill] sm:$0xff] %v5804_v35  ;;  %v5810_v41 = vpack.c.bf16 %v620_v39, %v588_v38  ;;  %v652_v44 = vld [vmem:[#allocation5 + $0xc18] sm:$0xff]  ;;  %v683_v49 = vld [vmem:[#allocation5 + $0xd10] sm:$0xff] }
  0x6b   :  { %v684_v45 = vld [vmem:[#allocation5 + $0xd18] sm:$0xff]  ;;  %8049 = vst [vmem:[#allocation26_spill] sm:$0xff] %v5813_v46  ;;  %v5819_v52 = vpack.c.bf16 %v683_v49, %v651_v48  ;;  %v715_v54 = vld [vmem:[#allocation5 + $0xe10] sm:$0xff] }
  0x6c   :  { %8048 = vst [vmem:[#allocation25_spill] sm:$0xff] %v5810_v41  ;;  %v5816_v47 = vpack.c.bf16 %v684_v45, %v652_v44  ;;  %v716_v50 = vld [vmem:[#allocation5 + $0xe18] sm:$0xff]  ;;  %v747_v55 = vld [vmem:[#allocation5 + $0xf10] sm:$0xff] }
  0x6d   :  { %v748_v51 = vld [vmem:[#allocation5 + $0xf18] sm:$0xff]  ;;  %8051 = vst [vmem:[#allocation28_spill] sm:$0xff] %v5819_v52  ;;  %v5825_v58 = vpack.c.bf16 %v747_v55, %v715_v54  ;;  %v271_v60 = vld [vmem:[#allocation5 + $0x30] sm:$0xff] }
  0x6e   :  { %4237 = vmatmul.mubr.f32.vlgmr.msra.gmra.mrb[0].mxu0 %v5780_v15  ;;  %8050 = vst [vmem:[#allocation27_spill] sm:$0xff] %v5816_v47  ;;  %v5822_v53 = vpack.c.bf16 %v748_v51, %v716_v50  ;;  %v272_v56 = vld [vmem:[#allocation5 + $0x38] sm:$0xff]  ;;  %v303_v61 = vld [vmem:[#allocation5 + $0x130] sm:$0xff] }
  0x6f   :  { %4297 = vmatpush1.bf16.msra.mxu0 %v5782_v16  ;;  %1080 = vmatprep.mubr.f32.mxu0 %v7773_v1  ;;  %v304_v57 = vld [vmem:[#allocation5 + $0x138] sm:$0xff]  ;;  %8053 = vst [vmem:[#allocation30_spill] sm:$0xff] %v5825_v58  ;;  %v5831_v62 = vpack.c.bf16 %v303_v61, %v271_v60  ;;  %v335_v6 = vld [vmem:[#allocation5 + $0x230] sm:$0xff]  ;;  %v290_v16 = vld [vmem:[#allocation5 + $0xc8] sm:$0xff] }
  0x70   :  { %4299 = vmatprep.subr.bf16.mxu0 %v5784_v17  ;;  %8052 = vst [vmem:[#allocation29_spill] sm:$0xff] %v5822_v53  ;;  %v5828_v59 = vpack.c.bf16 %v304_v57, %v272_v56  ;;  %v336_v3 = vld [vmem:[#allocation5 + $0x238] sm:$0xff]  ;;  %v367_v7 = vld [vmem:[#allocation5 + $0x330] sm:$0xff] }
  0x71   :  { %8055 = vst [vmem:[#allocation32_spill] sm:$0xff] %v5831_v62  ;;  %v368_v4 = vld [vmem:[#allocation5 + $0x338] sm:$0xff]  ;;  %v5842_v8 = vpack.c.bf16 %v367_v7, %v335_v6  ;;  %v399_v13 = vld [vmem:[#allocation5 + $0x430] sm:$0xff] }
  0x72   :  { %8054 = vst [vmem:[#allocation31_spill] sm:$0xff] %v5828_v59  ;;  %v5840_v5 = vpack.c.bf16 %v368_v4, %v336_v3  ;;  %v400_v9 = vld [vmem:[#allocation5 + $0x438] sm:$0xff]  ;;  %v431_v14 = vld [vmem:[#allocation5 + $0x530] sm:$0xff] }
  0x73   :  { %4301 = vmatpush1.bf16.msra.mxu0 %v5788_v22  ;;  %8057 = vst [vmem:[#allocation34_spill] sm:$0xff] %v5842_v8  ;;  %v432_v11 = vld [vmem:[#allocation5 + $0x538] sm:$0xff]  ;;  %v5848_v18 = vpack.c.bf16 %v431_v14, %v399_v13  ;;  %v463_v24 = vld [vmem:[#allocation5 + $0x630] sm:$0xff]  ;;  %v317_v22 = vld [vmem:[#allocation5 + $0x1a0] sm:$0xff] }
  0x74   :  { %4303 = vmatprep.subr.bf16.mxu0 %v5792_v23  ;;  %8056 = vst [vmem:[#allocation33_spill] sm:$0xff] %v5840_v5  ;;  %v5846_v12 = vpack.c.bf16 %v432_v11, %v400_v9  ;;  %v464_v19 = vld [vmem:[#allocation5 + $0x638] sm:$0xff]  ;;  %v495_v25 = vld [vmem:[#allocation5 + $0x730] sm:$0xff] }
  0x75   :  { %8059 = vst [vmem:[#allocation36_spill] sm:$0xff] %v5848_v18  ;;  %v496_v20 = vld [vmem:[#allocation5 + $0x738] sm:$0xff]  ;;  %v5854_v26 = vpack.c.bf16 %v495_v25, %v463_v24  ;;  %v527_v32 = vld [vmem:[#allocation5 + $0x830] sm:$0xff] }
  0x76   :  { %8058 = vst [vmem:[#allocation35_spill] sm:$0xff] %v5846_v12  ;;  %v5852_v21 = vpack.c.bf16 %v496_v20, %v464_v19  ;;  %v528_v27 = vld [vmem:[#allocation5 + $0x838] sm:$0xff]  ;;  %v559_v33 = vld [vmem:[#allocation5 + $0x930] sm:$0xff] }
  0x77   :  { %4305 = vmatpush1.bf16.msra.mxu0 %v5795_v28  ;;  %8061 = vst [vmem:[#allocation38_spill] sm:$0xff] %v5854_v26  ;;  %v560_v30 = vld [vmem:[#allocation5 + $0x938] sm:$0xff]  ;;  %v5860_v36 = vpack.c.bf16 %v559_v33, %v527_v32  ;;  %v591_v42 = vld [vmem:[#allocation5 + $0xa30] sm:$0xff] }
  0x78   :  { %4307 = vmatprep.subr.bf16.mxu0 %v5798_v29  ;;  %8060 = vst [vmem:[#allocation37_spill] sm:$0xff] %v5852_v21  ;;  %v5858_v31 = vpack.c.bf16 %v560_v30, %v528_v27  ;;  %v592_v37 = vld [vmem:[#allocation5 + $0xa38] sm:$0xff]  ;;  %v623_v43 = vld [vmem:[#allocation5 + $0xb30] sm:$0xff]  ;;  %v729_v29 = vld [vmem:[#allocation5 + $0xe80] sm:$0xff] }
  0x79   :  { %8063 = vst [vmem:[#allocation40_spill] sm:$0xff] %v5860_v36  ;;  %v624_v38 = vld [vmem:[#allocation5 + $0xb38] sm:$0xff]  ;;  %v5866_v44 = vpack.c.bf16 %v623_v43, %v591_v42  ;;  %v655_v50 = vld [vmem:[#allocation5 + $0xc30] sm:$0xff] }
  0x7a   :  { %8062 = vst [vmem:[#allocation39_spill] sm:$0xff] %v5858_v31  ;;  %v5864_v39 = vpack.c.bf16 %v624_v38, %v592_v37  ;;  %v656_v45 = vld [vmem:[#allocation5 + $0xc38] sm:$0xff]  ;;  %v687_v51 = vld [vmem:[#allocation5 + $0xd30] sm:$0xff] }
  0x7b   :  { %4309 = vmatpush1.bf16.msra.mxu0 %v5801_v34  ;;  %8065 = vst [vmem:[#allocation42_spill] sm:$0xff] %v5866_v44  ;;  %v688_v48 = vld [vmem:[#allocation5 + $0xd38] sm:$0xff]  ;;  %v5872_v54 = vpack.c.bf16 %v687_v51, %v655_v50  ;;  %v719_v60 = vld [vmem:[#allocation5 + $0xe30] sm:$0xff] }
  0x7c   :  { %4311 = vmatprep.subr.bf16.mxu0 %v5804_v35  ;;  %8064 = vst [vmem:[#allocation41_spill] sm:$0xff] %v5864_v39  ;;  %v5870_v49 = vpack.c.bf16 %v688_v48, %v656_v45  ;;  %v720_v55 = vld [vmem:[#allocation5 + $0xe38] sm:$0xff]  ;;  %v751_v61 = vld [vmem:[#allocation5 + $0xf30] sm:$0xff]  ;;  %v6511_v35 = vld [vmem:[#allocation7 + $0x8] sm:$0xff] }
  0x7d   :  { %8067 = vst [vmem:[#allocation44_spill] sm:$0xff] %v5872_v54  ;;  %v752_v56 = vld [vmem:[#allocation5 + $0xf38] sm:$0xff]  ;;  %v5878_v63 = vpack.c.bf16 %v751_v61, %v719_v60  ;;  %v275_v6 = vld [vmem:[#allocation5 + $0x50] sm:$0xff] }
  0x7e   :  { %8066 = vst [vmem:[#allocation43_spill] sm:$0xff] %v5870_v49  ;;  %v5876_v57 = vpack.c.bf16 %v752_v56, %v720_v55  ;;  %v276_v0 = vld [vmem:[#allocation5 + $0x58] sm:$0xff]  ;;  %v307_v7 = vld [vmem:[#allocation5 + $0x150] sm:$0xff] }
  0x7f   :  { %4313 = vmatpush1.bf16.msra.mxu0 %v5807_v40  ;;  %8069 = vst [vmem:[#allocation46_spill] sm:$0xff] %v5878_v63  ;;  %v308_v3 = vld [vmem:[#allocation5 + $0x158] sm:$0xff]  ;;  %v5884_v9 = vpack.c.bf16 %v307_v7, %v275_v6  ;;  %v339_v19 = vld [vmem:[#allocation5 + $0x250] sm:$0xff]  ;;  %v374_v40 = vld [vmem:[#allocation5 + $0x368] sm:$0xff] }
  0x80   :  { %4315 = vmatprep.subr.bf16.mxu0 %v5810_v41  ;;  %8068 = vst [vmem:[#allocation45_spill] sm:$0xff] %v5876_v57  ;;  %v5882_v4 = vpack.c.bf16 %v308_v3, %v276_v0  ;;  %v340_v11 = vld [vmem:[#allocation5 + $0x258] sm:$0xff]  ;;  %v371_v20 = vld [vmem:[#allocation5 + $0x350] sm:$0xff]  ;;  %v309_v41 = vld [vmem:[#allocation5 + $0x160] sm:$0xff] }
  0x81   :  { %8071 = vst [vmem:[#allocation48_spill] sm:$0xff] %v5884_v9  ;;  %v372_v13 = vld [vmem:[#allocation5 + $0x358] sm:$0xff]  ;;  %v5892_v24 = vpack.c.bf16 %v371_v20, %v339_v19  ;;  %v403_v32 = vld [vmem:[#allocation5 + $0x450] sm:$0xff] }
  0x82   :  { %8070 = vst [vmem:[#allocation47_spill] sm:$0xff] %v5882_v4  ;;  %v5890_v14 = vpack.c.bf16 %v372_v13, %v340_v11  ;;  %v404_v25 = vld [vmem:[#allocation5 + $0x458] sm:$0xff]  ;;  %v435_v33 = vld [vmem:[#allocation5 + $0x550] sm:$0xff] }
  0x83   :  { %4317 = vmatpush1.bf16.msra.mxu0 %v5813_v46  ;;  %8073 = vst [vmem:[#allocation50_spill] sm:$0xff] %v5892_v24  ;;  %v436_v27 = vld [vmem:[#allocation5 + $0x558] sm:$0xff]  ;;  %v5898_v37 = vpack.c.bf16 %v435_v33, %v403_v32  ;;  %v467_v45 = vld [vmem:[#allocation5 + $0x650] sm:$0xff] }
  0x84   :  { %4319 = vmatprep.subr.bf16.mxu0 %v5816_v47  ;;  %8072 = vst [vmem:[#allocation49_spill] sm:$0xff] %v5890_v14  ;;  %v5896_v30 = vpack.c.bf16 %v436_v27, %v404_v25  ;;  %v468_v38 = vld [vmem:[#allocation5 + $0x658] sm:$0xff]  ;;  %v499_v48 = vld [vmem:[#allocation5 + $0x750] sm:$0xff] }
  0x85   :  { %8075 = vst [vmem:[#allocation52_spill] sm:$0xff] %v5898_v37  ;;  %v500_v42 = vld [vmem:[#allocation5 + $0x758] sm:$0xff]  ;;  %v5904_v50 = vpack.c.bf16 %v499_v48, %v467_v45  ;;  %v531_v60 = vld [vmem:[#allocation5 + $0x850] sm:$0xff] }
  0x86   :  { %8074 = vst [vmem:[#allocation51_spill] sm:$0xff] %v5896_v30  ;;  %v5902_v43 = vpack.c.bf16 %v500_v42, %v468_v38  ;;  %v532_v51 = vld [vmem:[#allocation5 + $0x858] sm:$0xff]  ;;  %v563_v61 = vld [vmem:[#allocation5 + $0x950] sm:$0xff] }
  0x87   :  { %4321 = vmatpush1.bf16.msra.mxu0 %v5819_v52  ;;  %8077 = vst [vmem:[#allocation54_spill] sm:$0xff] %v5904_v50  ;;  %v564_v55 = vld [vmem:[#allocation5 + $0x958] sm:$0xff]  ;;  %v5910_v0 = vpack.c.bf16 %v563_v61, %v531_v60  ;;  %v595_v11 = vld [vmem:[#allocation5 + $0xa50] sm:$0xff] }
  0x88   :  { %4323 = vmatprep.subr.bf16.mxu0 %v5822_v53  ;;  %8076 = vst [vmem:[#allocation53_spill] sm:$0xff] %v5902_v43  ;;  %v5908_v56 = vpack.c.bf16 %v564_v55, %v532_v51  ;;  %v596_v3 = vld [vmem:[#allocation5 + $0xa58] sm:$0xff]  ;;  %v627_v13 = vld [vmem:[#allocation5 + $0xb50] sm:$0xff] }
  0x89   :  { %8079 = vst [vmem:[#allocation56_spill] sm:$0xff] %v5910_v0  ;;  %v628_v6 = vld [vmem:[#allocation5 + $0xb58] sm:$0xff]  ;;  %v5916_v19 = vpack.c.bf16 %v627_v13, %v595_v11  ;;  %v659_v32 = vld [vmem:[#allocation5 + $0xc50] sm:$0xff] }
  0x8a   :  { %8078 = vst [vmem:[#allocation55_spill] sm:$0xff] %v5908_v56  ;;  %v5914_v7 = vpack.c.bf16 %v628_v6, %v596_v3  ;;  %v660_v20 = vld [vmem:[#allocation5 + $0xc58] sm:$0xff]  ;;  %v691_v33 = vld [vmem:[#allocation5 + $0xd50] sm:$0xff] }
  0x8b   :  { %4325 = vmatpush1.bf16.msra.mxu0 %v5825_v58  ;;  %8081 = vst [vmem:[#allocation58_spill] sm:$0xff] %v5916_v19  ;;  %v692_v25 = vld [vmem:[#allocation5 + $0xd58] sm:$0xff]  ;;  %v5922_v38 = vpack.c.bf16 %v691_v33, %v659_v32  ;;  %v723_v51 = vld [vmem:[#allocation5 + $0xe50] sm:$0xff] }
  0x8c   :  { %4359 = vmatprep.subr.bf16.mxu0 %v5828_v59  ;;  %8080 = vst [vmem:[#allocation57_spill] sm:$0xff] %v5914_v7  ;;  %v5920_v27 = vpack.c.bf16 %v692_v25, %v660_v20  ;;  %v724_v42 = vld [vmem:[#allocation5 + $0xe58] sm:$0xff]  ;;  %v755_v55 = vld [vmem:[#allocation5 + $0xf50] sm:$0xff] }
  0x8d   :  { %8083 = vst [vmem:[#allocation60_spill] sm:$0xff] %v5922_v38  ;;  %v756_v45 = vld [vmem:[#allocation5 + $0xf58] sm:$0xff]  ;;  %v5928_v60 = vpack.c.bf16 %v755_v55, %v723_v51  ;;  %v279_v11 = vld [vmem:[#allocation5 + $0x70] sm:$0xff] }
  0x8e   :  { %1081 = vmatmul.mubr.f32.vlgmr.msra.gmra.mrb[2].mxu0 %v5780_v15  ;;  %8082 = vst [vmem:[#allocation59_spill] sm:$0xff] %v5920_v27  ;;  %v5926_v48 = vpack.c.bf16 %v756_v45, %v724_v42  ;;  %v280_v61 = vld [vmem:[#allocation5 + $0x78] sm:$0xff]  ;;  %v311_v13 = vld [vmem:[#allocation5 + $0x170] sm:$0xff] }
  0x8f   :  { %4361 = vmatpush1.bf16.msra.mxu0 %v5831_v62  ;;  %1222 = vmatprep.mubr.f32.mxu0 %v7773_v1  ;;  %8085 = vst [vmem:[#allocation62_spill] sm:$0xff] %v5928_v60  ;;  %v312_v3 = vld [vmem:[#allocation5 + $0x178] sm:$0xff]  ;;  %v5934_v20 = vpack.c.bf16 %v311_v13, %v279_v11  ;;  %v343_v42 = vld [vmem:[#allocation5 + $0x270] sm:$0xff] }
  0x90   :  { %4363 = vmatprep.subr.bf16.mxu0 %v5840_v5  ;;  %8084 = vst [vmem:[#allocation61_spill] sm:$0xff] %v5926_v48  ;;  %v5932_v6 = vpack.c.bf16 %v312_v3, %v280_v61  ;;  %v344_v25 = vld [vmem:[#allocation5 + $0x278] sm:$0xff]  ;;  %v375_v45 = vld [vmem:[#allocation5 + $0x370] sm:$0xff] }
  0x91   :  { %8087 = vst [vmem:[#allocation64_spill] sm:$0xff] %v5934_v20  ;;  %v376_v32 = vld [vmem:[#allocation5 + $0x378] sm:$0xff]  ;;  %v5942_v51 = vpack.c.bf16 %v375_v45, %v343_v42  ;;  %v407_v11 = vld [vmem:[#allocation5 + $0x470] sm:$0xff] }
  0x92   :  { %8086 = vst [vmem:[#allocation63_spill] sm:$0xff] %v5932_v6  ;;  %v5940_v33 = vpack.c.bf16 %v376_v32, %v344_v25  ;;  %v408_v55 = vld [vmem:[#allocation5 + $0x478] sm:$0xff]  ;;  %v439_v13 = vld [vmem:[#allocation5 + $0x570] sm:$0xff] }
  0x93   :  { %4365 = vmatpush1.bf16.msra.mxu0 %v5842_v8  ;;  %8089 = vst [vmem:[#allocation66_spill] sm:$0xff] %v5942_v51  ;;  %v440_v61 = vld [vmem:[#allocation5 + $0x578] sm:$0xff]  ;;  %v471_v45 = vld [vmem:[#allocation5 + $0x670] sm:$0xff] }
  0x94   :  { %4367 = vmatprep.subr.bf16.mxu0 %v5846_v12  ;;  %8088 = vst [vmem:[#allocation65_spill] sm:$0xff] %v5940_v33  ;;  %v5946_v3 = vpack.c.bf16 %v440_v61, %v408_v55  ;;  %v472_v25 = vld [vmem:[#allocation5 + $0x678] sm:$0xff] }
  0x95   :  { %v504_v32 = vld [vmem:[#allocation5 + $0x778] sm:$0xff] }
  0x96   :  { %8090 = vst [vmem:[#allocation67_spill] sm:$0xff] %v5946_v3  ;;  %v5952_v42 = vpack.c.bf16 %v504_v32, %v472_v25  ;;  %v536_v55 = vld [vmem:[#allocation5 + $0x878] sm:$0xff] }
  0x97   :  { %4369 = vmatpush1.bf16.msra.mxu0 %v5848_v18  ;;  %v568_v61 = vld [vmem:[#allocation5 + $0x978] sm:$0xff]  ;;  %v554_v18 = vld [vmem:[#allocation5 + $0x908] sm:$0xff] }
  0x98   :  { %4371 = vmatprep.subr.bf16.mxu0 %v5852_v21  ;;  %8092 = vst [vmem:[#allocation69_spill] sm:$0xff] %v5952_v42  ;;  %v600_v25 = vld [vmem:[#allocation5 + $0xa78] sm:$0xff]  ;;  %v522_v21 = vld [vmem:[#allocation5 + $0x808] sm:$0xff] }
  0x99   :  { %v632_v32 = vld [vmem:[#allocation5 + $0xb78] sm:$0xff] }
  0x9a   :  { %v648_v52 = vld [vmem:[#allocation5 + $0xbf8] sm:$0xff] }
  0x9b   :  { %4373 = vmatpush1.bf16.msra.mxu0 %v5854_v26  ;;  %v489_v26 = vld [vmem:[#allocation5 + $0x700] sm:$0xff]  ;;  %v680_v47 = vld [vmem:[#allocation5 + $0xcf8] sm:$0xff] }
  0x9c   :  { %4375 = vmatprep.subr.bf16.mxu0 %v5858_v31  ;;  %v447_v31 = vld [vmem:[#allocation5 + $0x5b0] sm:$0xff] }
  0x9f   :  { %4377 = vmatpush1.bf16.msra.mxu0 %v5860_v36  ;;  %v458_v36 = vld [vmem:[#allocation5 + $0x608] sm:$0xff] }
  0xa0   :  { %4379 = vmatprep.subr.bf16.mxu0 %v5864_v39  ;;  %v393_v39 = vld [vmem:[#allocation5 + $0x400] sm:$0xff] }
  0xa3   :  { %4381 = vmatpush1.bf16.msra.mxu0 %v5866_v44 }
  0xa4   :  { %4383 = vmatprep.subr.bf16.mxu0 %v5870_v49  ;;  %v426_v49 = vld [vmem:[#allocation5 + $0x508] sm:$0xff] }
  0xa7   :  { %4385 = vmatpush1.bf16.msra.mxu0 %v5872_v54 }
  0xa8   :  { %4387 = vmatprep.subr.bf16.mxu0 %v5876_v57  ;;  %v394_v57 = vld [vmem:[#allocation5 + $0x408] sm:$0xff] }
  0xa9   :  { %v6054_v44 = vpack.c.bf16 %v426_v49, %v394_v57 }
  0xab   :  { %4389 = vmatpush1.bf16.msra.mxu0 %v5878_v63  ;;  %v361_v63 = vld [vmem:[#allocation5 + $0x300] sm:$0xff] }
  0xac   :  { %4423 = vmatprep.subr.bf16.mxu0 %v5882_v4  ;;  %v319_v4 = vld [vmem:[#allocation5 + $0x1b0] sm:$0xff] }
  0xae   :  { %1223 = vmatmul.mubr.f32.vlgmr.msra.gmra.mrb[4].mxu0 %v5780_v15 }
  0xaf   :  { %4425 = vmatpush1.bf16.msra.mxu0 %v5884_v9  ;;  %1364 = vmatprep.mubr.f32.mxu0 %v7773_v1  ;;  %v287_v9 = vld [vmem:[#allocation5 + $0xb0] sm:$0xff] }
  0xb0   :  { %4427 = vmatprep.subr.bf16.mxu0 %v5890_v14 }
  0xb3   :  { %4429 = vmatpush1.bf16.msra.mxu0 %v5892_v24  ;;  %v297_v24 = vld [vmem:[#allocation5 + $0x100] sm:$0xff] }
  0xb4   :  { %4431 = vmatprep.subr.bf16.mxu0 %v5896_v30  ;;  %v265_v30 = vld [vmem:[#allocation5] sm:$0xff] }
  0xb7   :  { %4433 = vmatpush1.bf16.msra.mxu0 %v5898_v37 }
  0xb8   :  { %4435 = vmatprep.subr.bf16.mxu0 %v5902_v43  ;;  %v763_v43 = vld [vmem:[#allocation5 + $0xf90] sm:$0xff] }
  0xbb   :  { %4437 = vmatpush1.bf16.msra.mxu0 %v5904_v50 }
  0xbc   :  { %4439 = vmatprep.subr.bf16.mxu0 %v5908_v56  ;;  %v699_v56 = vld [vmem:[#allocation5 + $0xd90] sm:$0xff] }
  0xbf   :  { %4441 = vmatpush1.bf16.msra.mxu0 %v5910_v0 }
  0xc0   :  { %4443 = vmatprep.subr.bf16.mxu0 %v5914_v7  ;;  %v635_v7 = vld [vmem:[#allocation5 + $0xb90] sm:$0xff] }
  0xc3   :  { %4445 = vmatpush1.bf16.msra.mxu0 %v5916_v19 }
  0xc4   :  { %4447 = vmatprep.subr.bf16.mxu0 %v5920_v27  ;;  %v571_v27 = vld [vmem:[#allocation5 + $0x990] sm:$0xff] }
  0xc7   :  { %4449 = vmatpush1.bf16.msra.mxu0 %v5922_v38 }
  0xc8   :  { %4451 = vmatprep.subr.bf16.mxu0 %v5926_v48  ;;  %v507_v48 = vld [vmem:[#allocation5 + $0x790] sm:$0xff] }
  0xcb   :  { %4453 = vmatpush1.bf16.msra.mxu0 %v5928_v60 }
  0xcc   :  { %4487 = vmatprep.subr.bf16.mxu0 %v5932_v6  ;;  %v443_v6 = vld [vmem:[#allocation5 + $0x590] sm:$0xff] }
  0xce   :  { %1365 = vmatmul.mubr.f32.vlgmr.msra.gmra.mrb[6].mxu0 %v5780_v15 }
  0xcf   :  { %4489 = vmatpush1.bf16.msra.mxu0 %v5934_v20  ;;  %1506 = vmatprep.mubr.f32.mxu0 %v7773_v1  ;;  %v5948_v20 = vpack.c.bf16 %v439_v13, %v407_v11  ;;  %v503_v1 = vld [vmem:[#allocation5 + $0x770] sm:$0xff]  ;;  %v5958_v11 = vpack.c.bf16 %v568_v61, %v536_v55  ;;  %v664_v55 = vld [vmem:[#allocation5 + $0xc78] sm:$0xff] }
  0xd0   :  { %4491 = vmatprep.subr.bf16.mxu0 %v5940_v33  ;;  %v5954_v33 = vpack.c.bf16 %v503_v1, %v471_v45  ;;  %v535_v13 = vld [vmem:[#allocation5 + $0x870] sm:$0xff]  ;;  %v5964_v1 = vpack.c.bf16 %v632_v32, %v600_v25  ;;  %v696_v61 = vld [vmem:[#allocation5 + $0xd78] sm:$0xff] }
  0xd1   :  { %8091 = vst [vmem:[#allocation68_spill] sm:$0xff] %v5948_v20  ;;  %8094 = vst [vmem:[#allocation71_spill] sm:$0xff] %v5958_v11  ;;  %v599_v45 = vld [vmem:[#allocation5 + $0xa70] sm:$0xff]  ;;  %v728_v25 = vld [vmem:[#allocation5 + $0xe78] sm:$0xff] }
  0xd2   :  { %8093 = vst [vmem:[#allocation70_spill] sm:$0xff] %v5954_v33  ;;  %8096 = vst [vmem:[#allocation73_spill] sm:$0xff] %v5964_v1  ;;  %v760_v32 = vld [vmem:[#allocation5 + $0xf78] sm:$0xff] }
  0xd3   :  { %4493 = vmatpush1.bf16.msra.mxu0 %v5942_v51 }
  0xd4   :  { %4495 = vmatprep.subr.bf16.mxu0 %v5946_v3  ;;  %v567_v3 = vld [vmem:[#allocation5 + $0x970] sm:$0xff] }
  0xd5   :  { %v5960_v51 = vpack.c.bf16 %v567_v3, %v535_v13  ;;  %v5970_v3 = vpack.c.bf16 %v696_v61, %v664_v55  ;;  %v663_v13 = vld [vmem:[#allocation5 + $0xc70] sm:$0xff]  ;;  %v284_v55 = vld [vmem:[#allocation5 + $0x98] sm:$0xff] }
  0xd6   :  { %v316_v61 = vld [vmem:[#allocation5 + $0x198] sm:$0xff] }
  0xd7   :  { %4497 = vmatpush1.bf16.msra.mxu0 %v5948_v20  ;;  %8095 = vst [vmem:[#allocation72_spill] sm:$0xff] %v5960_v51  ;;  %8098 = vst [vmem:[#allocation75_spill] sm:$0xff] %v5970_v3 }
  0xd8   :  { %4499 = vmatprep.subr.bf16.mxu0 %v5952_v42  ;;  %v631_v42 = vld [vmem:[#allocation5 + $0xb70] sm:$0xff] }
  0xd9   :  { %v5966_v20 = vpack.c.bf16 %v631_v42, %v599_v45  ;;  %v5976_v42 = vpack.c.bf16 %v760_v32, %v728_v25  ;;  %v727_v45 = vld [vmem:[#allocation5 + $0xe70] sm:$0xff]  ;;  %v380_v25 = vld [vmem:[#allocation5 + $0x398] sm:$0xff]  ;;  %v8104_v32 = vmov 0.0  }
  0xdb   :  { %4501 = vmatpush1.bf16.msra.mxu0 %v5954_v33  ;;  %8097 = vst [vmem:[#allocation74_spill] sm:$0xff] %v5966_v20  ;;  %8100 = vst [vmem:[#allocation77_spill] sm:$0xff] %v5976_v42 }
  0xdc   :  { %4503 = vmatprep.subr.bf16.mxu0 %v5958_v11  ;;  %v695_v11 = vld [vmem:[#allocation5 + $0xd70] sm:$0xff] }
  0xdd   :  { %v5972_v33 = vpack.c.bf16 %v695_v11, %v663_v13  ;;  %v5982_v11 = vpack.c.bf16 %v316_v61, %v284_v55  ;;  %v283_v13 = vld [vmem:[#allocation5 + $0x90] sm:$0xff]  ;;  %v444_v61 = vld [vmem:[#allocation5 + $0x598] sm:$0xff] }
  0xdf   :  { %4505 = vmatpush1.bf16.msra.mxu0 %v5960_v51  ;;  %8099 = vst [vmem:[#allocation76_spill] sm:$0xff] %v5972_v33  ;;  %8102 = vst [vmem:[#allocation79_spill] sm:$0xff] %v5982_v11 }
  0xe0   :  { %4507 = vmatprep.subr.bf16.mxu0 %v5964_v1  ;;  %v759_v1 = vld [vmem:[#allocation5 + $0xf70] sm:$0xff] }
  0xe1   :  { %v5978_v51 = vpack.c.bf16 %v759_v1, %v727_v45  ;;  %v348_v1 = vld [vmem:[#allocation5 + $0x298] sm:$0xff] }
  0xe2   :  { %v5990_v45 = vpack.c.bf16 %v380_v25, %v348_v1  ;;  %v476_v1 = vld [vmem:[#allocation5 + $0x698] sm:$0xff] }
  0xe3   :  { %4509 = vmatpush1.bf16.msra.mxu0 %v5966_v20  ;;  %8101 = vst [vmem:[#allocation78_spill] sm:$0xff] %v5978_v51  ;;  %v508_v25 = vld [vmem:[#allocation5 + $0x798] sm:$0xff] }
  0xe4   :  { %4511 = vmatprep.subr.bf16.mxu0 %v5970_v3  ;;  %v315_v3 = vld [vmem:[#allocation5 + $0x190] sm:$0xff]  ;;  %8105 = vst [vmem:[#allocation81_spill] sm:$0xff] %v5990_v45 }
  0xe5   :  { %v5984_v20 = vpack.c.bf16 %v315_v3, %v283_v13  ;;  %v412_v3 = vld [vmem:[#allocation5 + $0x498] sm:$0xff] }
  0xe6   :  { %v5996_v13 = vpack.c.bf16 %v444_v61, %v412_v3  ;;  %v540_v3 = vld [vmem:[#allocation5 + $0x898] sm:$0xff] }
  0xe7   :  { %4513 = vmatpush1.bf16.msra.mxu0 %v5972_v33  ;;  %8103 = vst [vmem:[#allocation80_spill] sm:$0xff] %v5984_v20  ;;  %v411_v33 = vld [vmem:[#allocation5 + $0x490] sm:$0xff]  ;;  %v572_v61 = vld [vmem:[#allocation5 + $0x998] sm:$0xff] }
  0xe8   :  { %4515 = vmatprep.subr.bf16.mxu0 %v5976_v42  ;;  %v379_v42 = vld [vmem:[#allocation5 + $0x390] sm:$0xff]  ;;  %8107 = vst [vmem:[#allocation83_spill] sm:$0xff] %v5996_v13  ;;  %v5998_v60 = vpack.c.bf16 %v443_v6, %v411_v33  ;;  %v6008_v6 = vpack.c.bf16 %v572_v61, %v540_v3  ;;  %v668_v3 = vld [vmem:[#allocation5 + $0xc98] sm:$0xff] }
  0xe9   :  { %v539_v33 = vld [vmem:[#allocation5 + $0x890] sm:$0xff]  ;;  %v700_v61 = vld [vmem:[#allocation5 + $0xd98] sm:$0xff] }
  0xea   :  { %8108 = vst [vmem:[#allocation84_spill] sm:$0xff] %v5998_v60  ;;  %8111 = vst [vmem:[#allocation87_spill] sm:$0xff] %v6008_v6  ;;  %v6010_v19 = vpack.c.bf16 %v571_v27, %v539_v33  ;;  %v6020_v27 = vpack.c.bf16 %v700_v61, %v668_v3  ;;  %v667_v33 = vld [vmem:[#allocation5 + $0xc90] sm:$0xff]  ;;  %v330_v3 = vld [vmem:[#allocation5 + $0x208] sm:$0xff] }
  0xeb   :  { %4517 = vmatpush1.bf16.msra.mxu0 %v5978_v51  ;;  %v347_v51 = vld [vmem:[#allocation5 + $0x290] sm:$0xff]  ;;  %v6022_v50 = vpack.c.bf16 %v699_v56, %v667_v33  ;;  %v362_v61 = vld [vmem:[#allocation5 + $0x308] sm:$0xff]  ;;  %v288_v56 = vld [vmem:[#allocation5 + $0xb8] sm:$0xff] }
  0xec   :  { %4551 = vmatprep.subr.bf16.mxu0 %v5982_v11  ;;  %v5992_v55 = vpack.c.bf16 %v379_v42, %v347_v51  ;;  %v6002_v51 = vpack.c.bf16 %v508_v25, %v476_v1  ;;  %v475_v42 = vld [vmem:[#allocation5 + $0x690] sm:$0xff]  ;;  %8112 = vst [vmem:[#allocation88_spill] sm:$0xff] %v6010_v19  ;;  %v604_v1 = vld [vmem:[#allocation5 + $0xa98] sm:$0xff]  ;;  %8115 = vst [vmem:[#allocation91_spill] sm:$0xff] %v6020_v27 }
  0xed   :  { %v6004_v38 = vpack.c.bf16 %v507_v48, %v475_v42  ;;  %v636_v25 = vld [vmem:[#allocation5 + $0xb98] sm:$0xff]  ;;  %v603_v42 = vld [vmem:[#allocation5 + $0xa90] sm:$0xff]  ;;  %8116 = vst [vmem:[#allocation92_spill] sm:$0xff] %v6022_v50 }
  0xee   :  { %1507 = vmatmul.mubr.f32.vlgmr.msra.gmra.mrb[8].mxu0 %v5780_v15  ;;  %8106 = vst [vmem:[#allocation82_spill] sm:$0xff] %v5992_v55  ;;  %8109 = vst [vmem:[#allocation85_spill] sm:$0xff] %v6002_v51  ;;  %v6014_v48 = vpack.c.bf16 %v636_v25, %v604_v1  ;;  %v6016_v0 = vpack.c.bf16 %v635_v7, %v603_v42  ;;  %v732_v1 = vld [vmem:[#allocation5 + $0xe98] sm:$0xff]  ;;  %v731_v42 = vld [vmem:[#allocation5 + $0xe90] sm:$0xff] }
  0xef   :  { %4553 = vmatpush1.bf16.msra.mxu0 %v5984_v20  ;;  %1648 = vmatprep.mubr.f32.mxu0 %v8104_v32  ;;  %8110 = vst [vmem:[#allocation86_spill] sm:$0xff] %v6004_v38  ;;  %v764_v25 = vld [vmem:[#allocation5 + $0xf98] sm:$0xff]  ;;  %v6028_v37 = vpack.c.bf16 %v763_v43, %v731_v42  ;;  %v6038_v43 = vpack.c.bf16 %v362_v61, %v330_v3  ;;  %v329_v42 = vld [vmem:[#allocation5 + $0x200] sm:$0xff] }
  0xf0   :  { %4555 = vmatprep.subr.bf16.mxu0 %v5990_v45  ;;  %8113 = vst [vmem:[#allocation89_spill] sm:$0xff] %v6014_v48  ;;  %8114 = vst [vmem:[#allocation90_spill] sm:$0xff] %v6016_v0  ;;  %v6026_v7 = vpack.c.bf16 %v764_v25, %v732_v1  ;;  %v320_v33 = vld [vmem:[#allocation5 + $0x1b8] sm:$0xff]  ;;  %v6034_v1 = vpack.c.bf16 %v297_v24, %v265_v30  ;;  %v6036_v25 = vpack.c.bf16 %v319_v4, %v287_v9  ;;  %v351_v9 = vld [vmem:[#allocation5 + $0x2b0] sm:$0xff] }
  0xf1   :  { %8118 = vst [vmem:[#allocation94_spill] sm:$0xff] %v6028_v37  ;;  %v6032_v14 = vpack.c.bf16 %v320_v33, %v288_v56  ;;  %v352_v56 = vld [vmem:[#allocation5 + $0x2b8] sm:$0xff]  ;;  %v383_v30 = vld [vmem:[#allocation5 + $0x3b0] sm:$0xff]  ;;  %v6048_v3 = vpack.c.bf16 %v361_v63, %v329_v42  ;;  %v382_v45 = vld [vmem:[#allocation5 + $0x3a8] sm:$0xff] }
  0xf2   :  { %8117 = vst [vmem:[#allocation93_spill] sm:$0xff] %v6026_v7  ;;  %8120 = vst [vmem:[#allocation96_spill] sm:$0xff] %v6036_v25  ;;  %v384_v33 = vld [vmem:[#allocation5 + $0x3b8] sm:$0xff]  ;;  %v6051_v61 = vpack.c.bf16 %v383_v30, %v351_v9  ;;  %v415_v42 = vld [vmem:[#allocation5 + $0x4b0] sm:$0xff] }
  0xf3   :  { %4557 = vmatpush1.bf16.msra.mxu0 %v5992_v55  ;;  %8119 = vst [vmem:[#allocation95_spill] sm:$0xff] %v6032_v14  ;;  %v6045_v4 = vpack.c.bf16 %v384_v33, %v352_v56  ;;  %v416_v56 = vld [vmem:[#allocation5 + $0x4b8] sm:$0xff]  ;;  %v6063_v49 = vpack.c.bf16 %v447_v31, %v415_v42  ;;  %v457_v30 = vld [vmem:[#allocation5 + $0x600] sm:$0xff] }
  0xf4   :  { %4559 = vmatprep.subr.bf16.mxu0 %v5996_v13  ;;  %8122 = vst [vmem:[#allocation98_spill] sm:$0xff] %v6051_v61  ;;  %v448_v33 = vld [vmem:[#allocation5 + $0x5b8] sm:$0xff]  ;;  %v6073_v31 = vpack.c.bf16 %v489_v26, %v457_v30  ;;  %v521_v42 = vld [vmem:[#allocation5 + $0x800] sm:$0xff]  ;;  %v543_v26 = vld [vmem:[#allocation5 + $0x8b0] sm:$0xff] }
  0xf5   :  { %8121 = vst [vmem:[#allocation97_spill] sm:$0xff] %v6045_v4  ;;  %v6058_v63 = vpack.c.bf16 %v448_v33, %v416_v56  ;;  %8124 = vst [vmem:[#allocation100_spill] sm:$0xff] %v6063_v49  ;;  %v480_v56 = vld [vmem:[#allocation5 + $0x6b8] sm:$0xff]  ;;  %v575_v30 = vld [vmem:[#allocation5 + $0x9b0] sm:$0xff] }
  0xf6   :  { %v512_v33 = vld [vmem:[#allocation5 + $0x7b8] sm:$0xff]  ;;  %v286_v13 = vld [vmem:[#allocation5 + $0xa8] sm:$0xff]  ;;  %v285_v55 = vld [vmem:[#allocation5 + $0xa0] sm:$0xff] }
  0xf7   :  { %4561 = vmatpush1.bf16.msra.mxu0 %v5998_v60  ;;  %8123 = vst [vmem:[#allocation99_spill] sm:$0xff] %v6058_v63  ;;  %v6070_v12 = vpack.c.bf16 %v512_v33, %v480_v56  ;;  %v544_v56 = vld [vmem:[#allocation5 + $0x8b8] sm:$0xff]  ;;  %v761_v60 = vld [vmem:[#allocation5 + $0xf80] sm:$0xff] }
  0xf8   :  { %4563 = vmatprep.subr.bf16.mxu0 %v6002_v51  ;;  %v576_v33 = vld [vmem:[#allocation5 + $0x9b8] sm:$0xff] }
  0xf9   :  { %8125 = vst [vmem:[#allocation101_spill] sm:$0xff] %v6070_v12  ;;  %v6082_v8 = vpack.c.bf16 %v576_v33, %v544_v56  ;;  %v608_v56 = vld [vmem:[#allocation5 + $0xab8] sm:$0xff] }
  0xfa   :  { %v640_v33 = vld [vmem:[#allocation5 + $0xbb8] sm:$0xff] }
  0xfb   :  { %4565 = vmatpush1.bf16.msra.mxu0 %v6004_v38  ;;  %8127 = vst [vmem:[#allocation103_spill] sm:$0xff] %v6082_v8  ;;  %v6094_v5 = vpack.c.bf16 %v640_v33, %v608_v56  ;;  %v672_v56 = vld [vmem:[#allocation5 + $0xcb8] sm:$0xff] }
  0xfc   :  { %4567 = vmatprep.subr.bf16.mxu0 %v6008_v6  ;;  %v704_v33 = vld [vmem:[#allocation5 + $0xdb8] sm:$0xff]  ;;  %v762_v6 = vld [vmem:[#allocation5 + $0xf88] sm:$0xff] }
  0xfd   :  { %8129 = vst [vmem:[#allocation105_spill] sm:$0xff] %v6094_v5  ;;  %v6106_v62 = vpack.c.bf16 %v704_v33, %v672_v56  ;;  %v736_v56 = vld [vmem:[#allocation5 + $0xeb8] sm:$0xff] }
  0xfe   :  { %v768_v33 = vld [vmem:[#allocation5 + $0xfb8] sm:$0xff] }
  0xff   :  { %4569 = vmatpush1.bf16.msra.mxu0 %v6010_v19  ;;  %8131 = vst [vmem:[#allocation107_spill] sm:$0xff] %v6106_v62  ;;  %v6118_v59 = vpack.c.bf16 %v768_v33, %v736_v56  ;;  %v292_v56 = vld [vmem:[#allocation5 + $0xd8] sm:$0xff] }
 0x100   :  { %4571 = vmatprep.subr.bf16.mxu0 %v6014_v48  ;;  %v324_v33 = vld [vmem:[#allocation5 + $0x1d8] sm:$0xff] }
 0x101   :  { %8133 = vst [vmem:[#allocation109_spill] sm:$0xff] %v6118_v59  ;;  %v6130_v58 = vpack.c.bf16 %v324_v33, %v292_v56  ;;  %v356_v56 = vld [vmem:[#allocation5 + $0x2d8] sm:$0xff] }
 0x102   :  { %v388_v33 = vld [vmem:[#allocation5 + $0x3d8] sm:$0xff] }
 0x103   :  { %4573 = vmatpush1.bf16.msra.mxu0 %v6016_v0  ;;  %8136 = vst [vmem:[#allocation112_spill] sm:$0xff] %v6130_v58  ;;  %v711_v0 = vld [vmem:[#allocation5 + $0xdf0] sm:$0xff] }
 0x104   :  { %4575 = vmatprep.subr.bf16.mxu0 %v6020_v27 }
 0x107   :  { %4577 = vmatpush1.bf16.msra.mxu0 %v6022_v50 }
 0x108   :  { %4579 = vmatprep.subr.bf16.mxu0 %v6026_v7  ;;  %v398_v7 = vld [vmem:[#allocation5 + $0x428] sm:$0xff] }
 0x10b   :  { %4581 = vmatpush1.bf16.msra.mxu0 %v6028_v37  ;;  %v334_v37 = vld [vmem:[#allocation5 + $0x228] sm:$0xff] }
 0x10c   :  { %4615 = vmatprep.subr.bf16.mxu0 %v6032_v14  ;;  %v270_v14 = vld [vmem:[#allocation5 + $0x28] sm:$0xff] }
 0x10e   :  { %1649 = vmatmul.mubr.f32.vlgmr.msra.gmra.mrb[10].mxu0 %v5780_v15 }
 0x10f   :  { %4617 = vmatpush1.bf16.msra.mxu0 %v6036_v25  ;;  %1790 = vmatprep.mubr.f32.mxu0 %v8104_v32  ;;  %v714_v25 = vld [vmem:[#allocation5 + $0xe08] sm:$0xff] }
 0x110   :  { %4619 = vmatprep.subr.bf16.mxu0 %v6045_v4  ;;  %v650_v4 = vld [vmem:[#allocation5 + $0xc08] sm:$0xff] }
 0x113   :  { %4621 = vmatpush1.bf16.msra.mxu0 %v6051_v61  ;;  %v586_v61 = vld [vmem:[#allocation5 + $0xa08] sm:$0xff] }
 0x114   :  { %4623 = vmatprep.subr.bf16.mxu0 %v6058_v63  ;;  %v553_v63 = vld [vmem:[#allocation5 + $0x900] sm:$0xff] }
 0x117   :  { %4625 = vmatpush1.bf16.msra.mxu0 %v6063_v49  ;;  %v618_v49 = vld [vmem:[#allocation5 + $0xb08] sm:$0xff] }
 0x118   :  { %4627 = vmatprep.subr.bf16.mxu0 %v6070_v12  ;;  %v617_v12 = vld [vmem:[#allocation5 + $0xb00] sm:$0xff] }
 0x141   :  { %v172_v54 = vpop.f32.mrb[0].mxu0 }
 0x142   :  { %v4238_v24 = vpop.f32.mrb[1].mxu0  ;;  %4248 = vmatmul.mubr.msk.f32.vlgmr.msra.gmra.mrb[0].mxu1 %vm177_vm1, %v172_v54  ;;  %v490_v54 = vld [vmem:[#allocation5 + $0x708] sm:$0xff] }
 0x143   :  { %4265 = vmatpush1.bf16.msra.mxu1 %v6034_v1  ;;  %1009 = vmatprep.mubr.f32.mxu1 %v8104_v32  ;;  %v425_v24 = vld [vmem:[#allocation5 + $0x500] sm:$0xff]  ;;  %v6066_v57 = vpack.c.bf16 %v490_v54, %v458_v36  ;;  %v6078_v54 = vpack.c.bf16 %v554_v18, %v522_v21  ;;  %v6087_v18 = vpack.c.bf16 %v575_v30, %v543_v26 }
 0x144   :  { %4267 = vmatprep.subr.bf16.mxu1 %v6038_v43  ;;  %v6061_v9 = vpack.c.bf16 %v425_v24, %v393_v39  ;;  %v479_v39 = vld [vmem:[#allocation5 + $0x6b0] sm:$0xff]  ;;  %v6090_v21 = vpack.c.bf16 %v618_v49, %v586_v61  ;;  %v649_v30 = vld [vmem:[#allocation5 + $0xc00] sm:$0xff] }
 0x145   :  { %v511_v24 = vld [vmem:[#allocation5 + $0x7b0] sm:$0xff]  ;;  %8128 = vst [vmem:[#allocation104_spill] sm:$0xff] %v6087_v18 }
 0x146   :  { %v6075_v36 = vpack.c.bf16 %v511_v24, %v479_v39  ;;  %v6085_v39 = vpack.c.bf16 %v553_v63, %v521_v42  ;;  %v585_v24 = vld [vmem:[#allocation5 + $0xa00] sm:$0xff]  ;;  %v607_v63 = vld [vmem:[#allocation5 + $0xab0] sm:$0xff] }
 0x147   :  { %4269 = vmatpush1.bf16.msra.mxu1 %v6048_v3  ;;  %v639_v42 = vld [vmem:[#allocation5 + $0xbb0] sm:$0xff]  ;;  %v6097_v26 = vpack.c.bf16 %v617_v12, %v585_v24 }
 0x148   :  { %4271 = vmatprep.subr.bf16.mxu1 %v6054_v44  ;;  %8126 = vst [vmem:[#allocation102_spill] sm:$0xff] %v6075_v36  ;;  %4629 = vmatpush1.bf16.msra.mxu0 %v6075_v36  ;;  %v682_v36 = vld [vmem:[#allocation5 + $0xd08] sm:$0xff]  ;;  %v6099_v61 = vpack.c.bf16 %v639_v42, %v607_v63  ;;  %v671_v12 = vld [vmem:[#allocation5 + $0xcb0] sm:$0xff]  ;;  %v713_v42 = vld [vmem:[#allocation5 + $0xe00] sm:$0xff] }
 0x149   :  { %4631 = vmatprep.subr.bf16.mxu0 %v6082_v8  ;;  %v6102_v49 = vpack.c.bf16 %v682_v36, %v650_v4  ;;  %v681_v8 = vld [vmem:[#allocation5 + $0xd00] sm:$0xff]  ;;  %v703_v24 = vld [vmem:[#allocation5 + $0xdb0] sm:$0xff] }
 0x14a   :  { %8130 = vst [vmem:[#allocation106_spill] sm:$0xff] %v6099_v61  ;;  %v6109_v63 = vpack.c.bf16 %v681_v8, %v649_v30  ;;  %v6111_v4 = vpack.c.bf16 %v703_v24, %v671_v12  ;;  %v735_v8 = vld [vmem:[#allocation5 + $0xeb0] sm:$0xff]  ;;  %v269_v24 = vld [vmem:[#allocation5 + $0x20] sm:$0xff] }
 0x14b   :  { %4273 = vmatpush1.bf16.msra.mxu1 %v6061_v9  ;;  %v767_v30 = vld [vmem:[#allocation5 + $0xfb0] sm:$0xff] }
 0x14c   :  { %4275 = vmatprep.subr.bf16.mxu1 %v6066_v57  ;;  %4633 = vmatpush1.bf16.msra.mxu0 %v6087_v18  ;;  %v746_v18 = vld [vmem:[#allocation5 + $0xf08] sm:$0xff]  ;;  %8132 = vst [vmem:[#allocation108_spill] sm:$0xff] %v6111_v4 }
 0x14d   :  { %4635 = vmatprep.subr.bf16.mxu0 %v6094_v5  ;;  %v6114_v36 = vpack.c.bf16 %v746_v18, %v714_v25  ;;  %v745_v5 = vld [vmem:[#allocation5 + $0xf00] sm:$0xff]  ;;  %v6123_v25 = vpack.c.bf16 %v767_v30, %v735_v8 }
 0x14e   :  { %v6121_v12 = vpack.c.bf16 %v745_v5, %v713_v42  ;;  %v291_v5 = vld [vmem:[#allocation5 + $0xd0] sm:$0xff]  ;;  %v333_v30 = vld [vmem:[#allocation5 + $0x220] sm:$0xff] }
 0x14f   :  { %4277 = vmatpush1.bf16.msra.mxu1 %v6073_v31  ;;  %8134 = vst [vmem:[#allocation110_spill] sm:$0xff] %v6123_v25  ;;  %v323_v42 = vld [vmem:[#allocation5 + $0x1d0] sm:$0xff] }
 0x150   :  { %4279 = vmatprep.subr.bf16.mxu1 %v6078_v54  ;;  %4637 = vmatpush1.bf16.msra.mxu0 %v6099_v61  ;;  %v302_v61 = vld [vmem:[#allocation5 + $0x128] sm:$0xff] }
 0x151   :  { %4639 = vmatprep.subr.bf16.mxu0 %v6106_v62  ;;  %v6126_v18 = vpack.c.bf16 %v302_v61, %v270_v14  ;;  %v301_v62 = vld [vmem:[#allocation5 + $0x120] sm:$0xff]  ;;  %v6135_v14 = vpack.c.bf16 %v323_v42, %v291_v5  ;;  %v387_v5 = vld [vmem:[#allocation5 + $0x3d0] sm:$0xff] }
 0x152   :  { %v6133_v8 = vpack.c.bf16 %v301_v62, %v269_v24  ;;  %v6144_v62 = vpack.c.bf16 %v388_v33, %v356_v56  ;;  %v355_v24 = vld [vmem:[#allocation5 + $0x2d0] sm:$0xff]  ;;  %v494_v56 = vld [vmem:[#allocation5 + $0x728] sm:$0xff]  ;;  %v420_v33 = vld [vmem:[#allocation5 + $0x4d8] sm:$0xff] }
 0x153   :  { %4281 = vmatpush1.bf16.msra.mxu1 %v6085_v39  ;;  %8135 = vst [vmem:[#allocation111_spill] sm:$0xff] %v6126_v18  ;;  %8138 = vst [vmem:[#allocation114_spill] sm:$0xff] %v6135_v14 }
 0x154   :  { %4283 = vmatprep.subr.bf16.mxu1 %v6090_v21  ;;  %4641 = vmatpush1.bf16.msra.mxu0 %v6111_v4  ;;  %v366_v4 = vld [vmem:[#allocation5 + $0x328] sm:$0xff]  ;;  %8137 = vst [vmem:[#allocation113_spill] sm:$0xff] %v6133_v8  ;;  %8140 = vst [vmem:[#allocation116_spill] sm:$0xff] %v6144_v62 }
 0x155   :  { %4643 = vmatprep.subr.bf16.mxu0 %v6118_v59  ;;  %v6138_v61 = vpack.c.bf16 %v366_v4, %v334_v37  ;;  %v365_v59 = vld [vmem:[#allocation5 + $0x320] sm:$0xff]  ;;  %v6150_v4 = vpack.c.bf16 %v387_v5, %v355_v24  ;;  %v451_v24 = vld [vmem:[#allocation5 + $0x5d0] sm:$0xff] }
 0x156   :  { %v6147_v37 = vpack.c.bf16 %v365_v59, %v333_v30  ;;  %v419_v30 = vld [vmem:[#allocation5 + $0x4d0] sm:$0xff] }
 0x157   :  { %4285 = vmatpush1.bf16.msra.mxu1 %v6097_v26  ;;  %8139 = vst [vmem:[#allocation115_spill] sm:$0xff] %v6138_v61  ;;  %8142 = vst [vmem:[#allocation118_spill] sm:$0xff] %v6150_v4 }
 0x158   :  { %4287 = vmatprep.subr.bf16.mxu1 %v6102_v49  ;;  %4645 = vmatpush1.bf16.msra.mxu0 %v6123_v25  ;;  %v430_v25 = vld [vmem:[#allocation5 + $0x528] sm:$0xff]  ;;  %8141 = vst [vmem:[#allocation117_spill] sm:$0xff] %v6147_v37 }
 0x159   :  { %4679 = vmatprep.subr.bf16.mxu0 %v6130_v58  ;;  %v6153_v42 = vpack.c.bf16 %v430_v25, %v398_v7  ;;  %v397_v58 = vld [vmem:[#allocation5 + $0x420] sm:$0xff]  ;;  %v6163_v25 = vpack.c.bf16 %v451_v24, %v419_v30 }
 0x15a   :  { %v525_v24 = vld [vmem:[#allocation5 + $0x820] sm:$0xff] }
 0x15b   :  { %4289 = vmatpush1.bf16.msra.mxu1 %v6109_v63  ;;  %1791 = vmatmul.mubr.f32.vlgmr.msra.gmra.mrb[12].mxu0 %v5780_v15  ;;  %8143 = vst [vmem:[#allocation119_spill] sm:$0xff] %v6153_v42  ;;  %8146 = vst [vmem:[#allocation122_spill] sm:$0xff] %v6163_v25 }
 0x15c   :  { %4291 = vmatprep.subr.bf16.mxu1 %v6114_v36  ;;  %4681 = vmatpush1.bf16.msra.mxu0 %v6135_v14  ;;  %v452_v14 = vld [vmem:[#allocation5 + $0x5d8] sm:$0xff] }
 0x15d   :  { %4683 = vmatprep.subr.bf16.mxu0 %v6144_v62  ;;  %1932 = vmatprep.mubr.f32.mxu0 %v8104_v32  ;;  %v6158_v59 = vpack.c.bf16 %v452_v14, %v420_v33  ;;  %v461_v62 = vld [vmem:[#allocation5 + $0x620] sm:$0xff]  ;;  %v484_v14 = vld [vmem:[#allocation5 + $0x6d8] sm:$0xff] }
 0x15e   :  { %v516_v33 = vld [vmem:[#allocation5 + $0x7d8] sm:$0xff] }
 0x15f   :  { %4293 = vmatpush1.bf16.msra.mxu1 %v6121_v12  ;;  %8144 = vst [vmem:[#allocation120_spill] sm:$0xff] %v6158_v59  ;;  %v6170_v53 = vpack.c.bf16 %v516_v33, %v484_v14  ;;  %v548_v14 = vld [vmem:[#allocation5 + $0x8d8] sm:$0xff] }
 0x160   :  { %4327 = vmatprep.subr.bf16.mxu1 %v6126_v18  ;;  %v462_v18 = vld [vmem:[#allocation5 + $0x628] sm:$0xff]  ;;  %4685 = vmatpush1.bf16.msra.mxu0 %v6150_v4  ;;  %v580_v33 = vld [vmem:[#allocation5 + $0x9d8] sm:$0xff] }
 0x161   :  { %v6166_v5 = vpack.c.bf16 %v494_v56, %v462_v18  ;;  %4687 = vmatprep.subr.bf16.mxu0 %v6158_v59  ;;  %v558_v4 = vld [vmem:[#allocation5 + $0x928] sm:$0xff]  ;;  %8148 = vst [vmem:[#allocation124_spill] sm:$0xff] %v6170_v53  ;;  %v557_v59 = vld [vmem:[#allocation5 + $0x920] sm:$0xff] }
 0x162   :  { %1010 = vmatmul.mubr.f32.vlgmr.msra.gmra.mrb[2].mxu1 %v5780_v15  ;;  %v429_v15 = vld [vmem:[#allocation5 + $0x520] sm:$0xff] }
 0x163   :  { %4329 = vmatpush1.bf16.msra.mxu1 %v6133_v8  ;;  %1151 = vmatprep.mubr.f32.mxu1 %v8104_v32  ;;  %v6161_v7 = vpack.c.bf16 %v429_v15, %v397_v58  ;;  %8147 = vst [vmem:[#allocation123_spill] sm:$0xff] %v6166_v5  ;;  %v526_v8 = vld [vmem:[#allocation5 + $0x828] sm:$0xff]  ;;  %v483_v58 = vld [vmem:[#allocation5 + $0x6d0] sm:$0xff] }
 0x164   :  { %4331 = vmatprep.subr.bf16.mxu1 %v6138_v61  ;;  %v493_v61 = vld [vmem:[#allocation5 + $0x720] sm:$0xff]  ;;  %4689 = vmatpush1.bf16.msra.mxu0 %v6163_v25  ;;  %v515_v15 = vld [vmem:[#allocation5 + $0x7d0] sm:$0xff]  ;;  %v6178_v56 = vpack.c.bf16 %v558_v4, %v526_v8  ;;  %v622_v25 = vld [vmem:[#allocation5 + $0xb28] sm:$0xff] }
 0x165   :  { %8145 = vst [vmem:[#allocation121_spill] sm:$0xff] %v6161_v7  ;;  %v6173_v30 = vpack.c.bf16 %v493_v61, %v461_v62  ;;  %v6175_v18 = vpack.c.bf16 %v515_v15, %v483_v58  ;;  %4691 = vmatprep.subr.bf16.mxu0 %v6170_v53  ;;  %v547_v61 = vld [vmem:[#allocation5 + $0x8d0] sm:$0xff]  ;;  %v6185_v58 = vpack.c.bf16 %v557_v59, %v525_v24  ;;  %v589_v15 = vld [vmem:[#allocation5 + $0xa20] sm:$0xff] }
 0x166   :  { %8151 = vst [vmem:[#allocation127_spill] sm:$0xff] %v6178_v56  ;;  %v579_v62 = vld [vmem:[#allocation5 + $0x9d0] sm:$0xff]  ;;  %v621_v53 = vld [vmem:[#allocation5 + $0xb20] sm:$0xff] }
 0x167   :  { %4333 = vmatpush1.bf16.msra.mxu1 %v6147_v37  ;;  %8149 = vst [vmem:[#allocation125_spill] sm:$0xff] %v6173_v30  ;;  %8150 = vst [vmem:[#allocation126_spill] sm:$0xff] %v6175_v18  ;;  %v6182_v37 = vpack.c.bf16 %v580_v33, %v548_v14  ;;  %v6187_v8 = vpack.c.bf16 %v579_v62, %v547_v61  ;;  %v612_v14 = vld [vmem:[#allocation5 + $0xad8] sm:$0xff]  ;;  %v611_v59 = vld [vmem:[#allocation5 + $0xad0] sm:$0xff]  ;;  %v6197_v61 = vpack.c.bf16 %v621_v53, %v589_v15 }
 0x168   :  { %4335 = vmatprep.subr.bf16.mxu1 %v6153_v42  ;;  %v590_v42 = vld [vmem:[#allocation5 + $0xa28] sm:$0xff]  ;;  %4693 = vmatpush1.bf16.msra.mxu0 %v6175_v18  ;;  %8153 = vst [vmem:[#allocation129_spill] sm:$0xff] %v6185_v58  ;;  %v644_v33 = vld [vmem:[#allocation5 + $0xbd8] sm:$0xff]  ;;  %v643_v24 = vld [vmem:[#allocation5 + $0xbd0] sm:$0xff] }
 0x169   :  { %8152 = vst [vmem:[#allocation128_spill] sm:$0xff] %v6182_v37  ;;  %8154 = vst [vmem:[#allocation130_spill] sm:$0xff] %v6187_v8  ;;  %v6190_v4 = vpack.c.bf16 %v622_v25, %v590_v42  ;;  %4695 = vmatprep.subr.bf16.mxu0 %v6182_v37  ;;  %v686_v18 = vld [vmem:[#allocation5 + $0xd28] sm:$0xff]  ;;  %v6199_v42 = vpack.c.bf16 %v643_v24, %v611_v59  ;;  %v653_v62 = vld [vmem:[#allocation5 + $0xc20] sm:$0xff] }
 0x16a   :  { %8157 = vst [vmem:[#allocation133_spill] sm:$0xff] %v6197_v61  ;;  %v685_v37 = vld [vmem:[#allocation5 + $0xd20] sm:$0xff]  ;;  %v675_v53 = vld [vmem:[#allocation5 + $0xcd0] sm:$0xff] }
 0x16b   :  { %4337 = vmatpush1.bf16.msra.mxu1 %v6161_v7  ;;  %8155 = vst [vmem:[#allocation131_spill] sm:$0xff] %v6190_v4  ;;  %v6194_v7 = vpack.c.bf16 %v644_v33, %v612_v14  ;;  %8158 = vst [vmem:[#allocation134_spill] sm:$0xff] %v6199_v42  ;;  %v676_v14 = vld [vmem:[#allocation5 + $0xcd8] sm:$0xff]  ;;  %v707_v15 = vld [vmem:[#allocation5 + $0xdd0] sm:$0xff]  ;;  %v6209_v59 = vpack.c.bf16 %v685_v37, %v653_v62 }
 0x16c   :  { %4339 = vmatprep.subr.bf16.mxu1 %v6166_v5  ;;  %v654_v5 = vld [vmem:[#allocation5 + $0xc28] sm:$0xff]  ;;  %4697 = vmatpush1.bf16.msra.mxu0 %v6187_v8  ;;  %v708_v33 = vld [vmem:[#allocation5 + $0xdd8] sm:$0xff]  ;;  %v717_v24 = vld [vmem:[#allocation5 + $0xe20] sm:$0xff] }
 0x16d   :  { %8156 = vst [vmem:[#allocation132_spill] sm:$0xff] %v6194_v7  ;;  %v6202_v25 = vpack.c.bf16 %v686_v18, %v654_v5  ;;  %4699 = vmatprep.subr.bf16.mxu0 %v6194_v7  ;;  %v750_v8 = vld [vmem:[#allocation5 + $0xf28] sm:$0xff]  ;;  %8161 = vst [vmem:[#allocation137_spill] sm:$0xff] %v6209_v59  ;;  %v6211_v5 = vpack.c.bf16 %v707_v15, %v675_v53  ;;  %v749_v7 = vld [vmem:[#allocation5 + $0xf20] sm:$0xff] }
 0x16e   :  { %v739_v37 = vld [vmem:[#allocation5 + $0xed0] sm:$0xff]  ;;  %v6221_v53 = vpack.c.bf16 %v749_v7, %v717_v24  ;;  %v273_v15 = vld [vmem:[#allocation5 + $0x40] sm:$0xff] }
 0x16f   :  { %4341 = vmatpush1.bf16.msra.mxu1 %v6173_v30  ;;  %8159 = vst [vmem:[#allocation135_spill] sm:$0xff] %v6202_v25  ;;  %v6206_v30 = vpack.c.bf16 %v708_v33, %v676_v14  ;;  %8162 = vst [vmem:[#allocation138_spill] sm:$0xff] %v6211_v5  ;;  %v740_v14 = vld [vmem:[#allocation5 + $0xed8] sm:$0xff]  ;;  %v771_v62 = vld [vmem:[#allocation5 + $0xfd0] sm:$0xff] }
 0x170   :  { %4343 = vmatprep.subr.bf16.mxu1 %v6178_v56  ;;  %v718_v56 = vld [vmem:[#allocation5 + $0xe28] sm:$0xff]  ;;  %4701 = vmatpush1.bf16.msra.mxu0 %v6199_v42  ;;  %v772_v33 = vld [vmem:[#allocation5 + $0xfd8] sm:$0xff]  ;;  %8165 = vst [vmem:[#allocation141_spill] sm:$0xff] %v6221_v53  ;;  %v295_v7 = vld [vmem:[#allocation5 + $0xf0] sm:$0xff] }
 0x171   :  { %8160 = vst [vmem:[#allocation136_spill] sm:$0xff] %v6206_v30  ;;  %v6214_v18 = vpack.c.bf16 %v750_v8, %v718_v56  ;;  %4703 = vmatprep.subr.bf16.mxu0 %v6206_v30  ;;  %v306_v42 = vld [vmem:[#allocation5 + $0x148] sm:$0xff]  ;;  %v6223_v56 = vpack.c.bf16 %v771_v62, %v739_v37  ;;  %v305_v30 = vld [vmem:[#allocation5 + $0x140] sm:$0xff]  ;;  %v327_v24 = vld [vmem:[#allocation5 + $0x1f0] sm:$0xff] }
 0x172   :  { %v6233_v37 = vpack.c.bf16 %v305_v30, %v273_v15  ;;  %v337_v62 = vld [vmem:[#allocation5 + $0x240] sm:$0xff] }
 0x173   :  { %4345 = vmatpush1.bf16.msra.mxu1 %v6185_v58  ;;  %8163 = vst [vmem:[#allocation139_spill] sm:$0xff] %v6214_v18  ;;  %v6218_v58 = vpack.c.bf16 %v772_v33, %v740_v14  ;;  %8166 = vst [vmem:[#allocation142_spill] sm:$0xff] %v6223_v56  ;;  %v296_v14 = vld [vmem:[#allocation5 + $0xf8] sm:$0xff] }
 0x174   :  { %4347 = vmatprep.subr.bf16.mxu1 %v6190_v4  ;;  %v274_v4 = vld [vmem:[#allocation5 + $0x48] sm:$0xff]  ;;  %4705 = vmatpush1.bf16.msra.mxu0 %v6211_v5  ;;  %v328_v33 = vld [vmem:[#allocation5 + $0x1f8] sm:$0xff]  ;;  %8169 = vst [vmem:[#allocation145_spill] sm:$0xff] %v6233_v37 }
 0x175   :  { %8164 = vst [vmem:[#allocation140_spill] sm:$0xff] %v6218_v58  ;;  %v6226_v8 = vpack.c.bf16 %v306_v42, %v274_v4  ;;  %4707 = vmatprep.subr.bf16.mxu0 %v6218_v58  ;;  %v370_v5 = vld [vmem:[#allocation5 + $0x348] sm:$0xff]  ;;  %v6235_v4 = vpack.c.bf16 %v327_v24, %v295_v7  ;;  %v369_v58 = vld [vmem:[#allocation5 + $0x340] sm:$0xff] }
 0x176   :  { %v6249_v15 = vpack.c.bf16 %v369_v58, %v337_v62  ;;  %v423_v62 = vld [vmem:[#allocation5 + $0x4f0] sm:$0xff] }
 0x177   :  { %4349 = vmatpush1.bf16.msra.mxu1 %v6197_v61  ;;  %8167 = vst [vmem:[#allocation143_spill] sm:$0xff] %v6226_v8  ;;  %v6230_v61 = vpack.c.bf16 %v328_v33, %v296_v14  ;;  %8170 = vst [vmem:[#allocation146_spill] sm:$0xff] %v6235_v4  ;;  %v6241_v14 = vld [vmem:[#allocation2] sm:$0xff] }
 0x178   :  { %4351 = vmatprep.subr.bf16.mxu1 %v6202_v25  ;;  %v338_v25 = vld [vmem:[#allocation5 + $0x248] sm:$0xff]  ;;  %4709 = vmatpush1.bf16.msra.mxu0 %v6223_v56  ;;  %v360_v33 = vld [vmem:[#allocation5 + $0x2f8] sm:$0xff]  ;;  %8173 = vst [vmem:[#allocation149_spill] sm:$0xff] %v6249_v15 }
 0x179   :  { %8168 = vst [vmem:[#allocation144_spill] sm:$0xff] %v6230_v61  ;;  %v6238_v42 = vpack.c.bf16 %v370_v5, %v338_v25  ;;  %4743 = vmatprep.subr.bf16.mxu0 %v6230_v61  ;;  %v434_v56 = vld [vmem:[#allocation5 + $0x548] sm:$0xff]  ;;  %v359_v25 = vld [vmem:[#allocation5 + $0x2f0] sm:$0xff]  ;;  %v401_v61 = vld [vmem:[#allocation5 + $0x440] sm:$0xff] }
 0x17a   :  { %v391_v5 = vld [vmem:[#allocation5 + $0x3f0] sm:$0xff] }
 0x17b   :  { %4353 = vmatpush1.bf16.msra.mxu1 %v6209_v59  ;;  %8171 = vst [vmem:[#allocation147_spill] sm:$0xff] %v6238_v42  ;;  %1933 = vmatmul.mubr.f32.vlgmr.msra.gmra.mrb[14].mxu0 %v6241_v14  ;;  %v6252_v7 = vpack.c.bf16 %v391_v5, %v359_v25  ;;  %v466_v59 = vld [vmem:[#allocation5 + $0x648] sm:$0xff]  ;;  %v455_v25 = vld [vmem:[#allocation5 + $0x5f0] sm:$0xff] }
 0x17c   :  { %4355 = vmatprep.subr.bf16.mxu1 %v6214_v18  ;;  %v402_v18 = vld [vmem:[#allocation5 + $0x448] sm:$0xff]  ;;  %4745 = vmatpush1.bf16.msra.mxu0 %v6235_v4  ;;  %v456_v4 = vld [vmem:[#allocation5 + $0x5f8] sm:$0xff] }
 0x17d   :  { %8174 = vst [vmem:[#allocation150_spill] sm:$0xff] %v6252_v7  ;;  %v6255_v24 = vpack.c.bf16 %v434_v56, %v402_v18  ;;  %2074 = vmatprep.mubr.f32.mxu0 %v8104_v32  ;;  %v6265_v56 = vpack.c.bf16 %v455_v25, %v423_v62  ;;  %v529_v25 = vld [vmem:[#allocation5 + $0x840] sm:$0xff] }
 0x17f   :  { %4357 = vmatpush1.bf16.msra.mxu1 %v6221_v53  ;;  %v392_v53 = vld [vmem:[#allocation5 + $0x3f8] sm:$0xff]  ;;  %8175 = vst [vmem:[#allocation151_spill] sm:$0xff] %v6255_v24  ;;  %8178 = vst [vmem:[#allocation154_spill] sm:$0xff] %v6265_v56 }
 0x180   :  { %4391 = vmatprep.subr.bf16.mxu1 %v6226_v8  ;;  %v6246_v30 = vpack.c.bf16 %v392_v53, %v360_v33  ;;  %v433_v8 = vld [vmem:[#allocation5 + $0x540] sm:$0xff]  ;;  %v498_v53 = vld [vmem:[#allocation5 + $0x748] sm:$0xff]  ;;  %v424_v33 = vld [vmem:[#allocation5 + $0x4f8] sm:$0xff] }
 0x181   :  { %v6260_v58 = vpack.c.bf16 %v456_v4, %v424_v33  ;;  %v6263_v18 = vpack.c.bf16 %v433_v8, %v401_v61  ;;  %v6268_v5 = vpack.c.bf16 %v498_v53, %v466_v59  ;;  %v488_v4 = vld [vmem:[#allocation5 + $0x6f8] sm:$0xff]  ;;  %v487_v61 = vld [vmem:[#allocation5 + $0x6f0] sm:$0xff] }
 0x182   :  { %1152 = vmatmul.mubr.f32.vlgmr.msra.gmra.mrb[4].mxu1 %v6241_v14  ;;  %8172 = vst [vmem:[#allocation148_spill] sm:$0xff] %v6246_v30  ;;  %4747 = vmatprep.subr.bf16.mxu0 %v6246_v30  ;;  %v465_v30 = vld [vmem:[#allocation5 + $0x640] sm:$0xff]  ;;  %v520_v33 = vld [vmem:[#allocation5 + $0x7f8] sm:$0xff]  ;;  %v519_v8 = vld [vmem:[#allocation5 + $0x7f0] sm:$0xff] }
 0x183   :  { %4393 = vmatpush1.bf16.msra.mxu1 %v6233_v37  ;;  %1293 = vmatprep.mubr.f32.mxu1 %v8104_v32  ;;  %8176 = vst [vmem:[#allocation152_spill] sm:$0xff] %v6260_v58  ;;  %8177 = vst [vmem:[#allocation153_spill] sm:$0xff] %v6263_v18  ;;  %v530_v37 = vld [vmem:[#allocation5 + $0x848] sm:$0xff]  ;;  %v6272_v50 = vpack.c.bf16 %v520_v33, %v488_v4  ;;  %v6277_v59 = vpack.c.bf16 %v519_v8, %v487_v61  ;;  %v552_v4 = vld [vmem:[#allocation5 + $0x8f8] sm:$0xff]  ;;  %v785_v61 = vlaneseq }
 0x184   :  { %4395 = vmatprep.subr.bf16.mxu1 %v6238_v42  ;;  %4749 = vmatpush1.bf16.msra.mxu0 %v6252_v7  ;;  %8179 = vst [vmem:[#allocation155_spill] sm:$0xff] %v6268_v5  ;;  %v497_v42 = vld [vmem:[#allocation5 + $0x740] sm:$0xff]  ;;  %v562_v7 = vld [vmem:[#allocation5 + $0x948] sm:$0xff]  ;;  %v584_v33 = vld [vmem:[#allocation5 + $0x9f8] sm:$0xff] }
 0x185   :  { %4751 = vmatprep.subr.bf16.mxu0 %v6260_v58  ;;  %8180 = vst [vmem:[#allocation156_spill] sm:$0xff] %v6272_v50  ;;  %v6275_v62 = vpack.c.bf16 %v497_v42, %v465_v30  ;;  %8182 = vst [vmem:[#allocation158_spill] sm:$0xff] %v6277_v59  ;;  %v6280_v53 = vpack.c.bf16 %v562_v7, %v530_v37  ;;  %v561_v58 = vld [vmem:[#allocation5 + $0x940] sm:$0xff]  ;;  %v551_v42 = vld [vmem:[#allocation5 + $0x8f0] sm:$0xff] }
 0x186   :  { %v583_v30 = vld [vmem:[#allocation5 + $0x9f0] sm:$0xff]  ;;  %v6287_v8 = vpack.c.bf16 %v561_v58, %v529_v25 }
 0x187   :  { %4397 = vmatpush1.bf16.msra.mxu1 %v6249_v15  ;;  %8181 = vst [vmem:[#allocation157_spill] sm:$0xff] %v6275_v62  ;;  %8183 = vst [vmem:[#allocation159_spill] sm:$0xff] %v6280_v53  ;;  %v6284_v15 = vpack.c.bf16 %v584_v33, %v552_v4  ;;  %v6289_v37 = vpack.c.bf16 %v583_v30, %v551_v42  ;;  %v6295_v4 = vshrl.u32 %v785_v61, 7  ;;  %v690_v33 = vld [vmem:[#allocation5 + $0xd48] sm:$0xff]  ;;  %v647_v42 = vld [vmem:[#allocation5 + $0xbf0] sm:$0xff] }
 0x188   :  { %4399 = vmatprep.subr.bf16.mxu1 %v6255_v24  ;;  %4753 = vmatpush1.bf16.msra.mxu0 %v6265_v56  ;;  %v594_v24 = vld [vmem:[#allocation5 + $0xa48] sm:$0xff]  ;;  %8185 = vst [vmem:[#allocation161_spill] sm:$0xff] %v6287_v8  ;;  %v6309_v61 = vld [vmem:[#allocation7] sm:$0xff] }
 0x189   :  { %4755 = vmatprep.subr.bf16.mxu0 %v6272_v50  ;;  %v626_v56 = vld [vmem:[#allocation5 + $0xb48] sm:$0xff]  ;;  %8184 = vst [vmem:[#allocation160_spill] sm:$0xff] %v6284_v15  ;;  %8186 = vst [vmem:[#allocation162_spill] sm:$0xff] %v6289_v37  ;;  %v593_v50 = vld [vmem:[#allocation5 + $0xa40] sm:$0xff]  ;;  %v6299_v58 = vsub.s32 2, %v6295_v4 }
 0x18a   :  { %v6292_v7 = vpack.c.bf16 %v626_v56, %v594_v24  ;;  %v6304_v24 = vsub.s32 3, %v6295_v4  ;;  %v615_v56 = vld [vmem:[#allocation5 + $0xaf0] sm:$0xff] }
 0x18b   :  { %4401 = vmatpush1.bf16.msra.mxu1 %v6263_v18  ;;  %v658_v18 = vld [vmem:[#allocation5 + $0xc48] sm:$0xff]  ;;  %v796_v27 = vrot.slane %v6309_v61, %v6299_v58 }
 0x18c   :  { %4403 = vmatprep.subr.bf16.mxu1 %v6268_v5  ;;  %4757 = vmatpush1.bf16.msra.mxu0 %v6277_v59  ;;  %8187 = vst [vmem:[#allocation163_spill] sm:$0xff] %v6292_v7  ;;  %v625_v5 = vld [vmem:[#allocation5 + $0xb40] sm:$0xff]  ;;  %v616_v59 = vld [vmem:[#allocation5 + $0xaf8] sm:$0xff] }
 0x18d   :  { %4759 = vmatprep.subr.bf16.mxu0 %v6284_v15  ;;  %v6301_v25 = vpack.c.bf16 %v648_v52, %v616_v59  ;;  %v6307_v30 = vpack.c.bf16 %v625_v5, %v593_v50  ;;  %v1082_v15 = vpop.f32.mrb[2].mxu0  ;;  %v657_v52 = vld [vmem:[#allocation5 + $0xc40] sm:$0xff]  ;;  %v800_v50 = vrot.slane %v6309_v61, %v6304_v24 }
 0x18e   :  { %v689_v59 = vld [vmem:[#allocation5 + $0xd40] sm:$0xff]  ;;  %v1084_v5 = vpop.f32.mrb[3].mxu0 }
 0x18f   :  { %4405 = vmatpush1.bf16.msra.mxu1 %v6275_v62  ;;  %8188 = vst [vmem:[#allocation164_spill] sm:$0xff] %v6301_v25  ;;  %8189 = vst [vmem:[#allocation165_spill] sm:$0xff] %v6307_v30  ;;  %v722_v62 = vld [vmem:[#allocation5 + $0xe48] sm:$0xff] }
 0x190   :  { %4407 = vmatprep.subr.bf16.mxu1 %v6280_v53  ;;  %4761 = vmatpush1.bf16.msra.mxu0 %v6289_v37  ;;  %v6311_v53 = vpack.c.bf16 %v647_v42, %v615_v56  ;;  %v6314_v37 = vpack.c.bf16 %v690_v33, %v658_v18  ;;  %v712_v56 = vld [vmem:[#allocation5 + $0xdf8] sm:$0xff]  ;;  %v6321_v42 = vadd.f32 %v1082_v15, %v796_v27  ;;  %v679_v33 = vld [vmem:[#allocation5 + $0xcf0] sm:$0xff]  ;;  %v721_v27 = vld [vmem:[#allocation5 + $0xe40] sm:$0xff] }
 0x191   :  { %4763 = vmatprep.subr.bf16.mxu0 %v6301_v25  ;;  %v6326_v18 = vpack.c.bf16 %v712_v56, %v680_v47  ;;  %v6329_v25 = vpack.c.bf16 %v689_v59, %v657_v52  ;;  %v6331_v46 = vpack.c.bf16 %v711_v0, %v679_v33  ;;  %v753_v15 = vld [vmem:[#allocation5 + $0xf40] sm:$0xff]  ;;  %v278_v47 = vld [vmem:[#allocation5 + $0x68] sm:$0xff]  ;;  %v775_v59 = vld [vmem:[#allocation5 + $0xff0] sm:$0xff] }
 0x192   :  { %8190 = vst [vmem:[#allocation166_spill] sm:$0xff] %v6311_v53  ;;  %8191 = vst [vmem:[#allocation167_spill] sm:$0xff] %v6314_v37  ;;  %v310_v56 = vld [vmem:[#allocation5 + $0x168] sm:$0xff]  ;;  %v6345_v33 = vpack.c.bf16 %v753_v15, %v721_v27  ;;  %v341_v15 = vld [vmem:[#allocation5 + $0x260] sm:$0xff]  ;;  %vm2691_vm2 = vcmp.lt.f32.partialorder %v6321_v42, 0.0 }
 0x193   :  { %4409 = vmatpush1.bf16.msra.mxu1 %v6287_v8  ;;  %v754_v8 = vld [vmem:[#allocation5 + $0xf48] sm:$0xff]  ;;  %8192 = vst [vmem:[#allocation168_spill] sm:$0xff] %v6326_v18  ;;  %8193 = vst [vmem:[#allocation169_spill] sm:$0xff] %v6329_v25 }
 0x194   :  { %4411 = vmatprep.subr.bf16.mxu1 %v6292_v7  ;;  %v6323_v7 = vadd.f32 %v1084_v5, %v800_v50  ;;  %4765 = vmatpush1.bf16.msra.mxu0 %v6311_v53  ;;  %8194 = vst [vmem:[#allocation170_spill] sm:$0xff] %v6331_v46  ;;  %v6334_v48 = vpack.c.bf16 %v754_v8, %v722_v62  ;;  %v7907_v50 = vand.u32 2147483647, %v6321_v42  ;;  %v744_v53 = vld [vmem:[#allocation5 + $0xef8] sm:$0xff]  ;;  %v743_v8 = vld [vmem:[#allocation5 + $0xef0] sm:$0xff]  ;;  %8196 = vst [vmem:[#allocation172_spill] sm:$0xff] %v6345_v33 }
 0x195   :  { %4767 = vmatprep.subr.bf16.mxu0 %v6326_v18  ;;  %v776_v62 = vld [vmem:[#allocation5 + $0xff8] sm:$0xff]  ;;  %v6349_v18 = vpack.c.bf16 %v775_v59, %v743_v8  ;;  %v469_v8 = vld [vmem:[#allocation5 + $0x660] sm:$0xff] }
 0x196   :  { %8195 = vst [vmem:[#allocation171_spill] sm:$0xff] %v6334_v48  ;;  %v7909_v5 = vand.u32 2147483647, %v6323_v7  ;;  %v2115_v52 = vmul.f32 -2.0, %v7907_v50  ;;  %v277_v50 = vld [vmem:[#allocation5 + $0x60] sm:$0xff]  ;;  %vm2692_vm3 = vcmp.lt.f32.partialorder %v6323_v7, 0.0 }
 0x197   :  { %4413 = vmatpush1.bf16.msra.mxu1 %v6307_v30  ;;  %8198 = vst [vmem:[#allocation174_spill] sm:$0xff] %v6349_v18  ;;  %v6352_v30 = vpack.c.bf16 %v310_v56, %v278_v47  ;;  %v373_v47 = vld [vmem:[#allocation5 + $0x360] sm:$0xff]  ;;  %v406_v56 = vld [vmem:[#allocation5 + $0x468] sm:$0xff] }
 0x198   :  { %4415 = vmatprep.subr.bf16.mxu1 %v6314_v37  ;;  %v2116_v0 = vmul.f32 -2.0, %v7909_v5  ;;  %4769 = vmatpush1.bf16.msra.mxu0 %v6331_v46  ;;  %v6347_v37 = vpack.c.bf16 %v776_v62, %v744_v53  ;;  %v2149_v5 = vmul.f32 1.442695, %v2115_v52  ;;  %v342_v46 = vld [vmem:[#allocation5 + $0x268] sm:$0xff]  ;;  %v6357_v53 = vpack.c.bf16 %v309_v41, %v277_v50  ;;  %v501_v59 = vld [vmem:[#allocation5 + $0x760] sm:$0xff] }
 0x199   :  { %8199 = vst [vmem:[#allocation175_spill] sm:$0xff] %v6352_v30  ;;  %v6361_v27 = vpack.c.bf16 %v374_v40, %v342_v46  ;;  %v438_v52 = vld [vmem:[#allocation5 + $0x568] sm:$0xff]  ;;  %v405_v40 = vld [vmem:[#allocation5 + $0x460] sm:$0xff] }
 0x19a   :  { %8197 = vst [vmem:[#allocation173_spill] sm:$0xff] %v6347_v37  ;;  %v2151_v19 = vmul.f32 1.442695, %v2116_v0  ;;  %4771 = vmatprep.subr.bf16.mxu0 %v6347_v37  ;;  %5334 = vpow2.f32 %v2149_v5  ;;  %8200 = vst [vmem:[#allocation176_spill] sm:$0xff] %v6357_v53  ;;  %v6366_v5 = vpack.c.bf16 %v373_v47, %v341_v15  ;;  %v6370_v41 = vpack.c.bf16 %v438_v52, %v406_v56  ;;  %v437_v46 = vld [vmem:[#allocation5 + $0x560] sm:$0xff]  ;;  %v534_v47 = vld [vmem:[#allocation5 + $0x868] sm:$0xff] }
 0x19b   :  { %4417 = vmatpush1.bf16.msra.mxu1 %v6329_v25  ;;  %8201 = vst [vmem:[#allocation177_spill] sm:$0xff] %v6361_v27  ;;  %v6373_v50 = vpack.c.bf16 %v437_v46, %v405_v40  ;;  %v566_v56 = vld [vmem:[#allocation5 + $0x968] sm:$0xff]  ;;  %v533_v46 = vld [vmem:[#allocation5 + $0x860] sm:$0xff] }
 0x19c   :  { %4419 = vmatprep.subr.bf16.mxu1 %v6334_v48  ;;  %4773 = vmatpush1.bf16.msra.mxu0 %v6349_v18  ;;  %5336 = vpow2.f32 %v2151_v19  ;;  %8202 = vst [vmem:[#allocation178_spill] sm:$0xff] %v6366_v5  ;;  %8203 = vst [vmem:[#allocation179_spill] sm:$0xff] %v6370_v41  ;;  %v502_v19 = vld [vmem:[#allocation5 + $0x768] sm:$0xff]  ;;  %v6391_v40 = vpack.c.bf16 %v566_v56, %v534_v47  ;;  %v629_v47 = vld [vmem:[#allocation5 + $0xb60] sm:$0xff] }
 0x19d   :  { %4775 = vmatprep.subr.bf16.mxu0 %v5837_v2  ;;  %v470_v2 = vld [vmem:[#allocation5 + $0x668] sm:$0xff]  ;;  %8204 = vst [vmem:[#allocation180_spill] sm:$0xff] %v6373_v50  ;;  %v725_v48 = vld [vmem:[#allocation5 + $0xe60] sm:$0xff] }
 0x19e   :  { %v6379_v62 = vpack.c.bf16 %v502_v19, %v470_v2  ;;  %8207 = vst [vmem:[#allocation183_spill] sm:$0xff] %v6391_v40  ;;  %v565_v2 = vld [vmem:[#allocation5 + $0x960] sm:$0xff]  ;;  %v598_v19 = vld [vmem:[#allocation5 + $0xa68] sm:$0xff] }
 0x19f   :  { %4421 = vmatpush1.bf16.msra.mxu1 %v6345_v33  ;;  %2075 = vmatmul.mubr.f32.vlgmr.msra.gmra.mrb[16].mxu0 %v6241_v14  ;;  %v630_v18 = vld [vmem:[#allocation5 + $0xb68] sm:$0xff]  ;;  %v6399_v37 = vpack.c.bf16 %v565_v2, %v533_v46  ;;  %v6414_v2 = vsub.s32 7, %v6295_v4 }
 0x1a0   :  { %4455 = vmatprep.subr.bf16.mxu1 %v6352_v30  ;;  %8205 = vst [vmem:[#allocation181_spill] sm:$0xff] %v6379_v62  ;;  %v662_v56 = vld [vmem:[#allocation5 + $0xc68] sm:$0xff] }
 0x1a1   :  { %8208 = vst [vmem:[#allocation184_spill] sm:$0xff] %v6399_v37  ;;  %v378_v25 = vld [vmem:[#allocation5 + $0x388] sm:$0xff] }
 0x1a2   :  { %1294 = vmatmul.mubr.f32.vlgmr.msra.gmra.mrb[6].mxu1 %v6241_v14 }
 0x1a3   :  { %4457 = vmatpush1.bf16.msra.mxu1 %v6357_v53  ;;  %1435 = vmatprep.mubr.f32.mxu1 %v8104_v32 }
 0x1a4   :  { %4459 = vmatprep.subr.bf16.mxu1 %v6361_v27  ;;  %v6376_v0 = vpop.eup %5334 }
 0x1a5   :  { %4777 = vmatpush1.bf16.xpose.msra.mxu0 %v6034_v1  ;;  %v6385_v52 = vadd.f32 1.0, %v6376_v0  ;;  %v6388_v1 = vpack.c.bf16 %v501_v59, %v469_v8  ;;  %v6403_v8 = vpack.c.bf16 %v630_v18, %v598_v19  ;;  %v597_v59 = vld [vmem:[#allocation5 + $0xa60] sm:$0xff]  ;;  %v2563_v46 = vsub.f32 1.0, %v6376_v0 }
 0x1a6   :  { %4779 = vmatprep.subr.bf16.mxu0 %v6038_v43  ;;  %v6382_v15 = vpop.eup %5336  ;;  %v693_v19 = vld [vmem:[#allocation5 + $0xd60] sm:$0xff] }
 0x1a7   :  { %4461 = vmatpush1.bf16.msra.mxu1 %v6366_v5  ;;  %8206 = vst [vmem:[#allocation182_spill] sm:$0xff] %v6388_v1  ;;  %5338 = vrcp.f32 %v6385_v52  ;;  %v6395_v43 = vadd.f32 1.0, %v6382_v15  ;;  %8209 = vst [vmem:[#allocation185_spill] sm:$0xff] %v6403_v8  ;;  %v758_v5 = vld [vmem:[#allocation5 + $0xf68] sm:$0xff] }
 0x1a8   :  { %4463 = vmatprep.subr.bf16.mxu1 %v6370_v41  ;;  %v726_v41 = vld [vmem:[#allocation5 + $0xe68] sm:$0xff] }
 0x1a9   :  { %5340 = vrcp.f32 %v6395_v43  ;;  %v6433_v33 = vpack.c.bf16 %v758_v5, %v726_v41 }
 0x1ab   :  { %4465 = vmatpush1.bf16.msra.mxu1 %v6373_v50  ;;  %v6407_v50 = vsub.s32 6, %v6295_v4  ;;  %8214 = vst [vmem:[#allocation190_spill] sm:$0xff] %v6433_v33 }
 0x1ac   :  { %4467 = vmatprep.subr.bf16.mxu1 %v6379_v62  ;;  %v694_v62 = vld [vmem:[#allocation5 + $0xd68] sm:$0xff] }
 0x1ad   :  { %4781 = vmatpush1.bf16.xpose.msra.mxu0 %v6048_v3  ;;  %8210 = vst [vmem:[#allocation186_spill] sm:$0xff] %v6407_v50  ;;  %v1224_v3 = vpop.f32.mrb[4].mxu0  ;;  %v6417_v18 = vpack.c.bf16 %v694_v62, %v662_v56 }
 0x1ae   :  { %4783 = vmatprep.subr.bf16.mxu0 %v6054_v44  ;;  %v661_v44 = vld [vmem:[#allocation5 + $0xc60] sm:$0xff]  ;;  %v1226_v53 = vpop.f32.mrb[5].mxu0 }
 0x1af   :  { %4469 = vmatpush1.bf16.msra.mxu1 %v6388_v1  ;;  %v6410_v1 = vpack.c.bf16 %v629_v47, %v597_v59  ;;  %8212 = vst [vmem:[#allocation188_spill] sm:$0xff] %v6417_v18  ;;  %v2564_v59 = vsub.f32 1.0, %v6382_v15  ;;  %v816_v47 = vrot.slane %v6309_v61, %v6414_v2  ;;  %v6427_v62 = vpack.c.bf16 %v693_v19, %v661_v44  ;;  %v314_v44 = vld [vmem:[#allocation5 + $0x188] sm:$0xff]  ;;  %v1366_v34 = vpop.f32.mrb[6].mxu0 }
 0x1b0   :  { %4471 = vmatprep.subr.bf16.mxu1 %v6391_v40  ;;  %v812_v40 = vrot.slane %v6309_v61, %v6407_v50  ;;  %v757_v61 = vld [vmem:[#allocation5 + $0xf60] sm:$0xff] }
 0x1b1   :  { %8211 = vst [vmem:[#allocation187_spill] sm:$0xff] %v6410_v1  ;;  %8213 = vst [vmem:[#allocation189_spill] sm:$0xff] %v6427_v62  ;;  %v6443_v5 = vpack.c.bf16 %v757_v61, %v725_v48 }
 0x1b2   :  { %v6424_v27 = vadd.f32 %v1224_v3, %v812_v40  ;;  %v282_v3 = vld [vmem:[#allocation5 + $0x88] sm:$0xff] }
 0x1b3   :  { %4473 = vmatpush1.bf16.msra.mxu1 %v6399_v37  ;;  %v5339_v37 = vpop.eup %5338  ;;  %8215 = vst [vmem:[#allocation191_spill] sm:$0xff] %v6443_v5 }
 0x1b4   :  { %4475 = vmatprep.subr.bf16.mxu1 %v6403_v8  ;;  %v2659_v56 = vmul.f32 %v5339_v37, %v2563_v46  ;;  %v6429_v8 = vadd.f32 %v1226_v53, %v816_v47  ;;  %v5341_v30 = vpop.eup %5340  ;;  %v7931_v40 = vand.u32 2147483647, %v6424_v27  ;;  %v281_v47 = vld [vmem:[#allocation5 + $0x80] sm:$0xff]  ;;  %vm2695_vm4 = vcmp.lt.f32.partialorder %v6424_v27, 0.0 }
 0x1b5   :  { %4785 = vmatpush1.bf16.xpose.msra.mxu0 %v6061_v9  ;;  %v2660_v53 = vmul.f32 %v5341_v30, %v2564_v59  ;;  %v313_v30 = vld [vmem:[#allocation5 + $0x180] sm:$0xff] }
 0x1b6   :  { %4787 = vmatprep.subr.bf16.mxu0 %v6066_v57  ;;  %v2723_v37 = vsub.f32 0.0, %v2659_v56  ;;  %v7932_v46 = vand.u32 2147483647, %v6429_v8  ;;  %v2119_v9 = vmul.f32 -2.0, %v7931_v40  ;;  %v6448_v57 = vpack.c.bf16 %v314_v44, %v282_v3  ;;  %v345_v3 = vld [vmem:[#allocation5 + $0x280] sm:$0xff] }
 0x1b7   :  { %4477 = vmatpush1.bf16.msra.mxu1 %v6410_v1  ;;  %v2724_v19 = vsub.f32 0.0, %v2660_v53  ;;  %v346_v1 = vld [vmem:[#allocation5 + $0x288] sm:$0xff]  ;;  %v377_v44 = vld [vmem:[#allocation5 + $0x380] sm:$0xff]  ;;  %vm2696_vm5 = vcmp.lt.f32.partialorder %v6429_v8, 0.0 }
 0x1b8   :  { %4479 = vmatprep.subr.bf16.mxu1 %v6417_v18  ;;  %v6445_v41 = vsel %vm2691_vm2, %v2723_v37, %v2659_v56  ;;  %v2157_v59 = vmul.f32 1.442695, %v2119_v9  ;;  %v2120_v18 = vmul.f32 -2.0, %v7932_v46  ;;  %v6455_v56 = vpack.c.bf16 %v313_v30, %v281_v47  ;;  %v410_v37 = vld [vmem:[#allocation5 + $0x488] sm:$0xff] }
 0x1b9   :  { %8216 = vst [vmem:[#allocation192_spill] sm:$0xff] %v6445_v41  ;;  %v6452_v40 = vsel %vm2692_vm3, %v2724_v19, %v2660_v53  ;;  %v6459_v61 = vpack.c.bf16 %v378_v25, %v346_v1  ;;  %v442_v9 = vld [vmem:[#allocation5 + $0x588] sm:$0xff]  ;;  %v409_v25 = vld [vmem:[#allocation5 + $0x480] sm:$0xff] }
 0x1ba   :  { %8217 = vst [vmem:[#allocation193_spill] sm:$0xff] %v6452_v40  ;;  %5342 = vpow2.f32 %v2157_v59  ;;  %v2159_v48 = vmul.f32 1.442695, %v2120_v18  ;;  %v6464_v18 = vpack.c.bf16 %v377_v44, %v345_v3  ;;  %v441_v1 = vld [vmem:[#allocation5 + $0x580] sm:$0xff]  ;;  %v474_v53 = vld [vmem:[#allocation5 + $0x688] sm:$0xff] }
 0x1bb   :  { %4481 = vmatpush1.bf16.msra.mxu1 %v6427_v62  ;;  %v506_v19 = vld [vmem:[#allocation5 + $0x788] sm:$0xff]  ;;  %v473_v59 = vld [vmem:[#allocation5 + $0x680] sm:$0xff] }
 0x1bc   :  { %4483 = vmatprep.subr.bf16.mxu1 %v6433_v33  ;;  %5344 = vpow2.f32 %v2159_v48  ;;  %v6477_v30 = vpack.c.bf16 %v506_v19, %v474_v53  ;;  %v505_v48 = vld [vmem:[#allocation5 + $0x780] sm:$0xff]  ;;  %v538_v3 = vld [vmem:[#allocation5 + $0x888] sm:$0xff] }
 0x1bd   :  { %4789 = vmatpush1.bf16.xpose.msra.mxu0 %v6073_v31  ;;  %v6468_v31 = vpack.c.bf16 %v442_v9, %v410_v37  ;;  %v570_v44 = vld [vmem:[#allocation5 + $0x988] sm:$0xff]  ;;  %v569_v53 = vld [vmem:[#allocation5 + $0x980] sm:$0xff] }
 0x1be   :  { %4791 = vmatprep.subr.bf16.mxu0 %v6078_v54  ;;  %v6471_v54 = vpack.c.bf16 %v441_v1, %v409_v25  ;;  %v6489_v25 = vpack.c.bf16 %v570_v44, %v538_v3  ;;  %v537_v1 = vld [vmem:[#allocation5 + $0x880] sm:$0xff]  ;;  %v634_v19 = vld [vmem:[#allocation5 + $0xb88] sm:$0xff] }
 0x1bf   :  { %4485 = vmatpush1.bf16.msra.mxu1 %v6443_v5  ;;  %v6496_v5 = vpack.c.bf16 %v569_v53, %v537_v1  ;;  %v633_v3 = vld [vmem:[#allocation5 + $0xb80] sm:$0xff]  ;;  %v666_v44 = vld [vmem:[#allocation5 + $0xc88] sm:$0xff] }
 0x1c0   :  { %4519 = vmatprep.subr.bf16.mxu1 %v6448_v57  ;;  %v698_v33 = vld [vmem:[#allocation5 + $0xd88] sm:$0xff]  ;;  %v665_v53 = vld [vmem:[#allocation5 + $0xc80] sm:$0xff] }
 0x1c2   :  { %1436 = vmatmul.mubr.f32.vlgmr.msra.gmra.mrb[8].mxu1 %v6241_v14 }
 0x1c3   :  { %4521 = vmatpush1.bf16.msra.mxu1 %v6455_v56  ;;  %1577 = vmatprep.mubr.f32.mxu1 %v8104_v32 }
 0x1c4   :  { %4523 = vmatprep.subr.bf16.mxu1 %v6459_v61  ;;  %v6474_v47 = vpop.eup %5342 }
 0x1c5   :  { %4793 = vmatpush1.bf16.xpose.msra.mxu0 %v6085_v39  ;;  %v6481_v37 = vadd.f32 1.0, %v6474_v47  ;;  %v6486_v39 = vpack.c.bf16 %v505_v48, %v473_v59  ;;  %v601_v48 = vld [vmem:[#allocation5 + $0xa80] sm:$0xff]  ;;  %v2567_v1 = vsub.f32 1.0, %v6474_v47 }
 0x1c6   :  { %4795 = vmatprep.subr.bf16.mxu0 %v6090_v21  ;;  %v6483_v9 = vpop.eup %5344  ;;  %v602_v21 = vld [vmem:[#allocation5 + $0xa88] sm:$0xff]  ;;  %v6505_v62 = vpack.c.bf16 %v633_v3, %v601_v48 }
 0x1c7   :  { %4525 = vmatpush1.bf16.msra.mxu1 %v6464_v18  ;;  %5346 = vrcp.f32 %v6481_v37  ;;  %v6493_v46 = vadd.f32 1.0, %v6483_v9  ;;  %v6500_v59 = vpack.c.bf16 %v634_v19, %v602_v21  ;;  %v697_v21 = vld [vmem:[#allocation5 + $0xd80] sm:$0xff]  ;;  %v730_v19 = vld [vmem:[#allocation5 + $0xe88] sm:$0xff] }
 0x1c8   :  { %4527 = vmatprep.subr.bf16.mxu1 %v6468_v31  ;;  %v6516_v48 = vpack.c.bf16 %v697_v21, %v665_v53  ;;  %v6521_v51 = vpack.c.bf16 %v762_v6, %v730_v19  ;;  %v318_v53 = vld [vmem:[#allocation5 + $0x1a8] sm:$0xff]  ;;  %v6533_v19 = vpack.c.bf16 %v761_v60, %v729_v29  ;;  %v6547_v60 = vpack.c.bf16 %v317_v22, %v285_v55  ;;  %v445_v55 = vld [vmem:[#allocation5 + $0x5a0] sm:$0xff] }
 0x1c9   :  { %5348 = vrcp.f32 %v6493_v46 }
 0x1ca   :  { %8218 = vst [vmem:[#allocation194_spill] sm:$0xff] %v6516_v48  ;;  %8219 = vst [vmem:[#allocation195_spill] sm:$0xff] %v6521_v51 }
 0x1cb   :  { %4529 = vmatpush1.bf16.msra.mxu1 %v6471_v54  ;;  %8222 = vst [vmem:[#allocation198_spill] sm:$0xff] %v6533_v19  ;;  %8225 = vst [vmem:[#allocation201_spill] sm:$0xff] %v6547_v60 }
 0x1cc   :  { %4531 = vmatprep.subr.bf16.mxu1 %v6477_v30 }
 0x1cd   :  { %4797 = vmatpush1.bf16.xpose.msra.mxu0 %v6097_v26  ;;  %v6509_v26 = vpack.c.bf16 %v698_v33, %v666_v44  ;;  %v832_v33 = vrot.slane %v6511_v35, %v6304_v24  ;;  %v1368_v44 = vpop.f32.mrb[7].mxu0 }
 0x1ce   :  { %4799 = vmatprep.subr.bf16.mxu0 %v6102_v49  ;;  %v828_v49 = vrot.slane %v6511_v35, %v6299_v58 }
 0x1cf   :  { %4533 = vmatpush1.bf16.msra.mxu1 %v6486_v39 }
 0x1d0   :  { %4535 = vmatprep.subr.bf16.mxu1 %v6489_v25  ;;  %v6524_v28 = vadd.f32 %v1366_v34, %v828_v49 }
 0x1d1   :  { %v5347_v38 = vpop.eup %5346 }
 0x1d2   :  { %v2663_v3 = vmul.f32 %v5347_v38, %v2567_v1  ;;  %8220 = vst [vmem:[#allocation196_spill] sm:$0xff] %v6524_v28  ;;  %v2568_v38 = vsub.f32 1.0, %v6483_v9  ;;  %v6528_v1 = vadd.f32 %v1368_v44, %v832_v33  ;;  %v7950_v6 = vand.u32 2147483647, %v6524_v28  ;;  %v350_v44 = vld [vmem:[#allocation5 + $0x2a8] sm:$0xff] }
 0x1d3   :  { %4537 = vmatpush1.bf16.msra.mxu1 %v6496_v5  ;;  %v5349_v23 = vpop.eup %5348  ;;  %vm2699_vm6 = vcmp.lt.f32.partialorder %v6524_v28, 0.0  ;;  %v357_v28 = vld [vmem:[#allocation5 + $0x2e0] sm:$0xff] }
 0x1d4   :  { %4539 = vmatprep.subr.bf16.mxu1 %v6500_v59  ;;  %v2727_v21 = vsub.f32 0.0, %v2663_v3  ;;  %8221 = vst [vmem:[#allocation197_spill] sm:$0xff] %v6528_v1  ;;  %v2664_v49 = vmul.f32 %v5349_v23, %v2568_v38  ;;  %v2123_v33 = vmul.f32 -2.0, %v7950_v6  ;;  %v446_v6 = vld [vmem:[#allocation5 + $0x5a8] sm:$0xff]  ;;  %vm2700_vm7 = vcmp.lt.f32.partialorder %v6528_v1, 0.0 }
 0x1d5   :  { %4801 = vmatpush1.bf16.xpose.msra.mxu0 %v6109_v63  ;;  %v6538_v63 = vpack.c.bf16 %v318_v53, %v286_v13  ;;  %v349_v53 = vld [vmem:[#allocation5 + $0x2a0] sm:$0xff] }
 0x1d6   :  { %4803 = vmatprep.subr.bf16.mxu0 %v6114_v36  ;;  %v6535_v34 = vsel %vm2695_vm4, %v2727_v21, %v2663_v3  ;;  %v7951_v36 = vand.u32 2147483647, %v6528_v1  ;;  %v2728_v17 = vsub.f32 0.0, %v2664_v49  ;;  %v2165_v29 = vmul.f32 1.442695, %v2123_v33  ;;  %v381_v21 = vld [vmem:[#allocation5 + $0x3a0] sm:$0xff] }
 0x1d7   :  { %4541 = vmatpush1.bf16.msra.mxu1 %v6505_v62  ;;  %8223 = vst [vmem:[#allocation199_spill] sm:$0xff] %v6535_v34  ;;  %8224 = vst [vmem:[#allocation200_spill] sm:$0xff] %v6538_v63  ;;  %v6552_v3 = vpack.c.bf16 %v382_v45, %v350_v44  ;;  %v414_v33 = vld [vmem:[#allocation5 + $0x4a8] sm:$0xff]  ;;  %v413_v45 = vld [vmem:[#allocation5 + $0x4a0] sm:$0xff] }
 0x1d8   :  { %4543 = vmatprep.subr.bf16.mxu1 %v6509_v26  ;;  %v2124_v23 = vmul.f32 -2.0, %v7951_v36  ;;  %v6549_v13 = vsel %vm2696_vm5, %v2728_v17, %v2664_v49  ;;  %5350 = vpow2.f32 %v2165_v29  ;;  %v6558_v17 = vpack.c.bf16 %v381_v21, %v349_v53  ;;  %v510_v49 = vld [vmem:[#allocation5 + $0x7a8] sm:$0xff]  ;;  %v477_v29 = vld [vmem:[#allocation5 + $0x6a0] sm:$0xff] }
 0x1d9   :  { %8226 = vst [vmem:[#allocation202_spill] sm:$0xff] %v6549_v13  ;;  %8227 = vst [vmem:[#allocation203_spill] sm:$0xff] %v6552_v3  ;;  %v6562_v22 = vpack.c.bf16 %v446_v6, %v414_v33  ;;  %v542_v53 = vld [vmem:[#allocation5 + $0x8a8] sm:$0xff]  ;;  %v573_v36 = vld [vmem:[#allocation5 + $0x9a0] sm:$0xff] }
 0x1da   :  { %v2167_v38 = vmul.f32 1.442695, %v2124_v23  ;;  %8228 = vst [vmem:[#allocation204_spill] sm:$0xff] %v6558_v17  ;;  %v509_v23 = vld [vmem:[#allocation5 + $0x7a0] sm:$0xff]  ;;  %v574_v21 = vld [vmem:[#allocation5 + $0x9a8] sm:$0xff] }
 0x1db   :  { %4545 = vmatpush1.bf16.msra.mxu1 %v6516_v48  ;;  %8229 = vst [vmem:[#allocation205_spill] sm:$0xff] %v6562_v22  ;;  %v6573_v6 = vpack.c.bf16 %v509_v23, %v477_v29  ;;  %v322_v13 = vld [vmem:[#allocation5 + $0x1c8] sm:$0xff] }
 0x1dc   :  { %4547 = vmatprep.subr.bf16.mxu1 %v6521_v51  ;;  %5352 = vpow2.f32 %v2167_v38  ;;  %v6622_v34 = vpack.c.bf16 %v322_v13, %v290_v16 }
 0x1dd   :  { %4805 = vmatpush1.bf16.xpose.msra.mxu0 %v6121_v12  ;;  %v478_v12 = vld [vmem:[#allocation5 + $0x6a8] sm:$0xff]  ;;  %8232 = vst [vmem:[#allocation208_spill] sm:$0xff] %v6573_v6 }
 0x1de   :  { %4807 = vmatprep.subr.bf16.mxu0 %v5777_v10  ;;  %v6565_v10 = vpack.c.bf16 %v445_v55, %v413_v45  ;;  %v6568_v44 = vpack.c.bf16 %v510_v49, %v478_v12  ;;  %v6578_v45 = vpack.c.bf16 %v574_v21, %v542_v53  ;;  %v541_v55 = vld [vmem:[#allocation5 + $0x8a0] sm:$0xff]  ;;  %v606_v49 = vld [vmem:[#allocation5 + $0xaa8] sm:$0xff]  ;;  %8243 = vst [vmem:[#allocation219_spill] sm:$0xff] %v6622_v34 }
 0x1df   :  { %4549 = vmatpush1.bf16.msra.mxu1 %v6533_v19  ;;  %v605_v53 = vld [vmem:[#allocation5 + $0xaa0] sm:$0xff] }
 0x1e0   :  { %4583 = vmatprep.subr.bf16.mxu1 %v6538_v63  ;;  %8230 = vst [vmem:[#allocation206_spill] sm:$0xff] %v6565_v10  ;;  %8231 = vst [vmem:[#allocation207_spill] sm:$0xff] %v6568_v44  ;;  %v637_v21 = vld [vmem:[#allocation5 + $0xba0] sm:$0xff]  ;;  %v844_v63 = vrot.slane %v6511_v35, %v6407_v50 }
 0x1e1   :  { %8233 = vst [vmem:[#allocation209_spill] sm:$0xff] %v6578_v45 }
 0x1e2   :  { %1578 = vmatmul.mubr.f32.vlgmr.msra.gmra.mrb[10].mxu1 %v6241_v14  ;;  %v6570_v38 = vpop.eup %5350 }
 0x1e3   :  { %4585 = vmatpush1.bf16.msra.mxu1 %v6547_v60  ;;  %1719 = vmatprep.mubr.f32.mxu1 %v8104_v32  ;;  %v6581_v12 = vadd.f32 1.0, %v6570_v38  ;;  %v734_v60 = vld [vmem:[#allocation5 + $0xea8] sm:$0xff] }
 0x1e4   :  { %4587 = vmatprep.subr.bf16.mxu1 %v6552_v3  ;;  %v6595_v3 = vpack.c.bf16 %v637_v21, %v605_v53  ;;  %v848_v53 = vrot.slane %v6511_v35, %v6414_v2 }
 0x1e5   :  { %5354 = vrcp.f32 %v6581_v12 }
 0x1e6   :  { %v6575_v33 = vpop.eup %5352  ;;  %8236 = vst [vmem:[#allocation212_spill] sm:$0xff] %v6595_v3 }
 0x1e7   :  { %4589 = vmatpush1.bf16.msra.mxu1 %v6558_v17  ;;  %v6588_v29 = vadd.f32 1.0, %v6575_v33  ;;  %v702_v17 = vld [vmem:[#allocation5 + $0xda8] sm:$0xff]  ;;  %v2572_v40 = vsub.f32 1.0, %v6575_v33 }
 0x1e8   :  { %4591 = vmatprep.subr.bf16.mxu1 %v6562_v22  ;;  %v638_v22 = vld [vmem:[#allocation5 + $0xba8] sm:$0xff] }
 0x1e9   :  { %v6591_v23 = vpack.c.bf16 %v638_v22, %v606_v49  ;;  %5356 = vrcp.f32 %v6588_v29  ;;  %v2571_v22 = vsub.f32 1.0, %v6570_v38 }
 0x1eb   :  { %4593 = vmatpush1.bf16.msra.mxu1 %v6565_v10  ;;  %v6585_v10 = vpack.c.bf16 %v573_v36, %v541_v55  ;;  %8235 = vst [vmem:[#allocation211_spill] sm:$0xff] %v6591_v23  ;;  %v669_v55 = vld [vmem:[#allocation5 + $0xca0] sm:$0xff] }
 0x1ec   :  { %4595 = vmatprep.subr.bf16.mxu1 %v6568_v44  ;;  %v670_v44 = vld [vmem:[#allocation5 + $0xca8] sm:$0xff] }
 0x1ed   :  { %8234 = vst [vmem:[#allocation210_spill] sm:$0xff] %v6585_v10  ;;  %v6598_v36 = vpack.c.bf16 %v702_v17, %v670_v44  ;;  %v733_v44 = vld [vmem:[#allocation5 + $0xea0] sm:$0xff] }
 0x1ef   :  { %4597 = vmatpush1.bf16.msra.mxu1 %v6573_v6  ;;  %8237 = vst [vmem:[#allocation213_spill] sm:$0xff] %v6598_v36  ;;  %v701_v6 = vld [vmem:[#allocation5 + $0xda0] sm:$0xff]  ;;  %v5355_v21 = vpop.eup %5354 }
 0x1f0   :  { %4599 = vmatprep.subr.bf16.mxu1 %v6578_v45  ;;  %v766_v45 = vld [vmem:[#allocation5 + $0xfa8] sm:$0xff]  ;;  %v6602_v49 = vpack.c.bf16 %v701_v6, %v669_v55 }
 0x1f1   :  { %v6609_v17 = vpack.c.bf16 %v766_v45, %v734_v60 }
 0x1f2   :  { %8238 = vst [vmem:[#allocation214_spill] sm:$0xff] %v6602_v49 }
 0x1f3   :  { %4601 = vmatpush1.bf16.msra.mxu1 %v6585_v10  ;;  %v1508_v10 = vpop.f32.mrb[8].mxu0  ;;  %8239 = vst [vmem:[#allocation215_spill] sm:$0xff] %v6609_v17  ;;  %v5357_v35 = vpop.eup %5356 }
 0x1f4   :  { %4603 = vmatprep.subr.bf16.mxu1 %v6591_v23  ;;  %v765_v23 = vld [vmem:[#allocation5 + $0xfa0] sm:$0xff]  ;;  %v1510_v20 = vpop.f32.mrb[9].mxu0  ;;  %v6611_v6 = vadd.f32 %v1508_v10, %v844_v63 }
 0x1f5   :  { %v6613_v55 = vadd.f32 %v1510_v20, %v848_v53  ;;  %v289_v63 = vld [vmem:[#allocation5 + $0xc0] sm:$0xff]  ;;  %v2668_v20 = vmul.f32 %v5357_v35, %v2572_v40  ;;  %v354_v53 = vld [vmem:[#allocation5 + $0x2c8] sm:$0xff] }
 0x1f6   :  { %8240 = vst [vmem:[#allocation216_spill] sm:$0xff] %v6611_v6  ;;  %v7968_v45 = vand.u32 2147483647, %v6611_v6  ;;  %v321_v10 = vld [vmem:[#allocation5 + $0x1c0] sm:$0xff]  ;;  %vm2703_vm8 = vcmp.lt.f32.partialorder %v6611_v6, 0.0 }
 0x1f7   :  { %4605 = vmatpush1.bf16.msra.mxu1 %v6595_v3  ;;  %v2667_v3 = vmul.f32 %v5355_v21, %v2571_v22  ;;  %8241 = vst [vmem:[#allocation217_spill] sm:$0xff] %v6613_v55  ;;  %v7970_v22 = vand.u32 2147483647, %v6613_v55  ;;  %v386_v21 = vld [vmem:[#allocation5 + $0x3c8] sm:$0xff]  ;;  %v6632_v16 = vpack.c.bf16 %v321_v10, %v289_v63  ;;  %v385_v35 = vld [vmem:[#allocation5 + $0x3c0] sm:$0xff]  ;;  %vm2704_vm9 = vcmp.lt.f32.partialorder %v6613_v55, 0.0 }
 0x1f8   :  { %4607 = vmatprep.subr.bf16.mxu1 %v6598_v36  ;;  %v6618_v36 = vpack.c.bf16 %v765_v23, %v733_v44  ;;  %v2127_v23 = vmul.f32 -2.0, %v7968_v45  ;;  %v2732_v44 = vsub.f32 0.0, %v2668_v20  ;;  %v6636_v13 = vpack.c.bf16 %v386_v21, %v354_v53  ;;  %v417_v53 = vld [vmem:[#allocation5 + $0x4c0] sm:$0xff]  ;;  %v482_v21 = vld [vmem:[#allocation5 + $0x6c8] sm:$0xff] }
 0x1f9   :  { %v2731_v60 = vsub.f32 0.0, %v2667_v3  ;;  %8245 = vst [vmem:[#allocation221_spill] sm:$0xff] %v6632_v16  ;;  %v774_v55 = vld [vmem:[#allocation5 + $0xfe8] sm:$0xff] }
 0x1fa   :  { %8242 = vst [vmem:[#allocation218_spill] sm:$0xff] %v6618_v36  ;;  %v2173_v40 = vmul.f32 1.442695, %v2127_v23  ;;  %8246 = vst [vmem:[#allocation222_spill] sm:$0xff] %v6636_v13 }
 0x1fb   :  { %4609 = vmatpush1.bf16.msra.mxu1 %v6602_v49  ;;  %v6625_v41 = vsel %vm2699_vm6, %v2731_v60, %v2667_v3  ;;  %v2128_v49 = vmul.f32 -2.0, %v7970_v22  ;;  %v353_v3 = vld [vmem:[#allocation5 + $0x2c0] sm:$0xff]  ;;  %v6638_v60 = vsel %vm2700_vm7, %v2732_v44, %v2668_v20 }
 0x1fc   :  { %4611 = vmatprep.subr.bf16.mxu1 %v6609_v17  ;;  %8244 = vst [vmem:[#allocation220_spill] sm:$0xff] %v6625_v41  ;;  %8247 = vst [vmem:[#allocation223_spill] sm:$0xff] %v6638_v60  ;;  %v418_v17 = vld [vmem:[#allocation5 + $0x4c8] sm:$0xff]  ;;  %5358 = vpow2.f32 %v2173_v40  ;;  %v6642_v63 = vpack.c.bf16 %v385_v35, %v353_v3  ;;  %v449_v20 = vld [vmem:[#allocation5 + $0x5c0] sm:$0xff] }
 0x1fd   :  { %v2175_v45 = vmul.f32 1.442695, %v2128_v49  ;;  %v450_v41 = vld [vmem:[#allocation5 + $0x5c8] sm:$0xff]  ;;  %v6649_v23 = vpack.c.bf16 %v449_v20, %v417_v53  ;;  %v481_v44 = vld [vmem:[#allocation5 + $0x6c0] sm:$0xff] }
 0x1fe   :  { %8248 = vst [vmem:[#allocation224_spill] sm:$0xff] %v6642_v63  ;;  %v6646_v10 = vpack.c.bf16 %v450_v41, %v418_v17  ;;  %v514_v49 = vld [vmem:[#allocation5 + $0x7c8] sm:$0xff]  ;;  %v513_v40 = vld [vmem:[#allocation5 + $0x7c0] sm:$0xff] }
 0x1ff   :  { %4613 = vmatpush1.bf16.msra.mxu1 %v6618_v36  ;;  %5360 = vpow2.f32 %v2175_v45  ;;  %8250 = vst [vmem:[#allocation226_spill] sm:$0xff] %v6649_v23  ;;  %v546_v3 = vld [vmem:[#allocation5 + $0x8c8] sm:$0xff]  ;;  %v6657_v41 = vpack.c.bf16 %v513_v40, %v481_v44  ;;  %v545_v53 = vld [vmem:[#allocation5 + $0x8c0] sm:$0xff] }
 0x200   :  { %4647 = vmatprep.subr.bf16.mxu1 %v6622_v34  ;;  %8249 = vst [vmem:[#allocation225_spill] sm:$0xff] %v6646_v10  ;;  %v578_v45 = vld [vmem:[#allocation5 + $0x9c8] sm:$0xff]  ;;  %v577_v20 = vld [vmem:[#allocation5 + $0x9c0] sm:$0xff] }
 0x201   :  { %8253 = vst [vmem:[#allocation229_spill] sm:$0xff] %v6657_v41  ;;  %v6660_v17 = vpack.c.bf16 %v578_v45, %v546_v3  ;;  %v609_v40 = vld [vmem:[#allocation5 + $0xac0] sm:$0xff] }
 0x202   :  { %1720 = vmatmul.mubr.f32.vlgmr.msra.gmra.mrb[12].mxu1 %v6241_v14  ;;  %v6652_v14 = vpack.c.bf16 %v514_v49, %v482_v21  ;;  %v610_v21 = vld [vmem:[#allocation5 + $0xac8] sm:$0xff]  ;;  %v641_v3 = vld [vmem:[#allocation5 + $0xbc0] sm:$0xff] }
 0x203   :  { %4649 = vmatpush1.bf16.msra.mxu1 %v6632_v16  ;;  %1861 = vmatprep.mubr.f32.mxu1 %v8104_v32  ;;  %8254 = vst [vmem:[#allocation230_spill] sm:$0xff] %v6660_v17  ;;  %v642_v49 = vld [vmem:[#allocation5 + $0xbc8] sm:$0xff] }
 0x204   :  { %4651 = vmatprep.subr.bf16.mxu1 %v6636_v13  ;;  %8251 = vst [vmem:[#allocation227_spill] sm:$0xff] %v6652_v14  ;;  %v6672_v44 = vpack.c.bf16 %v642_v49, %v610_v21  ;;  %v673_v21 = vld [vmem:[#allocation5 + $0xcc0] sm:$0xff]  ;;  %v738_v13 = vld [vmem:[#allocation5 + $0xec8] sm:$0xff] }
 0x205   :  { %v705_v49 = vld [vmem:[#allocation5 + $0xdc0] sm:$0xff]  ;;  %v770_v16 = vld [vmem:[#allocation5 + $0xfc8] sm:$0xff] }
 0x206   :  { %v6654_v35 = vpop.eup %5358  ;;  %8258 = vst [vmem:[#allocation234_spill] sm:$0xff] %v6672_v44 }
 0x207   :  { %4653 = vmatpush1.bf16.msra.mxu1 %v6642_v63  ;;  %8252 = vst [vmem:[#allocation228_spill] sm:$0xff] %v6654_v35  ;;  %v6668_v63 = vpack.c.bf16 %v577_v20, %v545_v53  ;;  %v6679_v53 = vpack.c.bf16 %v641_v3, %v609_v40  ;;  %v2575_v60 = vsub.f32 1.0, %v6654_v35 }
 0x208   :  { %4655 = vmatprep.subr.bf16.mxu1 %v6646_v10  ;;  %v6665_v10 = vadd.f32 1.0, %v6654_v35  ;;  %v294_v35 = vld [vmem:[#allocation5 + $0xe8] sm:$0xff] }
 0x209   :  { %v6662_v22 = vpop.eup %5360  ;;  %8257 = vst [vmem:[#allocation233_spill] sm:$0xff] %v6668_v63  ;;  %8260 = vst [vmem:[#allocation236_spill] sm:$0xff] %v6679_v53 }
 0x20a   :  { %8255 = vst [vmem:[#allocation231_spill] sm:$0xff] %v6662_v22  ;;  %8256 = vst [vmem:[#allocation232_spill] sm:$0xff] %v6665_v10  ;;  %5362 = vrcp.f32 %v6665_v10  ;;  %v6675_v45 = vadd.f32 1.0, %v6662_v22  ;;  %v6685_v10 = vld [vmem:[#allocation7 + $0x10] sm:$0xff] }
 0x20b   :  { %4657 = vmatpush1.bf16.msra.mxu1 %v6649_v23  ;;  %v706_v23 = vld [vmem:[#allocation5 + $0xdc8] sm:$0xff]  ;;  %v860_v40 = vrot.slane %v6685_v10, %v6299_v58  ;;  %v880_v51 = vrot.slane %v6685_v10, %v6414_v2 }
 0x20c   :  { %4659 = vmatprep.subr.bf16.mxu1 %v6652_v14  ;;  %8259 = vst [vmem:[#allocation235_spill] sm:$0xff] %v6675_v45  ;;  %v674_v14 = vld [vmem:[#allocation5 + $0xcc8] sm:$0xff]  ;;  %5364 = vrcp.f32 %v6675_v45 }
 0x20d   :  { %v6682_v20 = vpack.c.bf16 %v706_v23, %v674_v14  ;;  %v1650_v23 = vpop.f32.mrb[10].mxu0  ;;  %v864_v14 = vrot.slane %v6685_v10, %v6304_v24 }
 0x20e   :  { %v1652_v3 = vpop.f32.mrb[11].mxu0 }
 0x20f   :  { %4661 = vmatpush1.bf16.msra.mxu1 %v6657_v41  ;;  %v4185_v41 = vld [vmem:[#allocation10] ss:$0 sm:$0xff]  ;;  %8261 = vst [vmem:[#allocation237_spill] sm:$0xff] %v6682_v20 }
 0x210   :  { %4663 = vmatprep.subr.bf16.mxu1 %v6660_v17 }
 0x213   :  { %4665 = vmatpush1.bf16.msra.mxu1 %v6668_v63  ;;  %v6688_v63 = vpack.c.bf16 %v705_v49, %v673_v21  ;;  %v6697_v21 = vadd.f32 %v1650_v23, %v860_v40  ;;  %v6699_v49 = vadd.f32 %v1652_v3, %v864_v14  ;;  %v293_v40 = vld [vmem:[#allocation5 + $0xe0] sm:$0xff]  ;;  %v390_v3 = vld [vmem:[#allocation5 + $0x3e8] sm:$0xff] }
 0x214   :  { %4667 = vmatprep.subr.bf16.mxu1 %v6672_v44  ;;  %v5363_v44 = vpop.eup %5362  ;;  %v325_v23 = vld [vmem:[#allocation5 + $0x1e0] sm:$0xff] }
 0x215   :  { %v247_v17 = vpop.f32.mrb[0].mxu1  ;;  %8262 = vst [vmem:[#allocation238_spill] sm:$0xff] %v6688_v63  ;;  %v2671_v45 = vmul.f32 %v5363_v44, %v2575_v60  ;;  %v7997_v60 = vand.u32 2147483647, %v6699_v49  ;;  %v358_v44 = vld [vmem:[#allocation5 + $0x2e8] sm:$0xff]  ;;  %vm2707_vm11 = vcmp.lt.f32.partialorder %v6697_v21, 0.0 }
 0x216   :  { %v257_v34 = vadd.f32 %v4185_v41, %v247_v17  ;;  %v4249_v36 = vpop.f32.mrb[1].mxu1  ;;  %v6695_v41 = vpack.c.bf16 %v770_v16, %v738_v13  ;;  %v769_v17 = vld [vmem:[#allocation5 + $0xfc0] sm:$0xff]  ;;  %v7996_v16 = vand.u32 2147483647, %v6697_v21  ;;  %v5365_v13 = vpop.eup %5364  ;;  %vm2708_vm12 = vcmp.lt.f32.partialorder %v6699_v49, 0.0 }
 0x217   :  { %4669 = vmatpush1.bf16.msra.mxu1 %v6679_v53  ;;  %v737_v36 = vld [vmem:[#allocation5 + $0xec0] sm:$0xff]  ;;  %v326_v53 = vld [vmem:[#allocation5 + $0x1e8] sm:$0xff]  ;;  %v2735_v14 = vsub.f32 0.0, %v2671_v45  ;;  %v2132_v6 = vmul.f32 -2.0, %v7997_v60  ;;  %v6726_v60 = vld [vmem:[#allocation2] sm:$0xff] }
 0x218   :  { %5287 = vst [vmem:[#allocation11] sm:$0xff] %v257_v34  ;;  %4671 = vmatprep.subr.bf16.mxu1 %v6682_v20  ;;  %8263 = vst [vmem:[#allocation239_spill] sm:$0xff] %v6695_v41  ;;  %v6702_v1 = vpack.c.bf16 %v769_v17, %v737_v36  ;;  %v2576_v34 = vsub.f32 1.0, %v6662_v22  ;;  %v6708_v20 = vpack.c.bf16 %v326_v53, %v294_v35  ;;  %v2131_v17 = vmul.f32 -2.0, %v7996_v16 }
 0x219   :  { %v6718_v35 = vpack.c.bf16 %v325_v23, %v293_v40  ;;  %v6721_v22 = vpack.c.bf16 %v390_v3, %v358_v44  ;;  %v453_v44 = vld [vmem:[#allocation5 + $0x5e0] sm:$0xff]  ;;  %v486_v3 = vld [vmem:[#allocation5 + $0x6e8] sm:$0xff] }
 0x21a   :  { %8264 = vst [vmem:[#allocation240_spill] sm:$0xff] %v6702_v1  ;;  %8265 = vst [vmem:[#allocation241_spill] sm:$0xff] %v6708_v20  ;;  %v2672_v36 = vmul.f32 %v5365_v13, %v2576_v34  ;;  %v389_v34 = vld [vmem:[#allocation5 + $0x3e0] sm:$0xff]  ;;  %v2183_v13 = vmul.f32 1.442695, %v2132_v6 }
 0x21b   :  { %4673 = vmatpush1.bf16.msra.mxu1 %v6688_v63  ;;  %v6713_v63 = vsel %vm2703_vm8, %v2735_v14, %v2671_v45  ;;  %8267 = vst [vmem:[#allocation243_spill] sm:$0xff] %v6718_v35  ;;  %8268 = vst [vmem:[#allocation244_spill] sm:$0xff] %v6721_v22  ;;  %v422_v45 = vld [vmem:[#allocation5 + $0x4e8] sm:$0xff]  ;;  %v6730_v40 = vpack.c.bf16 %v389_v34, %v357_v28  ;;  %v421_v6 = vld [vmem:[#allocation5 + $0x4e0] sm:$0xff] }
 0x21c   :  { %4675 = vmatprep.subr.bf16.mxu1 %v6695_v41  ;;  %8266 = vst [vmem:[#allocation242_spill] sm:$0xff] %v6713_v63  ;;  %v2736_v53 = vsub.f32 0.0, %v2672_v36  ;;  %v2181_v41 = vmul.f32 1.442695, %v2131_v17  ;;  %v454_v14 = vld [vmem:[#allocation5 + $0x5e8] sm:$0xff]  ;;  %v485_v28 = vld [vmem:[#allocation5 + $0x6e0] sm:$0xff] }
 0x21d   :  { %8270 = vst [vmem:[#allocation246_spill] sm:$0xff] %v6730_v40  ;;  %v6734_v23 = vpack.c.bf16 %v454_v14, %v422_v45  ;;  %v582_v34 = vld [vmem:[#allocation5 + $0x9e8] sm:$0xff]  ;;  %v2233_v63 = vand.u32 2147483647, %v6376_v0 }
 0x21e   :  { %v6724_v16 = vsel %vm2704_vm9, %v2736_v53, %v2672_v36  ;;  %5366 = vpow2.f32 %v2181_v41  ;;  %v518_v36 = vld [vmem:[#allocation5 + $0x7e8] sm:$0xff]  ;;  %v6737_v41 = vpack.c.bf16 %v453_v44, %v421_v6  ;;  %v517_v53 = vld [vmem:[#allocation5 + $0x7e0] sm:$0xff] }
 0x21f   :  { %4677 = vmatpush1.bf16.msra.mxu1 %v6702_v1  ;;  %8269 = vst [vmem:[#allocation245_spill] sm:$0xff] %v6724_v16  ;;  %5368 = vpow2.f32 %v2183_v13  ;;  %8271 = vst [vmem:[#allocation247_spill] sm:$0xff] %v6734_v23  ;;  %v6740_v17 = vpack.c.bf16 %v518_v36, %v486_v3  ;;  %v6745_v45 = vpack.c.bf16 %v517_v53, %v485_v28  ;;  %v549_v6 = vld [vmem:[#allocation5 + $0x8e0] sm:$0xff]  ;;  %v614_v3 = vld [vmem:[#allocation5 + $0xae8] sm:$0xff]  ;;  %v6763_v53 = vsub.s32 1, %v6295_v4 }
 0x220   :  { %4711 = vmatprep.subr.bf16.mxu1 %v6708_v20  ;;  %8272 = vst [vmem:[#allocation248_spill] sm:$0xff] %v6737_v41  ;;  %v581_v44 = vld [vmem:[#allocation5 + $0x9e0] sm:$0xff]  ;;  %5370 = vlog2.f32 %v6385_v52  ;;  %v646_v36 = vld [vmem:[#allocation5 + $0xbe8] sm:$0xff]  ;;  %vm6804_vm10 = vcmp.lt.f32.partialorder %v2233_v63, 0.0004427343 }
 0x221   :  { %8273 = vst [vmem:[#allocation249_spill] sm:$0xff] %v6740_v17  ;;  %8275 = vst [vmem:[#allocation251_spill] sm:$0xff] %v6745_v45  ;;  %v6760_v28 = vpack.c.bf16 %v581_v44, %v549_v6  ;;  %v6767_v52 = vpack.c.bf16 %v646_v36, %v614_v3  ;;  %v6773_v6 = vld [vmem:[#allocation7] sm:$0xff] }
 0x222   :  { %1862 = vmatmul.mubr.f32.vlgmr.msra.gmra.mrb[14].mxu1 %v6726_v60  ;;  %v792_v3 = vrot.slane %v6773_v6, %v6763_v53  ;;  %v677_v20 = vld [vmem:[#allocation5 + $0xce0] sm:$0xff] }
 0x223   :  { %4713 = vmatpush1.bf16.msra.mxu1 %v6718_v35  ;;  %2003 = vmatprep.mubr.f32.mxu1 %v8104_v32  ;;  %v550_v32 = vld [vmem:[#allocation5 + $0x8e8] sm:$0xff]  ;;  %8278 = vst [vmem:[#allocation254_spill] sm:$0xff] %v6760_v28  ;;  %8279 = vst [vmem:[#allocation255_spill] sm:$0xff] %v6767_v52  ;;  %v709_v1 = vld [vmem:[#allocation5 + $0xde0] sm:$0xff] }
 0x224   :  { %4715 = vmatprep.subr.bf16.mxu1 %v6721_v22  ;;  %v6748_v14 = vpack.c.bf16 %v582_v34, %v550_v32  ;;  %v6757_v22 = vsub.s32 0, %v6295_v4  ;;  %v613_v32 = vld [vmem:[#allocation5 + $0xae0] sm:$0xff]  ;;  %v678_v35 = vld [vmem:[#allocation5 + $0xce8] sm:$0xff] }
 0x225   :  { %v645_v34 = vld [vmem:[#allocation5 + $0xbe0] sm:$0xff] }
 0x226   :  { %8276 = vst [vmem:[#allocation252_spill] sm:$0xff] %v6748_v14  ;;  %v788_v44 = vrot.slane %v6773_v6, %v6757_v22  ;;  %v6782_v36 = vpack.c.bf16 %v645_v34, %v613_v32  ;;  %v2239_v34 = vmul.f32 -0.5, %v6382_v15 }
 0x227   :  { %4717 = vmatpush1.bf16.msra.mxu1 %v6730_v40 }
 0x228   :  { %4719 = vmatprep.subr.bf16.mxu1 %v6734_v23  ;;  %v6742_v13 = vpop.eup %5366  ;;  %8281 = vst [vmem:[#allocation257_spill] sm:$0xff] %v6782_v36 }
 0x229   :  { %8274 = vst [vmem:[#allocation250_spill] sm:$0xff] %v6742_v13  ;;  %v6750_v40 = vpop.eup %5368  ;;  %v6754_v23 = vadd.f32 1.0, %v6742_v13  ;;  %v2579_v11 = vsub.f32 1.0, %v6742_v13  ;;  %v773_v13 = vld [vmem:[#allocation5 + $0xfe0] sm:$0xff] }
 0x22a   :  { %v5371_v19 = vpop.eup %5370  ;;  %v2580_v63 = vsub.f32 1.0, %v6750_v40 }
 0x22b   :  { %4721 = vmatpush1.bf16.msra.mxu1 %v6737_v41  ;;  %8277 = vst [vmem:[#allocation253_spill] sm:$0xff] %v6754_v23  ;;  %5372 = vrcp.f32 %v6754_v23  ;;  %v2230_v41 = vmul.f32 -0.5, %v6376_v0 }
 0x22c   :  { %4723 = vmatprep.subr.bf16.mxu1 %v6740_v17  ;;  %v6770_v17 = vadd.f32 1.0, %v6750_v40 }
 0x22d   :  { %v2231_v16 = vadd.f32 1.0, %v2230_v41  ;;  %v876_v41 = vrot.slane %v6685_v10, %v6407_v50  ;;  %v2240_v10 = vadd.f32 1.0, %v2239_v34 }
 0x22e   :  { %8280 = vst [vmem:[#allocation256_spill] sm:$0xff] %v6770_v17  ;;  %5374 = vrcp.f32 %v6770_v17  ;;  %v742_v17 = vld [vmem:[#allocation5 + $0xee8] sm:$0xff] }
 0x22f   :  { %4725 = vmatpush1.bf16.msra.mxu1 %v6745_v45  ;;  %v710_v45 = vld [vmem:[#allocation5 + $0xde8] sm:$0xff]  ;;  %5376 = vlog2.f32 %v6395_v43 }
 0x230   :  { %4727 = vmatprep.subr.bf16.mxu1 %v6748_v14  ;;  %v6785_v14 = vpack.c.bf16 %v710_v45, %v678_v35  ;;  %v6794_v35 = vpack.c.bf16 %v709_v1, %v677_v20  ;;  %v1792_v45 = vpop.f32.mrb[12].mxu0 }
 0x231   :  { %v6813_v48 = vadd.f32 %v1792_v45, %v876_v41 }
 0x232   :  { %8282 = vst [vmem:[#allocation258_spill] sm:$0xff] %v6785_v14  ;;  %8283 = vst [vmem:[#allocation259_spill] sm:$0xff] %v6794_v35 }
 0x233   :  { %4729 = vmatpush1.bf16.msra.mxu1 %v6760_v28  ;;  %vm2711_vm3 = vcmp.lt.f32.partialorder %v6813_v48, 0.0 }
 0x234   :  { %4731 = vmatprep.subr.bf16.mxu1 %v6767_v52  ;;  %v2229_v52 = vmul.f32 0.6931472, %v5371_v19 }
 0x235   :  { %v1011_v23 = vpop.f32.mrb[2].mxu1 }
 0x236   :  { %v6788_v43 = vadd.f32 %v1011_v23, %v788_v44  ;;  %v1013_v28 = vpop.f32.mrb[3].mxu1  ;;  %v6801_v23 = vpack.c.bf16 %v774_v55, %v742_v17  ;;  %v741_v44 = vld [vmem:[#allocation5 + $0xee0] sm:$0xff] }
 0x237   :  { %v6791_v32 = vadd.f32 %v1013_v28, %v792_v3  ;;  %4733 = vmatpush1.bf16.msra.mxu1 %v6782_v36  ;;  %v1794_v28 = vpop.f32.mrb[13].mxu0  ;;  %v5373_v3 = vpop.eup %5372  ;;  %v2232_v36 = vmul.f32 %v6376_v0, %v2231_v16  ;;  %v6818_v0 = vpack.c.bf16 %v773_v13, %v741_v44  ;;  %v2242_v44 = vand.u32 2147483647, %v6382_v15 }
 0x238   :  { %4735 = vmatprep.subr.bf16.mxu1 %v6785_v14  ;;  %8284 = vst [vmem:[#allocation260_spill] sm:$0xff] %v6801_v23  ;;  %v8287_v14 = vand.u32 2147483647, %v6788_v43  ;;  %v2675_v17 = vmul.f32 %v5373_v3, %v2579_v11  ;;  %v5375_v16 = vpop.eup %5374  ;;  %v8025_v11 = vand.u32 2147483647, %v6813_v48  ;;  %vm2689_vm1 = vcmp.lt.f32.partialorder %v6788_v43, 0.0 }
 0x239   :  { %v8022_v20 = vand.u32 2147483647, %v6791_v32  ;;  %8288 = vst [vmem:[#allocation261_spill] sm:$0xff] %v6818_v0  ;;  %v5377_v41 = vpop.eup %5376  ;;  %v2676_v3 = vmul.f32 %v5375_v16, %v2580_v63  ;;  %v2235_v13 = vsel %vm6804_vm10, %v2232_v36, %v2229_v52  ;;  %v8289_v52 = vand.u32 2147483647, %v6321_v42 }
 0x23a   :  { %v2113_v55 = vmul.f32 -2.0, %v8287_v14  ;;  %v2739_v14 = vsub.f32 0.0, %v2675_v17  ;;  %v2238_v63 = vmul.f32 0.6931472, %v5377_v41  ;;  %vm2243_vm13 = vcmp.lt.f32.partialorder %v2242_v44, 0.0004427343 }
 0x23b   :  { %v2114_v50 = vmul.f32 -2.0, %v8022_v20  ;;  %4737 = vmatpush1.bf16.msra.mxu1 %v6794_v35  ;;  %v6824_v20 = vadd.f32 %v1794_v28, %v880_v51  ;;  %v2740_v34 = vsub.f32 0.0, %v2676_v3  ;;  %v2241_v51 = vmul.f32 %v6382_v15, %v2240_v10 }
 0x23c   :  { %v2145_v19 = vmul.f32 1.442695, %v2113_v55  ;;  %4739 = vmatprep.subr.bf16.mxu1 %v6801_v23  ;;  %v6829_v35 = vsel %vm2707_vm11, %v2739_v14, %v2675_v17  ;;  %v2135_v55 = vmul.f32 -2.0, %v8025_v11  ;;  %v2499_v36 = vadd.f32 %v2235_v13, %v8289_v52 }
 0x23d   :  { %v2147_v45 = vmul.f32 1.442695, %v2114_v50  ;;  %v8024_v50 = vand.u32 2147483647, %v6824_v20  ;;  %v6840_v28 = vsel %vm2708_vm12, %v2740_v34, %v2676_v3  ;;  %v2244_v15 = vsel %vm2243_vm13, %v2241_v51, %v2238_v63 }
 0x23e   :  { %5378 = vpow2.f32 %v2145_v19  ;;  %8290 = vst [vmem:[#allocation262_spill] sm:$0xff] %v6840_v28  ;;  %v2189_v1 = vmul.f32 1.442695, %v2135_v55  ;;  %v4188_v19 = vadd.f32 -0.6931472, %v2499_v36  ;;  %v2266_v13 = vmul.f32 -0.5, %v6474_v47 }
 0x23f   :  { %5380 = vpow2.f32 %v2147_v45  ;;  %4741 = vmatpush1.bf16.msra.mxu1 %v6818_v0  ;;  %v2136_v17 = vmul.f32 -2.0, %v8024_v50  ;;  %v2269_v36 = vand.u32 2147483647, %v6474_v47  ;;  %vm2690_vm2 = vcmp.lt.f32.partialorder %v6791_v32, 0.0 }
 0x240   :  { %5031 = vmatprep.subr.bf16.mxu1 %v6448_v57  ;;  %5382 = vpow2.f32 %v2189_v1  ;;  %v8291_v57 = vand.u32 2147483647, %v6323_v7  ;;  %v2797_v41 = vrot.slane %v4188_v19, 4  ;;  %v2267_v52 = vadd.f32 1.0, %v2266_v13 }
 0x241   :  { %v2191_v16 = vmul.f32 1.442695, %v2136_v17  ;;  %v2275_v1 = vmul.f32 -0.5, %v6483_v9  ;;  %vm6890_vm14 = vcmp.lt.f32.partialorder %v2269_v36, 0.0004427343  ;;  %vm2712_vm5 = vcmp.lt.f32.partialorder %v6824_v20, 0.0 }
 0x242   :  { %2004 = vmatmul.mubr.f32.vlgmr.msra.gmra.mrb[16].mxu1 %v6726_v60  ;;  %v2500_v14 = vadd.f32 %v2244_v15, %v8291_v57  ;;  %v6856_v7 = vadd.f32 %v4188_v19, %v2797_v41 }
 0x243   :  { %5384 = vpow2.f32 %v2191_v16 }
 0x244   :  { %5386 = vlog2.f32 %v6481_v37  ;;  %v4189_v3 = vadd.f32 -0.6931472, %v2500_v14 }
 0x246   :  { %v2803_v51 = vrot.slane %v4189_v3, 4 }
 0x248   :  { %v5379_v10 = vpop.eup %5378  ;;  %5033 = vmatpush1.bf16.xpose.msra.mxu1 %v6455_v56  ;;  %v6859_v56 = vsub.s32 4, %v6295_v4 }
 0x249   :  { %v6849_v42 = vpop.eup %5380  ;;  %v2209_v45 = vadd.f32 1.0, %v5379_v10  ;;  %5035 = vmatprep.subr.bf16.mxu1 %v6459_v61  ;;  %v2212_v37 = vmul.f32 -0.5, %v5379_v10  ;;  %v6863_v61 = vsub.s32 5, %v6295_v4  ;;  %v2215_v19 = vand.u32 2147483647, %v5379_v10 }
 0x24a   :  { %v2218_v60 = vadd.f32 1.0, %v6849_v42  ;;  %v6854_v44 = vpop.eup %5382  ;;  %v2221_v34 = vmul.f32 -0.5, %v6849_v42  ;;  %v804_v15 = vrot.slane %v6773_v6, %v6859_v56  ;;  %v2224_v14 = vand.u32 2147483647, %v6849_v42 }
 0x24b   :  { %5388 = vlog2.f32 %v2209_v45  ;;  %v6866_v55 = vadd.f32 1.0, %v6854_v44  ;;  %v2213_v16 = vadd.f32 1.0, %v2212_v37  ;;  %v2562_v50 = vsub.f32 1.0, %v6849_v42 }
 0x24c   :  { %5390 = vrcp.f32 %v2209_v45  ;;  %v2222_v57 = vadd.f32 1.0, %v2221_v34  ;;  %v6885_v45 = vadd.f32 %v4189_v3, %v2803_v51  ;;  %v2561_v34 = vsub.f32 1.0, %v5379_v10 }
 0x24d   :  { %5392 = vlog2.f32 %v2218_v60  ;;  %v6868_v63 = vpop.eup %5384  ;;  %v2214_v51 = vmul.f32 %v5379_v10, %v2213_v16  ;;  %vm6898_vm15 = vcmp.lt.f32.partialorder %v2215_v19, 0.0004427343  ;;  %vm6905_vm0 = vcmp.lt.f32.partialorder %v2224_v14, 0.0004427343 }
 0x24e   :  { %5394 = vrcp.f32 %v2218_v60  ;;  %v5387_v4 = vpop.eup %5386  ;;  %v6883_v41 = vadd.f32 1.0, %v6868_v63  ;;  %v1934_v28 = vpop.f32.mrb[14].mxu0 }
 0x24f   :  { %5396 = vrcp.f32 %v6866_v55  ;;  %v6894_v37 = vmul.f32 0.6931472, %v5387_v4  ;;  %v2223_v4 = vmul.f32 %v6849_v42, %v2222_v57 }
 0x250   :  { %5037 = vmatpush1.bf16.xpose.msra.mxu1 %v6464_v18  ;;  %5398 = vlog2.f32 %v6493_v46  ;;  %v808_v18 = vrot.slane %v6773_v6, %v6863_v61  ;;  %v2276_v46 = vadd.f32 1.0, %v2275_v1 }
 0x251   :  { %5039 = vmatprep.subr.bf16.mxu1 %v6468_v31  ;;  %v6888_v31 = vmul.f32 %v6474_v47, %v2267_v52  ;;  %5400 = vrcp.f32 %v6883_v41 }
 0x255   :  { %v5389_v13 = vpop.eup %5388  ;;  %v1153_v6 = vpop.f32.mrb[4].mxu1 }
 0x256   :  { %v5391_v11 = vpop.eup %5390  ;;  %v2211_v3 = vmul.f32 0.6931472, %v5389_v13  ;;  %v6902_v52 = vadd.f32 %v1153_v6, %v804_v15  ;;  %v1155_v36 = vpop.f32.mrb[5].mxu1  ;;  %v2583_v15 = vsub.f32 1.0, %v6854_v44 }
 0x257   :  { %v5393_v1 = vpop.eup %5392  ;;  %v2657_v17 = vmul.f32 %v5391_v11, %v2561_v34  ;;  %v6909_v23 = vadd.f32 %v1155_v36, %v808_v18  ;;  %v6915_v6 = vpop.f32.mrb[15].mxu0  ;;  %v8298_v11 = vand.u32 2147483647, %v6788_v43  ;;  %v2278_v34 = vand.u32 2147483647, %v6483_v9 }
 0x258   :  { %v5395_v13 = vpop.eup %5394  ;;  %v2217_v10 = vsel %vm6898_vm15, %v2214_v51, %v2211_v3  ;;  %v2220_v16 = vmul.f32 0.6931472, %v5393_v1  ;;  %v8028_v19 = vand.u32 2147483647, %v6902_v52  ;;  %5041 = vmatpush1.bf16.xpose.msra.mxu1 %v6471_v54  ;;  %vm2693_vm7 = vcmp.lt.f32.partialorder %v6902_v52, 0.0 }
 0x259   :  { %v2497_v42 = vadd.f32 %v2217_v10, %v8298_v11  ;;  %v2721_v57 = vsub.f32 0.0, %v2657_v17  ;;  %v2658_v14 = vmul.f32 %v5395_v13, %v2562_v50  ;;  %v2086_v18 = vand.u32 2147483647, %v6909_v23  ;;  %5043 = vmatprep.subr.bf16.mxu1 %v6477_v30  ;;  %v5397_v54 = vpop.eup %5396  ;;  %v6932_v10 = vld [vmem:[#allocation7 + $0x18] sm:$0xff] }
 0x25a   :  { %v2226_v3 = vsel %vm6905_vm0, %v2223_v4, %v2220_v16  ;;  %v2117_v51 = vmul.f32 -2.0, %v8028_v19  ;;  %v8299_v50 = vand.u32 2147483647, %v6791_v32  ;;  %v5399_v30 = vpop.eup %5398  ;;  %v2679_v4 = vmul.f32 %v5397_v54, %v2583_v15 }
 0x25b   :  { %v4186_v47 = vadd.f32 -0.6931472, %v2497_v42  ;;  %v6928_v36 = vsel %vm2689_vm1, %v2721_v57, %v2657_v17  ;;  %v2722_v13 = vsub.f32 0.0, %v2658_v14  ;;  %v2118_v0 = vmul.f32 -2.0, %v2086_v18 }
 0x25c   :  { %v2498_v1 = vadd.f32 %v2226_v3, %v8299_v50  ;;  %v2153_v43 = vmul.f32 1.442695, %v2117_v51  ;;  %v2743_v42 = vsub.f32 0.0, %v2679_v4  ;;  %v892_v57 = vrot.slane %v6932_v10, %v6299_v58  ;;  %v5401_v3 = vpop.eup %5400 }
 0x25d   :  { %v2785_v16 = vrot.slane %v4186_v47, 4  ;;  %v6937_v19 = vsel %vm2690_vm2, %v2722_v13, %v2658_v14  ;;  %v2155_v17 = vmul.f32 1.442695, %v2118_v0  ;;  %v2271_v32 = vsel %vm6890_vm14, %v6888_v31, %v6894_v37 }
 0x25e   :  { %v4187_v11 = vadd.f32 -0.6931472, %v2498_v1  ;;  %8300 = vst [vmem:[#allocation263_spill] sm:$0xff] %v6937_v19  ;;  %5402 = vpow2.f32 %v2153_v43  ;;  %v2277_v15 = vmul.f32 %v6483_v9, %v2276_v46  ;;  %v2274_v14 = vmul.f32 0.6931472, %v5399_v30 }
 0x25f   :  { %v2786_v51 = vadd.f32 %v4186_v47, %v2785_v16  ;;  %5404 = vpow2.f32 %v2155_v17  ;;  %v6947_v50 = vsel %vm2711_vm3, %v2743_v42, %v2679_v4  ;;  %v2584_v1 = vsub.f32 1.0, %v6868_v63 }
 0x260   :  { %v2791_v54 = vrot.slane %v4187_v11, 4  ;;  %5045 = vmatpush1.bf16.xpose.msra.mxu1 %v6486_v39  ;;  %v2805_v58 = vrot.slane %v6885_v45, 2  ;;  %vm6952_vm4 = vcmp.lt.f32.partialorder %v2278_v34, 0.0004427343  ;;  %v8303_v9 = vrot.slane %v6856_v7, 2 }
 0x261   :  { %v2787_v13 = vrot.slane %v2786_v51, 2  ;;  %5047 = vmatprep.subr.bf16.mxu1 %v6489_v25  ;;  %v2680_v46 = vmul.f32 %v5401_v3, %v2584_v1  ;;  %v6960_v37 = vadd.f32 %v1934_v28, %v892_v57  ;;  %v8304_v47 = vand.u32 2147483647, %v6424_v27 }
 0x262   :  { %v2792_v31 = vadd.f32 %v4187_v11, %v2791_v54  ;;  %v2800_v60 = vadd.f32 %v8303_v9, %v6856_v7  ;;  %v2280_v34 = vsel %vm6952_vm4, %v2277_v15, %v2274_v14  ;;  %v896_v16 = vrot.slane %v6932_v10, %v6304_v24 }
 0x263   :  { %v2503_v39 = vadd.f32 %v2271_v32, %v8304_v47  ;;  %v2788_v30 = vadd.f32 %v2787_v13, %v2786_v51  ;;  %v2744_v4 = vsub.f32 0.0, %v2680_v46  ;;  %v8032_v25 = vand.u32 2147483647, %v6960_v37 }
 0x264   :  { %v2793_v0 = vrot.slane %v2792_v31, 2  ;;  %v2806_v7 = vadd.f32 %v2805_v58, %v6885_v45  ;;  %v2801_v17 = vrot.slane %v2800_v60, 1  ;;  %v8306_v32 = vand.u32 2147483647, %v6429_v8 }
 0x265   :  { %v2789_v28 = vrot.slane %v2788_v30, 1  ;;  %v6971_v27 = vsel %vm2712_vm5, %v2744_v4, %v2680_v46  ;;  %v2139_v42 = vmul.f32 -2.0, %v8032_v25  ;;  %v4192_v57 = vadd.f32 -0.6931472, %v2503_v39 }
 0x266   :  { %v2794_v11 = vadd.f32 %v2793_v0, %v2792_v31  ;;  %8305 = vst [vmem:[#allocation264_spill] sm:$0xff] %v6971_v27  ;;  %v2504_v51 = vadd.f32 %v2280_v34, %v8306_v32  ;;  %5406 = vlog2.f32 %v6581_v12  ;;  %v6981_v24 = vadd.f32 %v6915_v6, %v896_v16 }
 0x267   :  { %v2790_v3 = vadd.f32 %v2789_v28, %v2788_v30  ;;  %v2807_v45 = vrot.slane %v2806_v7, 1  ;;  %v2197_v58 = vmul.f32 1.442695, %v2139_v42  ;;  %v2802_v8 = vadd.f32 %v2801_v17, %v2800_v60  ;;  %v7003_v17 = vld [vmem:[#allocation7 + $0x8] sm:$0xff] }
 0x268   :  { %v2795_v15 = vrot.slane %v2794_v11, 1  ;;  %v6977_v54 = vpop.eup %5402  ;;  %5049 = vmatpush1.bf16.xpose.msra.mxu1 %v6496_v5  ;;  %v2821_v43 = vrot.slane %v4192_v57, 4  ;;  %v4193_v31 = vadd.f32 -0.6931472, %v2504_v51  ;;  %v2302_v12 = vmul.f32 -0.5, %v6570_v38 }
 0x269   :  { %v2245_v1 = vadd.f32 1.0, %v6977_v54  ;;  %5051 = vmatprep.subr.bf16.mxu1 %v6500_v59  ;;  %v6986_v13 = vpop.eup %5404  ;;  %v8030_v5 = vand.u32 2147483647, %v6981_v24  ;;  %v2808_v46 = vadd.f32 %v2807_v45, %v2806_v7  ;;  %v2248_v39 = vmul.f32 -0.5, %v6977_v54 }
 0x26a   :  { %v2796_v14 = vadd.f32 %v2795_v15, %v2794_v11  ;;  %v2254_v6 = vadd.f32 1.0, %v6986_v13  ;;  %v6992_v59 = vadd.f32 %v4192_v57, %v2821_v43  ;;  %v2827_v30 = vrot.slane %v4193_v31, 4 }
 0x26b   :  { %5408 = vlog2.f32 %v2245_v1  ;;  %v2303_v0 = vadd.f32 1.0, %v2302_v12  ;;  %v2257_v34 = vmul.f32 -0.5, %v6986_v13  ;;  %v2140_v4 = vmul.f32 -2.0, %v8030_v5 }
 0x26c   :  { %v2977_v9 = vadd.f32 %v2796_v14, %v2790_v3  ;;  %5410 = vrcp.f32 %v2245_v1  ;;  %v2305_v16 = vand.u32 2147483647, %v6570_v38  ;;  %v2311_v7 = vmul.f32 -0.5, %v6575_v33 }
 0x26d   :  { %5412 = vpow2.f32 %v2197_v58  ;;  %v2249_v11 = vadd.f32 1.0, %v2248_v39  ;;  %v820_v42 = vrot.slane %v7003_v17, %v6757_v22  ;;  %v2199_v57 = vmul.f32 1.442695, %v2140_v4 }
 0x26e   :  { %v2978_v47 = vadd.f32 %v2977_v9, %v2802_v8  ;;  %5414 = vlog2.f32 %v2254_v6  ;;  %v2823_v3 = vrot.slane %v6992_v59, 2  ;;  %v2251_v32 = vand.u32 2147483647, %v6977_v54 }
 0x26f   :  { %5416 = vrcp.f32 %v2254_v6  ;;  %v7012_v51 = vadd.f32 %v4193_v31, %v2827_v30  ;;  %v2258_v15 = vadd.f32 1.0, %v2257_v34  ;;  %vm7019_vm6 = vcmp.lt.f32.partialorder %v2305_v16, 0.0004427343 }
 0x270   :  { %v6994_v60 = vadd.f32 %v2978_v47, %v2808_v46  ;;  %5053 = vmatpush1.bf16.xpose.msra.mxu1 %v6505_v62  ;;  %v5407_v28 = vpop.eup %5406  ;;  %5418 = vlog2.f32 %v6588_v29  ;;  %v824_v62 = vrot.slane %v7003_v17, %v6763_v53  ;;  %v2565_v58 = vsub.f32 1.0, %v6977_v54 }
 0x271   :  { %5055 = vmatprep.subr.bf16.mxu1 %v6509_v26  ;;  %v7015_v26 = vmul.f32 %v6570_v38, %v2303_v0  ;;  %5420 = vpow2.f32 %v2199_v57  ;;  %v7017_v14 = vmul.f32 0.6931472, %v5407_v28  ;;  %v2312_v29 = vadd.f32 1.0, %v2311_v7  ;;  %v8309_v28 = vld [vmem:[#allocation186_spill] sm:$0xff] }
 0x272   :  { %v2250_v38 = vmul.f32 %v6977_v54, %v2249_v11  ;;  %v2260_v9 = vand.u32 2147483647, %v6986_v13  ;;  %v2076_v46 = vpop.f32.mrb[16].mxu0  ;;  %vm2252_vm8 = vcmp.lt.f32.partialorder %v2251_v32, 0.0004427343  ;;  %v2566_v30 = vsub.f32 1.0, %v6986_v13 }
 0x273   :  { %v2078_v34 = vpop.f32.mrb[17].mxu0  ;;  %v2259_v7 = vmul.f32 %v6986_v13, %v2258_v15  ;;  %v908_v11 = vrot.slane %v6932_v10, %v8309_v28  ;;  %v8311_v32 = vand.u32 2147483647, %v6902_v52  ;;  %vm2694_vm10 = vcmp.lt.f32.partialorder %v6909_v23, 0.0 }
 0x274   :  { %vm2261_vm9 = vcmp.lt.f32.partialorder %v2260_v9, 0.0004427343  ;;  %v2307_v23 = vsel %vm7019_vm6, %v7015_v26, %v7017_v14  ;;  %vm2715_vm12 = vcmp.lt.f32.partialorder %v6960_v37, 0.0  ;;  %vm2716_vm13 = vcmp.lt.f32.partialorder %v6981_v24, 0.0 }
 0x275   :  { %v5409_v45 = vpop.eup %5408  ;;  %v1295_v8 = vpop.f32.mrb[6].mxu1 }
 0x276   :  { %v5411_v43 = vpop.eup %5410  ;;  %v2247_v31 = vmul.f32 0.6931472, %v5409_v45  ;;  %v7027_v12 = vadd.f32 %v1295_v8, %v820_v42  ;;  %v1297_v6 = vpop.f32.mrb[7].mxu1  ;;  %v8310_v42 = vld [vmem:[#allocation194_spill] sm:$0xff] }
 0x277   :  { %v7029_v47 = vpop.eup %5412  ;;  %v2661_v39 = vmul.f32 %v5411_v43, %v2565_v58  ;;  %v7032_v0 = vadd.f32 %v1297_v6, %v824_v62  ;;  %v8312_v43 = vld [vmem:[#allocation195_spill] sm:$0xff] }
 0x278   :  { %v5415_v4 = vpop.eup %5414  ;;  %v2253_v16 = vsel %vm2252_vm8, %v2250_v38, %v2247_v31  ;;  %v8034_v54 = vand.u32 2147483647, %v7027_v12  ;;  %5057 = vmatpush1.bf16.xpose.msra.mxu1 %v8310_v42  ;;  %v7046_v15 = vadd.f32 1.0, %v7029_v47  ;;  %vm2697_vm0 = vcmp.lt.f32.partialorder %v7027_v12, 0.0 }
 0x279   :  { %v5417_v57 = vpop.eup %5416  ;;  %v2501_v45 = vadd.f32 %v2253_v16, %v8311_v32  ;;  %v2725_v58 = vsub.f32 0.0, %v2661_v39  ;;  %v2256_v8 = vmul.f32 0.6931472, %v5415_v4  ;;  %v8033_v62 = vand.u32 2147483647, %v7032_v0  ;;  %5059 = vmatprep.subr.bf16.mxu1 %v8312_v43 }
 0x27a   :  { %v2662_v31 = vmul.f32 %v5417_v57, %v2566_v30  ;;  %v2121_v13 = vmul.f32 -2.0, %v8034_v54  ;;  %5422 = vrcp.f32 %v7046_v15  ;;  %v5419_v42 = vpop.eup %5418  ;;  %vm2698_vm1 = vcmp.lt.f32.partialorder %v7032_v0, 0.0 }
 0x27b   :  { %v4190_v38 = vadd.f32 -0.6931472, %v2501_v45  ;;  %v7050_v6 = vsel %vm2693_vm7, %v2725_v58, %v2661_v39  ;;  %v2262_v16 = vsel %vm2261_vm9, %v2259_v7, %v2256_v8  ;;  %v2122_v4 = vmul.f32 -2.0, %v8033_v62  ;;  %v7060_v52 = vpop.eup %5420 }
 0x27c   :  { %v2502_v28 = vadd.f32 %v2262_v16, %v2086_v18  ;;  %v2726_v9 = vsub.f32 0.0, %v2662_v31  ;;  %v2161_v30 = vmul.f32 1.442695, %v2121_v13  ;;  %v7058_v45 = vadd.f32 %v2076_v46, %v908_v11  ;;  %v8314_v13 = vld [vmem:[#allocation198_spill] sm:$0xff] }
 0x27d   :  { %v2809_v57 = vrot.slane %v4190_v38, 4  ;;  %v2163_v32 = vmul.f32 1.442695, %v2122_v4  ;;  %v2314_v39 = vand.u32 2147483647, %v6575_v33  ;;  %v2824_v18 = vadd.f32 %v2823_v3, %v6992_v59 }
 0x27e   :  { %v4191_v7 = vadd.f32 -0.6931472, %v2502_v28  ;;  %v7063_v58 = vsel %vm2694_vm10, %v2726_v9, %v2662_v31  ;;  %5424 = vpow2.f32 %v2161_v30  ;;  %v7071_v46 = vadd.f32 1.0, %v7060_v52 }
 0x27f   :  { %8313 = vst [vmem:[#allocation186_spill] sm:$0xff] %v7063_v58  ;;  %v2810_v8 = vadd.f32 %v4190_v38, %v2809_v57  ;;  %5426 = vpow2.f32 %v2163_v32  ;;  %v912_v11 = vrot.slane %v6932_v10, %v6414_v2  ;;  %v2829_v31 = vrot.slane %v7012_v51, 2  ;;  %v8315_v38 = vld [vmem:[#allocation79_spill] sm:$0xff]  ;;  %v8318_v2 = vld [vmem:[#allocation196_spill] sm:$0xff] }
 0x280   :  { %v2815_v43 = vrot.slane %v4191_v7, 4  ;;  %5061 = vmatpush1.bf16.xpose.msra.mxu1 %v8314_v13  ;;  %v2313_v59 = vmul.f32 %v6575_v33, %v2312_v29  ;;  %v8029_v3 = vand.u32 2147483647, %v7058_v45  ;;  %v2310_v1 = vmul.f32 0.6931472, %v5419_v42 }
 0x281   :  { %v2811_v16 = vrot.slane %v2810_v8, 2  ;;  %5063 = vmatprep.subr.bf16.mxu1 %v8315_v38  ;;  %vm7080_vm11 = vcmp.lt.f32.partialorder %v2314_v39, 0.0004427343  ;;  %5428 = vrcp.f32 %v7071_v46  ;;  %v8319_v10 = vand.u32 2147483647, %v8318_v2 }
 0x282   :  { %v2816_v14 = vadd.f32 %v4191_v7, %v2815_v43  ;;  %v2587_v9 = vsub.f32 1.0, %v7029_v47  ;;  %v2143_v33 = vmul.f32 -2.0, %v8029_v3  ;;  %v7090_v30 = vadd.f32 %v2078_v34, %v912_v11 }
 0x283   :  { %v2507_v4 = vadd.f32 %v2307_v23, %v8319_v10  ;;  %v2812_v28 = vadd.f32 %v2811_v16, %v2810_v8  ;;  %v2825_v39 = vrot.slane %v2824_v18, 1  ;;  %v2830_v7 = vadd.f32 %v2829_v31, %v7012_v51 }
 0x284   :  { %v2817_v29 = vrot.slane %v2816_v14, 2  ;;  %v2205_v57 = vmul.f32 1.442695, %v2143_v33  ;;  %v5423_v32 = vpop.eup %5422  ;;  %v2316_v43 = vsel %vm7080_vm11, %v2313_v59, %v2310_v1  ;;  %v8031_v10 = vand.u32 2147483647, %v7090_v30  ;;  %v8320_v33 = vld [vmem:[#allocation197_spill] sm:$0xff] }
 0x285   :  { %v2813_v42 = vrot.slane %v2812_v28, 1  ;;  %v4196_v23 = vadd.f32 -0.6931472, %v2507_v4  ;;  %v2683_v16 = vmul.f32 %v5423_v32, %v2587_v9  ;;  %v8321_v3 = vand.u32 2147483647, %v8320_v33  ;;  %v8322_v33 = vld [vmem:[#allocation232_spill] sm:$0xff] }
 0x286   :  { %v2818_v13 = vadd.f32 %v2817_v29, %v2816_v14  ;;  %5430 = vpow2.f32 %v2205_v57  ;;  %v2831_v31 = vrot.slane %v2830_v7, 1  ;;  %v2826_v1 = vadd.f32 %v2825_v39, %v2824_v18 }
 0x287   :  { %v2814_v8 = vadd.f32 %v2813_v42, %v2812_v28  ;;  %v2508_v5 = vadd.f32 %v2316_v43, %v8321_v3  ;;  %v2845_v14 = vrot.slane %v4196_v23, 4  ;;  %v2588_v4 = vsub.f32 1.0, %v7060_v52 }
 0x288   :  { %v5425_v38 = vpop.eup %5424  ;;  %v2819_v2 = vrot.slane %v2818_v13, 1  ;;  %v2747_v3 = vsub.f32 0.0, %v2683_v16  ;;  %v2832_v42 = vadd.f32 %v2831_v31, %v2830_v7  ;;  %vm2719_vm3 = vcmp.lt.f32.partialorder %v7058_v45, 0.0 }
 0x289   :  { %v7096_v34 = vpop.eup %5426  ;;  %v2980_v11 = vadd.f32 %v6994_v60, %v2814_v8  ;;  %v2281_v51 = vadd.f32 1.0, %v5425_v38  ;;  %v2144_v60 = vmul.f32 -2.0, %v8031_v10  ;;  %v4197_v29 = vadd.f32 -0.6931472, %v2508_v5 }
 0x28a   :  { %v2820_v26 = vadd.f32 %v2819_v2, %v2818_v13  ;;  %v2290_v59 = vadd.f32 1.0, %v7096_v34  ;;  %v2284_v32 = vmul.f32 -0.5, %v5425_v38  ;;  %v7106_v18 = vadd.f32 %v4196_v23, %v2845_v14  ;;  %v8323_v23 = vld [vmem:[#allocation235_spill] sm:$0xff] }
 0x28b   :  { %5432 = vlog2.f32 %v2281_v51  ;;  %v5429_v28 = vpop.eup %5428  ;;  %v7108_v39 = vsel %vm2715_vm12, %v2747_v3, %v2683_v16  ;;  %v2293_v8 = vmul.f32 -0.5, %v7096_v34  ;;  %v2207_v2 = vmul.f32 1.442695, %v2144_v60  ;;  %v8325_v3 = vld [vmem:[#allocation228_spill] sm:$0xff] }
 0x28c   :  { %v2981_v9 = vadd.f32 %v2980_v11, %v2820_v26  ;;  %5434 = vrcp.f32 %v2281_v51  ;;  %v2684_v43 = vmul.f32 %v5429_v28, %v2588_v4  ;;  %v2851_v5 = vrot.slane %v4197_v29, 4 }
 0x28d   :  { %5436 = vlog2.f32 %v2290_v59  ;;  %v2285_v51 = vadd.f32 1.0, %v2284_v32  ;;  %v2287_v31 = vand.u32 2147483647, %v5425_v38  ;;  %v836_v16 = vrot.slane %v7003_v17, %v6859_v56 }
 0x28e   :  { %v2982_v57 = vadd.f32 %v2981_v9, %v2826_v1  ;;  %5438 = vrcp.f32 %v2290_v59  ;;  %v2748_v7 = vsub.f32 0.0, %v2684_v43  ;;  %v2296_v26 = vand.u32 2147483647, %v7096_v34 }
 0x28f   :  { %5440 = vlog2.f32 %v8322_v33  ;;  %v840_v59 = vrot.slane %v7003_v17, %v6863_v61  ;;  %v2847_v4 = vrot.slane %v7106_v18, 2  ;;  %v2294_v28 = vadd.f32 1.0, %v2293_v8 }
 0x290   :  { %v7110_v13 = vadd.f32 %v2982_v57, %v2832_v42  ;;  %v7114_v11 = vpop.eup %5430  ;;  %5442 = vlog2.f32 %v8323_v23  ;;  %v7123_v1 = vsel %vm2716_vm13, %v2748_v7, %v2684_v43  ;;  %v7129_v60 = vadd.f32 %v4197_v29, %v2851_v5 }
 0x291   :  { %8324 = vst [vmem:[#allocation194_spill] sm:$0xff] %v7123_v1  ;;  %v7126_v14 = vadd.f32 1.0, %v7114_v11  ;;  %5444 = vpow2.f32 %v2207_v2  ;;  %v2338_v42 = vmul.f32 -0.5, %v8325_v3  ;;  %v2569_v57 = vsub.f32 1.0, %v5425_v38 }
 0x292   :  { %v2286_v43 = vmul.f32 %v5425_v38, %v2285_v51  ;;  %vm2288_vm14 = vcmp.lt.f32.partialorder %v2287_v31, 0.0004427343  ;;  %vm7135_vm15 = vcmp.lt.f32.partialorder %v2296_v26, 0.0004427343  ;;  %v2570_v29 = vsub.f32 1.0, %v7096_v34 }
 0x293   :  { %5446 = vrcp.f32 %v7126_v14  ;;  %v8328_v51 = vand.u32 2147483647, %v7027_v12  ;;  %vm2720_vm5 = vcmp.lt.f32.partialorder %v7090_v30, 0.0 }
 0x295   :  { %v5433_v9 = vpop.eup %5432  ;;  %v1437_v32 = vpop.f32.mrb[8].mxu1 }
 0x296   :  { %v5435_v33 = vpop.eup %5434  ;;  %v2283_v17 = vmul.f32 0.6931472, %v5433_v9  ;;  %v7133_v7 = vadd.f32 %v1437_v32, %v836_v16  ;;  %v1439_v23 = vpop.f32.mrb[9].mxu1  ;;  %v2295_v9 = vmul.f32 %v7096_v34, %v2294_v28  ;;  %v2341_v32 = vand.u32 2147483647, %v8325_v3 }
 0x297   :  { %v5437_v10 = vpop.eup %5436  ;;  %v2665_v25 = vmul.f32 %v5435_v33, %v2569_v57  ;;  %v7140_v2 = vadd.f32 %v1439_v23, %v840_v59 }
 0x298   :  { %v5439_v5 = vpop.eup %5438  ;;  %v2289_v62 = vsel %vm2288_vm14, %v2286_v43, %v2283_v17  ;;  %v2292_v54 = vmul.f32 0.6931472, %v5437_v10  ;;  %v8035_v38 = vand.u32 2147483647, %v7133_v7  ;;  %vm7168_vm2 = vcmp.lt.f32.partialorder %v2341_v32, 0.0004427343 }
 0x299   :  { %v2505_v31 = vadd.f32 %v2289_v62, %v8328_v51  ;;  %v2729_v16 = vsub.f32 0.0, %v2665_v25  ;;  %v2666_v57 = vmul.f32 %v5439_v5, %v2570_v29  ;;  %v8036_v26 = vand.u32 2147483647, %v7140_v2  ;;  %v5441_v34 = vpop.eup %5440 }
 0x29a   :  { %v2298_v59 = vsel %vm7135_vm15, %v2295_v9, %v2292_v54  ;;  %v2125_v10 = vmul.f32 -2.0, %v8035_v38  ;;  %v8329_v62 = vand.u32 2147483647, %v7032_v0  ;;  %v5443_v23 = vpop.eup %5442  ;;  %v2591_v54 = vsub.f32 1.0, %v7114_v11 }
 0x29b   :  { %v4194_v28 = vadd.f32 -0.6931472, %v2505_v31  ;;  %v7153_v33 = vsel %vm2697_vm0, %v2729_v16, %v2665_v25  ;;  %v2730_v43 = vsub.f32 0.0, %v2666_v57  ;;  %v2126_v12 = vmul.f32 -2.0, %v8036_v26  ;;  %v7163_v51 = vpop.eup %5444  ;;  %v8331_v31 = vld [vmem:[#allocation231_spill] sm:$0xff] }
 0x29c   :  { %v2506_v17 = vadd.f32 %v2298_v59, %v8329_v62  ;;  %v2169_v29 = vmul.f32 1.442695, %v2125_v10  ;;  %v2339_v25 = vadd.f32 1.0, %v2338_v42  ;;  %v2347_v16 = vmul.f32 -0.5, %v8331_v31 }
 0x29d   :  { %v2833_v8 = vrot.slane %v4194_v28, 4  ;;  %v7161_v9 = vsel %vm2698_vm1, %v2730_v43, %v2666_v57  ;;  %v2171_v59 = vmul.f32 1.442695, %v2126_v12  ;;  %v5447_v62 = vpop.eup %5446  ;;  %v2848_v0 = vadd.f32 %v2847_v4, %v7106_v18 }
 0x29e   :  { %v4195_v5 = vadd.f32 -0.6931472, %v2506_v17  ;;  %8330 = vst [vmem:[#allocation195_spill] sm:$0xff] %v7161_v9  ;;  %5448 = vpow2.f32 %v2169_v29  ;;  %v2853_v26 = vrot.slane %v7129_v60, 2  ;;  %v2687_v57 = vmul.f32 %v5447_v62, %v2591_v54 }
 0x29f   :  { %v2834_v10 = vadd.f32 %v4194_v28, %v2833_v8  ;;  %5450 = vpow2.f32 %v2171_v59  ;;  %v7174_v42 = vadd.f32 1.0, %v7163_v51  ;;  %v2337_v29 = vmul.f32 0.6931472, %v5441_v34 }
 0x2a0   :  { %v2839_v38 = vrot.slane %v4195_v5, 4  ;;  %v2340_v18 = vmul.f32 %v8325_v3, %v2339_v25  ;;  %v2348_v4 = vadd.f32 1.0, %v2347_v16  ;;  %v2751_v28 = vsub.f32 0.0, %v2687_v57 }
 0x2a1   :  { %v2835_v17 = vrot.slane %v2834_v10, 2  ;;  %v2350_v32 = vand.u32 2147483647, %v8331_v31  ;;  %5452 = vrcp.f32 %v7174_v42  ;;  %v2854_v54 = vadd.f32 %v2853_v26, %v7129_v60  ;;  %v8336_v60 = vld [vmem:[#allocation216_spill] sm:$0xff] }
 0x2a2   :  { %v2840_v43 = vadd.f32 %v4195_v5, %v2839_v38  ;;  %v7180_v59 = vsel %vm2719_vm3, %v2751_v28, %v2687_v57  ;;  %v2849_v62 = vrot.slane %v2848_v0, 1  ;;  %v2343_v34 = vsel %vm7168_vm2, %v2340_v18, %v2337_v29 }
 0x2a3   :  { %v2836_v12 = vadd.f32 %v2835_v17, %v2834_v10  ;;  %v2346_v9 = vmul.f32 0.6931472, %v5443_v23  ;;  %v2349_v3 = vmul.f32 %v8331_v31, %v2348_v4  ;;  %vm7185_vm4 = vcmp.lt.f32.partialorder %v2350_v32, 0.0004427343 }
 0x2a4   :  { %v2841_v8 = vrot.slane %v2840_v43, 2  ;;  %v2855_v27 = vrot.slane %v2854_v54, 1  ;;  %v8337_v26 = vand.u32 2147483647, %v8336_v60  ;;  %v2850_v29 = vadd.f32 %v2849_v62, %v2848_v0  ;;  %v8338_v60 = vld [vmem:[#allocation217_spill] sm:$0xff] }
 0x2a5   :  { %v2837_v38 = vrot.slane %v2836_v12, 1  ;;  %v2352_v23 = vsel %vm7185_vm4, %v2349_v3, %v2346_v9  ;;  %v2592_v4 = vsub.f32 1.0, %v7163_v51  ;;  %vm2701_vm8 = vcmp.lt.f32.partialorder %v7133_v7, 0.0 }
 0x2a6   :  { %v2842_v5 = vadd.f32 %v2841_v8, %v2840_v43  ;;  %v2511_v57 = vadd.f32 %v2343_v34, %v8337_v26  ;;  %v8339_v34 = vand.u32 2147483647, %v8338_v60  ;;  %vm2702_vm9 = vcmp.lt.f32.partialorder %v7140_v2, 0.0 }
 0x2a7   :  { %v2838_v25 = vadd.f32 %v2837_v38, %v2836_v12  ;;  %v2856_v12 = vadd.f32 %v2855_v27, %v2854_v54 }
 0x2a8   :  { %v2843_v10 = vrot.slane %v2842_v5, 1  ;;  %v5449_v17 = vpop.eup %5448  ;;  %v4200_v38 = vadd.f32 -0.6931472, %v2511_v57  ;;  %v2512_v26 = vadd.f32 %v2352_v23, %v8339_v34 }
 0x2a9   :  { %v2984_v43 = vadd.f32 %v7110_v13, %v2838_v25  ;;  %v2317_v8 = vadd.f32 1.0, %v5449_v17  ;;  %v5451_v1 = vpop.eup %5450  ;;  %v2323_v54 = vand.u32 2147483647, %v5449_v17 }
 0x2aa   :  { %v2844_v28 = vadd.f32 %v2843_v10, %v2842_v5  ;;  %v2326_v18 = vadd.f32 1.0, %v5451_v1  ;;  %v2320_v5 = vmul.f32 -0.5, %v5449_v17  ;;  %v2329_v9 = vmul.f32 -0.5, %v5451_v1  ;;  %v7200_v10 = vld [vmem:[#allocation7 + $0x10] sm:$0xff] }
 0x2ab   :  { %5454 = vlog2.f32 %v2317_v8  ;;  %v5453_v32 = vpop.eup %5452  ;;  %v2869_v3 = vrot.slane %v4200_v38, 4  ;;  %v4201_v25 = vadd.f32 -0.6931472, %v2512_v26  ;;  %v852_v57 = vrot.slane %v7200_v10, %v6757_v22 }
 0x2ac   :  { %v2985_v31 = vadd.f32 %v2984_v43, %v2844_v28  ;;  %5456 = vrcp.f32 %v2317_v8  ;;  %v2688_v62 = vmul.f32 %v5453_v32, %v2592_v4  ;;  %v2321_v27 = vadd.f32 1.0, %v2320_v5  ;;  %v8342_v32 = vld [vmem:[#allocation256_spill] sm:$0xff] }
 0x2ad   :  { %5458 = vlog2.f32 %v2326_v18  ;;  %v2332_v43 = vand.u32 2147483647, %v5451_v1  ;;  %v856_v28 = vrot.slane %v7200_v10, %v6763_v53  ;;  %v2330_v23 = vadd.f32 1.0, %v2329_v9 }
 0x2ae   :  { %v2986_v13 = vadd.f32 %v2985_v31, %v2850_v29  ;;  %5460 = vrcp.f32 %v2326_v18  ;;  %v2752_v16 = vsub.f32 0.0, %v2688_v62  ;;  %v8341_v29 = vld [vmem:[#allocation253_spill] sm:$0xff]  ;;  %v2870_v18 = vadd.f32 %v4200_v38, %v2869_v3 }
 0x2af   :  { %5462 = vlog2.f32 %v8341_v29  ;;  %v2875_v4 = vrot.slane %v4201_v25, 4  ;;  %vm2324_vm6 = vcmp.lt.f32.partialorder %v2323_v54, 0.0004427343  ;;  %vm7212_vm7 = vcmp.lt.f32.partialorder %v2332_v43, 0.0004427343  ;;  %v8346_v43 = vld [vmem:[#allocation250_spill] sm:$0xff] }
 0x2b0   :  { %v7197_v0 = vadd.f32 %v2986_v13, %v2856_v12  ;;  %v7206_v8 = vsel %vm2720_vm5, %v2752_v16, %v2688_v62  ;;  %v2573_v12 = vsub.f32 1.0, %v5449_v17  ;;  %5464 = vlog2.f32 %v8342_v32 }
 0x2b1   :  { %8340 = vst [vmem:[#allocation198_spill] sm:$0xff] %v7206_v8  ;;  %v2322_v13 = vmul.f32 %v5449_v17, %v2321_v27  ;;  %v2574_v9 = vsub.f32 1.0, %v5451_v1  ;;  %v2331_v8 = vmul.f32 %v5451_v1, %v2330_v23  ;;  %v8345_v17 = vand.u32 2147483647, %v7133_v7 }
 0x2b2   :  { %v8347_v23 = vand.u32 2147483647, %v7140_v2 }
 0x2b5   :  { %v5455_v31 = vpop.eup %5454  ;;  %v1579_v60 = vpop.f32.mrb[10].mxu1 }
 0x2b6   :  { %v5457_v34 = vpop.eup %5456  ;;  %v2319_v26 = vmul.f32 0.6931472, %v5455_v31  ;;  %v7210_v5 = vadd.f32 %v1579_v60, %v852_v57  ;;  %v1581_v58 = vpop.f32.mrb[11].mxu1  ;;  %v2374_v60 = vmul.f32 -0.5, %v8346_v43 }
 0x2b7   :  { %v5459_v19 = vpop.eup %5458  ;;  %v2669_v62 = vmul.f32 %v5457_v34, %v2573_v12  ;;  %v7216_v38 = vadd.f32 %v1581_v58, %v856_v28 }
 0x2b8   :  { %v5461_v3 = vpop.eup %5460  ;;  %v2325_v29 = vsel %vm2324_vm6, %v2322_v13, %v2319_v26  ;;  %v2328_v32 = vmul.f32 0.6931472, %v5459_v19  ;;  %v8038_v31 = vand.u32 2147483647, %v7210_v5  ;;  %v2876_v13 = vadd.f32 %v4201_v25, %v2875_v4 }
 0x2b9   :  { %v2509_v27 = vadd.f32 %v2325_v29, %v8345_v17  ;;  %v2733_v54 = vsub.f32 0.0, %v2669_v62  ;;  %v2670_v57 = vmul.f32 %v5461_v3, %v2574_v9  ;;  %v8037_v12 = vand.u32 2147483647, %v7216_v38 }
 0x2ba   :  { %v2334_v58 = vsel %vm7212_vm7, %v2331_v8, %v2328_v32  ;;  %v2129_v19 = vmul.f32 -2.0, %v8038_v31  ;;  %v2871_v3 = vrot.slane %v2870_v18, 2  ;;  %v5463_v32 = vpop.eup %5462  ;;  %v2375_v17 = vadd.f32 1.0, %v2374_v60 }
 0x2bb   :  { %v4198_v1 = vadd.f32 -0.6931472, %v2509_v27  ;;  %v7228_v28 = vsel %vm2701_vm8, %v2733_v54, %v2669_v62  ;;  %v2510_v34 = vadd.f32 %v2334_v58, %v8347_v23  ;;  %v2734_v26 = vsub.f32 0.0, %v2670_v57  ;;  %v5465_v54 = vpop.eup %5464 }
 0x2bc   :  { %v2177_v9 = vmul.f32 1.442695, %v2129_v19  ;;  %v2130_v7 = vmul.f32 -2.0, %v8037_v12  ;;  %v2383_v62 = vmul.f32 -0.5, %v6750_v40  ;;  %v2377_v25 = vand.u32 2147483647, %v8346_v43 }
 0x2bd   :  { %v2857_v16 = vrot.slane %v4198_v1, 4  ;;  %v4199_v8 = vadd.f32 -0.6931472, %v2510_v34  ;;  %v7235_v29 = vsel %vm2702_vm9, %v2734_v26, %v2670_v57  ;;  %v2877_v58 = vrot.slane %v2876_v13, 2 }
 0x2be   :  { %8348 = vst [vmem:[#allocation79_spill] sm:$0xff] %v7235_v29  ;;  %5466 = vpow2.f32 %v2177_v9  ;;  %v2179_v27 = vmul.f32 1.442695, %v2130_v7  ;;  %v2872_v12 = vadd.f32 %v2871_v3, %v2870_v18  ;;  %v2373_v31 = vmul.f32 0.6931472, %v5463_v32 }
 0x2bf   :  { %v2858_v4 = vadd.f32 %v4198_v1, %v2857_v16  ;;  %v2863_v2 = vrot.slane %v4199_v8, 4  ;;  %v2376_v57 = vmul.f32 %v8346_v43, %v2375_v17  ;;  %v2384_v34 = vadd.f32 1.0, %v2383_v62 }
 0x2c0   :  { %5468 = vpow2.f32 %v2179_v27  ;;  %vm7240_vm10 = vcmp.lt.f32.partialorder %v2377_v25, 0.0004427343  ;;  %v2386_v9 = vand.u32 2147483647, %v6750_v40  ;;  %v2878_v29 = vadd.f32 %v2877_v58, %v2876_v13 }
 0x2c1   :  { %v2859_v19 = vrot.slane %v2858_v4, 2  ;;  %v2864_v23 = vadd.f32 %v4199_v8, %v2863_v2  ;;  %v2379_v27 = vsel %vm7240_vm10, %v2376_v57, %v2373_v31  ;;  %v2382_v8 = vmul.f32 0.6931472, %v5465_v54 }
 0x2c2   :  { %v2385_v18 = vmul.f32 %v6750_v40, %v2384_v34  ;;  %v2873_v3 = vrot.slane %v2872_v12, 1  ;;  %vm7248_vm11 = vcmp.lt.f32.partialorder %v2386_v9, 0.0004427343  ;;  %v2879_v25 = vrot.slane %v2878_v29, 1 }
 0x2c3   :  { %v2860_v26 = vadd.f32 %v2859_v19, %v2858_v4  ;;  %v2865_v7 = vrot.slane %v2864_v23, 2  ;;  %v8353_v4 = vand.u32 2147483647, %v6697_v21  ;;  %vm2705_vm14 = vcmp.lt.f32.partialorder %v7210_v5, 0.0 }
 0x2c4   :  { %v2388_v40 = vsel %vm7248_vm11, %v2385_v18, %v2382_v8  ;;  %v2874_v54 = vadd.f32 %v2873_v3, %v2872_v12  ;;  %v2880_v34 = vadd.f32 %v2879_v25, %v2878_v29  ;;  %v868_v18 = vrot.slane %v7200_v10, %v6859_v56 }
 0x2c5   :  { %v2861_v1 = vrot.slane %v2860_v26, 1  ;;  %v2866_v16 = vadd.f32 %v2865_v7, %v2864_v23  ;;  %v2515_v13 = vadd.f32 %v2379_v27, %v8353_v4  ;;  %v872_v3 = vrot.slane %v7200_v10, %v6863_v61 }
 0x2c6   :  { %vm2706_vm15 = vcmp.lt.f32.partialorder %v7216_v38, 0.0 }
 0x2c7   :  { %v2862_v43 = vadd.f32 %v2861_v1, %v2860_v26  ;;  %v2867_v17 = vrot.slane %v2866_v16, 1  ;;  %v4204_v60 = vadd.f32 -0.6931472, %v2515_v13  ;;  %v8354_v26 = vand.u32 2147483647, %v6699_v49 }
 0x2c8   :  { %v5467_v62 = vpop.eup %5466 }
 0x2c9   :  { %v2988_v2 = vadd.f32 %v7197_v0, %v2862_v43  ;;  %v2868_v58 = vadd.f32 %v2867_v17, %v2866_v16  ;;  %v2353_v19 = vadd.f32 1.0, %v5467_v62  ;;  %v2516_v9 = vadd.f32 %v2388_v40, %v8354_v26 }
 0x2ca   :  { %v5469_v31 = vpop.eup %5468  ;;  %v2356_v7 = vmul.f32 -0.5, %v5467_v62  ;;  %v2893_v16 = vrot.slane %v4204_v60, 4  ;;  %v2359_v12 = vand.u32 2147483647, %v5467_v62  ;;  %v2577_v25 = vsub.f32 1.0, %v5467_v62 }
 0x2cb   :  { %v2989_v23 = vadd.f32 %v2988_v2, %v2868_v58  ;;  %5470 = vlog2.f32 %v2353_v19  ;;  %v2362_v57 = vadd.f32 1.0, %v5469_v31  ;;  %v2365_v1 = vmul.f32 -0.5, %v5469_v31 }
 0x2cc   :  { %5472 = vrcp.f32 %v2353_v19  ;;  %v4205_v27 = vadd.f32 -0.6931472, %v2516_v9  ;;  %v2357_v8 = vadd.f32 1.0, %v2356_v7  ;;  %v2368_v29 = vand.u32 2147483647, %v5469_v31 }
 0x2cd   :  { %v2990_v21 = vadd.f32 %v2989_v23, %v2874_v54  ;;  %5474 = vlog2.f32 %v2362_v57  ;;  %v2366_v49 = vadd.f32 1.0, %v2365_v1  ;;  %v2894_v32 = vadd.f32 %v4204_v60, %v2893_v16 }
 0x2ce   :  { %5476 = vrcp.f32 %v2362_v57  ;;  %v2899_v17 = vrot.slane %v4205_v27, 4  ;;  %v2358_v58 = vmul.f32 %v5467_v62, %v2357_v8  ;;  %vm2360_vm12 = vcmp.lt.f32.partialorder %v2359_v12, 0.0004427343 }
 0x2cf   :  { %v7259_v0 = vadd.f32 %v2990_v21, %v2880_v34  ;;  %5478 = vlog2.f32 %v6866_v55  ;;  %vm7269_vm13 = vcmp.lt.f32.partialorder %v2368_v29, 0.0004427343  ;;  %v2578_v55 = vsub.f32 1.0, %v5469_v31 }
 0x2d0   :  { %5480 = vlog2.f32 %v6883_v41  ;;  %v2367_v26 = vmul.f32 %v5469_v31, %v2366_v49  ;;  %v8357_v62 = vand.u32 2147483647, %v7210_v5  ;;  %v2410_v8 = vmul.f32 -0.5, %v6854_v44 }
 0x2d2   :  { %v2411_v10 = vadd.f32 1.0, %v2410_v8 }
 0x2d5   :  { %v5471_v43 = vpop.eup %5470  ;;  %v1721_v4 = vpop.f32.mrb[12].mxu1 }
 0x2d6   :  { %v5473_v13 = vpop.eup %5472  ;;  %v2355_v2 = vmul.f32 0.6931472, %v5471_v43  ;;  %v7267_v19 = vadd.f32 %v1721_v4, %v868_v18  ;;  %v1723_v40 = vpop.f32.mrb[13].mxu1 }
 0x2d7   :  { %v5475_v54 = vpop.eup %5474  ;;  %v2673_v23 = vmul.f32 %v5473_v13, %v2577_v25  ;;  %v7273_v57 = vadd.f32 %v1723_v40, %v872_v3  ;;  %v8358_v3 = vand.u32 2147483647, %v7216_v38  ;;  %v2900_v25 = vadd.f32 %v4205_v27, %v2899_v17 }
 0x2d8   :  { %v5477_v34 = vpop.eup %5476  ;;  %v2361_v60 = vsel %vm2360_vm12, %v2358_v58, %v2355_v2  ;;  %v2364_v41 = vmul.f32 0.6931472, %v5475_v54  ;;  %v2101_v9 = vand.u32 2147483647, %v7267_v19  ;;  %v2895_v13 = vrot.slane %v2894_v32, 2 }
 0x2d9   :  { %v2513_v21 = vadd.f32 %v2361_v60, %v8357_v62  ;;  %v2737_v7 = vsub.f32 0.0, %v2673_v23  ;;  %v2674_v1 = vmul.f32 %v5477_v34, %v2578_v55  ;;  %v2102_v16 = vand.u32 2147483647, %v7273_v57  ;;  %v5479_v54 = vpop.eup %5478 }
 0x2da   :  { %v2370_v12 = vsel %vm7269_vm13, %v2367_v26, %v2364_v41  ;;  %v2133_v18 = vmul.f32 -2.0, %v2101_v9  ;;  %v5481_v34 = vpop.eup %5480  ;;  %v2413_v27 = vand.u32 2147483647, %v6854_v44  ;;  %v2901_v60 = vrot.slane %v2900_v25, 2 }
 0x2db   :  { %v4202_v31 = vadd.f32 -0.6931472, %v2513_v21  ;;  %v7285_v29 = vsel %vm2705_vm14, %v2737_v7, %v2673_v23  ;;  %v2514_v49 = vadd.f32 %v2370_v12, %v8358_v3  ;;  %v2738_v43 = vsub.f32 0.0, %v2674_v1 }
 0x2dc   :  { %v2185_v4 = vmul.f32 1.442695, %v2133_v18  ;;  %v2134_v5 = vmul.f32 -2.0, %v2102_v16  ;;  %v2419_v23 = vmul.f32 -0.5, %v6868_v63  ;;  %v2896_v62 = vadd.f32 %v2895_v13, %v2894_v32 }
 0x2dd   :  { %v2881_v2 = vrot.slane %v4202_v31, 4  ;;  %v4203_v58 = vadd.f32 -0.6931472, %v2514_v49  ;;  %v7292_v40 = vsel %vm2706_vm15, %v2738_v43, %v2674_v1  ;;  %v2409_v21 = vmul.f32 0.6931472, %v5479_v54 }
 0x2de   :  { %5482 = vpow2.f32 %v2185_v4  ;;  %v2187_v55 = vmul.f32 1.442695, %v2134_v5  ;;  %v2412_v7 = vmul.f32 %v6854_v44, %v2411_v10  ;;  %v2420_v1 = vadd.f32 1.0, %v2419_v23 }
 0x2df   :  { %v2882_v17 = vadd.f32 %v4202_v31, %v2881_v2  ;;  %v2887_v38 = vrot.slane %v4203_v58, 4  ;;  %vm7297_vm0 = vcmp.lt.f32.partialorder %v2413_v27, 0.0004427343  ;;  %v2422_v18 = vand.u32 2147483647, %v6868_v63 }
 0x2e0   :  { %5484 = vpow2.f32 %v2187_v55  ;;  %v2902_v49 = vadd.f32 %v2901_v60, %v2900_v25  ;;  %v2415_v4 = vsel %vm7297_vm0, %v2412_v7, %v2409_v21  ;;  %v2418_v5 = vmul.f32 0.6931472, %v5481_v34 }
 0x2e1   :  { %v2883_v41 = vrot.slane %v2882_v17, 2  ;;  %v2888_v26 = vadd.f32 %v4203_v58, %v2887_v38  ;;  %v2421_v32 = vmul.f32 %v6868_v63, %v2420_v1  ;;  %v2897_v13 = vrot.slane %v2896_v62, 1 }
 0x2e2   :  { %vm7305_vm1 = vcmp.lt.f32.partialorder %v2422_v18, 0.0004427343  ;;  %v2903_v10 = vrot.slane %v2902_v49, 1  ;;  %v8363_v23 = vand.u32 2147483647, %v6813_v48  ;;  %vm2709_vm4 = vcmp.lt.f32.partialorder %v7267_v19, 0.0 }
 0x2e3   :  { %v2884_v12 = vadd.f32 %v2883_v41, %v2882_v17  ;;  %v2889_v3 = vrot.slane %v2888_v26, 2  ;;  %v2424_v63 = vsel %vm7305_vm1, %v2421_v32, %v2418_v5  ;;  %v2898_v34 = vadd.f32 %v2897_v13, %v2896_v62 }
 0x2e4   :  { %v2519_v25 = vadd.f32 %v2415_v4, %v8363_v23  ;;  %v8364_v7 = vand.u32 2147483647, %v6824_v20  ;;  %vm2710_vm5 = vcmp.lt.f32.partialorder %v7273_v57, 0.0 }
 0x2e5   :  { %v2885_v31 = vrot.slane %v2884_v12, 1  ;;  %v2890_v43 = vadd.f32 %v2889_v3, %v2888_v26  ;;  %v2904_v26 = vadd.f32 %v2903_v10, %v2902_v49 }
 0x2e6   :  { %v4208_v21 = vadd.f32 -0.6931472, %v2519_v25  ;;  %v2520_v1 = vadd.f32 %v2424_v63, %v8364_v7 }
 0x2e7   :  { %v2886_v44 = vadd.f32 %v2885_v31, %v2884_v12  ;;  %v2891_v58 = vrot.slane %v2890_v43, 1 }
 0x2e8   :  { %v5483_v54 = vpop.eup %5482  ;;  %v2917_v18 = vrot.slane %v4208_v21, 4  ;;  %v4209_v3 = vadd.f32 -0.6931472, %v2520_v1 }
 0x2e9   :  { %v2992_v55 = vadd.f32 %v7259_v0, %v2886_v44  ;;  %v2892_v27 = vadd.f32 %v2891_v58, %v2890_v43  ;;  %v2389_v17 = vadd.f32 1.0, %v5483_v54  ;;  %v2392_v8 = vmul.f32 -0.5, %v5483_v54  ;;  %v7318_v43 = vld [vmem:[#allocation7 + $0x18] sm:$0xff] }
 0x2ea   :  { %v5485_v38 = vpop.eup %5484  ;;  %v2395_v62 = vand.u32 2147483647, %v5483_v54  ;;  %v884_v49 = vrot.slane %v7318_v43, %v6757_v22  ;;  %v888_v20 = vrot.slane %v7318_v43, %v6763_v53  ;;  %v2918_v13 = vadd.f32 %v4208_v21, %v2917_v18 }
 0x2eb   :  { %v2993_v60 = vadd.f32 %v2992_v55, %v2892_v27  ;;  %5486 = vlog2.f32 %v2389_v17  ;;  %v2398_v41 = vadd.f32 1.0, %v5485_v38  ;;  %v2401_v12 = vmul.f32 -0.5, %v5485_v38 }
 0x2ec   :  { %5488 = vrcp.f32 %v2389_v17  ;;  %v2393_v31 = vadd.f32 1.0, %v2392_v8  ;;  %v2404_v4 = vand.u32 2147483647, %v5485_v38  ;;  %v2923_v44 = vrot.slane %v4209_v3, 4 }
 0x2ed   :  { %v2994_v48 = vadd.f32 %v2993_v60, %v2898_v34  ;;  %5490 = vlog2.f32 %v2398_v41  ;;  %v2402_v5 = vadd.f32 1.0, %v2401_v12  ;;  %v2581_v2 = vsub.f32 1.0, %v5483_v54 }
 0x2ee   :  { %5492 = vrcp.f32 %v2398_v41  ;;  %v2394_v25 = vmul.f32 %v5483_v54, %v2393_v31  ;;  %vm2396_vm2 = vcmp.lt.f32.partialorder %v2395_v62, 0.0004427343  ;;  %vm7328_vm3 = vcmp.lt.f32.partialorder %v2404_v4, 0.0004427343 }
 0x2ef   :  { %v7316_v0 = vadd.f32 %v2994_v48, %v2904_v26  ;;  %5494 = vlog2.f32 %v7046_v15  ;;  %v2582_v15 = vsub.f32 1.0, %v5485_v38  ;;  %v2403_v26 = vmul.f32 %v5485_v38, %v2402_v5 }
 0x2f0   :  { %5496 = vlog2.f32 %v7071_v46  ;;  %v2446_v8 = vmul.f32 -0.5, %v7029_v47 }
 0x2f5   :  { %v5487_v32 = vpop.eup %5486  ;;  %v1863_v58 = vpop.f32.mrb[14].mxu1 }
 0x2f6   :  { %v5489_v10 = vpop.eup %5488  ;;  %v2391_v23 = vmul.f32 0.6931472, %v5487_v32  ;;  %v7326_v55 = vadd.f32 %v1863_v58, %v884_v49  ;;  %v1865_v27 = vpop.f32.mrb[15].mxu1  ;;  %v2924_v49 = vadd.f32 %v4209_v3, %v2923_v44  ;;  %v2449_v3 = vand.u32 2147483647, %v7029_v47 }
 0x2f7   :  { %v5491_v17 = vpop.eup %5490  ;;  %v2677_v63 = vmul.f32 %v5489_v10, %v2581_v2  ;;  %v7332_v34 = vadd.f32 %v1865_v27, %v888_v20  ;;  %v2919_v20 = vrot.slane %v2918_v13, 2  ;;  %v2447_v10 = vadd.f32 1.0, %v2446_v8 }
 0x2f8   :  { %v5493_v60 = vpop.eup %5492  ;;  %v2397_v41 = vsel %vm2396_vm2, %v2394_v25, %v2391_v23  ;;  %v2400_v46 = vmul.f32 0.6931472, %v5491_v17  ;;  %v2105_v21 = vand.u32 2147483647, %v7326_v55  ;;  %v2455_v23 = vmul.f32 -0.5, %v7060_v52 }
 0x2f9   :  { %v2517_v54 = vadd.f32 %v2397_v41, %v2101_v9  ;;  %v2741_v7 = vsub.f32 0.0, %v2677_v63  ;;  %v2678_v1 = vmul.f32 %v5493_v60, %v2582_v15  ;;  %v2106_v48 = vand.u32 2147483647, %v7332_v34  ;;  %v5495_v58 = vpop.eup %5494 }
 0x2fa   :  { %v2406_v12 = vsel %vm7328_vm3, %v2403_v26, %v2400_v46  ;;  %v2137_v18 = vmul.f32 -2.0, %v2105_v21  ;;  %v2925_v27 = vrot.slane %v2924_v49, 2  ;;  %v2920_v53 = vadd.f32 %v2919_v20, %v2918_v13 }
 0x2fb   :  { %v4206_v38 = vadd.f32 -0.6931472, %v2517_v54  ;;  %v7344_v31 = vsel %vm2709_vm4, %v2741_v7, %v2677_v63  ;;  %v2518_v9 = vadd.f32 %v2406_v12, %v2102_v16  ;;  %v2742_v62 = vsub.f32 0.0, %v2678_v1  ;;  %v5497_v16 = vpop.eup %5496 }
 0x2fc   :  { %v2193_v4 = vmul.f32 1.442695, %v2137_v18  ;;  %v2138_v19 = vmul.f32 -2.0, %v2106_v48  ;;  %v2445_v15 = vmul.f32 0.6931472, %v5495_v58  ;;  %v2448_v60 = vmul.f32 %v7029_v47, %v2447_v10 }
 0x2fd   :  { %v2905_v5 = vrot.slane %v4206_v38, 4  ;;  %v4207_v32 = vadd.f32 -0.6931472, %v2518_v9  ;;  %v7351_v2 = vsel %vm2710_vm5, %v2742_v62, %v2678_v1  ;;  %v2456_v41 = vadd.f32 1.0, %v2455_v23 }
 0x2fe   :  { %5498 = vpow2.f32 %v2193_v4  ;;  %v2195_v25 = vmul.f32 1.442695, %v2138_v19  ;;  %vm7356_vm6 = vcmp.lt.f32.partialorder %v2449_v3, 0.0004427343  ;;  %v2458_v54 = vand.u32 2147483647, %v7060_v52 }
 0x2ff   :  { %v2906_v44 = vadd.f32 %v4206_v38, %v2905_v5  ;;  %v2911_v57 = vrot.slane %v4207_v32, 4  ;;  %v2926_v1 = vadd.f32 %v2925_v27, %v2924_v49  ;;  %v2451_v18 = vsel %vm7356_vm6, %v2448_v60, %v2445_v15 }
 0x300   :  { %5500 = vpow2.f32 %v2195_v25  ;;  %v2454_v38 = vmul.f32 0.6931472, %v5497_v16  ;;  %v2457_v13 = vmul.f32 %v7060_v52, %v2456_v41  ;;  %v2921_v9 = vrot.slane %v2920_v53, 1 }
 0x301   :  { %v2907_v17 = vrot.slane %v2906_v44, 2  ;;  %v2912_v63 = vadd.f32 %v4207_v32, %v2911_v57  ;;  %vm7364_vm7 = vcmp.lt.f32.partialorder %v2458_v54, 0.0004427343  ;;  %v2927_v20 = vrot.slane %v2926_v1, 1 }
 0x302   :  { %v8371_v5 = vand.u32 2147483647, %v6960_v37  ;;  %v2460_v52 = vsel %vm7364_vm7, %v2457_v13, %v2454_v38  ;;  %v2922_v25 = vadd.f32 %v2921_v9, %v2920_v53  ;;  %v8372_v27 = vand.u32 2147483647, %v6981_v24 }
 0x303   :  { %v2908_v26 = vadd.f32 %v2907_v17, %v2906_v44  ;;  %v2913_v7 = vrot.slane %v2912_v63, 2  ;;  %v2928_v44 = vadd.f32 %v2927_v20, %v2926_v1  ;;  %vm2713_vm10 = vcmp.lt.f32.partialorder %v7326_v55, 0.0 }
 0x304   :  { %v2523_v49 = vadd.f32 %v2451_v18, %v8371_v5  ;;  %v2524_v17 = vadd.f32 %v2460_v52, %v8372_v27  ;;  %vm2714_vm11 = vcmp.lt.f32.partialorder %v7332_v34, 0.0 }
 0x305   :  { %v2909_v8 = vrot.slane %v2908_v26, 1  ;;  %v2914_v12 = vadd.f32 %v2913_v7, %v2912_v63  ;;  %v904_v7 = vrot.slane %v7318_v43, %v6863_v61 }
 0x306   :  { %v4212_v57 = vadd.f32 -0.6931472, %v2523_v49  ;;  %v4213_v41 = vadd.f32 -0.6931472, %v2524_v17 }
 0x307   :  { %v2910_v47 = vadd.f32 %v2909_v8, %v2908_v26  ;;  %v2915_v4 = vrot.slane %v2914_v12, 1  ;;  %v900_v26 = vrot.slane %v7318_v43, %v6859_v56 }
 0x308   :  { %v5499_v19 = vpop.eup %5498  ;;  %v2941_v60 = vrot.slane %v4212_v57, 4 }
 0x309   :  { %v2996_v32 = vadd.f32 %v7316_v0, %v2910_v47  ;;  %v2916_v58 = vadd.f32 %v2915_v4, %v2914_v12  ;;  %v2425_v10 = vadd.f32 1.0, %v5499_v19  ;;  %v2428_v63 = vmul.f32 -0.5, %v5499_v19 }
 0x30a   :  { %v5501_v23 = vpop.eup %5500  ;;  %v2431_v53 = vand.u32 2147483647, %v5499_v19  ;;  %v2942_v8 = vadd.f32 %v4212_v57, %v2941_v60  ;;  %v2947_v12 = vrot.slane %v4213_v41, 4  ;;  %v2585_v18 = vsub.f32 1.0, %v5499_v19 }
 0x30b   :  { %v2997_v16 = vadd.f32 %v2996_v32, %v2916_v58  ;;  %5502 = vlog2.f32 %v2425_v10  ;;  %v2434_v3 = vadd.f32 1.0, %v5501_v23  ;;  %v2437_v15 = vmul.f32 -0.5, %v5501_v23 }
 0x30c   :  { %5504 = vrcp.f32 %v2425_v10  ;;  %v2429_v46 = vadd.f32 1.0, %v2428_v63  ;;  %v2440_v54 = vand.u32 2147483647, %v5501_v23  ;;  %vm2432_vm8 = vcmp.lt.f32.partialorder %v2431_v53, 0.0004427343 }
 0x30d   :  { %v2998_v37 = vadd.f32 %v2997_v16, %v2922_v25  ;;  %5506 = vlog2.f32 %v2434_v3  ;;  %v2438_v24 = vadd.f32 1.0, %v2437_v15  ;;  %v2586_v61 = vsub.f32 1.0, %v5501_v23 }
 0x30e   :  { %5508 = vrcp.f32 %v2434_v3  ;;  %v2430_v47 = vmul.f32 %v5499_v19, %v2429_v46  ;;  %vm7384_vm9 = vcmp.lt.f32.partialorder %v2440_v54, 0.0004427343  ;;  %v2948_v3 = vadd.f32 %v4213_v41, %v2947_v12 }
 0x30f   :  { %v7375_v0 = vadd.f32 %v2998_v37, %v2928_v44  ;;  %5510 = vlog2.f32 %v7126_v14  ;;  %v2439_v58 = vmul.f32 %v5501_v23, %v2438_v24  ;;  %v2943_v41 = vrot.slane %v2942_v8, 2 }
 0x310   :  { %5512 = vlog2.f32 %v7174_v42  ;;  %v2491_v42 = vmul.f32 -0.5, %v7163_v51 }
 0x315   :  { %v5503_v1 = vpop.eup %5502  ;;  %v2005_v38 = vpop.f32.mrb[16].mxu1 }
 0x316   :  { %v5505_v13 = vpop.eup %5504  ;;  %v2427_v9 = vmul.f32 0.6931472, %v5503_v1  ;;  %v7382_v62 = vadd.f32 %v2005_v38, %v900_v26  ;;  %v2007_v4 = vpop.f32.mrb[17].mxu1  ;;  %v2482_v26 = vmul.f32 -0.5, %v7114_v11  ;;  %v2944_v1 = vadd.f32 %v2943_v41, %v2942_v8 }
 0x317   :  { %v5507_v56 = vpop.eup %5506  ;;  %v2681_v20 = vmul.f32 %v5505_v13, %v2585_v18  ;;  %v7388_v43 = vadd.f32 %v2007_v4, %v904_v7  ;;  %v2949_v7 = vrot.slane %v2948_v3, 2 }
 0x318   :  { %v5509_v49 = vpop.eup %5508  ;;  %v2433_v14 = vsel %vm2432_vm8, %v2430_v47, %v2427_v9  ;;  %v2436_v32 = vmul.f32 0.6931472, %v5507_v56  ;;  %v2109_v10 = vand.u32 2147483647, %v7382_v62  ;;  %v2483_v12 = vadd.f32 1.0, %v2482_v26 }
 0x319   :  { %v2521_v19 = vadd.f32 %v2433_v14, %v2105_v21  ;;  %v2745_v52 = vsub.f32 0.0, %v2681_v20  ;;  %v2682_v25 = vmul.f32 %v5509_v49, %v2586_v61  ;;  %v2110_v16 = vand.u32 2147483647, %v7388_v43  ;;  %v5511_v53 = vpop.eup %5510 }
 0x31a   :  { %v2442_v44 = vsel %vm7384_vm9, %v2439_v58, %v2436_v32  ;;  %v2141_v57 = vmul.f32 -2.0, %v2109_v10  ;;  %v2950_v13 = vadd.f32 %v2949_v7, %v2948_v3  ;;  %v2485_v9 = vand.u32 2147483647, %v7114_v11 }
 0x31b   :  { %v4210_v27 = vadd.f32 -0.6931472, %v2521_v19  ;;  %v7399_v23 = vsel %vm2713_vm10, %v2745_v52, %v2681_v20  ;;  %v2522_v17 = vadd.f32 %v2442_v44, %v2106_v48  ;;  %v2746_v21 = vsub.f32 0.0, %v2682_v25  ;;  %v5513_v20 = vpop.eup %5512 }
 0x31c   :  { %v2201_v37 = vmul.f32 1.442695, %v2141_v57  ;;  %v2142_v55 = vmul.f32 -2.0, %v2110_v16  ;;  %v2492_v47 = vadd.f32 1.0, %v2491_v42  ;;  %v2945_v5 = vrot.slane %v2944_v1, 1 }
 0x31d   :  { %v2929_v63 = vrot.slane %v4210_v27, 4  ;;  %v4211_v15 = vadd.f32 -0.6931472, %v2522_v17  ;;  %v7407_v60 = vsel %vm2714_vm11, %v2746_v21, %v2682_v25  ;;  %v2494_v61 = vand.u32 2147483647, %v7163_v51 }
 0x31e   :  { %5514 = vpow2.f32 %v2201_v37  ;;  %v2203_v46 = vmul.f32 1.442695, %v2142_v55  ;;  %v2481_v49 = vmul.f32 0.6931472, %v5511_v53  ;;  %v2484_v14 = vmul.f32 %v7114_v11, %v2483_v12 }
 0x31f   :  { %v2930_v48 = vadd.f32 %v4210_v27, %v2929_v63  ;;  %v2935_v54 = vrot.slane %v4211_v15, 4  ;;  %v2951_v8 = vrot.slane %v2950_v13, 1  ;;  %vm7414_vm12 = vcmp.lt.f32.partialorder %v2485_v9, 0.0004427343 }
 0x320   :  { %5516 = vpow2.f32 %v2203_v46  ;;  %v2493_v25 = vmul.f32 %v7163_v51, %v2492_v47  ;;  %v2490_v3 = vmul.f32 0.6931472, %v5513_v20  ;;  %v2946_v21 = vadd.f32 %v2945_v5, %v2944_v1 }
 0x321   :  { %v2931_v34 = vrot.slane %v2930_v48, 2  ;;  %v2936_v24 = vadd.f32 %v4211_v15, %v2935_v54  ;;  %vm2495_vm13 = vcmp.lt.f32.partialorder %v2494_v61, 0.0004427343  ;;  %v2487_v11 = vsel %vm7414_vm12, %v2484_v14, %v2481_v49 }
 0x322   :  { %v2952_v63 = vadd.f32 %v2951_v8, %v2950_v13  ;;  %v2496_v15 = vsel %vm2495_vm13, %v2493_v25, %v2490_v3  ;;  %v8377_v51 = vand.u32 2147483647, %v7058_v45  ;;  %v8378_v26 = vand.u32 2147483647, %v7090_v30 }
 0x323   :  { %v2932_v18 = vadd.f32 %v2931_v34, %v2930_v48  ;;  %v2937_v38 = vrot.slane %v2936_v24, 2  ;;  %vm2717_vm0 = vcmp.lt.f32.partialorder %v7382_v62, 0.0  ;;  %vm2718_vm1 = vcmp.lt.f32.partialorder %v7388_v43, 0.0 }
 0x324   :  { %v2527_v46 = vadd.f32 %v2487_v11, %v8377_v51  ;;  %v2528_v48 = vadd.f32 %v2496_v15, %v8378_v26 }
 0x325   :  { %v2933_v4 = vrot.slane %v2932_v18, 1  ;;  %v2938_v56 = vadd.f32 %v2937_v38, %v2936_v24 }
 0x326   :  { %v4216_v7 = vadd.f32 -0.6931472, %v2527_v46  ;;  %v4217_v24 = vadd.f32 -0.6931472, %v2528_v48 }
 0x327   :  { %v2934_v32 = vadd.f32 %v2933_v4, %v2932_v18  ;;  %v2939_v58 = vrot.slane %v2938_v56, 1 }
 0x328   :  { %v5515_v19 = vpop.eup %5514  ;;  %v2965_v9 = vrot.slane %v4216_v7, 4  ;;  %v2971_v30 = vrot.slane %v4217_v24, 4 }
 0x329   :  { %v3000_v44 = vadd.f32 %v7375_v0, %v2934_v32  ;;  %v2940_v57 = vadd.f32 %v2939_v58, %v2938_v56  ;;  %v2461_v27 = vadd.f32 1.0, %v5515_v19  ;;  %v2464_v0 = vmul.f32 -0.5, %v5515_v19 }
 0x32a   :  { %v5517_v17 = vpop.eup %5516  ;;  %v2467_v34 = vand.u32 2147483647, %v5515_v19  ;;  %v2589_v18 = vsub.f32 1.0, %v5515_v19  ;;  %v2966_v52 = vadd.f32 %v4216_v7, %v2965_v9 }
 0x32b   :  { %v3001_v37 = vadd.f32 %v3000_v44, %v2940_v57  ;;  %5518 = vlog2.f32 %v2461_v27  ;;  %v2470_v55 = vadd.f32 1.0, %v5517_v17  ;;  %v2473_v54 = vmul.f32 -0.5, %v5517_v17 }
 0x32c   :  { %5520 = vrcp.f32 %v2461_v27  ;;  %v2465_v42 = vadd.f32 1.0, %v2464_v0  ;;  %v2476_v38 = vand.u32 2147483647, %v5517_v17  ;;  %vm2468_vm14 = vcmp.lt.f32.partialorder %v2467_v34, 0.0004427343 }
 0x32d   :  { %v3002_v41 = vadd.f32 %v3001_v37, %v2946_v21  ;;  %5522 = vlog2.f32 %v2470_v55  ;;  %v2474_v1 = vadd.f32 1.0, %v2473_v54  ;;  %v2590_v20 = vsub.f32 1.0, %v5517_v17 }
 0x32e   :  { %5524 = vrcp.f32 %v2470_v55  ;;  %v2466_v45 = vmul.f32 %v5515_v19, %v2465_v42  ;;  %vm2477_vm15 = vcmp.lt.f32.partialorder %v2476_v38, 0.0004427343  ;;  %v2972_v27 = vadd.f32 %v4217_v24, %v2971_v30 }
 0x32f   :  { %v3003_v53 = vadd.f32 %v3002_v41, %v2952_v63  ;;  %v2475_v14 = vmul.f32 %v5517_v17, %v2474_v1 }
 0x330   :  { %v2973_v63 = vrot.slane %v2972_v27, 2 }
 0x332   :  { %v2974_v0 = vadd.f32 %v2973_v63, %v2972_v27  ;;  %v8387_v27 = vld [vmem:[#allocation202_spill] sm:$0xff]  ;;  %v8392_v63 = vld [vmem:[#allocation79_spill] sm:$0xff] }
 0x334   :  { %v2975_v43 = vrot.slane %v2974_v0, 1 }
 0x335   :  { %v5519_v12 = vpop.eup %5518 }
 0x336   :  { %v5521_v13 = vpop.eup %5520  ;;  %v2463_v47 = vmul.f32 0.6931472, %v5519_v12  ;;  %v2976_v12 = vadd.f32 %v2975_v43, %v2974_v0  ;;  %v8396_v0 = vld [vmem:[#allocation198_spill] sm:$0xff]  ;;  %v8402_v43 = vld [vmem:[#allocation83_spill] sm:$0xff] }
 0x337   :  { %v5523_v4 = vpop.eup %5522  ;;  %v2685_v56 = vmul.f32 %v5521_v13, %v2589_v18 }
 0x338   :  { %v5525_v5 = vpop.eup %5524  ;;  %v2469_v61 = vsel %vm2468_vm14, %v2466_v45, %v2463_v47  ;;  %v2472_v49 = vmul.f32 0.6931472, %v5523_v4  ;;  %v8379_v47 = vld [vmem:[#allocation192_spill] sm:$0xff] }
 0x339   :  { %v2525_v32 = vadd.f32 %v2469_v61, %v2109_v10  ;;  %v2749_v58 = vsub.f32 0.0, %v2685_v56  ;;  %v2686_v8 = vmul.f32 %v5525_v5, %v2590_v20  ;;  %v2967_v10 = vrot.slane %v2966_v52, 2  ;;  %v8381_v5 = vld [vmem:[#allocation220_spill] sm:$0xff] }
 0x33a   :  { %v2478_v25 = vsel %vm2477_vm15, %v2475_v14, %v2472_v49 }
 0x33b   :  { %v4214_v19 = vadd.f32 -0.6931472, %v2525_v32  ;;  %v2781_v3 = vsel %vm2717_vm0, %v2749_v58, %v2685_v56  ;;  %v2526_v44 = vadd.f32 %v2478_v25, %v2110_v16  ;;  %v2750_v57 = vsub.f32 0.0, %v2686_v8  ;;  %v8380_v56 = vld [vmem:[#allocation199_spill] sm:$0xff] }
 0x33c   :  { %v2968_v62 = vadd.f32 %v2967_v10, %v2966_v52  ;;  %v8390_v10 = vld [vmem:[#allocation223_spill] sm:$0xff] }
 0x33d   :  { %v2953_v17 = vrot.slane %v4214_v19, 4  ;;  %v4215_v21 = vadd.f32 -0.6931472, %v2526_v44  ;;  %v2782_v11 = vsel %vm2718_vm1, %v2750_v57, %v2686_v8  ;;  %v8386_v44 = vld [vmem:[#allocation186_spill] sm:$0xff] }
 0x33e   :  { %v2969_v16 = vrot.slane %v2968_v62, 1 }
 0x33f   :  { %v2954_v37 = vadd.f32 %v4214_v19, %v2953_v17  ;;  %v2959_v55 = vrot.slane %v4215_v21, 4  ;;  %v8385_v19 = vld [vmem:[#allocation262_spill] sm:$0xff] }
 0x340   :  { %v2970_v24 = vadd.f32 %v2969_v16, %v2968_v62  ;;  %v8393_v62 = vld [vmem:[#allocation16_spill] sm:$0xff]  ;;  %v8398_v16 = vld [vmem:[#allocation81_spill] sm:$0xff] }
 0x341   :  { %v2955_v15 = vrot.slane %v2954_v37, 2  ;;  %v2960_v41 = vadd.f32 %v4215_v21, %v2959_v55 }
 0x343   :  { %v2956_v51 = vadd.f32 %v2955_v15, %v2954_v37  ;;  %v2961_v46 = vrot.slane %v2960_v41, 2 }
 0x345   :  { %v2957_v26 = vrot.slane %v2956_v51, 1  ;;  %v2962_v48 = vadd.f32 %v2961_v46, %v2960_v41  ;;  %v8395_v46 = vld [vmem:[#allocation245_spill] sm:$0xff] }
 0x347   :  { %v2958_v54 = vadd.f32 %v2957_v26, %v2956_v51  ;;  %v2963_v7 = vrot.slane %v2962_v48, 1  ;;  %v8394_v51 = vld [vmem:[#allocation80_spill] sm:$0xff] }
 0x349   :  { %v3004_v42 = vadd.f32 %v3003_v53, %v2958_v54  ;;  %v2964_v34 = vadd.f32 %v2963_v7, %v2962_v48  ;;  %v8397_v48 = vld [vmem:[#allocation17_spill] sm:$0xff]  ;;  %v8399_v54 = vld [vmem:[#allocation18_spill] sm:$0xff]  ;;  %v8401_v7 = vld [vmem:[#allocation19_spill] sm:$0xff] }
 0x34b   :  { %v3005_v1 = vadd.f32 %v3004_v42, %v2964_v34  ;;  %v8403_v42 = vld [vmem:[#allocation20_spill] sm:$0xff] }
 0x34c   :  { %v8404_v34 = vld [vmem:[#allocation84_spill] sm:$0xff] }
 0x34d   :  { %v3006_v18 = vadd.f32 %v3005_v1, %v2970_v24  ;;  %v8405_v24 = vld [vmem:[#allocation21_spill] sm:$0xff] }
 0x34e   :  { %v8406_v1 = vld [vmem:[#allocation85_spill] sm:$0xff] }
 0x34f   :  { %v3007_v38 = vadd.f32 %v3006_v18, %v2976_v12  ;;  %v8407_v12 = vld [vmem:[#allocation22_spill] sm:$0xff] }
 0x350   :  { %v8408_v18 = vld [vmem:[#allocation86_spill] sm:$0xff] }
 0x351   :  { %v3011_v13 = vrot.slane %v3007_v38, %v6757_v22  ;;  %v8382_v22 = vld [vmem:[#allocation242_spill] sm:$0xff]  ;;  %v8409_v38 = vld [vmem:[#allocation23_spill] sm:$0xff] }
 0x353   :  { %v3012_v9 = vmul.f32 %v3011_v13, %v6928_v36  ;;  %v7435_v45 = vmul.f32 %v3011_v13, %v8379_v47  ;;  %v7438_v4 = vmul.f32 %v3011_v13, %v7050_v6  ;;  %v7441_v20 = vmul.f32 %v3011_v13, %v8380_v56  ;;  %v8412_v47 = vld [vmem:[#allocation88_spill] sm:$0xff]  ;;  %v8413_v56 = vld [vmem:[#allocation25_spill] sm:$0xff] }
 0x354   :  { %v7444_v53 = vmul.f32 %v3011_v13, %v7153_v33  ;;  %v7447_v30 = vmul.f32 %v3011_v13, %v8381_v5  ;;  %v7450_v61 = vmul.f32 %v3011_v13, %v7228_v28  ;;  %v7453_v36 = vmul.f32 %v3011_v13, %v8382_v22  ;;  %v8414_v5 = vld [vmem:[#allocation89_spill] sm:$0xff]  ;;  %v8415_v22 = vld [vmem:[#allocation26_spill] sm:$0xff] }
 0x355   :  { %v3028_v49 = vmul.f32 %v3011_v13, %v7285_v29  ;;  %v3030_v6 = vmul.f32 %v3011_v13, %v6829_v35  ;;  %v7458_v14 = vmul.f32 %v3011_v13, %v7344_v31  ;;  %v7461_v32 = vmul.f32 %v3011_v13, %v6947_v50  ;;  %v8383_v29 = vld [vmem:[#allocation263_spill] sm:$0xff]  ;;  %v8384_v31 = vld [vmem:[#allocation193_spill] sm:$0xff] }
 0x356   :  { %v7464_v33 = vmul.f32 %v3011_v13, %v7399_v23  ;;  %v7467_v58 = vmul.f32 %v3011_v13, %v7108_v39  ;;  %v7469_v28 = vmul.f32 %v3011_v13, %v2781_v3  ;;  %v7472_v8 = vmul.f32 %v3011_v13, %v7180_v59  ;;  %v8388_v3 = vld [vmem:[#allocation264_spill] sm:$0xff]  ;;  %v8389_v59 = vld [vmem:[#allocation195_spill] sm:$0xff] }
 0x357   :  { %v3013_v52 = vmul.f32 %v3011_v13, %v8383_v29  ;;  %v3029_v35 = vmul.f32 %v3011_v13, %v7292_v40  ;;  %v3015_v25 = vmul.f32 %v3011_v13, %v8384_v31  ;;  %v3031_v50 = vmul.f32 %v3011_v13, %v8385_v19  ;;  %v8417_v29 = vld [vmem:[#allocation27_spill] sm:$0xff]  ;;  %v8420_v31 = vld [vmem:[#allocation92_spill] sm:$0xff]  ;;  %v8422_v19 = vld [vmem:[#allocation93_spill] sm:$0xff] }
 0x358   :  { %v3017_v57 = vmul.f32 %v3011_v13, %v8386_v44  ;;  %v3033_v23 = vmul.f32 %v3011_v13, %v7351_v2  ;;  %v7481_v39 = vmul.f32 %v3011_v13, %v8387_v27  ;;  %v7484_v17 = vmul.f32 %v3011_v13, %v8388_v3  ;;  %v8391_v2 = vld [vmem:[#allocation194_spill] sm:$0xff]  ;;  %v8425_v27 = vld [vmem:[#allocation111_spill] sm:$0xff]  ;;  %v8426_v3 = vld [vmem:[#allocation200_spill] sm:$0xff] }
 0x359   :  { %3109 = vmatprep.mubr.f32.mxu0 %v3013_v52  ;;  %3669 = vmatprep.mubr.f32.mxu1 %v3029_v35  ;;  %v7487_v21 = vmul.f32 %v3011_v13, %v8389_v59  ;;  %v7490_v40 = vmul.f32 %v3011_v13, %v7407_v60  ;;  %v7493_v37 = vmul.f32 %v3011_v13, %v8390_v10  ;;  %v8418_v52 = vld [vmem:[#allocation91_spill] sm:$0xff]  ;;  %v8419_v35 = vld [vmem:[#allocation28_spill] sm:$0xff]  ;;  %v8424_v44 = vld [vmem:[#allocation94_spill] sm:$0xff] }
 0x35a   :  { %3110 = vmatmul.mubr.f32.vlgmr.msra.gmra.mrb[18].mxu0 %v3012_v9  ;;  %3670 = vmatmul.mubr.f32.vlgmr.msra.gmra.mrb[18].mxu1 %v3028_v49  ;;  %v7496_v55 = vmul.f32 %v3011_v13, %v8391_v2  ;;  %v7499_v15 = vmul.f32 %v3011_v13, %v8392_v63  ;;  %v7501_v41 = vmul.f32 %v3011_v13, %v2782_v11  ;;  %v8400_v11 = vld [vmem:[#allocation82_spill] sm:$0xff]  ;;  %v8411_v9 = vld [vmem:[#allocation24_spill] sm:$0xff]  ;;  %v8427_v59 = vld [vmem:[#allocation113_spill] sm:$0xff] }
 0x35b   :  { %4809 = vmatpush1.bf16.xpose.msra.mxu0 %v8393_v62  ;;  %5065 = vmatpush1.bf16.xpose.msra.mxu1 %v8394_v51  ;;  %v7506_v60 = vmul.f32 %v3011_v13, %v8395_v46  ;;  %v7509_v26 = vmul.f32 %v3011_v13, %v8396_v0  ;;  %v8410_v13 = vld [vmem:[#allocation87_spill] sm:$0xff]  ;;  %v8416_v49 = vld [vmem:[#allocation90_spill] sm:$0xff]  ;;  %v8428_v10 = vld [vmem:[#allocation201_spill] sm:$0xff] }
 0x35c   :  { %3179 = vmatprep.mubr.f32.mxu0 %v3015_v25  ;;  %3739 = vmatprep.mubr.f32.mxu1 %v3031_v50  ;;  %v8421_v25 = vld [vmem:[#allocation29_spill] sm:$0xff]  ;;  %v8423_v50 = vld [vmem:[#allocation30_spill] sm:$0xff]  ;;  %v8429_v2 = vld [vmem:[#allocation115_spill] sm:$0xff] }
 0x35d   :  { %4811 = vmatprep.subr.bf16.mxu0 %v8397_v48  ;;  %5067 = vmatprep.subr.bf16.mxu1 %v8398_v16  ;;  %v8430_v63 = vld [vmem:[#allocation203_spill] sm:$0xff]  ;;  %v8431_v62 = vld [vmem:[#allocation117_spill] sm:$0xff]  ;;  %v8432_v51 = vld [vmem:[#allocation204_spill] sm:$0xff] }
 0x35e   :  { %v8433_v46 = vld [vmem:[#allocation119_spill] sm:$0xff]  ;;  %v8434_v0 = vld [vmem:[#allocation205_spill] sm:$0xff]  ;;  %v8440_v16 = vld [vmem:[#allocation208_spill] sm:$0xff] }
 0x35f   :  { %v8438_v48 = vld [vmem:[#allocation207_spill] sm:$0xff] }
 0x363   :  { %4813 = vmatpush1.bf16.xpose.msra.mxu0 %v8399_v54  ;;  %5069 = vmatpush1.bf16.xpose.msra.mxu1 %v8400_v11  ;;  %v8441_v54 = vld [vmem:[#allocation127_spill] sm:$0xff]  ;;  %v8442_v11 = vld [vmem:[#allocation209_spill] sm:$0xff] }
 0x364   :  { %4815 = vmatprep.subr.bf16.mxu0 %v8401_v7  ;;  %5071 = vmatprep.subr.bf16.mxu1 %v8402_v43  ;;  %v8443_v7 = vld [vmem:[#allocation129_spill] sm:$0xff]  ;;  %v8444_v43 = vld [vmem:[#allocation210_spill] sm:$0xff] }
 0x36b   :  { %4817 = vmatpush1.bf16.xpose.msra.mxu0 %v8403_v42  ;;  %5073 = vmatpush1.bf16.xpose.msra.mxu1 %v8404_v34  ;;  %v8445_v42 = vld [vmem:[#allocation131_spill] sm:$0xff] }
 0x36c   :  { %4819 = vmatprep.subr.bf16.mxu0 %v8405_v24  ;;  %5075 = vmatprep.subr.bf16.mxu1 %v8406_v1  ;;  %v8446_v34 = vld [vmem:[#allocation211_spill] sm:$0xff]  ;;  %v8447_v24 = vld [vmem:[#allocation133_spill] sm:$0xff]  ;;  %v8448_v1 = vld [vmem:[#allocation212_spill] sm:$0xff] }
 0x373   :  { %4821 = vmatpush1.bf16.xpose.msra.mxu0 %v8407_v12  ;;  %5077 = vmatpush1.bf16.xpose.msra.mxu1 %v8408_v18  ;;  %v8449_v12 = vld [vmem:[#allocation135_spill] sm:$0xff]  ;;  %v8450_v18 = vld [vmem:[#allocation213_spill] sm:$0xff] }
 0x374   :  { %4823 = vmatprep.subr.bf16.mxu0 %v8409_v38  ;;  %5079 = vmatprep.subr.bf16.mxu1 %v8410_v13  ;;  %v8451_v38 = vld [vmem:[#allocation137_spill] sm:$0xff]  ;;  %v8452_v13 = vld [vmem:[#allocation214_spill] sm:$0xff] }
 0x37b   :  { %4825 = vmatpush1.bf16.xpose.msra.mxu0 %v8411_v9  ;;  %5081 = vmatpush1.bf16.xpose.msra.mxu1 %v8412_v47  ;;  %v8453_v9 = vld [vmem:[#allocation139_spill] sm:$0xff] }
 0x37c   :  { %4827 = vmatprep.subr.bf16.mxu0 %v8413_v56  ;;  %5083 = vmatprep.subr.bf16.mxu1 %v8414_v5  ;;  %v8454_v47 = vld [vmem:[#allocation215_spill] sm:$0xff]  ;;  %v8455_v56 = vld [vmem:[#allocation141_spill] sm:$0xff]  ;;  %v8456_v5 = vld [vmem:[#allocation218_spill] sm:$0xff] }
 0x383   :  { %4829 = vmatpush1.bf16.xpose.msra.mxu0 %v8415_v22  ;;  %5085 = vmatpush1.bf16.xpose.msra.mxu1 %v8416_v49  ;;  %v8457_v22 = vld [vmem:[#allocation31_spill] sm:$0xff] }
 0x384   :  { %4831 = vmatprep.subr.bf16.mxu0 %v8417_v29  ;;  %5087 = vmatprep.subr.bf16.mxu1 %v8418_v52  ;;  %v8458_v49 = vld [vmem:[#allocation95_spill] sm:$0xff]  ;;  %v8459_v29 = vld [vmem:[#allocation32_spill] sm:$0xff] }
 0x385   :  { %v8460_v52 = vld [vmem:[#allocation96_spill] sm:$0xff] }
 0x38b   :  { %4833 = vmatpush1.bf16.xpose.msra.mxu0 %v8419_v35  ;;  %5089 = vmatpush1.bf16.xpose.msra.mxu1 %v8420_v31  ;;  %v8461_v35 = vld [vmem:[#allocation33_spill] sm:$0xff] }
 0x38c   :  { %4835 = vmatprep.subr.bf16.mxu0 %v8421_v25  ;;  %5091 = vmatprep.subr.bf16.mxu1 %v8422_v19  ;;  %v8462_v31 = vld [vmem:[#allocation97_spill] sm:$0xff]  ;;  %v8463_v25 = vld [vmem:[#allocation34_spill] sm:$0xff] }
 0x38d   :  { %v8464_v19 = vld [vmem:[#allocation98_spill] sm:$0xff] }
 0x393   :  { %4837 = vmatpush1.bf16.xpose.msra.mxu0 %v8423_v50  ;;  %5093 = vmatpush1.bf16.xpose.msra.mxu1 %v8424_v44  ;;  %v8465_v50 = vld [vmem:[#allocation35_spill] sm:$0xff]  ;;  %v8468_v44 = vld [vmem:[#allocation100_spill] sm:$0xff] }
 0x394   :  { %4839 = vmatprep.subr.bf16.mxu0 %v8425_v27  ;;  %5095 = vmatprep.subr.bf16.mxu1 %v8426_v3  ;;  %v8470_v27 = vld [vmem:[#allocation101_spill] sm:$0xff]  ;;  %v8472_v3 = vld [vmem:[#allocation102_spill] sm:$0xff] }
 0x39a   :  { %3180 = vmatmul.mubr.f32.vlgmr.msra.gmra.mrb[18].mxu0 %v7435_v45  ;;  %3740 = vmatmul.mubr.f32.vlgmr.msra.gmra.mrb[18].mxu1 %v3030_v6  ;;  %v8435_v45 = vld [vmem:[#allocation121_spill] sm:$0xff]  ;;  %v8436_v6 = vld [vmem:[#allocation206_spill] sm:$0xff] }
 0x39b   :  { %4841 = vmatpush1.bf16.xpose.msra.mxu0 %v8427_v59  ;;  %3249 = vmatprep.mubr.f32.mxu0 %v3017_v57  ;;  %v8437_v57 = vld [vmem:[#allocation123_spill] sm:$0xff] }
 0x39c   :  { %5097 = vmatpush1.bf16.xpose.msra.mxu1 %v8428_v10  ;;  %3809 = vmatprep.mubr.f32.mxu1 %v3033_v23  ;;  %v8439_v23 = vld [vmem:[#allocation125_spill] sm:$0xff]  ;;  %v8473_v59 = vld [vmem:[#allocation39_spill] sm:$0xff] }
 0x39d   :  { %4843 = vmatprep.subr.bf16.mxu0 %v8429_v2  ;;  %5099 = vmatprep.subr.bf16.mxu1 %v8430_v63  ;;  %v8474_v10 = vld [vmem:[#allocation103_spill] sm:$0xff]  ;;  %v8475_v2 = vld [vmem:[#allocation40_spill] sm:$0xff] }
 0x39e   :  { %v8476_v63 = vld [vmem:[#allocation104_spill] sm:$0xff] }
 0x3a3   :  { %4845 = vmatpush1.bf16.xpose.msra.mxu0 %v8431_v62  ;;  %v8477_v62 = vld [vmem:[#allocation41_spill] sm:$0xff] }
 0x3a4   :  { %5101 = vmatpush1.bf16.xpose.msra.mxu1 %v8432_v51  ;;  %4847 = vmatprep.subr.bf16.mxu0 %v8433_v46  ;;  %v8478_v51 = vld [vmem:[#allocation105_spill] sm:$0xff]  ;;  %v8479_v46 = vld [vmem:[#allocation42_spill] sm:$0xff] }
 0x3a5   :  { %5103 = vmatprep.subr.bf16.mxu1 %v8434_v0  ;;  %v8480_v0 = vld [vmem:[#allocation106_spill] sm:$0xff] }
 0x3ab   :  { %4849 = vmatpush1.bf16.xpose.msra.mxu0 %v8435_v45  ;;  %v8481_v45 = vld [vmem:[#allocation43_spill] sm:$0xff] }
 0x3ac   :  { %5105 = vmatpush1.bf16.xpose.msra.mxu1 %v8436_v6  ;;  %4851 = vmatprep.subr.bf16.mxu0 %v8437_v57  ;;  %v8482_v6 = vld [vmem:[#allocation107_spill] sm:$0xff]  ;;  %v8483_v57 = vld [vmem:[#allocation44_spill] sm:$0xff] }
 0x3ad   :  { %5107 = vmatprep.subr.bf16.mxu1 %v8438_v48  ;;  %v8484_v48 = vld [vmem:[#allocation108_spill] sm:$0xff] }
 0x3b3   :  { %4853 = vmatpush1.bf16.xpose.msra.mxu0 %v8439_v23  ;;  %v8485_v23 = vld [vmem:[#allocation45_spill] sm:$0xff] }
 0x3b4   :  { %5109 = vmatpush1.bf16.xpose.msra.mxu1 %v8440_v16  ;;  %4855 = vmatprep.subr.bf16.mxu0 %v8441_v54  ;;  %v8486_v16 = vld [vmem:[#allocation109_spill] sm:$0xff]  ;;  %v8487_v54 = vld [vmem:[#allocation46_spill] sm:$0xff] }
 0x3b5   :  { %5111 = vmatprep.subr.bf16.mxu1 %v8442_v11  ;;  %v8488_v11 = vld [vmem:[#allocation110_spill] sm:$0xff] }
 0x3bb   :  { %4857 = vmatpush1.bf16.xpose.msra.mxu0 %v8443_v7  ;;  %v8489_v7 = vld [vmem:[#allocation143_spill] sm:$0xff] }
 0x3bc   :  { %5113 = vmatpush1.bf16.xpose.msra.mxu1 %v8444_v43  ;;  %4859 = vmatprep.subr.bf16.mxu0 %v8445_v42  ;;  %v8490_v43 = vld [vmem:[#allocation219_spill] sm:$0xff]  ;;  %v8491_v42 = vld [vmem:[#allocation145_spill] sm:$0xff] }
 0x3bd   :  { %5115 = vmatprep.subr.bf16.mxu1 %v8446_v34  ;;  %v8492_v34 = vld [vmem:[#allocation221_spill] sm:$0xff] }
 0x3c3   :  { %4861 = vmatpush1.bf16.xpose.msra.mxu0 %v8447_v24  ;;  %v8493_v24 = vld [vmem:[#allocation147_spill] sm:$0xff] }
 0x3c4   :  { %5117 = vmatpush1.bf16.xpose.msra.mxu1 %v8448_v1  ;;  %4863 = vmatprep.subr.bf16.mxu0 %v8449_v12  ;;  %v8494_v1 = vld [vmem:[#allocation222_spill] sm:$0xff]  ;;  %v8495_v12 = vld [vmem:[#allocation149_spill] sm:$0xff] }
 0x3c5   :  { %5119 = vmatprep.subr.bf16.mxu1 %v8450_v18  ;;  %v8496_v18 = vld [vmem:[#allocation224_spill] sm:$0xff] }
 0x3cb   :  { %4865 = vmatpush1.bf16.xpose.msra.mxu0 %v8451_v38  ;;  %v8497_v38 = vld [vmem:[#allocation151_spill] sm:$0xff] }
 0x3cc   :  { %5121 = vmatpush1.bf16.xpose.msra.mxu1 %v8452_v13  ;;  %4867 = vmatprep.subr.bf16.mxu0 %v8453_v9  ;;  %v8500_v13 = vld [vmem:[#allocation226_spill] sm:$0xff]  ;;  %v8502_v9 = vld [vmem:[#allocation227_spill] sm:$0xff] }
 0x3cd   :  { %5123 = vmatprep.subr.bf16.mxu1 %v8454_v47  ;;  %v8504_v47 = vld [vmem:[#allocation229_spill] sm:$0xff] }
 0x3d3   :  { %4869 = vmatpush1.bf16.xpose.msra.mxu0 %v8455_v56  ;;  %v8505_v56 = vld [vmem:[#allocation159_spill] sm:$0xff] }
 0x3d4   :  { %5125 = vmatpush1.bf16.xpose.msra.mxu1 %v8456_v5  ;;  %4871 = vmatprep.subr.bf16.mxu0 %v8457_v22  ;;  %v8506_v5 = vld [vmem:[#allocation230_spill] sm:$0xff]  ;;  %v8507_v22 = vld [vmem:[#allocation161_spill] sm:$0xff] }
 0x3d5   :  { %5127 = vmatprep.subr.bf16.mxu1 %v8458_v49  ;;  %v8508_v49 = vld [vmem:[#allocation233_spill] sm:$0xff] }
 0x3da   :  { %3250 = vmatmul.mubr.f32.vlgmr.msra.gmra.mrb[18].mxu0 %v7438_v4  ;;  %v8466_v4 = vld [vmem:[#allocation99_spill] sm:$0xff] }
 0x3db   :  { %3810 = vmatmul.mubr.f32.vlgmr.msra.gmra.mrb[18].mxu1 %v7458_v14  ;;  %4873 = vmatpush1.bf16.xpose.msra.mxu0 %v8459_v29  ;;  %v8467_v14 = vld [vmem:[#allocation36_spill] sm:$0xff]  ;;  %v8509_v29 = vld [vmem:[#allocation163_spill] sm:$0xff] }
 0x3dc   :  { %3319 = vmatprep.mubr.f32.mxu0 %v7481_v39  ;;  %5129 = vmatpush1.bf16.xpose.msra.mxu1 %v8460_v52  ;;  %v8469_v39 = vld [vmem:[#allocation37_spill] sm:$0xff]  ;;  %v8510_v52 = vld [vmem:[#allocation234_spill] sm:$0xff] }
 0x3dd   :  { %3879 = vmatprep.mubr.f32.mxu1 %v7484_v17  ;;  %4875 = vmatprep.subr.bf16.mxu0 %v8461_v35  ;;  %v8471_v17 = vld [vmem:[#allocation38_spill] sm:$0xff]  ;;  %v8511_v35 = vld [vmem:[#allocation165_spill] sm:$0xff] }
 0x3de   :  { %5131 = vmatprep.subr.bf16.mxu1 %v8462_v31  ;;  %v8512_v31 = vld [vmem:[#allocation236_spill] sm:$0xff] }
 0x3e3   :  { %4877 = vmatpush1.bf16.xpose.msra.mxu0 %v8463_v25  ;;  %v8513_v25 = vld [vmem:[#allocation167_spill] sm:$0xff] }
 0x3e4   :  { %5133 = vmatpush1.bf16.xpose.msra.mxu1 %v8464_v19  ;;  %4879 = vmatprep.subr.bf16.mxu0 %v8465_v50  ;;  %v8514_v19 = vld [vmem:[#allocation237_spill] sm:$0xff] }
 0x3e5   :  { %5135 = vmatprep.subr.bf16.mxu1 %v8466_v4  ;;  %v8515_v50 = vld [vmem:[#allocation169_spill] sm:$0xff]  ;;  %v8516_v4 = vld [vmem:[#allocation238_spill] sm:$0xff] }
 0x3eb   :  { %4881 = vmatpush1.bf16.xpose.msra.mxu0 %v8467_v14  ;;  %v8517_v14 = vld [vmem:[#allocation171_spill] sm:$0xff] }
 0x3ec   :  { %5137 = vmatpush1.bf16.xpose.msra.mxu1 %v8468_v44  ;;  %4883 = vmatprep.subr.bf16.mxu0 %v8469_v39  ;;  %v8518_v44 = vld [vmem:[#allocation239_spill] sm:$0xff]  ;;  %v8519_v39 = vld [vmem:[#allocation172_spill] sm:$0xff] }
 0x3ed   :  { %5139 = vmatprep.subr.bf16.mxu1 %v8470_v27  ;;  %v8520_v27 = vld [vmem:[#allocation240_spill] sm:$0xff] }
 0x3f3   :  { %4885 = vmatpush1.bf16.xpose.msra.mxu0 %v8471_v17  ;;  %v8521_v17 = vld [vmem:[#allocation47_spill] sm:$0xff] }
 0x3f4   :  { %5141 = vmatpush1.bf16.xpose.msra.mxu1 %v8472_v3  ;;  %4887 = vmatprep.subr.bf16.mxu0 %v8473_v59  ;;  %v8522_v3 = vld [vmem:[#allocation112_spill] sm:$0xff] }
 0x3f5   :  { %5143 = vmatprep.subr.bf16.mxu1 %v8474_v10  ;;  %v8523_v59 = vld [vmem:[#allocation48_spill] sm:$0xff]  ;;  %v8524_v10 = vld [vmem:[#allocation114_spill] sm:$0xff] }
 0x3fb   :  { %4889 = vmatpush1.bf16.xpose.msra.mxu0 %v8475_v2  ;;  %v8525_v2 = vld [vmem:[#allocation49_spill] sm:$0xff] }
 0x3fc   :  { %5145 = vmatpush1.bf16.xpose.msra.mxu1 %v8476_v63  ;;  %4891 = vmatprep.subr.bf16.mxu0 %v8477_v62  ;;  %v8526_v63 = vld [vmem:[#allocation116_spill] sm:$0xff]  ;;  %v8527_v62 = vld [vmem:[#allocation50_spill] sm:$0xff] }
 0x3fd   :  { %5147 = vmatprep.subr.bf16.mxu1 %v8478_v51  ;;  %v8528_v51 = vld [vmem:[#allocation118_spill] sm:$0xff] }
 0x403   :  { %4893 = vmatpush1.bf16.xpose.msra.mxu0 %v8479_v46  ;;  %v8529_v46 = vld [vmem:[#allocation51_spill] sm:$0xff] }
 0x404   :  { %5149 = vmatpush1.bf16.xpose.msra.mxu1 %v8480_v0  ;;  %4895 = vmatprep.subr.bf16.mxu0 %v8481_v45  ;;  %v8532_v0 = vld [vmem:[#allocation122_spill] sm:$0xff]  ;;  %v8534_v45 = vld [vmem:[#allocation124_spill] sm:$0xff] }
 0x405   :  { %5151 = vmatprep.subr.bf16.mxu1 %v8482_v6  ;;  %v8536_v6 = vld [vmem:[#allocation126_spill] sm:$0xff] }
 0x40b   :  { %4897 = vmatpush1.bf16.xpose.msra.mxu0 %v8483_v57  ;;  %v8537_v57 = vld [vmem:[#allocation55_spill] sm:$0xff] }
 0x40c   :  { %5153 = vmatpush1.bf16.xpose.msra.mxu1 %v8484_v48  ;;  %4899 = vmatprep.subr.bf16.mxu0 %v8485_v23  ;;  %v8538_v48 = vld [vmem:[#allocation128_spill] sm:$0xff] }
 0x40d   :  { %5155 = vmatprep.subr.bf16.mxu1 %v8486_v16  ;;  %v8539_v23 = vld [vmem:[#allocation56_spill] sm:$0xff]  ;;  %v8540_v16 = vld [vmem:[#allocation130_spill] sm:$0xff] }
 0x413   :  { %4901 = vmatpush1.bf16.xpose.msra.mxu0 %v8487_v54  ;;  %v8541_v54 = vld [vmem:[#allocation57_spill] sm:$0xff] }
 0x414   :  { %5157 = vmatpush1.bf16.xpose.msra.mxu1 %v8488_v11  ;;  %4903 = vmatprep.subr.bf16.mxu0 %v8489_v7  ;;  %v8542_v11 = vld [vmem:[#allocation132_spill] sm:$0xff]  ;;  %v8543_v7 = vld [vmem:[#allocation58_spill] sm:$0xff] }
 0x415   :  { %5159 = vmatprep.subr.bf16.mxu1 %v8490_v43  ;;  %v8544_v43 = vld [vmem:[#allocation134_spill] sm:$0xff] }
 0x41a   :  { %3320 = vmatmul.mubr.f32.vlgmr.msra.gmra.mrb[18].mxu0 %v7441_v20  ;;  %v8498_v20 = vld [vmem:[#allocation225_spill] sm:$0xff] }
 0x41b   :  { %3880 = vmatmul.mubr.f32.vlgmr.msra.gmra.mrb[18].mxu1 %v7461_v32  ;;  %4905 = vmatpush1.bf16.xpose.msra.mxu0 %v8491_v42  ;;  %v8499_v32 = vld [vmem:[#allocation153_spill] sm:$0xff]  ;;  %v8545_v42 = vld [vmem:[#allocation59_spill] sm:$0xff] }
 0x41c   :  { %3389 = vmatprep.mubr.f32.mxu0 %v7487_v21  ;;  %5161 = vmatpush1.bf16.xpose.msra.mxu1 %v8492_v34  ;;  %v8501_v21 = vld [vmem:[#allocation155_spill] sm:$0xff]  ;;  %v8546_v34 = vld [vmem:[#allocation136_spill] sm:$0xff] }
 0x41d   :  { %3949 = vmatprep.mubr.f32.mxu1 %v7490_v40  ;;  %4907 = vmatprep.subr.bf16.mxu0 %v8493_v24  ;;  %v8503_v40 = vld [vmem:[#allocation157_spill] sm:$0xff]  ;;  %v8547_v24 = vld [vmem:[#allocation60_spill] sm:$0xff] }
 0x41e   :  { %5163 = vmatprep.subr.bf16.mxu1 %v8494_v1  ;;  %v8548_v1 = vld [vmem:[#allocation138_spill] sm:$0xff] }
 0x423   :  { %4909 = vmatpush1.bf16.xpose.msra.mxu0 %v8495_v12  ;;  %v8549_v12 = vld [vmem:[#allocation61_spill] sm:$0xff] }
 0x424   :  { %5165 = vmatpush1.bf16.xpose.msra.mxu1 %v8496_v18  ;;  %4911 = vmatprep.subr.bf16.mxu0 %v8497_v38  ;;  %v8550_v18 = vld [vmem:[#allocation140_spill] sm:$0xff]  ;;  %v8551_v38 = vld [vmem:[#allocation62_spill] sm:$0xff] }
 0x425   :  { %5167 = vmatprep.subr.bf16.mxu1 %v8498_v20  ;;  %v8552_v20 = vld [vmem:[#allocation142_spill] sm:$0xff] }
 0x42b   :  { %4913 = vmatpush1.bf16.xpose.msra.mxu0 %v8499_v32  ;;  %v8553_v32 = vld [vmem:[#allocation175_spill] sm:$0xff] }
 0x42c   :  { %5169 = vmatpush1.bf16.xpose.msra.mxu1 %v8500_v13  ;;  %4915 = vmatprep.subr.bf16.mxu0 %v8501_v21  ;;  %v8554_v13 = vld [vmem:[#allocation241_spill] sm:$0xff]  ;;  %v8555_v21 = vld [vmem:[#allocation176_spill] sm:$0xff] }
 0x42d   :  { %5171 = vmatprep.subr.bf16.mxu1 %v8502_v9  ;;  %v8556_v9 = vld [vmem:[#allocation243_spill] sm:$0xff] }
 0x433   :  { %4917 = vmatpush1.bf16.xpose.msra.mxu0 %v8503_v40  ;;  %v8557_v40 = vld [vmem:[#allocation177_spill] sm:$0xff] }
 0x434   :  { %5173 = vmatpush1.bf16.xpose.msra.mxu1 %v8504_v47  ;;  %4919 = vmatprep.subr.bf16.mxu0 %v8505_v56  ;;  %v8558_v47 = vld [vmem:[#allocation244_spill] sm:$0xff]  ;;  %v8559_v56 = vld [vmem:[#allocation178_spill] sm:$0xff] }
 0x435   :  { %5175 = vmatprep.subr.bf16.mxu1 %v8506_v5  ;;  %v8560_v5 = vld [vmem:[#allocation246_spill] sm:$0xff] }
 0x43b   :  { %4921 = vmatpush1.bf16.xpose.msra.mxu0 %v8507_v22  ;;  %v8561_v22 = vld [vmem:[#allocation179_spill] sm:$0xff] }
 0x43c   :  { %5177 = vmatpush1.bf16.xpose.msra.mxu1 %v8508_v49  ;;  %4923 = vmatprep.subr.bf16.mxu0 %v8509_v29  ;;  %v8564_v49 = vld [vmem:[#allocation248_spill] sm:$0xff]  ;;  %v8566_v29 = vld [vmem:[#allocation249_spill] sm:$0xff] }
 0x43d   :  { %5179 = vmatprep.subr.bf16.mxu1 %v8510_v52  ;;  %v8568_v52 = vld [vmem:[#allocation251_spill] sm:$0xff] }
 0x443   :  { %4925 = vmatpush1.bf16.xpose.msra.mxu0 %v8511_v35  ;;  %v8569_v35 = vld [vmem:[#allocation183_spill] sm:$0xff] }
 0x444   :  { %5181 = vmatpush1.bf16.xpose.msra.mxu1 %v8512_v31  ;;  %4927 = vmatprep.subr.bf16.mxu0 %v8513_v25  ;;  %v8570_v31 = vld [vmem:[#allocation252_spill] sm:$0xff] }
 0x445   :  { %5183 = vmatprep.subr.bf16.mxu1 %v8514_v19  ;;  %v8571_v25 = vld [vmem:[#allocation184_spill] sm:$0xff]  ;;  %v8572_v19 = vld [vmem:[#allocation254_spill] sm:$0xff] }
 0x44b   :  { %4929 = vmatpush1.bf16.xpose.msra.mxu0 %v8515_v50  ;;  %v8573_v50 = vld [vmem:[#allocation185_spill] sm:$0xff] }
 0x44c   :  { %5185 = vmatpush1.bf16.xpose.msra.mxu1 %v8516_v4  ;;  %4931 = vmatprep.subr.bf16.mxu0 %v8517_v14  ;;  %v8574_v4 = vld [vmem:[#allocation255_spill] sm:$0xff] }
 0x44d   :  { %5187 = vmatprep.subr.bf16.mxu1 %v8518_v44  ;;  %v8575_v14 = vld [vmem:[#allocation187_spill] sm:$0xff]  ;;  %v8576_v44 = vld [vmem:[#allocation257_spill] sm:$0xff] }
 0x453   :  { %4933 = vmatpush1.bf16.xpose.msra.mxu0 %v8519_v39  ;;  %v8577_v39 = vld [vmem:[#allocation188_spill] sm:$0xff] }
 0x454   :  { %5189 = vmatpush1.bf16.xpose.msra.mxu1 %v8520_v27  ;;  %4935 = vmatprep.subr.bf16.mxu0 %v8521_v17  ;;  %v8578_v27 = vld [vmem:[#allocation258_spill] sm:$0xff]  ;;  %v8579_v17 = vld [vmem:[#allocation189_spill] sm:$0xff] }
 0x455   :  { %5191 = vmatprep.subr.bf16.mxu1 %v8522_v3  ;;  %v8580_v3 = vld [vmem:[#allocation259_spill] sm:$0xff] }
 0x45a   :  { %3390 = vmatmul.mubr.f32.vlgmr.msra.gmra.mrb[18].mxu0 %v7444_v53  ;;  %v8530_v53 = vld [vmem:[#allocation120_spill] sm:$0xff] }
 0x45b   :  { %3950 = vmatmul.mubr.f32.vlgmr.msra.gmra.mrb[18].mxu1 %v7464_v33  ;;  %4937 = vmatpush1.bf16.xpose.msra.mxu0 %v8523_v59  ;;  %v8531_v33 = vld [vmem:[#allocation52_spill] sm:$0xff]  ;;  %v8581_v59 = vld [vmem:[#allocation190_spill] sm:$0xff] }
 0x45c   :  { %3459 = vmatprep.mubr.f32.mxu0 %v7493_v37  ;;  %5193 = vmatpush1.bf16.xpose.msra.mxu1 %v8524_v10  ;;  %v8533_v37 = vld [vmem:[#allocation53_spill] sm:$0xff]  ;;  %v8582_v10 = vld [vmem:[#allocation260_spill] sm:$0xff] }
 0x45d   :  { %4019 = vmatprep.mubr.f32.mxu1 %v7496_v55  ;;  %4939 = vmatprep.subr.bf16.mxu0 %v8525_v2  ;;  %v8535_v55 = vld [vmem:[#allocation54_spill] sm:$0xff]  ;;  %v8583_v2 = vld [vmem:[#allocation191_spill] sm:$0xff] }
 0x45e   :  { %5195 = vmatprep.subr.bf16.mxu1 %v8526_v63  ;;  %v8584_v63 = vld [vmem:[#allocation261_spill] sm:$0xff] }
 0x463   :  { %4941 = vmatpush1.bf16.xpose.msra.mxu0 %v8527_v62  ;;  %v8585_v62 = vld [vmem:[#allocation63_spill] sm:$0xff] }
 0x464   :  { %5197 = vmatpush1.bf16.xpose.msra.mxu1 %v8528_v51  ;;  %4943 = vmatprep.subr.bf16.mxu0 %v8529_v46  ;;  %v8586_v51 = vld [vmem:[#allocation144_spill] sm:$0xff] }
 0x465   :  { %5199 = vmatprep.subr.bf16.mxu1 %v8530_v53  ;;  %v8587_v46 = vld [vmem:[#allocation64_spill] sm:$0xff]  ;;  %v8588_v53 = vld [vmem:[#allocation146_spill] sm:$0xff] }
 0x46b   :  { %4945 = vmatpush1.bf16.xpose.msra.mxu0 %v8531_v33  ;;  %v8589_v33 = vld [vmem:[#allocation65_spill] sm:$0xff] }
 0x46c   :  { %5201 = vmatpush1.bf16.xpose.msra.mxu1 %v8532_v0  ;;  %4947 = vmatprep.subr.bf16.mxu0 %v8533_v37  ;;  %v8590_v0 = vld [vmem:[#allocation148_spill] sm:$0xff]  ;;  %v8591_v37 = vld [vmem:[#allocation66_spill] sm:$0xff] }
 0x46d   :  { %5203 = vmatprep.subr.bf16.mxu1 %v8534_v45  ;;  %v8592_v45 = vld [vmem:[#allocation150_spill] sm:$0xff] }
 0x473   :  { %4949 = vmatpush1.bf16.xpose.msra.mxu0 %v8535_v55  ;;  %v8593_v55 = vld [vmem:[#allocation67_spill] sm:$0xff] }
 0x474   :  { %5205 = vmatpush1.bf16.xpose.msra.mxu1 %v8536_v6  ;;  %4951 = vmatprep.subr.bf16.mxu0 %v8537_v57  ;;  %v8596_v6 = vld [vmem:[#allocation154_spill] sm:$0xff]  ;;  %v8598_v57 = vld [vmem:[#allocation156_spill] sm:$0xff] }
 0x475   :  { %5207 = vmatprep.subr.bf16.mxu1 %v8538_v48  ;;  %v8600_v48 = vld [vmem:[#allocation158_spill] sm:$0xff] }
 0x47b   :  { %4953 = vmatpush1.bf16.xpose.msra.mxu0 %v8539_v23  ;;  %v8601_v23 = vld [vmem:[#allocation71_spill] sm:$0xff] }
 0x47c   :  { %5209 = vmatpush1.bf16.xpose.msra.mxu1 %v8540_v16  ;;  %4955 = vmatprep.subr.bf16.mxu0 %v8541_v54  ;;  %v8602_v16 = vld [vmem:[#allocation160_spill] sm:$0xff] }
 0x47d   :  { %5211 = vmatprep.subr.bf16.mxu1 %v8542_v11  ;;  %v8603_v54 = vld [vmem:[#allocation72_spill] sm:$0xff]  ;;  %v8604_v11 = vld [vmem:[#allocation162_spill] sm:$0xff] }
 0x483   :  { %4957 = vmatpush1.bf16.xpose.msra.mxu0 %v8543_v7  ;;  %v8605_v7 = vld [vmem:[#allocation73_spill] sm:$0xff] }
 0x484   :  { %5213 = vmatpush1.bf16.xpose.msra.mxu1 %v8544_v43  ;;  %4959 = vmatprep.subr.bf16.mxu0 %v8545_v42  ;;  %v8606_v43 = vld [vmem:[#allocation164_spill] sm:$0xff]  ;;  %v8607_v42 = vld [vmem:[#allocation74_spill] sm:$0xff] }
 0x485   :  { %5215 = vmatprep.subr.bf16.mxu1 %v8546_v34  ;;  %v8608_v34 = vld [vmem:[#allocation166_spill] sm:$0xff] }
 0x48b   :  { %4961 = vmatpush1.bf16.xpose.msra.mxu0 %v8547_v24  ;;  %v8609_v24 = vld [vmem:[#allocation75_spill] sm:$0xff] }
 0x48c   :  { %5217 = vmatpush1.bf16.xpose.msra.mxu1 %v8548_v1  ;;  %4963 = vmatprep.subr.bf16.mxu0 %v8549_v12  ;;  %v8610_v1 = vld [vmem:[#allocation168_spill] sm:$0xff] }
 0x48d   :  { %5219 = vmatprep.subr.bf16.mxu1 %v8550_v18  ;;  %v8611_v12 = vld [vmem:[#allocation76_spill] sm:$0xff]  ;;  %v8612_v18 = vld [vmem:[#allocation170_spill] sm:$0xff] }
 0x493   :  { %4965 = vmatpush1.bf16.xpose.msra.mxu0 %v8551_v38  ;;  %v8613_v38 = vld [vmem:[#allocation77_spill] sm:$0xff] }
 0x494   :  { %5221 = vmatpush1.bf16.xpose.msra.mxu1 %v8552_v20  ;;  %4967 = vmatprep.subr.bf16.mxu0 %v8553_v32  ;;  %v8614_v20 = vld [vmem:[#allocation173_spill] sm:$0xff]  ;;  %v8615_v32 = vld [vmem:[#allocation78_spill] sm:$0xff] }
 0x495   :  { %5223 = vmatprep.subr.bf16.mxu1 %v8554_v13  ;;  %v8616_v13 = vld [vmem:[#allocation174_spill] sm:$0xff] }
 0x49a   :  { %3460 = vmatmul.mubr.f32.vlgmr.msra.gmra.mrb[18].mxu0 %v7447_v30  ;;  %v8562_v30 = vld [vmem:[#allocation247_spill] sm:$0xff] }
 0x49b   :  { %4020 = vmatmul.mubr.f32.vlgmr.msra.gmra.mrb[18].mxu1 %v7467_v58  ;;  %4969 = vmatpush1.bf16.xpose.msra.mxu0 %v8555_v21  ;;  %v8563_v58 = vld [vmem:[#allocation180_spill] sm:$0xff] }
 0x49c   :  { %3529 = vmatprep.mubr.f32.mxu0 %v7499_v15  ;;  %5225 = vmatpush1.bf16.xpose.msra.mxu1 %v8556_v9  ;;  %v8565_v15 = vld [vmem:[#allocation181_spill] sm:$0xff]  ;;  %v5288_v9 = vld [vmem:[#allocation11] sm:$0xff] }
 0x49d   :  { %4089 = vmatprep.mubr.f32.mxu1 %v7501_v41  ;;  %4971 = vmatprep.subr.bf16.mxu0 %v8557_v40  ;;  %v8567_v41 = vld [vmem:[#allocation182_spill] sm:$0xff] }
 0x49e   :  { %5227 = vmatprep.subr.bf16.mxu1 %v8558_v47 }
 0x4a3   :  { %4973 = vmatpush1.bf16.xpose.msra.mxu0 %v8559_v56 }
 0x4a4   :  { %5229 = vmatpush1.bf16.xpose.msra.mxu1 %v8560_v5  ;;  %4975 = vmatprep.subr.bf16.mxu0 %v8561_v22 }
 0x4a5   :  { %5231 = vmatprep.subr.bf16.mxu1 %v8562_v30 }
 0x4ab   :  { %4977 = vmatpush1.bf16.xpose.msra.mxu0 %v8563_v58 }
 0x4ac   :  { %5233 = vmatpush1.bf16.xpose.msra.mxu1 %v8564_v49  ;;  %4979 = vmatprep.subr.bf16.mxu0 %v8565_v15 }
 0x4ad   :  { %5235 = vmatprep.subr.bf16.mxu1 %v8566_v29 }
 0x4b3   :  { %4981 = vmatpush1.bf16.xpose.msra.mxu0 %v8567_v41 }
 0x4b4   :  { %5237 = vmatpush1.bf16.xpose.msra.mxu1 %v8568_v52  ;;  %4983 = vmatprep.subr.bf16.mxu0 %v8569_v35 }
 0x4b5   :  { %5239 = vmatprep.subr.bf16.mxu1 %v8570_v31 }
 0x4bb   :  { %4985 = vmatpush1.bf16.xpose.msra.mxu0 %v8571_v25 }
 0x4bc   :  { %5241 = vmatpush1.bf16.xpose.msra.mxu1 %v8572_v19  ;;  %4987 = vmatprep.subr.bf16.mxu0 %v8573_v50 }
 0x4bd   :  { %5243 = vmatprep.subr.bf16.mxu1 %v8574_v4 }
 0x4c3   :  { %4989 = vmatpush1.bf16.xpose.msra.mxu0 %v8575_v14 }
 0x4c4   :  { %5245 = vmatpush1.bf16.xpose.msra.mxu1 %v8576_v44  ;;  %4991 = vmatprep.subr.bf16.mxu0 %v8577_v39 }
 0x4c5   :  { %5247 = vmatprep.subr.bf16.mxu1 %v8578_v27 }
 0x4cb   :  { %4993 = vmatpush1.bf16.xpose.msra.mxu0 %v8579_v17 }
 0x4cc   :  { %5249 = vmatpush1.bf16.xpose.msra.mxu1 %v8580_v3  ;;  %4995 = vmatprep.subr.bf16.mxu0 %v8581_v59 }
 0x4cd   :  { %5251 = vmatprep.subr.bf16.mxu1 %v8582_v10 }
 0x4d3   :  { %4997 = vmatpush1.bf16.xpose.msra.mxu0 %v8583_v2 }
 0x4d4   :  { %5253 = vmatpush1.bf16.xpose.msra.mxu1 %v8584_v63  ;;  %4999 = vmatprep.subr.bf16.mxu0 %v8585_v62 }
 0x4d5   :  { %5255 = vmatprep.subr.bf16.mxu1 %v8586_v51 }
 0x4da   :  { %3530 = vmatmul.mubr.f32.vlgmr.msra.gmra.mrb[18].mxu0 %v7450_v61  ;;  %v8594_v61 = vld [vmem:[#allocation152_spill] sm:$0xff] }
 0x4db   :  { %4090 = vmatmul.mubr.f32.vlgmr.msra.gmra.mrb[18].mxu1 %v7469_v28  ;;  %5001 = vmatpush1.bf16.xpose.msra.mxu0 %v8587_v46  ;;  %v8595_v28 = vld [vmem:[#allocation68_spill] sm:$0xff] }
 0x4dc   :  { %3599 = vmatprep.mubr.f32.mxu0 %v7506_v60  ;;  %5257 = vmatpush1.bf16.xpose.msra.mxu1 %v8588_v53  ;;  %v8597_v60 = vld [vmem:[#allocation69_spill] sm:$0xff] }
 0x4dd   :  { %4159 = vmatprep.mubr.f32.mxu1 %v7509_v26  ;;  %5003 = vmatprep.subr.bf16.mxu0 %v8589_v33  ;;  %v8599_v26 = vld [vmem:[#allocation70_spill] sm:$0xff] }
 0x4de   :  { %5259 = vmatprep.subr.bf16.mxu1 %v8590_v0 }
 0x4e3   :  { %5005 = vmatpush1.bf16.xpose.msra.mxu0 %v8591_v37 }
 0x4e4   :  { %5261 = vmatpush1.bf16.xpose.msra.mxu1 %v8592_v45  ;;  %5007 = vmatprep.subr.bf16.mxu0 %v8593_v55 }
 0x4e5   :  { %5263 = vmatprep.subr.bf16.mxu1 %v8594_v61 }
 0x4eb   :  { %5009 = vmatpush1.bf16.xpose.msra.mxu0 %v8595_v28 }
 0x4ec   :  { %5265 = vmatpush1.bf16.xpose.msra.mxu1 %v8596_v6  ;;  %5011 = vmatprep.subr.bf16.mxu0 %v8597_v60 }
 0x4ed   :  { %5267 = vmatprep.subr.bf16.mxu1 %v8598_v57 }
 0x4f3   :  { %5013 = vmatpush1.bf16.xpose.msra.mxu0 %v8599_v26 }
 0x4f4   :  { %5269 = vmatpush1.bf16.xpose.msra.mxu1 %v8600_v48  ;;  %5015 = vmatprep.subr.bf16.mxu0 %v8601_v23 }
 0x4f5   :  { %5271 = vmatprep.subr.bf16.mxu1 %v8602_v16 }
 0x4fb   :  { %5017 = vmatpush1.bf16.xpose.msra.mxu0 %v8603_v54 }
 0x4fc   :  { %5273 = vmatpush1.bf16.xpose.msra.mxu1 %v8604_v11  ;;  %5019 = vmatprep.subr.bf16.mxu0 %v8605_v7 }
 0x4fd   :  { %5275 = vmatprep.subr.bf16.mxu1 %v8606_v43 }
 0x503   :  { %5021 = vmatpush1.bf16.xpose.msra.mxu0 %v8607_v42 }
 0x504   :  { %5277 = vmatpush1.bf16.xpose.msra.mxu1 %v8608_v34  ;;  %5023 = vmatprep.subr.bf16.mxu0 %v8609_v24 }
 0x505   :  { %5279 = vmatprep.subr.bf16.mxu1 %v8610_v1 }
 0x50b   :  { %5025 = vmatpush1.bf16.xpose.msra.mxu0 %v8611_v12 }
 0x50c   :  { %5281 = vmatpush1.bf16.xpose.msra.mxu1 %v8612_v18  ;;  %5027 = vmatprep.subr.bf16.mxu0 %v8613_v38 }
 0x50d   :  { %5283 = vmatprep.subr.bf16.mxu1 %v8614_v20 }
 0x513   :  { %5029 = vmatpush1.bf16.xpose.msra.mxu0 %v8615_v32 }
 0x514   :  { %5285 = vmatpush1.bf16.xpose.msra.mxu1 %v8616_v13 }
 0x51a   :  { %3600 = vmatmul.mubr.f32.vlgmr.msra.gmra.mrb[18].mxu0 %v7453_v36 }
 0x51b   :  { %4160 = vmatmul.mubr.f32.vlgmr.msra.gmra.mrb[18].mxu1 %v7472_v8 }
 0x5ed   :  { %v3601_v21 = vpop.f32.mrb[18].mxu0 }
 0x5ee   :  { %v5289_v40 = vadd.f32 %v5288_v9, %v3601_v21  ;;  %v4161_v47 = vpop.f32.mrb[18].mxu1  ;;  %v3603_v56 = vpop.f32.mrb[19].mxu0 }
 0x5ef   :  { %v4163_v5 = vpop.f32.mrb[19].mxu1 }
 0x5f0   :  { %v5292_v22 = vadd.f32 %v5289_v40, %v4161_v47 }
 0x5f2   :  { %4166 = vst [vmem:[#allocation11] sm:$0xff] %v5292_v22 }
 0x5f3   :  { %5653 = shalt.err (!%p5650_p2)
}
 0x5f4   :  { %s5654_s6 = scalar_lea.hbm %s7771_s5, 128 }
 0x5f5   :  { %p5655_p3 = scmp.ne.s32.totalorder %s7771_s5, %s5654_s6  ;;  %p5658_p4 = scmp.lt.u32.totalorder %s5654_s6, %s7771_s5 }
 0x5f7   :  { %p5660_p5 = pnand %p5658_p4, %p5655_p3 }
 0x5f9   :  { %5663 = shalt.err (!%p5660_p5)
}
 0x5fa   :  { %4176 = dma.vmem_to_hbm [thread:$0]  %s4174_s28, 128, %s7771_s5, [#allocation4]  }
 0x5fb   :  { %5670 = dma.done.wait [#allocation4], 128  }
 0x5fc   :  { %5671 = vsyncadd [#allocation4], 4294967168 }
 0x5fd   :  { %4180 = vsyncpa [#allocation3], 1 }
 0x5fe   :  { %4181 = vsyncpa [#allocation6], 1 }
 0x5ff   :  { %4182 = vsyncpa [#allocation9], 1 }
 0x600   :  { %4183 = vsyncpa [#allocation4], 1 }

// kernel: tpu_custom_call.1
= control target key start
LH: loop header
LB: loop body
LE: loop exit
PB: predicated region body
PF: predicated region fallthrough
CT: control target
= control target key end

     0   :  { %10 = vsyncpa [#allocation3], 0  ;;  %s7766_s0 = inlined_call_operand.hbm [shape: f32[8,128], index: 0, kind: input, shape index: {}]   ;;  %s7767_s1 = inlined_call_operand.hbm [shape: f32[128,4096], index: 1, kind: input, shape index: {}]   ;;  %s7768_s2 = inlined_call_operand.hbm [shape: f32[1,4096], index: 2, kind: input, shape index: {}]   ;;  %s7769_s3 = inlined_call_operand.hbm [shape: f32[32,128], index: 3, kind: input, shape index: {}]   ;;  %s7770_s4 = inlined_call_operand.hbm [shape: f32[1,128], index: 4, kind: input, shape index: {}]   ;;  %s7771_s5 = inlined_call_operand.hbm [shape: f32[1,8,128], index: 5, kind: output, shape index: {}]  }
   0x1   :  { %11 = vsyncpa [#allocation6], 0 }
   0x2   :  { %12 = vsyncpa [#allocation9], 0 }
   0x3   :  { %13 = vsyncpa [#allocation4], 0  ;;  %s5672_s18 = smov [#allocation5]   ;;  %s5532_s22 = scalar_lea.hbm %s7767_s1, 65536 }
   0x4   :  { %s33_s19 = sshll.u32 %s5672_s18, 4  ;;  %p5533_p0 = scmp.ne.s32.totalorder %s7767_s1, %s5532_s22  ;;  %s34_s19 = int_to_ptr.vmem [resolvable:$true] %s33_s19 }
   0x5   :  { %p5536_p1 = scmp.lt.u32.totalorder %s5532_s22, %s7767_s1 }
   0x7   :  { %p5538_p2 = pnand %p5536_p1, %p5533_p0 }
   0x9   :  { %5541 = shalt.err (!%p5538_p2)
}
   0xa   :  { %s5542_s27 = scalar_lea.vmem %s34_s19, 65536  ;;  %p5547_p4 = scmp.lt.s32.totalorder %s34_s19, %s34_s19 }
   0xb   :  { %p5543_p3 = scmp.ne.s32.totalorder %s34_s19, %s5542_s27  ;;  %p5548_p5 = scmp.lt.s32.totalorder %s5542_s27, %s5542_s27 }
   0xd   :  { %p5549_p6 = por %p5548_p5, %p5547_p4 }
   0xf   :  { %p5550_p7 = pnand %p5549_p6, %p5543_p3 }
  0x11   :  { %5553 = shalt.err (!%p5550_p7)
}
  0x12   :  { %s5673_s28 = smov 4096   ;;  %s5674_s29 = smov 256  }
  0x13   :  { %39 = dma.hbm_to_vmem [thread:$0]  %s7767_s1, 65536, %s34_s19, [#allocation6], %s5673_s28, %s5673_s28, %s5674_s29  }
  0x14   :  { %s5675_s7 = smov [#allocation8]   ;;  %s5554_s11 = scalar_lea.hbm %s7769_s3, 512 }
  0x15   :  { %s59_s8 = sshll.u32 %s5675_s7, 4  ;;  %p5555_p8 = scmp.ne.s32.totalorder %s7769_s3, %s5554_s11  ;;  %s60_s8 = int_to_ptr.vmem [resolvable:$true] %s59_s8 }
  0x16   :  { %p5558_p9 = scmp.lt.u32.totalorder %s5554_s11, %s7769_s3 }
  0x18   :  { %p5560_p10 = pnand %p5558_p9, %p5555_p8 }
  0x1a   :  { %5563 = shalt.err (!%p5560_p10)
}
  0x1b   :  { %s5564_s16 = scalar_lea.vmem %s60_s8, 512  ;;  %p5569_p12 = scmp.lt.s32.totalorder %s60_s8, %s60_s8 }
  0x1c   :  { %p5565_p11 = scmp.ne.s32.totalorder %s60_s8, %s5564_s16  ;;  %p5570_p13 = scmp.lt.s32.totalorder %s5564_s16, %s5564_s16 }
  0x1e   :  { %p5571_p0 = por %p5570_p13, %p5569_p12 }
  0x20   :  { %p5572_p1 = pnand %p5571_p0, %p5565_p11 }
  0x22   :  { %5575 = shalt.err (!%p5572_p1)
}
  0x23   :  { %s5676_s1 = smov 128   ;;  %s5677_s17 = smov 8  }
  0x24   :  { %65 = dma.hbm_to_vmem [thread:$0]  %s7769_s3, 512, %s60_s8, [#allocation9], %s5676_s1, %s5676_s1, %s5677_s17  }
  0x25   :  { %s5678_s20 = smov [#allocation2]   ;;  %s5679_s22 = smov [#allocation7]  }
  0x26   :  { %s20_s21 = sshll.u32 %s5678_s20, 4  ;;  %s50_s23 = sshll.u32 %s5679_s22, 4  ;;  %s21_s21 = int_to_ptr.vmem [resolvable:$true] %s20_s21  ;;  %s51_s23 = int_to_ptr.vmem [resolvable:$true] %s50_s23 }
  0x27   :  { %s5576_s26 = scalar_lea.hbm %s7766_s0, 128 }
  0x28   :  { %p5577_p2 = scmp.ne.s32.totalorder %s7766_s0, %s5576_s26  ;;  %p5580_p3 = scmp.lt.u32.totalorder %s5576_s26, %s7766_s0 }
  0x2a   :  { %p5582_p4 = pnand %p5580_p3, %p5577_p2 }
  0x2c   :  { %5585 = shalt.err (!%p5582_p4)
}
  0x2d   :  { %s5586_s3 = scalar_lea.vmem %s21_s21, 128  ;;  %p5591_p6 = scmp.lt.s32.totalorder %s21_s21, %s21_s21 }
  0x2e   :  { %p5587_p5 = scmp.ne.s32.totalorder %s21_s21, %s5586_s3  ;;  %p5592_p7 = scmp.lt.s32.totalorder %s5586_s3, %s5586_s3 }
  0x30   :  { %p5593_p8 = por %p5592_p7, %p5591_p6 }
  0x32   :  { %p5594_p9 = pnand %p5593_p8, %p5587_p5 }
  0x34   :  { %5597 = shalt.err (!%p5594_p9)
}
  0x35   :  { %23 = dma.hbm_to_vmem [thread:$0]  %s7766_s0, 128, %s21_s21, [#allocation3]  }
  0x36   :  { %s5598_s10 = scalar_lea.hbm %s7768_s2, 512 }
  0x37   :  { %p5599_p10 = scmp.ne.s32.totalorder %s7768_s2, %s5598_s10  ;;  %p5602_p11 = scmp.lt.u32.totalorder %s5598_s10, %s7768_s2 }
  0x39   :  { %p5604_p12 = pnand %p5602_p11, %p5599_p10 }
  0x3b   :  { %5607 = shalt.err (!%p5604_p12)
}
  0x3c   :  { %s5608_s15 = scalar_lea.vmem %s51_s23, 512  ;;  %p5613_p0 = scmp.lt.s32.totalorder %s51_s23, %s51_s23 }
  0x3d   :  { %p5609_p13 = scmp.ne.s32.totalorder %s51_s23, %s5608_s15  ;;  %p5614_p1 = scmp.lt.s32.totalorder %s5608_s15, %s5608_s15 }
  0x3f   :  { %p5615_p2 = por %p5614_p1, %p5613_p0 }
  0x41   :  { %p5616_p3 = pnand %p5615_p2, %p5609_p13 }
  0x43   :  { %5619 = shalt.err (!%p5616_p3)
}
  0x44   :  { %53 = dma.hbm_to_vmem [thread:$0]  %s7768_s2, 512, %s51_s23, [#allocation6]  }
  0x45   :  { %s5680_s1 = smov [#allocation10]   ;;  %s5620_s20 = scalar_lea.hbm %s7770_s4, 16 }
  0x46   :  { %s72_s17 = sshll.u32 %s5680_s1, 4  ;;  %p5621_p4 = scmp.ne.s32.totalorder %s7770_s4, %s5620_s20  ;;  %s73_s17 = int_to_ptr.vmem [resolvable:$true] %s72_s17 }
  0x47   :  { %p5624_p5 = scmp.lt.u32.totalorder %s5620_s20, %s7770_s4 }
  0x49   :  { %p5626_p6 = pnand %p5624_p5, %p5621_p4 }
  0x4b   :  { %5629 = shalt.err (!%p5626_p6)
}
  0x4c   :  { %s5630_s26 = scalar_lea.vmem %s73_s17, 16  ;;  %s5634_s2 = scalar_lea.vmem %s73_s17, 32 }
  0x4d   :  { %p5631_p7 = scmp.ne.s32.totalorder %s73_s17, %s5630_s26  ;;  %p5635_p8 = scmp.lt.s32.totalorder %s73_s17, %s73_s17 }
  0x4e   :  { %p5636_p9 = scmp.lt.s32.totalorder %s5634_s2, %s5630_s26 }
  0x50   :  { %p5637_p10 = por %p5636_p9, %p5635_p8 }
  0x52   :  { %p5638_p11 = pnand %p5637_p10, %p5631_p7 }
  0x54   :  { %5641 = shalt.err (!%p5638_p11)
}
  0x55   :  { %75 = dma.hbm_to_vmem [thread:$0]  %s7770_s4, 16, %s73_s17, [#allocation9]  }
  0x56   :  { %5664 = dma.done.wait [#allocation3], 128  }
  0x57   :  { %5665 = vsyncadd [#allocation3], 4294967168 }
  0x58   :  { %5666 = dma.done.wait [#allocation6], 66048  }
  0x59   :  { %5667 = vsyncadd [#allocation6], 4294901248 }
  0x5a   :  { %5668 = dma.done.wait [#allocation9], 528  }
  0x5b   :  { %5669 = vsyncadd [#allocation9], 4294966768  ;;  %v5681_v0 = vmov 0.0|0.0   ;;  %vm5682_vm0 = vmmov 0   ;;  %v7773_v1 = vmov 0.0   ;;  %v102_v2 = vld [vmem:[#allocation8] sm:$0xff] }
  0x5c   :  { %4250 = vmatprep.subr.bf16.mxu0 %v5681_v0  ;;  %4236 = vmatprep.mubr.msk.f32.mxu0 %vm5682_vm0, %v7773_v1  ;;  %v103_v3 = vld [vmem:[#allocation8 + $0x8] sm:$0xff]  ;;  %v104_v5 = vld [vmem:[#allocation8 + $0x10] sm:$0xff]  ;;  %v105_v6 = vld [vmem:[#allocation8 + $0x18] sm:$0xff]  ;;  %vm177_vm1 = vcmask 261120   ;;  %s5684_s4 = smov [#allocation11]  }
  0x5d   :  { %4256 = vmatprep.subr.bf16.mxu1 %v5681_v0  ;;  %4247 = vmatprep.mubr.msk.f32.mxu1 %vm5682_vm0, %v7773_v1  ;;  %v4251_v4 = vpack.c.bf16 %v103_v3, %v102_v2  ;;  %v4254_v7 = vpack.c.bf16 %v105_v6, %v104_v5  ;;  %v268_v8 = vld [vmem:[#allocation5 + $0x18] sm:$0xff]  ;;  %v267_v11 = vld [vmem:[#allocation5 + $0x10] sm:$0xff]  ;;  %v266_v63 = vld [vmem:[#allocation5 + $0x8] sm:$0xff]  ;;  %s4173_s28 = sshll.u32 %s5684_s4, 4  ;;  %s4174_s28 = int_to_ptr.vmem [resolvable:$true] %s4173_s28 }
  0x5e   :  { %v300_v9 = vld [vmem:[#allocation5 + $0x118] sm:$0xff]  ;;  %v299_v12 = vld [vmem:[#allocation5 + $0x110] sm:$0xff]  ;;  %s5642_s29 = scalar_lea.vmem %s4174_s28, 128  ;;  %p5647_p13 = scmp.lt.s32.totalorder %s4174_s28, %s4174_s28 }
  0x5f   :  { %4252 = vmatpush3.bf16.xpose.msra.mxu0 %v4251_v4  ;;  %4258 = vmatpush3.bf16.msra.mxu1 %v4251_v4  ;;  %v5777_v10 = vpack.c.bf16 %v300_v9, %v268_v8  ;;  %v332_v13 = vld [vmem:[#allocation5 + $0x218] sm:$0xff]  ;;  %v5782_v16 = vpack.c.bf16 %v299_v12, %v267_v11  ;;  %v331_v18 = vld [vmem:[#allocation5 + $0x210] sm:$0xff]  ;;  %p5643_p12 = scmp.ne.s32.totalorder %s4174_s28, %s5642_s29  ;;  %p5648_p0 = scmp.lt.s32.totalorder %s5642_s29, %s5642_s29 }
  0x60   :  { %4253 = vmatprep.subr.bf16.mxu0 %v5681_v0  ;;  %4259 = vmatprep.subr.bf16.mxu1 %v5681_v0  ;;  %v364_v14 = vld [vmem:[#allocation5 + $0x318] sm:$0xff]  ;;  %v363_v19 = vld [vmem:[#allocation5 + $0x310] sm:$0xff]  ;;  %v298_v0 = vld [vmem:[#allocation5 + $0x108] sm:$0xff] }
  0x61   :  { %v5780_v15 = vld [vmem:[#allocation2] sm:$0xff]  ;;  %8039 = vst [vmem:[#allocation16_spill] sm:$0xff] %v5782_v16  ;;  %v5784_v17 = vpack.c.bf16 %v364_v14, %v332_v13  ;;  %v5788_v22 = vpack.c.bf16 %v363_v19, %v331_v18  ;;  %v395_v24 = vld [vmem:[#allocation5 + $0x410] sm:$0xff]  ;;  %v5837_v2 = vpack.c.bf16 %v298_v0, %v266_v63  ;;  %p5649_p1 = por %p5648_p0, %p5647_p13 }
  0x62   :  { %v396_v20 = vld [vmem:[#allocation5 + $0x418] sm:$0xff]  ;;  %v427_v25 = vld [vmem:[#allocation5 + $0x510] sm:$0xff] }
  0x63   :  { %4261 = vmatpush3.bf16.msra.mxu1 %v4254_v7  ;;  %8040 = vst [vmem:[#allocation17_spill] sm:$0xff] %v5784_v17  ;;  %v428_v21 = vld [vmem:[#allocation5 + $0x518] sm:$0xff]  ;;  %8041 = vst [vmem:[#allocation18_spill] sm:$0xff] %v5788_v22  ;;  %v5795_v28 = vpack.c.bf16 %v427_v25, %v395_v24  ;;  %v459_v30 = vld [vmem:[#allocation5 + $0x610] sm:$0xff]  ;;  %p5650_p2 = pnand %p5649_p1, %p5643_p12 }
  0x64   :  { %v5792_v23 = vpack.c.bf16 %v428_v21, %v396_v20  ;;  %v460_v26 = vld [vmem:[#allocation5 + $0x618] sm:$0xff]  ;;  %v491_v31 = vld [vmem:[#allocation5 + $0x710] sm:$0xff]  ;;  %4263 = vmatprep.subr.bf16.mxu1 %v5837_v2 }
  0x65   :  { %v492_v27 = vld [vmem:[#allocation5 + $0x718] sm:$0xff]  ;;  %8043 = vst [vmem:[#allocation20_spill] sm:$0xff] %v5795_v28  ;;  %v5801_v34 = vpack.c.bf16 %v491_v31, %v459_v30  ;;  %v523_v36 = vld [vmem:[#allocation5 + $0x810] sm:$0xff] }
  0x66   :  { %8042 = vst [vmem:[#allocation19_spill] sm:$0xff] %v5792_v23  ;;  %v5798_v29 = vpack.c.bf16 %v492_v27, %v460_v26  ;;  %v524_v32 = vld [vmem:[#allocation5 + $0x818] sm:$0xff]  ;;  %v555_v37 = vld [vmem:[#allocation5 + $0x910] sm:$0xff] }
  0x67   :  { %4255 = vmatpush3.bf16.xpose.msra.mxu0 %v4254_v7  ;;  %v556_v33 = vld [vmem:[#allocation5 + $0x918] sm:$0xff]  ;;  %8045 = vst [vmem:[#allocation22_spill] sm:$0xff] %v5801_v34  ;;  %v5807_v40 = vpack.c.bf16 %v555_v37, %v523_v36  ;;  %v587_v42 = vld [vmem:[#allocation5 + $0xa10] sm:$0xff] }
  0x68   :  { %4295 = vmatprep.subr.bf16.mxu0 %v5777_v10  ;;  %8044 = vst [vmem:[#allocation21_spill] sm:$0xff] %v5798_v29  ;;  %v5804_v35 = vpack.c.bf16 %v556_v33, %v524_v32  ;;  %v588_v38 = vld [vmem:[#allocation5 + $0xa18] sm:$0xff]  ;;  %v619_v43 = vld [vmem:[#allocation5 + $0xb10] sm:$0xff] }
  0x69   :  { %v620_v39 = vld [vmem:[#allocation5 + $0xb18] sm:$0xff]  ;;  %8047 = vst [vmem:[#allocation24_spill] sm:$0xff] %v5807_v40  ;;  %v5813_v46 = vpack.c.bf16 %v619_v43, %v587_v42  ;;  %v651_v48 = vld [vmem:[#allocation5 + $0xc10] sm:$0xff] }
  0x6a   :  { %8046 = vst [vmem:[#allocation23_spill] sm:$0xff] %v5804_v35  ;;  %v5810_v41 = vpack.c.bf16 %v620_v39, %v588_v38  ;;  %v652_v44 = vld [vmem:[#allocation5 + $0xc18] sm:$0xff]  ;;  %v683_v49 = vld [vmem:[#allocation5 + $0xd10] sm:$0xff] }
  0x6b   :  { %v684_v45 = vld [vmem:[#allocation5 + $0xd18] sm:$0xff]  ;;  %8049 = vst [vmem:[#allocation26_spill] sm:$0xff] %v5813_v46  ;;  %v5819_v52 = vpack.c.bf16 %v683_v49, %v651_v48  ;;  %v715_v54 = vld [vmem:[#allocation5 + $0xe10] sm:$0xff] }
  0x6c   :  { %8048 = vst [vmem:[#allocation25_spill] sm:$0xff] %v5810_v41  ;;  %v5816_v47 = vpack.c.bf16 %v684_v45, %v652_v44  ;;  %v716_v50 = vld [vmem:[#allocation5 + $0xe18] sm:$0xff]  ;;  %v747_v55 = vld [vmem:[#allocation5 + $0xf10] sm:$0xff] }
  0x6d   :  { %v748_v51 = vld [vmem:[#allocation5 + $0xf18] sm:$0xff]  ;;  %8051 = vst [vmem:[#allocation28_spill] sm:$0xff] %v5819_v52  ;;  %v5825_v58 = vpack.c.bf16 %v747_v55, %v715_v54  ;;  %v271_v60 = vld [vmem:[#allocation5 + $0x30] sm:$0xff] }
  0x6e   :  { %4237 = vmatmul.mubr.f32.vlgmr.msra.gmra.mrb[0].mxu0 %v5780_v15  ;;  %8050 = vst [vmem:[#allocation27_spill] sm:$0xff] %v5816_v47  ;;  %v5822_v53 = vpack.c.bf16 %v748_v51, %v716_v50  ;;  %v272_v56 = vld [vmem:[#allocation5 + $0x38] sm:$0xff]  ;;  %v303_v61 = vld [vmem:[#allocation5 + $0x130] sm:$0xff] }
  0x6f   :  { %4297 = vmatpush1.bf16.msra.mxu0 %v5782_v16  ;;  %1080 = vmatprep.mubr.f32.mxu0 %v7773_v1  ;;  %v304_v57 = vld [vmem:[#allocation5 + $0x138] sm:$0xff]  ;;  %8053 = vst [vmem:[#allocation30_spill] sm:$0xff] %v5825_v58  ;;  %v5831_v62 = vpack.c.bf16 %v303_v61, %v271_v60  ;;  %v335_v6 = vld [vmem:[#allocation5 + $0x230] sm:$0xff]  ;;  %v290_v16 = vld [vmem:[#allocation5 + $0xc8] sm:$0xff] }
  0x70   :  { %4299 = vmatprep.subr.bf16.mxu0 %v5784_v17  ;;  %8052 = vst [vmem:[#allocation29_spill] sm:$0xff] %v5822_v53  ;;  %v5828_v59 = vpack.c.bf16 %v304_v57, %v272_v56  ;;  %v336_v3 = vld [vmem:[#allocation5 + $0x238] sm:$0xff]  ;;  %v367_v7 = vld [vmem:[#allocation5 + $0x330] sm:$0xff] }
  0x71   :  { %8055 = vst [vmem:[#allocation32_spill] sm:$0xff] %v5831_v62  ;;  %v368_v4 = vld [vmem:[#allocation5 + $0x338] sm:$0xff]  ;;  %v5842_v8 = vpack.c.bf16 %v367_v7, %v335_v6  ;;  %v399_v13 = vld [vmem:[#allocation5 + $0x430] sm:$0xff] }
  0x72   :  { %8054 = vst [vmem:[#allocation31_spill] sm:$0xff] %v5828_v59  ;;  %v5840_v5 = vpack.c.bf16 %v368_v4, %v336_v3  ;;  %v400_v9 = vld [vmem:[#allocation5 + $0x438] sm:$0xff]  ;;  %v431_v14 = vld [vmem:[#allocation5 + $0x530] sm:$0xff] }
  0x73   :  { %4301 = vmatpush1.bf16.msra.mxu0 %v5788_v22  ;;  %8057 = vst [vmem:[#allocation34_spill] sm:$0xff] %v5842_v8  ;;  %v432_v11 = vld [vmem:[#allocation5 + $0x538] sm:$0xff]  ;;  %v5848_v18 = vpack.c.bf16 %v431_v14, %v399_v13  ;;  %v463_v24 = vld [vmem:[#allocation5 + $0x630] sm:$0xff]  ;;  %v317_v22 = vld [vmem:[#allocation5 + $0x1a0] sm:$0xff] }
  0x74   :  { %4303 = vmatprep.subr.bf16.mxu0 %v5792_v23  ;;  %8056 = vst [vmem:[#allocation33_spill] sm:$0xff] %v5840_v5  ;;  %v5846_v12 = vpack.c.bf16 %v432_v11, %v400_v9  ;;  %v464_v19 = vld [vmem:[#allocation5 + $0x638] sm:$0xff]  ;;  %v495_v25 = vld [vmem:[#allocation5 + $0x730] sm:$0xff] }
  0x75   :  { %8059 = vst [vmem:[#allocation36_spill] sm:$0xff] %v5848_v18  ;;  %v496_v20 = vld [vmem:[#allocation5 + $0x738] sm:$0xff]  ;;  %v5854_v26 = vpack.c.bf16 %v495_v25, %v463_v24  ;;  %v527_v32 = vld [vmem:[#allocation5 + $0x830] sm:$0xff] }
  0x76   :  { %8058 = vst [vmem:[#allocation35_spill] sm:$0xff] %v5846_v12  ;;  %v5852_v21 = vpack.c.bf16 %v496_v20, %v464_v19  ;;  %v528_v27 = vld [vmem:[#allocation5 + $0x838] sm:$0xff]  ;;  %v559_v33 = vld [vmem:[#allocation5 + $0x930] sm:$0xff] }
  0x77   :  { %4305 = vmatpush1.bf16.msra.mxu0 %v5795_v28  ;;  %8061 = vst [vmem:[#allocation38_spill] sm:$0xff] %v5854_v26  ;;  %v560_v30 = vld [vmem:[#allocation5 + $0x938] sm:$0xff]  ;;  %v5860_v36 = vpack.c.bf16 %v559_v33, %v527_v32  ;;  %v591_v42 = vld [vmem:[#allocation5 + $0xa30] sm:$0xff] }
  0x78   :  { %4307 = vmatprep.subr.bf16.mxu0 %v5798_v29  ;;  %8060 = vst [vmem:[#allocation37_spill] sm:$0xff] %v5852_v21  ;;  %v5858_v31 = vpack.c.bf16 %v560_v30, %v528_v27  ;;  %v592_v37 = vld [vmem:[#allocation5 + $0xa38] sm:$0xff]  ;;  %v623_v43 = vld [vmem:[#allocation5 + $0xb30] sm:$0xff]  ;;  %v729_v29 = vld [vmem:[#allocation5 + $0xe80] sm:$0xff] }
  0x79   :  { %8063 = vst [vmem:[#allocation40_spill] sm:$0xff] %v5860_v36  ;;  %v624_v38 = vld [vmem:[#allocation5 + $0xb38] sm:$0xff]  ;;  %v5866_v44 = vpack.c.bf16 %v623_v43, %v591_v42  ;;  %v655_v50 = vld [vmem:[#allocation5 + $0xc30] sm:$0xff] }
  0x7a   :  { %8062 = vst [vmem:[#allocation39_spill] sm:$0xff] %v5858_v31  ;;  %v5864_v39 = vpack.c.bf16 %v624_v38, %v592_v37  ;;  %v656_v45 = vld [vmem:[#allocation5 + $0xc38] sm:$0xff]  ;;  %v687_v51 = vld [vmem:[#allocation5 + $0xd30] sm:$0xff] }
  0x7b   :  { %4309 = vmatpush1.bf16.msra.mxu0 %v5801_v34  ;;  %8065 = vst [vmem:[#allocation42_spill] sm:$0xff] %v5866_v44  ;;  %v688_v48 = vld [vmem:[#allocation5 + $0xd38] sm:$0xff]  ;;  %v5872_v54 = vpack.c.bf16 %v687_v51, %v655_v50  ;;  %v719_v60 = vld [vmem:[#allocation5 + $0xe30] sm:$0xff] }
  0x7c   :  { %4311 = vmatprep.subr.bf16.mxu0 %v5804_v35  ;;  %8064 = vst [vmem:[#allocation41_spill] sm:$0xff] %v5864_v39  ;;  %v5870_v49 = vpack.c.bf16 %v688_v48, %v656_v45  ;;  %v720_v55 = vld [vmem:[#allocation5 + $0xe38] sm:$0xff]  ;;  %v751_v61 = vld [vmem:[#allocation5 + $0xf30] sm:$0xff]  ;;  %v6511_v35 = vld [vmem:[#allocation7 + $0x8] sm:$0xff] }
  0x7d   :  { %8067 = vst [vmem:[#allocation44_spill] sm:$0xff] %v5872_v54  ;;  %v752_v56 = vld [vmem:[#allocation5 + $0xf38] sm:$0xff]  ;;  %v5878_v63 = vpack.c.bf16 %v751_v61, %v719_v60  ;;  %v275_v6 = vld [vmem:[#allocation5 + $0x50] sm:$0xff] }
  0x7e   :  { %8066 = vst [vmem:[#allocation43_spill] sm:$0xff] %v5870_v49  ;;  %v5876_v57 = vpack.c.bf16 %v752_v56, %v720_v55  ;;  %v276_v0 = vld [vmem:[#allocation5 + $0x58] sm:$0xff]  ;;  %v307_v7 = vld [vmem:[#allocation5 + $0x150] sm:$0xff] }
  0x7f   :  { %4313 = vmatpush1.bf16.msra.mxu0 %v5807_v40  ;;  %8069 = vst [vmem:[#allocation46_spill] sm:$0xff] %v5878_v63  ;;  %v308_v3 = vld [vmem:[#allocation5 + $0x158] sm:$0xff]  ;;  %v5884_v9 = vpack.c.bf16 %v307_v7, %v275_v6  ;;  %v339_v19 = vld [vmem:[#allocation5 + $0x250] sm:$0xff]  ;;  %v374_v40 = vld [vmem:[#allocation5 + $0x368] sm:$0xff] }
  0x80   :  { %4315 = vmatprep.subr.bf16.mxu0 %v5810_v41  ;;  %8068 = vst [vmem:[#allocation45_spill] sm:$0xff] %v5876_v57  ;;  %v5882_v4 = vpack.c.bf16 %v308_v3, %v276_v0  ;;  %v340_v11 = vld [vmem:[#allocation5 + $0x258] sm:$0xff]  ;;  %v371_v20 = vld [vmem:[#allocation5 + $0x350] sm:$0xff]  ;;  %v309_v41 = vld [vmem:[#allocation5 + $0x160] sm:$0xff] }
  0x81   :  { %8071 = vst [vmem:[#allocation48_spill] sm:$0xff] %v5884_v9  ;;  %v372_v13 = vld [vmem:[#allocation5 + $0x358] sm:$0xff]  ;;  %v5892_v24 = vpack.c.bf16 %v371_v20, %v339_v19  ;;  %v403_v32 = vld [vmem:[#allocation5 + $0x450] sm:$0xff] }
  0x82   :  { %8070 = vst [vmem:[#allocation47_spill] sm:$0xff] %v5882_v4  ;;  %v5890_v14 = vpack.c.bf16 %v372_v13, %v340_v11  ;;  %v404_v25 = vld [vmem:[#allocation5 + $0x458] sm:$0xff]  ;;  %v435_v33 = vld [vmem:[#allocation5 + $0x550] sm:$0xff] }
  0x83   :  { %4317 = vmatpush1.bf16.msra.mxu0 %v5813_v46  ;;  %8073 = vst [vmem:[#allocation50_spill] sm:$0xff] %v5892_v24  ;;  %v436_v27 = vld [vmem:[#allocation5 + $0x558] sm:$0xff]  ;;  %v5898_v37 = vpack.c.bf16 %v435_v33, %v403_v32  ;;  %v467_v45 = vld [vmem:[#allocation5 + $0x650] sm:$0xff] }
  0x84   :  { %4319 = vmatprep.subr.bf16.mxu0 %v5816_v47  ;;  %8072 = vst [vmem:[#allocation49_spill] sm:$0xff] %v5890_v14  ;;  %v5896_v30 = vpack.c.bf16 %v436_v27, %v404_v25  ;;  %v468_v38 = vld [vmem:[#allocation5 + $0x658] sm:$0xff]  ;;  %v499_v48 = vld [vmem:[#allocation5 + $0x750] sm:$0xff] }
  0x85   :  { %8075 = vst [vmem:[#allocation52_spill] sm:$0xff] %v5898_v37  ;;  %v500_v42 = vld [vmem:[#allocation5 + $0x758] sm:$0xff]  ;;  %v5904_v50 = vpack.c.bf16 %v499_v48, %v467_v45  ;;  %v531_v60 = vld [vmem:[#allocation5 + $0x850] sm:$0xff] }
  0x86   :  { %8074 = vst [vmem:[#allocation51_spill] sm:$0xff] %v5896_v30  ;;  %v5902_v43 = vpack.c.bf16 %v500_v42, %v468_v38  ;;  %v532_v51 = vld [vmem:[#allocation5 + $0x858] sm:$0xff]  ;;  %v563_v61 = vld [vmem:[#allocation5 + $0x950] sm:$0xff] }
  0x87   :  { %4321 = vmatpush1.bf16.msra.mxu0 %v5819_v52  ;;  %8077 = vst [vmem:[#allocation54_spill] sm:$0xff] %v5904_v50  ;;  %v564_v55 = vld [vmem:[#allocation5 + $0x958] sm:$0xff]  ;;  %v5910_v0 = vpack.c.bf16 %v563_v61, %v531_v60  ;;  %v595_v11 = vld [vmem:[#allocation5 + $0xa50] sm:$0xff] }
  0x88   :  { %4323 = vmatprep.subr.bf16.mxu0 %v5822_v53  ;;  %8076 = vst [vmem:[#allocation53_spill] sm:$0xff] %v5902_v43  ;;  %v5908_v56 = vpack.c.bf16 %v564_v55, %v532_v51  ;;  %v596_v3 = vld [vmem:[#allocation5 + $0xa58] sm:$0xff]  ;;  %v627_v13 = vld [vmem:[#allocation5 + $0xb50] sm:$0xff] }
  0x89   :  { %8079 = vst [vmem:[#allocation56_spill] sm:$0xff] %v5910_v0  ;;  %v628_v6 = vld [vmem:[#allocation5 + $0xb58] sm:$0xff]  ;;  %v5916_v19 = vpack.c.bf16 %v627_v13, %v595_v11  ;;  %v659_v32 = vld [vmem:[#allocation5 + $0xc50] sm:$0xff] }
  0x8a   :  { %8078 = vst [vmem:[#allocation55_spill] sm:$0xff] %v5908_v56  ;;  %v5914_v7 = vpack.c.bf16 %v628_v6, %v596_v3  ;;  %v660_v20 = vld [vmem:[#allocation5 + $0xc58] sm:$0xff]  ;;  %v691_v33 = vld [vmem:[#allocation5 + $0xd50] sm:$0xff] }
  0x8b   :  { %4325 = vmatpush1.bf16.msra.mxu0 %v5825_v58  ;;  %8081 = vst [vmem:[#allocation58_spill] sm:$0xff] %v5916_v19  ;;  %v692_v25 = vld [vmem:[#allocation5 + $0xd58] sm:$0xff]  ;;  %v5922_v38 = vpack.c.bf16 %v691_v33, %v659_v32  ;;  %v723_v51 = vld [vmem:[#allocation5 + $0xe50] sm:$0xff] }
  0x8c   :  { %4359 = vmatprep.subr.bf16.mxu0 %v5828_v59  ;;  %8080 = vst [vmem:[#allocation57_spill] sm:$0xff] %v5914_v7  ;;  %v5920_v27 = vpack.c.bf16 %v692_v25, %v660_v20  ;;  %v724_v42 = vld [vmem:[#allocation5 + $0xe58] sm:$0xff]  ;;  %v755_v55 = vld [vmem:[#allocation5 + $0xf50] sm:$0xff] }
  0x8d   :  { %8083 = vst [vmem:[#allocation60_spill] sm:$0xff] %v5922_v38  ;;  %v756_v45 = vld [vmem:[#allocation5 + $0xf58] sm:$0xff]  ;;  %v5928_v60 = vpack.c.bf16 %v755_v55, %v723_v51  ;;  %v279_v11 = vld [vmem:[#allocation5 + $0x70] sm:$0xff] }
  0x8e   :  { %1081 = vmatmul.mubr.f32.vlgmr.msra.gmra.mrb[2].mxu0 %v5780_v15  ;;  %8082 = vst [vmem:[#allocation59_spill] sm:$0xff] %v5920_v27  ;;  %v5926_v48 = vpack.c.bf16 %v756_v45, %v724_v42  ;;  %v280_v61 = vld [vmem:[#allocation5 + $0x78] sm:$0xff]  ;;  %v311_v13 = vld [vmem:[#allocation5 + $0x170] sm:$0xff] }
  0x8f   :  { %4361 = vmatpush1.bf16.msra.mxu0 %v5831_v62  ;;  %1222 = vmatprep.mubr.f32.mxu0 %v7773_v1  ;;  %8085 = vst [vmem:[#allocation62_spill] sm:$0xff] %v5928_v60  ;;  %v312_v3 = vld [vmem:[#allocation5 + $0x178] sm:$0xff]  ;;  %v5934_v20 = vpack.c.bf16 %v311_v13, %v279_v11  ;;  %v343_v42 = vld [vmem:[#allocation5 + $0x270] sm:$0xff] }
  0x90   :  { %4363 = vmatprep.subr.bf16.mxu0 %v5840_v5  ;;  %8084 = vst [vmem:[#allocation61_spill] sm:$0xff] %v5926_v48  ;;  %v5932_v6 = vpack.c.bf16 %v312_v3, %v280_v61  ;;  %v344_v25 = vld [vmem:[#allocation5 + $0x278] sm:$0xff]  ;;  %v375_v45 = vld [vmem:[#allocation5 + $0x370] sm:$0xff] }
  0x91   :  { %8087 = vst [vmem:[#allocation64_spill] sm:$0xff] %v5934_v20  ;;  %v376_v32 = vld [vmem:[#allocation5 + $0x378] sm:$0xff]  ;;  %v5942_v51 = vpack.c.bf16 %v375_v45, %v343_v42  ;;  %v407_v11 = vld [vmem:[#allocation5 + $0x470] sm:$0xff] }
  0x92   :  { %8086 = vst [vmem:[#allocation63_spill] sm:$0xff] %v5932_v6  ;;  %v5940_v33 = vpack.c.bf16 %v376_v32, %v344_v25  ;;  %v408_v55 = vld [vmem:[#allocation5 + $0x478] sm:$0xff]  ;;  %v439_v13 = vld [vmem:[#allocation5 + $0x570] sm:$0xff] }
  0x93   :  { %4365 = vmatpush1.bf16.msra.mxu0 %v5842_v8  ;;  %8089 = vst [vmem:[#allocation66_spill] sm:$0xff] %v5942_v51  ;;  %v440_v61 = vld [vmem:[#allocation5 + $0x578] sm:$0xff]  ;;  %v471_v45 = vld [vmem:[#allocation5 + $0x670] sm:$0xff] }
  0x94   :  { %4367 = vmatprep.subr.bf16.mxu0 %v5846_v12  ;;  %8088 = vst [vmem:[#allocation65_spill] sm:$0xff] %v5940_v33  ;;  %v5946_v3 = vpack.c.bf16 %v440_v61, %v408_v55  ;;  %v472_v25 = vld [vmem:[#allocation5 + $0x678] sm:$0xff] }
  0x95   :  { %v504_v32 = vld [vmem:[#allocation5 + $0x778] sm:$0xff] }
  0x96   :  { %8090 = vst [vmem:[#allocation67_spill] sm:$0xff] %v5946_v3  ;;  %v5952_v42 = vpack.c.bf16 %v504_v32, %v472_v25  ;;  %v536_v55 = vld [vmem:[#allocation5 + $0x878] sm:$0xff] }
  0x97   :  { %4369 = vmatpush1.bf16.msra.mxu0 %v5848_v18  ;;  %v568_v61 = vld [vmem:[#allocation5 + $0x978] sm:$0xff]  ;;  %v554_v18 = vld [vmem:[#allocation5 + $0x908] sm:$0xff] }
  0x98   :  { %4371 = vmatprep.subr.bf16.mxu0 %v5852_v21  ;;  %8092 = vst [vmem:[#allocation69_spill] sm:$0xff] %v5952_v42  ;;  %v600_v25 = vld [vmem:[#allocation5 + $0xa78] sm:$0xff]  ;;  %v522_v21 = vld [vmem:[#allocation5 + $0x808] sm:$0xff] }
  0x99   :  { %v632_v32 = vld [vmem:[#allocation5 + $0xb78] sm:$0xff] }
  0x9a   :  { %v648_v52 = vld [vmem:[#allocation5 + $0xbf8] sm:$0xff] }
  0x9b   :  { %4373 = vmatpush1.bf16.msra.mxu0 %v5854_v26  ;;  %v489_v26 = vld [vmem:[#allocation5 + $0x700] sm:$0xff]  ;;  %v680_v47 = vld [vmem:[#allocation5 + $0xcf8] sm:$0xff] }
  0x9c   :  { %4375 = vmatprep.subr.bf16.mxu0 %v5858_v31  ;;  %v447_v31 = vld [vmem:[#allocation5 + $0x5b0] sm:$0xff] }
  0x9f   :  { %4377 = vmatpush1.bf16.msra.mxu0 %v5860_v36  ;;  %v458_v36 = vld [vmem:[#allocation5 + $0x608] sm:$0xff] }
  0xa0   :  { %4379 = vmatprep.subr.bf16.mxu0 %v5864_v39  ;;  %v393_v39 = vld [vmem:[#allocation5 + $0x400] sm:$0xff] }
  0xa3   :  { %4381 = vmatpush1.bf16.msra.mxu0 %v5866_v44 }
  0xa4   :  { %4383 = vmatprep.subr.bf16.mxu0 %v5870_v49  ;;  %v426_v49 = vld [vmem:[#allocation5 + $0x508] sm:$0xff] }
  0xa7   :  { %4385 = vmatpush1.bf16.msra.mxu0 %v5872_v54 }
  0xa8   :  { %4387 = vmatprep.subr.bf16.mxu0 %v5876_v57  ;;  %v394_v57 = vld [vmem:[#allocation5 + $0x408] sm:$0xff] }
  0xa9   :  { %v6054_v44 = vpack.c.bf16 %v426_v49, %v394_v57 }
  0xab   :  { %4389 = vmatpush1.bf16.msra.mxu0 %v5878_v63  ;;  %v361_v63 = vld [vmem:[#allocation5 + $0x300] sm:$0xff] }
  0xac   :  { %4423 = vmatprep.subr.bf16.mxu0 %v5882_v4  ;;  %v319_v4 = vld [vmem:[#allocation5 + $0x1b0] sm:$0xff] }
  0xae   :  { %1223 = vmatmul.mubr.f32.vlgmr.msra.gmra.mrb[4].mxu0 %v5780_v15 }
  0xaf   :  { %4425 = vmatpush1.bf16.msra.mxu0 %v5884_v9  ;;  %1364 = vmatprep.mubr.f32.mxu0 %v7773_v1  ;;  %v287_v9 = vld [vmem:[#allocation5 + $0xb0] sm:$0xff] }
  0xb0   :  { %4427 = vmatprep.subr.bf16.mxu0 %v5890_v14 }
  0xb3   :  { %4429 = vmatpush1.bf16.msra.mxu0 %v5892_v24  ;;  %v297_v24 = vld [vmem:[#allocation5 + $0x100] sm:$0xff] }
  0xb4   :  { %4431 = vmatprep.subr.bf16.mxu0 %v5896_v30  ;;  %v265_v30 = vld [vmem:[#allocation5] sm:$0xff] }
  0xb7   :  { %4433 = vmatpush1.bf16.msra.mxu0 %v5898_v37 }
  0xb8   :  { %4435 = vmatprep.subr.bf16.mxu0 %v5902_v43  ;;  %v763_v43 = vld [vmem:[#allocation5 + $0xf90] sm:$0xff] }
  0xbb   :  { %4437 = vmatpush1.bf16.msra.mxu0 %v5904_v50 }
  0xbc   :  { %4439 = vmatprep.subr.bf16.mxu0 %v5908_v56  ;;  %v699_v56 = vld [vmem:[#allocation5 + $0xd90] sm:$0xff] }
  0xbf   :  { %4441 = vmatpush1.bf16.msra.mxu0 %v5910_v0 }
  0xc0   :  { %4443 = vmatprep.subr.bf16.mxu0 %v5914_v7  ;;  %v635_v7 = vld [vmem:[#allocation5 + $0xb90] sm:$0xff] }
  0xc3   :  { %4445 = vmatpush1.bf16.msra.mxu0 %v5916_v19 }
  0xc4   :  { %4447 = vmatprep.subr.bf16.mxu0 %v5920_v27  ;;  %v571_v27 = vld [vmem:[#allocation5 + $0x990] sm:$0xff] }
  0xc7   :  { %4449 = vmatpush1.bf16.msra.mxu0 %v5922_v38 }
  0xc8   :  { %4451 = vmatprep.subr.bf16.mxu0 %v5926_v48  ;;  %v507_v48 = vld [vmem:[#allocation5 + $0x790] sm:$0xff] }
  0xcb   :  { %4453 = vmatpush1.bf16.msra.mxu0 %v5928_v60 }
  0xcc   :  { %4487 = vmatprep.subr.bf16.mxu0 %v5932_v6  ;;  %v443_v6 = vld [vmem:[#allocation5 + $0x590] sm:$0xff] }
  0xce   :  { %1365 = vmatmul.mubr.f32.vlgmr.msra.gmra.mrb[6].mxu0 %v5780_v15 }
  0xcf   :  { %4489 = vmatpush1.bf16.msra.mxu0 %v5934_v20  ;;  %1506 = vmatprep.mubr.f32.mxu0 %v7773_v1  ;;  %v5948_v20 = vpack.c.bf16 %v439_v13, %v407_v11  ;;  %v503_v1 = vld [vmem:[#allocation5 + $0x770] sm:$0xff]  ;;  %v5958_v11 = vpack.c.bf16 %v568_v61, %v536_v55  ;;  %v664_v55 = vld [vmem:[#allocation5 + $0xc78] sm:$0xff] }
  0xd0   :  { %4491 = vmatprep.subr.bf16.mxu0 %v5940_v33  ;;  %v5954_v33 = vpack.c.bf16 %v503_v1, %v471_v45  ;;  %v535_v13 = vld [vmem:[#allocation5 + $0x870] sm:$0xff]  ;;  %v5964_v1 = vpack.c.bf16 %v632_v32, %v600_v25  ;;  %v696_v61 = vld [vmem:[#allocation5 + $0xd78] sm:$0xff] }
  0xd1   :  { %8091 = vst [vmem:[#allocation68_spill] sm:$0xff] %v5948_v20  ;;  %8094 = vst [vmem:[#allocation71_spill] sm:$0xff] %v5958_v11  ;;  %v599_v45 = vld [vmem:[#allocation5 + $0xa70] sm:$0xff]  ;;  %v728_v25 = vld [vmem:[#allocation5 + $0xe78] sm:$0xff] }
  0xd2   :  { %8093 = vst [vmem:[#allocation70_spill] sm:$0xff] %v5954_v33  ;;  %8096 = vst [vmem:[#allocation73_spill] sm:$0xff] %v5964_v1  ;;  %v760_v32 = vld [vmem:[#allocation5 + $0xf78] sm:$0xff] }
  0xd3   :  { %4493 = vmatpush1.bf16.msra.mxu0 %v5942_v51 }
  0xd4   :  { %4495 = vmatprep.subr.bf16.mxu0 %v5946_v3  ;;  %v567_v3 = vld [vmem:[#allocation5 + $0x970] sm:$0xff] }
  0xd5   :  { %v5960_v51 = vpack.c.bf16 %v567_v3, %v535_v13  ;;  %v5970_v3 = vpack.c.bf16 %v696_v61, %v664_v55  ;;  %v663_v13 = vld [vmem:[#allocation5 + $0xc70] sm:$0xff]  ;;  %v284_v55 = vld [vmem:[#allocation5 + $0x98] sm:$0xff] }
  0xd6   :  { %v316_v61 = vld [vmem:[#allocation5 + $0x198] sm:$0xff] }
  0xd7   :  { %4497 = vmatpush1.bf16.msra.mxu0 %v5948_v20  ;;  %8095 = vst [vmem:[#allocation72_spill] sm:$0xff] %v5960_v51  ;;  %8098 = vst [vmem:[#allocation75_spill] sm:$0xff] %v5970_v3 }
  0xd8   :  { %4499 = vmatprep.subr.bf16.mxu0 %v5952_v42  ;;  %v631_v42 = vld [vmem:[#allocation5 + $0xb70] sm:$0xff] }
  0xd9   :  { %v5966_v20 = vpack.c.bf16 %v631_v42, %v599_v45  ;;  %v5976_v42 = vpack.c.bf16 %v760_v32, %v728_v25  ;;  %v727_v45 = vld [vmem:[#allocation5 + $0xe70] sm:$0xff]  ;;  %v380_v25 = vld [vmem:[#allocation5 + $0x398] sm:$0xff]  ;;  %v8104_v32 = vmov 0.0  }
  0xdb   :  { %4501 = vmatpush1.bf16.msra.mxu0 %v5954_v33  ;;  %8097 = vst [vmem:[#allocation74_spill] sm:$0xff] %v5966_v20  ;;  %8100 = vst [vmem:[#allocation77_spill] sm:$0xff] %v5976_v42 }
  0xdc   :  { %4503 = vmatprep.subr.bf16.mxu0 %v5958_v11  ;;  %v695_v11 = vld [vmem:[#allocation5 + $0xd70] sm:$0xff] }
  0xdd   :  { %v5972_v33 = vpack.c.bf16 %v695_v11, %v663_v13  ;;  %v5982_v11 = vpack.c.bf16 %v316_v61, %v284_v55  ;;  %v283_v13 = vld [vmem:[#allocation5 + $0x90] sm:$0xff]  ;;  %v444_v61 = vld [vmem:[#allocation5 + $0x598] sm:$0xff] }
  0xdf   :  { %4505 = vmatpush1.bf16.msra.mxu0 %v5960_v51  ;;  %8099 = vst [vmem:[#allocation76_spill] sm:$0xff] %v5972_v33  ;;  %8102 = vst [vmem:[#allocation79_spill] sm:$0xff] %v5982_v11 }
  0xe0   :  { %4507 = vmatprep.subr.bf16.mxu0 %v5964_v1  ;;  %v759_v1 = vld [vmem:[#allocation5 + $0xf70] sm:$0xff] }
  0xe1   :  { %v5978_v51 = vpack.c.bf16 %v759_v1, %v727_v45  ;;  %v348_v1 = vld [vmem:[#allocation5 + $0x298] sm:$0xff] }
  0xe2   :  { %v5990_v45 = vpack.c.bf16 %v380_v25, %v348_v1  ;;  %v476_v1 = vld [vmem:[#allocation5 + $0x698] sm:$0xff] }
  0xe3   :  { %4509 = vmatpush1.bf16.msra.mxu0 %v5966_v20  ;;  %8101 = vst [vmem:[#allocation78_spill] sm:$0xff] %v5978_v51  ;;  %v508_v25 = vld [vmem:[#allocation5 + $0x798] sm:$0xff] }
  0xe4   :  { %4511 = vmatprep.subr.bf16.mxu0 %v5970_v3  ;;  %v315_v3 = vld [vmem:[#allocation5 + $0x190] sm:$0xff]  ;;  %8105 = vst [vmem:[#allocation81_spill] sm:$0xff] %v5990_v45 }
  0xe5   :  { %v5984_v20 = vpack.c.bf16 %v315_v3, %v283_v13  ;;  %v412_v3 = vld [vmem:[#allocation5 + $0x498] sm:$0xff] }
  0xe6   :  { %v5996_v13 = vpack.c.bf16 %v444_v61, %v412_v3  ;;  %v540_v3 = vld [vmem:[#allocation5 + $0x898] sm:$0xff] }
  0xe7   :  { %4513 = vmatpush1.bf16.msra.mxu0 %v5972_v33  ;;  %8103 = vst [vmem:[#allocation80_spill] sm:$0xff] %v5984_v20  ;;  %v411_v33 = vld [vmem:[#allocation5 + $0x490] sm:$0xff]  ;;  %v572_v61 = vld [vmem:[#allocation5 + $0x998] sm:$0xff] }
  0xe8   :  { %4515 = vmatprep.subr.bf16.mxu0 %v5976_v42  ;;  %v379_v42 = vld [vmem:[#allocation5 + $0x390] sm:$0xff]  ;;  %8107 = vst [vmem:[#allocation83_spill] sm:$0xff] %v5996_v13  ;;  %v5998_v60 = vpack.c.bf16 %v443_v6, %v411_v33  ;;  %v6008_v6 = vpack.c.bf16 %v572_v61, %v540_v3  ;;  %v668_v3 = vld [vmem:[#allocation5 + $0xc98] sm:$0xff] }
  0xe9   :  { %v539_v33 = vld [vmem:[#allocation5 + $0x890] sm:$0xff]  ;;  %v700_v61 = vld [vmem:[#allocation5 + $0xd98] sm:$0xff] }
  0xea   :  { %8108 = vst [vmem:[#allocation84_spill] sm:$0xff] %v5998_v60  ;;  %8111 = vst [vmem:[#allocation87_spill] sm:$0xff] %v6008_v6  ;;  %v6010_v19 = vpack.c.bf16 %v571_v27, %v539_v33  ;;  %v6020_v27 = vpack.c.bf16 %v700_v61, %v668_v3  ;;  %v667_v33 = vld [vmem:[#allocation5 + $0xc90] sm:$0xff]  ;;  %v330_v3 = vld [vmem:[#allocation5 + $0x208] sm:$0xff] }
  0xeb   :  { %4517 = vmatpush1.bf16.msra.mxu0 %v5978_v51  ;;  %v347_v51 = vld [vmem:[#allocation5 + $0x290] sm:$0xff]  ;;  %v6022_v50 = vpack.c.bf16 %v699_v56, %v667_v33  ;;  %v362_v61 = vld [vmem:[#allocation5 + $0x308] sm:$0xff]  ;;  %v288_v56 = vld [vmem:[#allocation5 + $0xb8] sm:$0xff] }
  0xec   :  { %4551 = vmatprep.subr.bf16.mxu0 %v5982_v11  ;;  %v5992_v55 = vpack.c.bf16 %v379_v42, %v347_v51  ;;  %v6002_v51 = vpack.c.bf16 %v508_v25, %v476_v1  ;;  %v475_v42 = vld [vmem:[#allocation5 + $0x690] sm:$0xff]  ;;  %8112 = vst [vmem:[#allocation88_spill] sm:$0xff] %v6010_v19  ;;  %v604_v1 = vld [vmem:[#allocation5 + $0xa98] sm:$0xff]  ;;  %8115 = vst [vmem:[#allocation91_spill] sm:$0xff] %v6020_v27 }
  0xed   :  { %v6004_v38 = vpack.c.bf16 %v507_v48, %v475_v42  ;;  %v636_v25 = vld [vmem:[#allocation5 + $0xb98] sm:$0xff]  ;;  %v603_v42 = vld [vmem:[#allocation5 + $0xa90] sm:$0xff]  ;;  %8116 = vst [vmem:[#allocation92_spill] sm:$0xff] %v6022_v50 }
  0xee   :  { %1507 = vmatmul.mubr.f32.vlgmr.msra.gmra.mrb[8].mxu0 %v5780_v15  ;;  %8106 = vst [vmem:[#allocation82_spill] sm:$0xff] %v5992_v55  ;;  %8109 = vst [vmem:[#allocation85_spill] sm:$0xff] %v6002_v51  ;;  %v6014_v48 = vpack.c.bf16 %v636_v25, %v604_v1  ;;  %v6016_v0 = vpack.c.bf16 %v635_v7, %v603_v42  ;;  %v732_v1 = vld [vmem:[#allocation5 + $0xe98] sm:$0xff]  ;;  %v731_v42 = vld [vmem:[#allocation5 + $0xe90] sm:$0xff] }
  0xef   :  { %4553 = vmatpush1.bf16.msra.mxu0 %v5984_v20  ;;  %1648 = vmatprep.mubr.f32.mxu0 %v8104_v32  ;;  %8110 = vst [vmem:[#allocation86_spill] sm:$0xff] %v6004_v38  ;;  %v764_v25 = vld [vmem:[#allocation5 + $0xf98] sm:$0xff]  ;;  %v6028_v37 = vpack.c.bf16 %v763_v43, %v731_v42  ;;  %v6038_v43 = vpack.c.bf16 %v362_v61, %v330_v3  ;;  %v329_v42 = vld [vmem:[#allocation5 + $0x200] sm:$0xff] }
  0xf0   :  { %4555 = vmatprep.subr.bf16.mxu0 %v5990_v45  ;;  %8113 = vst [vmem:[#allocation89_spill] sm:$0xff] %v6014_v48  ;;  %8114 = vst [vmem:[#allocation90_spill] sm:$0xff] %v6016_v0  ;;  %v6026_v7 = vpack.c.bf16 %v764_v25, %v732_v1  ;;  %v320_v33 = vld [vmem:[#allocation5 + $0x1b8] sm:$0xff]  ;;  %v6034_v1 = vpack.c.bf16 %v297_v24, %v265_v30  ;;  %v6036_v25 = vpack.c.bf16 %v319_v4, %v287_v9  ;;  %v351_v9 = vld [vmem:[#allocation5 + $0x2b0] sm:$0xff] }
  0xf1   :  { %8118 = vst [vmem:[#allocation94_spill] sm:$0xff] %v6028_v37  ;;  %v6032_v14 = vpack.c.bf16 %v320_v33, %v288_v56  ;;  %v352_v56 = vld [vmem:[#allocation5 + $0x2b8] sm:$0xff]  ;;  %v383_v30 = vld [vmem:[#allocation5 + $0x3b0] sm:$0xff]  ;;  %v6048_v3 = vpack.c.bf16 %v361_v63, %v329_v42  ;;  %v382_v45 = vld [vmem:[#allocation5 + $0x3a8] sm:$0xff] }
  0xf2   :  { %8117 = vst [vmem:[#allocation93_spill] sm:$0xff] %v6026_v7  ;;  %8120 = vst [vmem:[#allocation96_spill] sm:$0xff] %v6036_v25  ;;  %v384_v33 = vld [vmem:[#allocation5 + $0x3b8] sm:$0xff]  ;;  %v6051_v61 = vpack.c.bf16 %v383_v30, %v351_v9  ;;  %v415_v42 = vld [vmem:[#allocation5 + $0x4b0] sm:$0xff] }
  0xf3   :  { %4557 = vmatpush1.bf16.msra.mxu0 %v5992_v55  ;;  %8119 = vst [vmem:[#allocation95_spill] sm:$0xff] %v6032_v14  ;;  %v6045_v4 = vpack.c.bf16 %v384_v33, %v352_v56  ;;  %v416_v56 = vld [vmem:[#allocation5 + $0x4b8] sm:$0xff]  ;;  %v6063_v49 = vpack.c.bf16 %v447_v31, %v415_v42  ;;  %v457_v30 = vld [vmem:[#allocation5 + $0x600] sm:$0xff] }
  0xf4   :  { %4559 = vmatprep.subr.bf16.mxu0 %v5996_v13  ;;  %8122 = vst [vmem:[#allocation98_spill] sm:$0xff] %v6051_v61  ;;  %v448_v33 = vld [vmem:[#allocation5 + $0x5b8] sm:$0xff]  ;;  %v6073_v31 = vpack.c.bf16 %v489_v26, %v457_v30  ;;  %v521_v42 = vld [vmem:[#allocation5 + $0x800] sm:$0xff]  ;;  %v543_v26 = vld [vmem:[#allocation5 + $0x8b0] sm:$0xff] }
  0xf5   :  { %8121 = vst [vmem:[#allocation97_spill] sm:$0xff] %v6045_v4  ;;  %v6058_v63 = vpack.c.bf16 %v448_v33, %v416_v56  ;;  %8124 = vst [vmem:[#allocation100_spill] sm:$0xff] %v6063_v49  ;;  %v480_v56 = vld [vmem:[#allocation5 + $0x6b8] sm:$0xff]  ;;  %v575_v30 = vld [vmem:[#allocation5 + $0x9b0] sm:$0xff] }
  0xf6   :  { %v512_v33 = vld [vmem:[#allocation5 + $0x7b8] sm:$0xff]  ;;  %v286_v13 = vld [vmem:[#allocation5 + $0xa8] sm:$0xff]  ;;  %v285_v55 = vld [vmem:[#allocation5 + $0xa0] sm:$0xff] }
  0xf7   :  { %4561 = vmatpush1.bf16.msra.mxu0 %v5998_v60  ;;  %8123 = vst [vmem:[#allocation99_spill] sm:$0xff] %v6058_v63  ;;  %v6070_v12 = vpack.c.bf16 %v512_v33, %v480_v56  ;;  %v544_v56 = vld [vmem:[#allocation5 + $0x8b8] sm:$0xff]  ;;  %v761_v60 = vld [vmem:[#allocation5 + $0xf80] sm:$0xff] }
  0xf8   :  { %4563 = vmatprep.subr.bf16.mxu0 %v6002_v51  ;;  %v576_v33 = vld [vmem:[#allocation5 + $0x9b8] sm:$0xff] }
  0xf9   :  { %8125 = vst [vmem:[#allocation101_spill] sm:$0xff] %v6070_v12  ;;  %v6082_v8 = vpack.c.bf16 %v576_v33, %v544_v56  ;;  %v608_v56 = vld [vmem:[#allocation5 + $0xab8] sm:$0xff] }
  0xfa   :  { %v640_v33 = vld [vmem:[#allocation5 + $0xbb8] sm:$0xff] }
  0xfb   :  { %4565 = vmatpush1.bf16.msra.mxu0 %v6004_v38  ;;  %8127 = vst [vmem:[#allocation103_spill] sm:$0xff] %v6082_v8  ;;  %v6094_v5 = vpack.c.bf16 %v640_v33, %v608_v56  ;;  %v672_v56 = vld [vmem:[#allocation5 + $0xcb8] sm:$0xff] }
  0xfc   :  { %4567 = vmatprep.subr.bf16.mxu0 %v6008_v6  ;;  %v704_v33 = vld [vmem:[#allocation5 + $0xdb8] sm:$0xff]  ;;  %v762_v6 = vld [vmem:[#allocation5 + $0xf88] sm:$0xff] }
  0xfd   :  { %8129 = vst [vmem:[#allocation105_spill] sm:$0xff] %v6094_v5  ;;  %v6106_v62 = vpack.c.bf16 %v704_v33, %v672_v56  ;;  %v736_v56 = vld [vmem:[#allocation5 + $0xeb8] sm:$0xff] }
  0xfe   :  { %v768_v33 = vld [vmem:[#allocation5 + $0xfb8] sm:$0xff] }
  0xff   :  { %4569 = vmatpush1.bf16.msra.mxu0 %v6010_v19  ;;  %8131 = vst [vmem:[#allocation107_spill] sm:$0xff] %v6106_v62  ;;  %v6118_v59 = vpack.c.bf16 %v768_v33, %v736_v56  ;;  %v292_v56 = vld [vmem:[#allocation5 + $0xd8] sm:$0xff] }
 0x100   :  { %4571 = vmatprep.subr.bf16.mxu0 %v6014_v48  ;;  %v324_v33 = vld [vmem:[#allocation5 + $0x1d8] sm:$0xff] }
 0x101   :  { %8133 = vst [vmem:[#allocation109_spill] sm:$0xff] %v6118_v59  ;;  %v6130_v58 = vpack.c.bf16 %v324_v33, %v292_v56  ;;  %v356_v56 = vld [vmem:[#allocation5 + $0x2d8] sm:$0xff] }
 0x102   :  { %v388_v33 = vld [vmem:[#allocation5 + $0x3d8] sm:$0xff] }
 0x103   :  { %4573 = vmatpush1.bf16.msra.mxu0 %v6016_v0  ;;  %8136 = vst [vmem:[#allocation112_spill] sm:$0xff] %v6130_v58  ;;  %v711_v0 = vld [vmem:[#allocation5 + $0xdf0] sm:$0xff] }
 0x104   :  { %4575 = vmatprep.subr.bf16.mxu0 %v6020_v27 }
 0x107   :  { %4577 = vmatpush1.bf16.msra.mxu0 %v6022_v50 }
 0x108   :  { %4579 = vmatprep.subr.bf16.mxu0 %v6026_v7  ;;  %v398_v7 = vld [vmem:[#allocation5 + $0x428] sm:$0xff] }
 0x10b   :  { %4581 = vmatpush1.bf16.msra.mxu0 %v6028_v37  ;;  %v334_v37 = vld [vmem:[#allocation5 + $0x228] sm:$0xff] }
 0x10c   :  { %4615 = vmatprep.subr.bf16.mxu0 %v6032_v14  ;;  %v270_v14 = vld [vmem:[#allocation5 + $0x28] sm:$0xff] }
 0x10e   :  { %1649 = vmatmul.mubr.f32.vlgmr.msra.gmra.mrb[10].mxu0 %v5780_v15 }
 0x10f   :  { %4617 = vmatpush1.bf16.msra.mxu0 %v6036_v25  ;;  %1790 = vmatprep.mubr.f32.mxu0 %v8104_v32  ;;  %v714_v25 = vld [vmem:[#allocation5 + $0xe08] sm:$0xff] }
 0x110   :  { %4619 = vmatprep.subr.bf16.mxu0 %v6045_v4  ;;  %v650_v4 = vld [vmem:[#allocation5 + $0xc08] sm:$0xff] }
 0x113   :  { %4621 = vmatpush1.bf16.msra.mxu0 %v6051_v61  ;;  %v586_v61 = vld [vmem:[#allocation5 + $0xa08] sm:$0xff] }
 0x114   :  { %4623 = vmatprep.subr.bf16.mxu0 %v6058_v63  ;;  %v553_v63 = vld [vmem:[#allocation5 + $0x900] sm:$0xff] }
 0x117   :  { %4625 = vmatpush1.bf16.msra.mxu0 %v6063_v49  ;;  %v618_v49 = vld [vmem:[#allocation5 + $0xb08] sm:$0xff] }
 0x118   :  { %4627 = vmatprep.subr.bf16.mxu0 %v6070_v12  ;;  %v617_v12 = vld [vmem:[#allocation5 + $0xb00] sm:$0xff] }
 0x141   :  { %v172_v54 = vpop.f32.mrb[0].mxu0 }
 0x142   :  { %v4238_v24 = vpop.f32.mrb[1].mxu0  ;;  %4248 = vmatmul.mubr.msk.f32.vlgmr.msra.gmra.mrb[0].mxu1 %vm177_vm1, %v172_v54  ;;  %v490_v54 = vld [vmem:[#allocation5 + $0x708] sm:$0xff] }
 0x143   :  { %4265 = vmatpush1.bf16.msra.mxu1 %v6034_v1  ;;  %1009 = vmatprep.mubr.f32.mxu1 %v8104_v32  ;;  %v425_v24 = vld [vmem:[#allocation5 + $0x500] sm:$0xff]  ;;  %v6066_v57 = vpack.c.bf16 %v490_v54, %v458_v36  ;;  %v6078_v54 = vpack.c.bf16 %v554_v18, %v522_v21  ;;  %v6087_v18 = vpack.c.bf16 %v575_v30, %v543_v26 }
 0x144   :  { %4267 = vmatprep.subr.bf16.mxu1 %v6038_v43  ;;  %v6061_v9 = vpack.c.bf16 %v425_v24, %v393_v39  ;;  %v479_v39 = vld [vmem:[#allocation5 + $0x6b0] sm:$0xff]  ;;  %v6090_v21 = vpack.c.bf16 %v618_v49, %v586_v61  ;;  %v649_v30 = vld [vmem:[#allocation5 + $0xc00] sm:$0xff] }
 0x145   :  { %v511_v24 = vld [vmem:[#allocation5 + $0x7b0] sm:$0xff]  ;;  %8128 = vst [vmem:[#allocation104_spill] sm:$0xff] %v6087_v18 }
 0x146   :  { %v6075_v36 = vpack.c.bf16 %v511_v24, %v479_v39  ;;  %v6085_v39 = vpack.c.bf16 %v553_v63, %v521_v42  ;;  %v585_v24 = vld [vmem:[#allocation5 + $0xa00] sm:$0xff]  ;;  %v607_v63 = vld [vmem:[#allocation5 + $0xab0] sm:$0xff] }
 0x147   :  { %4269 = vmatpush1.bf16.msra.mxu1 %v6048_v3  ;;  %v639_v42 = vld [vmem:[#allocation5 + $0xbb0] sm:$0xff]  ;;  %v6097_v26 = vpack.c.bf16 %v617_v12, %v585_v24 }
 0x148   :  { %4271 = vmatprep.subr.bf16.mxu1 %v6054_v44  ;;  %8126 = vst [vmem:[#allocation102_spill] sm:$0xff] %v6075_v36  ;;  %4629 = vmatpush1.bf16.msra.mxu0 %v6075_v36  ;;  %v682_v36 = vld [vmem:[#allocation5 + $0xd08] sm:$0xff]  ;;  %v6099_v61 = vpack.c.bf16 %v639_v42, %v607_v63  ;;  %v671_v12 = vld [vmem:[#allocation5 + $0xcb0] sm:$0xff]  ;;  %v713_v42 = vld [vmem:[#allocation5 + $0xe00] sm:$0xff] }
 0x149   :  { %4631 = vmatprep.subr.bf16.mxu0 %v6082_v8  ;;  %v6102_v49 = vpack.c.bf16 %v682_v36, %v650_v4  ;;  %v681_v8 = vld [vmem:[#allocation5 + $0xd00] sm:$0xff]  ;;  %v703_v24 = vld [vmem:[#allocation5 + $0xdb0] sm:$0xff] }
 0x14a   :  { %8130 = vst [vmem:[#allocation106_spill] sm:$0xff] %v6099_v61  ;;  %v6109_v63 = vpack.c.bf16 %v681_v8, %v649_v30  ;;  %v6111_v4 = vpack.c.bf16 %v703_v24, %v671_v12  ;;  %v735_v8 = vld [vmem:[#allocation5 + $0xeb0] sm:$0xff]  ;;  %v269_v24 = vld [vmem:[#allocation5 + $0x20] sm:$0xff] }
 0x14b   :  { %4273 = vmatpush1.bf16.msra.mxu1 %v6061_v9  ;;  %v767_v30 = vld [vmem:[#allocation5 + $0xfb0] sm:$0xff] }
 0x14c   :  { %4275 = vmatprep.subr.bf16.mxu1 %v6066_v57  ;;  %4633 = vmatpush1.bf16.msra.mxu0 %v6087_v18  ;;  %v746_v18 = vld [vmem:[#allocation5 + $0xf08] sm:$0xff]  ;;  %8132 = vst [vmem:[#allocation108_spill] sm:$0xff] %v6111_v4 }
 0x14d   :  { %4635 = vmatprep.subr.bf16.mxu0 %v6094_v5  ;;  %v6114_v36 = vpack.c.bf16 %v746_v18, %v714_v25  ;;  %v745_v5 = vld [vmem:[#allocation5 + $0xf00] sm:$0xff]  ;;  %v6123_v25 = vpack.c.bf16 %v767_v30, %v735_v8 }
 0x14e   :  { %v6121_v12 = vpack.c.bf16 %v745_v5, %v713_v42  ;;  %v291_v5 = vld [vmem:[#allocation5 + $0xd0] sm:$0xff]  ;;  %v333_v30 = vld [vmem:[#allocation5 + $0x220] sm:$0xff] }
 0x14f   :  { %4277 = vmatpush1.bf16.msra.mxu1 %v6073_v31  ;;  %8134 = vst [vmem:[#allocation110_spill] sm:$0xff] %v6123_v25  ;;  %v323_v42 = vld [vmem:[#allocation5 + $0x1d0] sm:$0xff] }
 0x150   :  { %4279 = vmatprep.subr.bf16.mxu1 %v6078_v54  ;;  %4637 = vmatpush1.bf16.msra.mxu0 %v6099_v61  ;;  %v302_v61 = vld [vmem:[#allocation5 + $0x128] sm:$0xff] }
 0x151   :  { %4639 = vmatprep.subr.bf16.mxu0 %v6106_v62  ;;  %v6126_v18 = vpack.c.bf16 %v302_v61, %v270_v14  ;;  %v301_v62 = vld [vmem:[#allocation5 + $0x120] sm:$0xff]  ;;  %v6135_v14 = vpack.c.bf16 %v323_v42, %v291_v5  ;;  %v387_v5 = vld [vmem:[#allocation5 + $0x3d0] sm:$0xff] }
 0x152   :  { %v6133_v8 = vpack.c.bf16 %v301_v62, %v269_v24  ;;  %v6144_v62 = vpack.c.bf16 %v388_v33, %v356_v56  ;;  %v355_v24 = vld [vmem:[#allocation5 + $0x2d0] sm:$0xff]  ;;  %v494_v56 = vld [vmem:[#allocation5 + $0x728] sm:$0xff]  ;;  %v420_v33 = vld [vmem:[#allocation5 + $0x4d8] sm:$0xff] }
 0x153   :  { %4281 = vmatpush1.bf16.msra.mxu1 %v6085_v39  ;;  %8135 = vst [vmem:[#allocation111_spill] sm:$0xff] %v6126_v18  ;;  %8138 = vst [vmem:[#allocation114_spill] sm:$0xff] %v6135_v14 }
 0x154   :  { %4283 = vmatprep.subr.bf16.mxu1 %v6090_v21  ;;  %4641 = vmatpush1.bf16.msra.mxu0 %v6111_v4  ;;  %v366_v4 = vld [vmem:[#allocation5 + $0x328] sm:$0xff]  ;;  %8137 = vst [vmem:[#allocation113_spill] sm:$0xff] %v6133_v8  ;;  %8140 = vst [vmem:[#allocation116_spill] sm:$0xff] %v6144_v62 }
 0x155   :  { %4643 = vmatprep.subr.bf16.mxu0 %v6118_v59  ;;  %v6138_v61 = vpack.c.bf16 %v366_v4, %v334_v37  ;;  %v365_v59 = vld [vmem:[#allocation5 + $0x320] sm:$0xff]  ;;  %v6150_v4 = vpack.c.bf16 %v387_v5, %v355_v24  ;;  %v451_v24 = vld [vmem:[#allocation5 + $0x5d0] sm:$0xff] }
 0x156   :  { %v6147_v37 = vpack.c.bf16 %v365_v59, %v333_v30  ;;  %v419_v30 = vld [vmem:[#allocation5 + $0x4d0] sm:$0xff] }
 0x157   :  { %4285 = vmatpush1.bf16.msra.mxu1 %v6097_v26  ;;  %8139 = vst [vmem:[#allocation115_spill] sm:$0xff] %v6138_v61  ;;  %8142 = vst [vmem:[#allocation118_spill] sm:$0xff] %v6150_v4 }
 0x158   :  { %4287 = vmatprep.subr.bf16.mxu1 %v6102_v49  ;;  %4645 = vmatpush1.bf16.msra.mxu0 %v6123_v25  ;;  %v430_v25 = vld [vmem:[#allocation5 + $0x528] sm:$0xff]  ;;  %8141 = vst [vmem:[#allocation117_spill] sm:$0xff] %v6147_v37 }
 0x159   :  { %4679 = vmatprep.subr.bf16.mxu0 %v6130_v58  ;;  %v6153_v42 = vpack.c.bf16 %v430_v25, %v398_v7  ;;  %v397_v58 = vld [vmem:[#allocation5 + $0x420] sm:$0xff]  ;;  %v6163_v25 = vpack.c.bf16 %v451_v24, %v419_v30 }
 0x15a   :  { %v525_v24 = vld [vmem:[#allocation5 + $0x820] sm:$0xff] }
 0x15b   :  { %4289 = vmatpush1.bf16.msra.mxu1 %v6109_v63  ;;  %1791 = vmatmul.mubr.f32.vlgmr.msra.gmra.mrb[12].mxu0 %v5780_v15  ;;  %8143 = vst [vmem:[#allocation119_spill] sm:$0xff] %v6153_v42  ;;  %8146 = vst [vmem:[#allocation122_spill] sm:$0xff] %v6163_v25 }
 0x15c   :  { %4291 = vmatprep.subr.bf16.mxu1 %v6114_v36  ;;  %4681 = vmatpush1.bf16.msra.mxu0 %v6135_v14  ;;  %v452_v14 = vld [vmem:[#allocation5 + $0x5d8] sm:$0xff] }
 0x15d   :  { %4683 = vmatprep.subr.bf16.mxu0 %v6144_v62  ;;  %1932 = vmatprep.mubr.f32.mxu0 %v8104_v32  ;;  %v6158_v59 = vpack.c.bf16 %v452_v14, %v420_v33  ;;  %v461_v62 = vld [vmem:[#allocation5 + $0x620] sm:$0xff]  ;;  %v484_v14 = vld [vmem:[#allocation5 + $0x6d8] sm:$0xff] }
 0x15e   :  { %v516_v33 = vld [vmem:[#allocation5 + $0x7d8] sm:$0xff] }
 0x15f   :  { %4293 = vmatpush1.bf16.msra.mxu1 %v6121_v12  ;;  %8144 = vst [vmem:[#allocation120_spill] sm:$0xff] %v6158_v59  ;;  %v6170_v53 = vpack.c.bf16 %v516_v33, %v484_v14  ;;  %v548_v14 = vld [vmem:[#allocation5 + $0x8d8] sm:$0xff] }
 0x160   :  { %4327 = vmatprep.subr.bf16.mxu1 %v6126_v18  ;;  %v462_v18 = vld [vmem:[#allocation5 + $0x628] sm:$0xff]  ;;  %4685 = vmatpush1.bf16.msra.mxu0 %v6150_v4  ;;  %v580_v33 = vld [vmem:[#allocation5 + $0x9d8] sm:$0xff] }
 0x161   :  { %v6166_v5 = vpack.c.bf16 %v494_v56, %v462_v18  ;;  %4687 = vmatprep.subr.bf16.mxu0 %v6158_v59  ;;  %v558_v4 = vld [vmem:[#allocation5 + $0x928] sm:$0xff]  ;;  %8148 = vst [vmem:[#allocation124_spill] sm:$0xff] %v6170_v53  ;;  %v557_v59 = vld [vmem:[#allocation5 + $0x920] sm:$0xff] }
 0x162   :  { %1010 = vmatmul.mubr.f32.vlgmr.msra.gmra.mrb[2].mxu1 %v5780_v15  ;;  %v429_v15 = vld [vmem:[#allocation5 + $0x520] sm:$0xff] }
 0x163   :  { %4329 = vmatpush1.bf16.msra.mxu1 %v6133_v8  ;;  %1151 = vmatprep.mubr.f32.mxu1 %v8104_v32  ;;  %v6161_v7 = vpack.c.bf16 %v429_v15, %v397_v58  ;;  %8147 = vst [vmem:[#allocation123_spill] sm:$0xff] %v6166_v5  ;;  %v526_v8 = vld [vmem:[#allocation5 + $0x828] sm:$0xff]  ;;  %v483_v58 = vld [vmem:[#allocation5 + $0x6d0] sm:$0xff] }
 0x164   :  { %4331 = vmatprep.subr.bf16.mxu1 %v6138_v61  ;;  %v493_v61 = vld [vmem:[#allocation5 + $0x720] sm:$0xff]  ;;  %4689 = vmatpush1.bf16.msra.mxu0 %v6163_v25  ;;  %v515_v15 = vld [vmem:[#allocation5 + $0x7d0] sm:$0xff]  ;;  %v6178_v56 = vpack.c.bf16 %v558_v4, %v526_v8  ;;  %v622_v25 = vld [vmem:[#allocation5 + $0xb28] sm:$0xff] }
 0x165   :  { %8145 = vst [vmem:[#allocation121_spill] sm:$0xff] %v6161_v7  ;;  %v6173_v30 = vpack.c.bf16 %v493_v61, %v461_v62  ;;  %v6175_v18 = vpack.c.bf16 %v515_v15, %v483_v58  ;;  %4691 = vmatprep.subr.bf16.mxu0 %v6170_v53  ;;  %v547_v61 = vld [vmem:[#allocation5 + $0x8d0] sm:$0xff]  ;;  %v6185_v58 = vpack.c.bf16 %v557_v59, %v525_v24  ;;  %v589_v15 = vld [vmem:[#allocation5 + $0xa20] sm:$0xff] }
 0x166   :  { %8151 = vst [vmem:[#allocation127_spill] sm:$0xff] %v6178_v56  ;;  %v579_v62 = vld [vmem:[#allocation5 + $0x9d0] sm:$0xff]  ;;  %v621_v53 = vld [vmem:[#allocation5 + $0xb20] sm:$0xff] }
 0x167   :  { %4333 = vmatpush1.bf16.msra.mxu1 %v6147_v37  ;;  %8149 = vst [vmem:[#allocation125_spill] sm:$0xff] %v6173_v30  ;;  %8150 = vst [vmem:[#allocation126_spill] sm:$0xff] %v6175_v18  ;;  %v6182_v37 = vpack.c.bf16 %v580_v33, %v548_v14  ;;  %v6187_v8 = vpack.c.bf16 %v579_v62, %v547_v61  ;;  %v612_v14 = vld [vmem:[#allocation5 + $0xad8] sm:$0xff]  ;;  %v611_v59 = vld [vmem:[#allocation5 + $0xad0] sm:$0xff]  ;;  %v6197_v61 = vpack.c.bf16 %v621_v53, %v589_v15 }
 0x168   :  { %4335 = vmatprep.subr.bf16.mxu1 %v6153_v42  ;;  %v590_v42 = vld [vmem:[#allocation5 + $0xa28] sm:$0xff]  ;;  %4693 = vmatpush1.bf16.msra.mxu0 %v6175_v18  ;;  %8153 = vst [vmem:[#allocation129_spill] sm:$0xff] %v6185_v58  ;;  %v644_v33 = vld [vmem:[#allocation5 + $0xbd8] sm:$0xff]  ;;  %v643_v24 = vld [vmem:[#allocation5 + $0xbd0] sm:$0xff] }
 0x169   :  { %8152 = vst [vmem:[#allocation128_spill] sm:$0xff] %v6182_v37  ;;  %8154 = vst [vmem:[#allocation130_spill] sm:$0xff] %v6187_v8  ;;  %v6190_v4 = vpack.c.bf16 %v622_v25, %v590_v42  ;;  %4695 = vmatprep.subr.bf16.mxu0 %v6182_v37  ;;  %v686_v18 = vld [vmem:[#allocation5 + $0xd28] sm:$0xff]  ;;  %v6199_v42 = vpack.c.bf16 %v643_v24, %v611_v59  ;;  %v653_v62 = vld [vmem:[#allocation5 + $0xc20] sm:$0xff] }
 0x16a   :  { %8157 = vst [vmem:[#allocation133_spill] sm:$0xff] %v6197_v61  ;;  %v685_v37 = vld [vmem:[#allocation5 + $0xd20] sm:$0xff]  ;;  %v675_v53 = vld [vmem:[#allocation5 + $0xcd0] sm:$0xff] }
 0x16b   :  { %4337 = vmatpush1.bf16.msra.mxu1 %v6161_v7  ;;  %8155 = vst [vmem:[#allocation131_spill] sm:$0xff] %v6190_v4  ;;  %v6194_v7 = vpack.c.bf16 %v644_v33, %v612_v14  ;;  %8158 = vst [vmem:[#allocation134_spill] sm:$0xff] %v6199_v42  ;;  %v676_v14 = vld [vmem:[#allocation5 + $0xcd8] sm:$0xff]  ;;  %v707_v15 = vld [vmem:[#allocation5 + $0xdd0] sm:$0xff]  ;;  %v6209_v59 = vpack.c.bf16 %v685_v37, %v653_v62 }
 0x16c   :  { %4339 = vmatprep.subr.bf16.mxu1 %v6166_v5  ;;  %v654_v5 = vld [vmem:[#allocation5 + $0xc28] sm:$0xff]  ;;  %4697 = vmatpush1.bf16.msra.mxu0 %v6187_v8  ;;  %v708_v33 = vld [vmem:[#allocation5 + $0xdd8] sm:$0xff]  ;;  %v717_v24 = vld [vmem:[#allocation5 + $0xe20] sm:$0xff] }
 0x16d   :  { %8156 = vst [vmem:[#allocation132_spill] sm:$0xff] %v6194_v7  ;;  %v6202_v25 = vpack.c.bf16 %v686_v18, %v654_v5  ;;  %4699 = vmatprep.subr.bf16.mxu0 %v6194_v7  ;;  %v750_v8 = vld [vmem:[#allocation5 + $0xf28] sm:$0xff]  ;;  %8161 = vst [vmem:[#allocation137_spill] sm:$0xff] %v6209_v59  ;;  %v6211_v5 = vpack.c.bf16 %v707_v15, %v675_v53  ;;  %v749_v7 = vld [vmem:[#allocation5 + $0xf20] sm:$0xff] }
 0x16e   :  { %v739_v37 = vld [vmem:[#allocation5 + $0xed0] sm:$0xff]  ;;  %v6221_v53 = vpack.c.bf16 %v749_v7, %v717_v24  ;;  %v273_v15 = vld [vmem:[#allocation5 + $0x40] sm:$0xff] }
 0x16f   :  { %4341 = vmatpush1.bf16.msra.mxu1 %v6173_v30  ;;  %8159 = vst [vmem:[#allocation135_spill] sm:$0xff] %v6202_v25  ;;  %v6206_v30 = vpack.c.bf16 %v708_v33, %v676_v14  ;;  %8162 = vst [vmem:[#allocation138_spill] sm:$0xff] %v6211_v5  ;;  %v740_v14 = vld [vmem:[#allocation5 + $0xed8] sm:$0xff]  ;;  %v771_v62 = vld [vmem:[#allocation5 + $0xfd0] sm:$0xff] }
 0x170   :  { %4343 = vmatprep.subr.bf16.mxu1 %v6178_v56  ;;  %v718_v56 = vld [vmem:[#allocation5 + $0xe28] sm:$0xff]  ;;  %4701 = vmatpush1.bf16.msra.mxu0 %v6199_v42  ;;  %v772_v33 = vld [vmem:[#allocation5 + $0xfd8] sm:$0xff]  ;;  %8165 = vst [vmem:[#allocation141_spill] sm:$0xff] %v6221_v53  ;;  %v295_v7 = vld [vmem:[#allocation5 + $0xf0] sm:$0xff] }
 0x171   :  { %8160 = vst [vmem:[#allocation136_spill] sm:$0xff] %v6206_v30  ;;  %v6214_v18 = vpack.c.bf16 %v750_v8, %v718_v56  ;;  %4703 = vmatprep.subr.bf16.mxu0 %v6206_v30  ;;  %v306_v42 = vld [vmem:[#allocation5 + $0x148] sm:$0xff]  ;;  %v6223_v56 = vpack.c.bf16 %v771_v62, %v739_v37  ;;  %v305_v30 = vld [vmem:[#allocation5 + $0x140] sm:$0xff]  ;;  %v327_v24 = vld [vmem:[#allocation5 + $0x1f0] sm:$0xff] }
 0x172   :  { %v6233_v37 = vpack.c.bf16 %v305_v30, %v273_v15  ;;  %v337_v62 = vld [vmem:[#allocation5 + $0x240] sm:$0xff] }
 0x173   :  { %4345 = vmatpush1.bf16.msra.mxu1 %v6185_v58  ;;  %8163 = vst [vmem:[#allocation139_spill] sm:$0xff] %v6214_v18  ;;  %v6218_v58 = vpack.c.bf16 %v772_v33, %v740_v14  ;;  %8166 = vst [vmem:[#allocation142_spill] sm:$0xff] %v6223_v56  ;;  %v296_v14 = vld [vmem:[#allocation5 + $0xf8] sm:$0xff] }
 0x174   :  { %4347 = vmatprep.subr.bf16.mxu1 %v6190_v4  ;;  %v274_v4 = vld [vmem:[#allocation5 + $0x48] sm:$0xff]  ;;  %4705 = vmatpush1.bf16.msra.mxu0 %v6211_v5  ;;  %v328_v33 = vld [vmem:[#allocation5 + $0x1f8] sm:$0xff]  ;;  %8169 = vst [vmem:[#allocation145_spill] sm:$0xff] %v6233_v37 }
 0x175   :  { %8164 = vst [vmem:[#allocation140_spill] sm:$0xff] %v6218_v58  ;;  %v6226_v8 = vpack.c.bf16 %v306_v42, %v274_v4  ;;  %4707 = vmatprep.subr.bf16.mxu0 %v6218_v58  ;;  %v370_v5 = vld [vmem:[#allocation5 + $0x348] sm:$0xff]  ;;  %v6235_v4 = vpack.c.bf16 %v327_v24, %v295_v7  ;;  %v369_v58 = vld [vmem:[#allocation5 + $0x340] sm:$0xff] }
 0x176   :  { %v6249_v15 = vpack.c.bf16 %v369_v58, %v337_v62  ;;  %v423_v62 = vld [vmem:[#allocation5 + $0x4f0] sm:$0xff] }
 0x177   :  { %4349 = vmatpush1.bf16.msra.mxu1 %v6197_v61  ;;  %8167 = vst [vmem:[#allocation143_spill] sm:$0xff] %v6226_v8  ;;  %v6230_v61 = vpack.c.bf16 %v328_v33, %v296_v14  ;;  %8170 = vst [vmem:[#allocation146_spill] sm:$0xff] %v6235_v4  ;;  %v6241_v14 = vld [vmem:[#allocation2] sm:$0xff] }
 0x178   :  { %4351 = vmatprep.subr.bf16.mxu1 %v6202_v25  ;;  %v338_v25 = vld [vmem:[#allocation5 + $0x248] sm:$0xff]  ;;  %4709 = vmatpush1.bf16.msra.mxu0 %v6223_v56  ;;  %v360_v33 = vld [vmem:[#allocation5 + $0x2f8] sm:$0xff]  ;;  %8173 = vst [vmem:[#allocation149_spill] sm:$0xff] %v6249_v15 }
 0x179   :  { %8168 = vst [vmem:[#allocation144_spill] sm:$0xff] %v6230_v61  ;;  %v6238_v42 = vpack.c.bf16 %v370_v5, %v338_v25  ;;  %4743 = vmatprep.subr.bf16.mxu0 %v6230_v61  ;;  %v434_v56 = vld [vmem:[#allocation5 + $0x548] sm:$0xff]  ;;  %v359_v25 = vld [vmem:[#allocation5 + $0x2f0] sm:$0xff]  ;;  %v401_v61 = vld [vmem:[#allocation5 + $0x440] sm:$0xff] }
 0x17a   :  { %v391_v5 = vld [vmem:[#allocation5 + $0x3f0] sm:$0xff] }
 0x17b   :  { %4353 = vmatpush1.bf16.msra.mxu1 %v6209_v59  ;;  %8171 = vst [vmem:[#allocation147_spill] sm:$0xff] %v6238_v42  ;;  %1933 = vmatmul.mubr.f32.vlgmr.msra.gmra.mrb[14].mxu0 %v6241_v14  ;;  %v6252_v7 = vpack.c.bf16 %v391_v5, %v359_v25  ;;  %v466_v59 = vld [vmem:[#allocation5 + $0x648] sm:$0xff]  ;;  %v455_v25 = vld [vmem:[#allocation5 + $0x5f0] sm:$0xff] }
 0x17c   :  { %4355 = vmatprep.subr.bf16.mxu1 %v6214_v18  ;;  %v402_v18 = vld [vmem:[#allocation5 + $0x448] sm:$0xff]  ;;  %4745 = vmatpush1.bf16.msra.mxu0 %v6235_v4  ;;  %v456_v4 = vld [vmem:[#allocation5 + $0x5f8] sm:$0xff] }
 0x17d   :  { %8174 = vst [vmem:[#allocation150_spill] sm:$0xff] %v6252_v7  ;;  %v6255_v24 = vpack.c.bf16 %v434_v56, %v402_v18  ;;  %2074 = vmatprep.mubr.f32.mxu0 %v8104_v32  ;;  %v6265_v56 = vpack.c.bf16 %v455_v25, %v423_v62  ;;  %v529_v25 = vld [vmem:[#allocation5 + $0x840] sm:$0xff] }
 0x17f   :  { %4357 = vmatpush1.bf16.msra.mxu1 %v6221_v53  ;;  %v392_v53 = vld [vmem:[#allocation5 + $0x3f8] sm:$0xff]  ;;  %8175 = vst [vmem:[#allocation151_spill] sm:$0xff] %v6255_v24  ;;  %8178 = vst [vmem:[#allocation154_spill] sm:$0xff] %v6265_v56 }
 0x180   :  { %4391 = vmatprep.subr.bf16.mxu1 %v6226_v8  ;;  %v6246_v30 = vpack.c.bf16 %v392_v53, %v360_v33  ;;  %v433_v8 = vld [vmem:[#allocation5 + $0x540] sm:$0xff]  ;;  %v498_v53 = vld [vmem:[#allocation5 + $0x748] sm:$0xff]  ;;  %v424_v33 = vld [vmem:[#allocation5 + $0x4f8] sm:$0xff] }
 0x181   :  { %v6260_v58 = vpack.c.bf16 %v456_v4, %v424_v33  ;;  %v6263_v18 = vpack.c.bf16 %v433_v8, %v401_v61  ;;  %v6268_v5 = vpack.c.bf16 %v498_v53, %v466_v59  ;;  %v488_v4 = vld [vmem:[#allocation5 + $0x6f8] sm:$0xff]  ;;  %v487_v61 = vld [vmem:[#allocation5 + $0x6f0] sm:$0xff] }
 0x182   :  { %1152 = vmatmul.mubr.f32.vlgmr.msra.gmra.mrb[4].mxu1 %v6241_v14  ;;  %8172 = vst [vmem:[#allocation148_spill] sm:$0xff] %v6246_v30  ;;  %4747 = vmatprep.subr.bf16.mxu0 %v6246_v30  ;;  %v465_v30 = vld [vmem:[#allocation5 + $0x640] sm:$0xff]  ;;  %v520_v33 = vld [vmem:[#allocation5 + $0x7f8] sm:$0xff]  ;;  %v519_v8 = vld [vmem:[#allocation5 + $0x7f0] sm:$0xff] }
 0x183   :  { %4393 = vmatpush1.bf16.msra.mxu1 %v6233_v37  ;;  %1293 = vmatprep.mubr.f32.mxu1 %v8104_v32  ;;  %8176 = vst [vmem:[#allocation152_spill] sm:$0xff] %v6260_v58  ;;  %8177 = vst [vmem:[#allocation153_spill] sm:$0xff] %v6263_v18  ;;  %v530_v37 = vld [vmem:[#allocation5 + $0x848] sm:$0xff]  ;;  %v6272_v50 = vpack.c.bf16 %v520_v33, %v488_v4  ;;  %v6277_v59 = vpack.c.bf16 %v519_v8, %v487_v61  ;;  %v552_v4 = vld [vmem:[#allocation5 + $0x8f8] sm:$0xff]  ;;  %v785_v61 = vlaneseq }
 0x184   :  { %4395 = vmatprep.subr.bf16.mxu1 %v6238_v42  ;;  %4749 = vmatpush1.bf16.msra.mxu0 %v6252_v7  ;;  %8179 = vst [vmem:[#allocation155_spill] sm:$0xff] %v6268_v5  ;;  %v497_v42 = vld [vmem:[#allocation5 + $0x740] sm:$0xff]  ;;  %v562_v7 = vld [vmem:[#allocation5 + $0x948] sm:$0xff]  ;;  %v584_v33 = vld [vmem:[#allocation5 + $0x9f8] sm:$0xff] }
 0x185   :  { %4751 = vmatprep.subr.bf16.mxu0 %v6260_v58  ;;  %8180 = vst [vmem:[#allocation156_spill] sm:$0xff] %v6272_v50  ;;  %v6275_v62 = vpack.c.bf16 %v497_v42, %v465_v30  ;;  %8182 = vst [vmem:[#allocation158_spill] sm:$0xff] %v6277_v59  ;;  %v6280_v53 = vpack.c.bf16 %v562_v7, %v530_v37  ;;  %v561_v58 = vld [vmem:[#allocation5 + $0x940] sm:$0xff]  ;;  %v551_v42 = vld [vmem:[#allocation5 + $0x8f0] sm:$0xff] }
 0x186   :  { %v583_v30 = vld [vmem:[#allocation5 + $0x9f0] sm:$0xff]  ;;  %v6287_v8 = vpack.c.bf16 %v561_v58, %v529_v25 }
 0x187   :  { %4397 = vmatpush1.bf16.msra.mxu1 %v6249_v15  ;;  %8181 = vst [vmem:[#allocation157_spill] sm:$0xff] %v6275_v62  ;;  %8183 = vst [vmem:[#allocation159_spill] sm:$0xff] %v6280_v53  ;;  %v6284_v15 = vpack.c.bf16 %v584_v33, %v552_v4  ;;  %v6289_v37 = vpack.c.bf16 %v583_v30, %v551_v42  ;;  %v6295_v4 = vshrl.u32 %v785_v61, 7  ;;  %v690_v33 = vld [vmem:[#allocation5 + $0xd48] sm:$0xff]  ;;  %v647_v42 = vld [vmem:[#allocation5 + $0xbf0] sm:$0xff] }
 0x188   :  { %4399 = vmatprep.subr.bf16.mxu1 %v6255_v24  ;;  %4753 = vmatpush1.bf16.msra.mxu0 %v6265_v56  ;;  %v594_v24 = vld [vmem:[#allocation5 + $0xa48] sm:$0xff]  ;;  %8185 = vst [vmem:[#allocation161_spill] sm:$0xff] %v6287_v8  ;;  %v6309_v61 = vld [vmem:[#allocation7] sm:$0xff] }
 0x189   :  { %4755 = vmatprep.subr.bf16.mxu0 %v6272_v50  ;;  %v626_v56 = vld [vmem:[#allocation5 + $0xb48] sm:$0xff]  ;;  %8184 = vst [vmem:[#allocation160_spill] sm:$0xff] %v6284_v15  ;;  %8186 = vst [vmem:[#allocation162_spill] sm:$0xff] %v6289_v37  ;;  %v593_v50 = vld [vmem:[#allocation5 + $0xa40] sm:$0xff]  ;;  %v6299_v58 = vsub.s32 2, %v6295_v4 }
 0x18a   :  { %v6292_v7 = vpack.c.bf16 %v626_v56, %v594_v24  ;;  %v6304_v24 = vsub.s32 3, %v6295_v4  ;;  %v615_v56 = vld [vmem:[#allocation5 + $0xaf0] sm:$0xff] }
 0x18b   :  { %4401 = vmatpush1.bf16.msra.mxu1 %v6263_v18  ;;  %v658_v18 = vld [vmem:[#allocation5 + $0xc48] sm:$0xff]  ;;  %v796_v27 = vrot.slane %v6309_v61, %v6299_v58 }
 0x18c   :  { %4403 = vmatprep.subr.bf16.mxu1 %v6268_v5  ;;  %4757 = vmatpush1.bf16.msra.mxu0 %v6277_v59  ;;  %8187 = vst [vmem:[#allocation163_spill] sm:$0xff] %v6292_v7  ;;  %v625_v5 = vld [vmem:[#allocation5 + $0xb40] sm:$0xff]  ;;  %v616_v59 = vld [vmem:[#allocation5 + $0xaf8] sm:$0xff] }
 0x18d   :  { %4759 = vmatprep.subr.bf16.mxu0 %v6284_v15  ;;  %v6301_v25 = vpack.c.bf16 %v648_v52, %v616_v59  ;;  %v6307_v30 = vpack.c.bf16 %v625_v5, %v593_v50  ;;  %v1082_v15 = vpop.f32.mrb[2].mxu0  ;;  %v657_v52 = vld [vmem:[#allocation5 + $0xc40] sm:$0xff]  ;;  %v800_v50 = vrot.slane %v6309_v61, %v6304_v24 }
 0x18e   :  { %v689_v59 = vld [vmem:[#allocation5 + $0xd40] sm:$0xff]  ;;  %v1084_v5 = vpop.f32.mrb[3].mxu0 }
 0x18f   :  { %4405 = vmatpush1.bf16.msra.mxu1 %v6275_v62  ;;  %8188 = vst [vmem:[#allocation164_spill] sm:$0xff] %v6301_v25  ;;  %8189 = vst [vmem:[#allocation165_spill] sm:$0xff] %v6307_v30  ;;  %v722_v62 = vld [vmem:[#allocation5 + $0xe48] sm:$0xff] }
 0x190   :  { %4407 = vmatprep.subr.bf16.mxu1 %v6280_v53  ;;  %4761 = vmatpush1.bf16.msra.mxu0 %v6289_v37  ;;  %v6311_v53 = vpack.c.bf16 %v647_v42, %v615_v56  ;;  %v6314_v37 = vpack.c.bf16 %v690_v33, %v658_v18  ;;  %v712_v56 = vld [vmem:[#allocation5 + $0xdf8] sm:$0xff]  ;;  %v6321_v42 = vadd.f32 %v1082_v15, %v796_v27  ;;  %v679_v33 = vld [vmem:[#allocation5 + $0xcf0] sm:$0xff]  ;;  %v721_v27 = vld [vmem:[#allocation5 + $0xe40] sm:$0xff] }
 0x191   :  { %4763 = vmatprep.subr.bf16.mxu0 %v6301_v25  ;;  %v6326_v18 = vpack.c.bf16 %v712_v56, %v680_v47  ;;  %v6329_v25 = vpack.c.bf16 %v689_v59, %v657_v52  ;;  %v6331_v46 = vpack.c.bf16 %v711_v0, %v679_v33  ;;  %v753_v15 = vld [vmem:[#allocation5 + $0xf40] sm:$0xff]  ;;  %v278_v47 = vld [vmem:[#allocation5 + $0x68] sm:$0xff]  ;;  %v775_v59 = vld [vmem:[#allocation5 + $0xff0] sm:$0xff] }
 0x192   :  { %8190 = vst [vmem:[#allocation166_spill] sm:$0xff] %v6311_v53  ;;  %8191 = vst [vmem:[#allocation167_spill] sm:$0xff] %v6314_v37  ;;  %v310_v56 = vld [vmem:[#allocation5 + $0x168] sm:$0xff]  ;;  %v6345_v33 = vpack.c.bf16 %v753_v15, %v721_v27  ;;  %v341_v15 = vld [vmem:[#allocation5 + $0x260] sm:$0xff]  ;;  %vm2691_vm2 = vcmp.lt.f32.partialorder %v6321_v42, 0.0 }
 0x193   :  { %4409 = vmatpush1.bf16.msra.mxu1 %v6287_v8  ;;  %v754_v8 = vld [vmem:[#allocation5 + $0xf48] sm:$0xff]  ;;  %8192 = vst [vmem:[#allocation168_spill] sm:$0xff] %v6326_v18  ;;  %8193 = vst [vmem:[#allocation169_spill] sm:$0xff] %v6329_v25 }
 0x194   :  { %4411 = vmatprep.subr.bf16.mxu1 %v6292_v7  ;;  %v6323_v7 = vadd.f32 %v1084_v5, %v800_v50  ;;  %4765 = vmatpush1.bf16.msra.mxu0 %v6311_v53  ;;  %8194 = vst [vmem:[#allocation170_spill] sm:$0xff] %v6331_v46  ;;  %v6334_v48 = vpack.c.bf16 %v754_v8, %v722_v62  ;;  %v7907_v50 = vand.u32 2147483647, %v6321_v42  ;;  %v744_v53 = vld [vmem:[#allocation5 + $0xef8] sm:$0xff]  ;;  %v743_v8 = vld [vmem:[#allocation5 + $0xef0] sm:$0xff]  ;;  %8196 = vst [vmem:[#allocation172_spill] sm:$0xff] %v6345_v33 }
 0x195   :  { %4767 = vmatprep.subr.bf16.mxu0 %v6326_v18  ;;  %v776_v62 = vld [vmem:[#allocation5 + $0xff8] sm:$0xff]  ;;  %v6349_v18 = vpack.c.bf16 %v775_v59, %v743_v8  ;;  %v469_v8 = vld [vmem:[#allocation5 + $0x660] sm:$0xff] }
 0x196   :  { %8195 = vst [vmem:[#allocation171_spill] sm:$0xff] %v6334_v48  ;;  %v7909_v5 = vand.u32 2147483647, %v6323_v7  ;;  %v2115_v52 = vmul.f32 -2.0, %v7907_v50  ;;  %v277_v50 = vld [vmem:[#allocation5 + $0x60] sm:$0xff]  ;;  %vm2692_vm3 = vcmp.lt.f32.partialorder %v6323_v7, 0.0 }
 0x197   :  { %4413 = vmatpush1.bf16.msra.mxu1 %v6307_v30  ;;  %8198 = vst [vmem:[#allocation174_spill] sm:$0xff] %v6349_v18  ;;  %v6352_v30 = vpack.c.bf16 %v310_v56, %v278_v47  ;;  %v373_v47 = vld [vmem:[#allocation5 + $0x360] sm:$0xff]  ;;  %v406_v56 = vld [vmem:[#allocation5 + $0x468] sm:$0xff] }
 0x198   :  { %4415 = vmatprep.subr.bf16.mxu1 %v6314_v37  ;;  %v2116_v0 = vmul.f32 -2.0, %v7909_v5  ;;  %4769 = vmatpush1.bf16.msra.mxu0 %v6331_v46  ;;  %v6347_v37 = vpack.c.bf16 %v776_v62, %v744_v53  ;;  %v2149_v5 = vmul.f32 1.442695, %v2115_v52  ;;  %v342_v46 = vld [vmem:[#allocation5 + $0x268] sm:$0xff]  ;;  %v6357_v53 = vpack.c.bf16 %v309_v41, %v277_v50  ;;  %v501_v59 = vld [vmem:[#allocation5 + $0x760] sm:$0xff] }
 0x199   :  { %8199 = vst [vmem:[#allocation175_spill] sm:$0xff] %v6352_v30  ;;  %v6361_v27 = vpack.c.bf16 %v374_v40, %v342_v46  ;;  %v438_v52 = vld [vmem:[#allocation5 + $0x568] sm:$0xff]  ;;  %v405_v40 = vld [vmem:[#allocation5 + $0x460] sm:$0xff] }
 0x19a   :  { %8197 = vst [vmem:[#allocation173_spill] sm:$0xff] %v6347_v37  ;;  %v2151_v19 = vmul.f32 1.442695, %v2116_v0  ;;  %4771 = vmatprep.subr.bf16.mxu0 %v6347_v37  ;;  %5334 = vpow2.f32 %v2149_v5  ;;  %8200 = vst [vmem:[#allocation176_spill] sm:$0xff] %v6357_v53  ;;  %v6366_v5 = vpack.c.bf16 %v373_v47, %v341_v15  ;;  %v6370_v41 = vpack.c.bf16 %v438_v52, %v406_v56  ;;  %v437_v46 = vld [vmem:[#allocation5 + $0x560] sm:$0xff]  ;;  %v534_v47 = vld [vmem:[#allocation5 + $0x868] sm:$0xff] }
 0x19b   :  { %4417 = vmatpush1.bf16.msra.mxu1 %v6329_v25  ;;  %8201 = vst [vmem:[#allocation177_spill] sm:$0xff] %v6361_v27  ;;  %v6373_v50 = vpack.c.bf16 %v437_v46, %v405_v40  ;;  %v566_v56 = vld [vmem:[#allocation5 + $0x968] sm:$0xff]  ;;  %v533_v46 = vld [vmem:[#allocation5 + $0x860] sm:$0xff] }
 0x19c   :  { %4419 = vmatprep.subr.bf16.mxu1 %v6334_v48  ;;  %4773 = vmatpush1.bf16.msra.mxu0 %v6349_v18  ;;  %5336 = vpow2.f32 %v2151_v19  ;;  %8202 = vst [vmem:[#allocation178_spill] sm:$0xff] %v6366_v5  ;;  %8203 = vst [vmem:[#allocation179_spill] sm:$0xff] %v6370_v41  ;;  %v502_v19 = vld [vmem:[#allocation5 + $0x768] sm:$0xff]  ;;  %v6391_v40 = vpack.c.bf16 %v566_v56, %v534_v47  ;;  %v629_v47 = vld [vmem:[#allocation5 + $0xb60] sm:$0xff] }
 0x19d   :  { %4775 = vmatprep.subr.bf16.mxu0 %v5837_v2  ;;  %v470_v2 = vld [vmem:[#allocation5 + $0x668] sm:$0xff]  ;;  %8204 = vst [vmem:[#allocation180_spill] sm:$0xff] %v6373_v50  ;;  %v725_v48 = vld [vmem:[#allocation5 + $0xe60] sm:$0xff] }
 0x19e   :  { %v6379_v62 = vpack.c.bf16 %v502_v19, %v470_v2  ;;  %8207 = vst [vmem:[#allocation183_spill] sm:$0xff] %v6391_v40  ;;  %v565_v2 = vld [vmem:[#allocation5 + $0x960] sm:$0xff]  ;;  %v598_v19 = vld [vmem:[#allocation5 + $0xa68] sm:$0xff] }
 0x19f   :  { %4421 = vmatpush1.bf16.msra.mxu1 %v6345_v33  ;;  %2075 = vmatmul.mubr.f32.vlgmr.msra.gmra.mrb[16].mxu0 %v6241_v14  ;;  %v630_v18 = vld [vmem:[#allocation5 + $0xb68] sm:$0xff]  ;;  %v6399_v37 = vpack.c.bf16 %v565_v2, %v533_v46  ;;  %v6414_v2 = vsub.s32 7, %v6295_v4 }
 0x1a0   :  { %4455 = vmatprep.subr.bf16.mxu1 %v6352_v30  ;;  %8205 = vst [vmem:[#allocation181_spill] sm:$0xff] %v6379_v62  ;;  %v662_v56 = vld [vmem:[#allocation5 + $0xc68] sm:$0xff] }
 0x1a1   :  { %8208 = vst [vmem:[#allocation184_spill] sm:$0xff] %v6399_v37  ;;  %v378_v25 = vld [vmem:[#allocation5 + $0x388] sm:$0xff] }
 0x1a2   :  { %1294 = vmatmul.mubr.f32.vlgmr.msra.gmra.mrb[6].mxu1 %v6241_v14 }
 0x1a3   :  { %4457 = vmatpush1.bf16.msra.mxu1 %v6357_v53  ;;  %1435 = vmatprep.mubr.f32.mxu1 %v8104_v32 }
 0x1a4   :  { %4459 = vmatprep.subr.bf16.mxu1 %v6361_v27  ;;  %v6376_v0 = vpop.eup %5334 }
 0x1a5   :  { %4777 = vmatpush1.bf16.xpose.msra.mxu0 %v6034_v1  ;;  %v6385_v52 = vadd.f32 1.0, %v6376_v0  ;;  %v6388_v1 = vpack.c.bf16 %v501_v59, %v469_v8  ;;  %v6403_v8 = vpack.c.bf16 %v630_v18, %v598_v19  ;;  %v597_v59 = vld [vmem:[#allocation5 + $0xa60] sm:$0xff]  ;;  %v2563_v46 = vsub.f32 1.0, %v6376_v0 }
 0x1a6   :  { %4779 = vmatprep.subr.bf16.mxu0 %v6038_v43  ;;  %v6382_v15 = vpop.eup %5336  ;;  %v693_v19 = vld [vmem:[#allocation5 + $0xd60] sm:$0xff] }
 0x1a7   :  { %4461 = vmatpush1.bf16.msra.mxu1 %v6366_v5  ;;  %8206 = vst [vmem:[#allocation182_spill] sm:$0xff] %v6388_v1  ;;  %5338 = vrcp.f32 %v6385_v52  ;;  %v6395_v43 = vadd.f32 1.0, %v6382_v15  ;;  %8209 = vst [vmem:[#allocation185_spill] sm:$0xff] %v6403_v8  ;;  %v758_v5 = vld [vmem:[#allocation5 + $0xf68] sm:$0xff] }
 0x1a8   :  { %4463 = vmatprep.subr.bf16.mxu1 %v6370_v41  ;;  %v726_v41 = vld [vmem:[#allocation5 + $0xe68] sm:$0xff] }
 0x1a9   :  { %5340 = vrcp.f32 %v6395_v43  ;;  %v6433_v33 = vpack.c.bf16 %v758_v5, %v726_v41 }
 0x1ab   :  { %4465 = vmatpush1.bf16.msra.mxu1 %v6373_v50  ;;  %v6407_v50 = vsub.s32 6, %v6295_v4  ;;  %8214 = vst [vmem:[#allocation190_spill] sm:$0xff] %v6433_v33 }
 0x1ac   :  { %4467 = vmatprep.subr.bf16.mxu1 %v6379_v62  ;;  %v694_v62 = vld [vmem:[#allocation5 + $0xd68] sm:$0xff] }
 0x1ad   :  { %4781 = vmatpush1.bf16.xpose.msra.mxu0 %v6048_v3  ;;  %8210 = vst [vmem:[#allocation186_spill] sm:$0xff] %v6407_v50  ;;  %v1224_v3 = vpop.f32.mrb[4].mxu0  ;;  %v6417_v18 = vpack.c.bf16 %v694_v62, %v662_v56 }
 0x1ae   :  { %4783 = vmatprep.subr.bf16.mxu0 %v6054_v44  ;;  %v661_v44 = vld [vmem:[#allocation5 + $0xc60] sm:$0xff]  ;;  %v1226_v53 = vpop.f32.mrb[5].mxu0 }
 0x1af   :  { %4469 = vmatpush1.bf16.msra.mxu1 %v6388_v1  ;;  %v6410_v1 = vpack.c.bf16 %v629_v47, %v597_v59  ;;  %8212 = vst [vmem:[#allocation188_spill] sm:$0xff] %v6417_v18  ;;  %v2564_v59 = vsub.f32 1.0, %v6382_v15  ;;  %v816_v47 = vrot.slane %v6309_v61, %v6414_v2  ;;  %v6427_v62 = vpack.c.bf16 %v693_v19, %v661_v44  ;;  %v314_v44 = vld [vmem:[#allocation5 + $0x188] sm:$0xff]  ;;  %v1366_v34 = vpop.f32.mrb[6].mxu0 }
 0x1b0   :  { %4471 = vmatprep.subr.bf16.mxu1 %v6391_v40  ;;  %v812_v40 = vrot.slane %v6309_v61, %v6407_v50  ;;  %v757_v61 = vld [vmem:[#allocation5 + $0xf60] sm:$0xff] }
 0x1b1   :  { %8211 = vst [vmem:[#allocation187_spill] sm:$0xff] %v6410_v1  ;;  %8213 = vst [vmem:[#allocation189_spill] sm:$0xff] %v6427_v62  ;;  %v6443_v5 = vpack.c.bf16 %v757_v61, %v725_v48 }
 0x1b2   :  { %v6424_v27 = vadd.f32 %v1224_v3, %v812_v40  ;;  %v282_v3 = vld [vmem:[#allocation5 + $0x88] sm:$0xff] }
 0x1b3   :  { %4473 = vmatpush1.bf16.msra.mxu1 %v6399_v37  ;;  %v5339_v37 = vpop.eup %5338  ;;  %8215 = vst [vmem:[#allocation191_spill] sm:$0xff] %v6443_v5 }
 0x1b4   :  { %4475 = vmatprep.subr.bf16.mxu1 %v6403_v8  ;;  %v2659_v56 = vmul.f32 %v5339_v37, %v2563_v46  ;;  %v6429_v8 = vadd.f32 %v1226_v53, %v816_v47  ;;  %v5341_v30 = vpop.eup %5340  ;;  %v7931_v40 = vand.u32 2147483647, %v6424_v27  ;;  %v281_v47 = vld [vmem:[#allocation5 + $0x80] sm:$0xff]  ;;  %vm2695_vm4 = vcmp.lt.f32.partialorder %v6424_v27, 0.0 }
 0x1b5   :  { %4785 = vmatpush1.bf16.xpose.msra.mxu0 %v6061_v9  ;;  %v2660_v53 = vmul.f32 %v5341_v30, %v2564_v59  ;;  %v313_v30 = vld [vmem:[#allocation5 + $0x180] sm:$0xff] }
 0x1b6   :  { %4787 = vmatprep.subr.bf16.mxu0 %v6066_v57  ;;  %v2723_v37 = vsub.f32 0.0, %v2659_v56  ;;  %v7932_v46 = vand.u32 2147483647, %v6429_v8  ;;  %v2119_v9 = vmul.f32 -2.0, %v7931_v40  ;;  %v6448_v57 = vpack.c.bf16 %v314_v44, %v282_v3  ;;  %v345_v3 = vld [vmem:[#allocation5 + $0x280] sm:$0xff] }
 0x1b7   :  { %4477 = vmatpush1.bf16.msra.mxu1 %v6410_v1  ;;  %v2724_v19 = vsub.f32 0.0, %v2660_v53  ;;  %v346_v1 = vld [vmem:[#allocation5 + $0x288] sm:$0xff]  ;;  %v377_v44 = vld [vmem:[#allocation5 + $0x380] sm:$0xff]  ;;  %vm2696_vm5 = vcmp.lt.f32.partialorder %v6429_v8, 0.0 }
 0x1b8   :  { %4479 = vmatprep.subr.bf16.mxu1 %v6417_v18  ;;  %v6445_v41 = vsel %vm2691_vm2, %v2723_v37, %v2659_v56  ;;  %v2157_v59 = vmul.f32 1.442695, %v2119_v9  ;;  %v2120_v18 = vmul.f32 -2.0, %v7932_v46  ;;  %v6455_v56 = vpack.c.bf16 %v313_v30, %v281_v47  ;;  %v410_v37 = vld [vmem:[#allocation5 + $0x488] sm:$0xff] }
 0x1b9   :  { %8216 = vst [vmem:[#allocation192_spill] sm:$0xff] %v6445_v41  ;;  %v6452_v40 = vsel %vm2692_vm3, %v2724_v19, %v2660_v53  ;;  %v6459_v61 = vpack.c.bf16 %v378_v25, %v346_v1  ;;  %v442_v9 = vld [vmem:[#allocation5 + $0x588] sm:$0xff]  ;;  %v409_v25 = vld [vmem:[#allocation5 + $0x480] sm:$0xff] }
 0x1ba   :  { %8217 = vst [vmem:[#allocation193_spill] sm:$0xff] %v6452_v40  ;;  %5342 = vpow2.f32 %v2157_v59  ;;  %v2159_v48 = vmul.f32 1.442695, %v2120_v18  ;;  %v6464_v18 = vpack.c.bf16 %v377_v44, %v345_v3  ;;  %v441_v1 = vld [vmem:[#allocation5 + $0x580] sm:$0xff]  ;;  %v474_v53 = vld [vmem:[#allocation5 + $0x688] sm:$0xff] }
 0x1bb   :  { %4481 = vmatpush1.bf16.msra.mxu1 %v6427_v62  ;;  %v506_v19 = vld [vmem:[#allocation5 + $0x788] sm:$0xff]  ;;  %v473_v59 = vld [vmem:[#allocation5 + $0x680] sm:$0xff] }
 0x1bc   :  { %4483 = vmatprep.subr.bf16.mxu1 %v6433_v33  ;;  %5344 = vpow2.f32 %v2159_v48  ;;  %v6477_v30 = vpack.c.bf16 %v506_v19, %v474_v53  ;;  %v505_v48 = vld [vmem:[#allocation5 + $0x780] sm:$0xff]  ;;  %v538_v3 = vld [vmem:[#allocation5 + $0x888] sm:$0xff] }
 0x1bd   :  { %4789 = vmatpush1.bf16.xpose.msra.mxu0 %v6073_v31  ;;  %v6468_v31 = vpack.c.bf16 %v442_v9, %v410_v37  ;;  %v570_v44 = vld [vmem:[#allocation5 + $0x988] sm:$0xff]  ;;  %v569_v53 = vld [vmem:[#allocation5 + $0x980] sm:$0xff] }
 0x1be   :  { %4791 = vmatprep.subr.bf16.mxu0 %v6078_v54  ;;  %v6471_v54 = vpack.c.bf16 %v441_v1, %v409_v25  ;;  %v6489_v25 = vpack.c.bf16 %v570_v44, %v538_v3  ;;  %v537_v1 = vld [vmem:[#allocation5 + $0x880] sm:$0xff]  ;;  %v634_v19 = vld [vmem:[#allocation5 + $0xb88] sm:$0xff] }
 0x1bf   :  { %4485 = vmatpush1.bf16.msra.mxu1 %v6443_v5  ;;  %v6496_v5 = vpack.c.bf16 %v569_v53, %v537_v1  ;;  %v633_v3 = vld [vmem:[#allocation5 + $0xb80] sm:$0xff]  ;;  %v666_v44 = vld [vmem:[#allocation5 + $0xc88] sm:$0xff] }
 0x1c0   :  { %4519 = vmatprep.subr.bf16.mxu1 %v6448_v57  ;;  %v698_v33 = vld [vmem:[#allocation5 + $0xd88] sm:$0xff]  ;;  %v665_v53 = vld [vmem:[#allocation5 + $0xc80] sm:$0xff] }
 0x1c2   :  { %1436 = vmatmul.mubr.f32.vlgmr.msra.gmra.mrb[8].mxu1 %v6241_v14 }
 0x1c3   :  { %4521 = vmatpush1.bf16.msra.mxu1 %v6455_v56  ;;  %1577 = vmatprep.mubr.f32.mxu1 %v8104_v32 }
 0x1c4   :  { %4523 = vmatprep.subr.bf16.mxu1 %v6459_v61  ;;  %v6474_v47 = vpop.eup %5342 }
 0x1c5   :  { %4793 = vmatpush1.bf16.xpose.msra.mxu0 %v6085_v39  ;;  %v6481_v37 = vadd.f32 1.0, %v6474_v47  ;;  %v6486_v39 = vpack.c.bf16 %v505_v48, %v473_v59  ;;  %v601_v48 = vld [vmem:[#allocation5 + $0xa80] sm:$0xff]  ;;  %v2567_v1 = vsub.f32 1.0, %v6474_v47 }
 0x1c6   :  { %4795 = vmatprep.subr.bf16.mxu0 %v6090_v21  ;;  %v6483_v9 = vpop.eup %5344  ;;  %v602_v21 = vld [vmem:[#allocation5 + $0xa88] sm:$0xff]  ;;  %v6505_v62 = vpack.c.bf16 %v633_v3, %v601_v48 }
 0x1c7   :  { %4525 = vmatpush1.bf16.msra.mxu1 %v6464_v18  ;;  %5346 = vrcp.f32 %v6481_v37  ;;  %v6493_v46 = vadd.f32 1.0, %v6483_v9  ;;  %v6500_v59 = vpack.c.bf16 %v634_v19, %v602_v21  ;;  %v697_v21 = vld [vmem:[#allocation5 + $0xd80] sm:$0xff]  ;;  %v730_v19 = vld [vmem:[#allocation5 + $0xe88] sm:$0xff] }
 0x1c8   :  { %4527 = vmatprep.subr.bf16.mxu1 %v6468_v31  ;;  %v6516_v48 = vpack.c.bf16 %v697_v21, %v665_v53  ;;  %v6521_v51 = vpack.c.bf16 %v762_v6, %v730_v19  ;;  %v318_v53 = vld [vmem:[#allocation5 + $0x1a8] sm:$0xff]  ;;  %v6533_v19 = vpack.c.bf16 %v761_v60, %v729_v29  ;;  %v6547_v60 = vpack.c.bf16 %v317_v22, %v285_v55  ;;  %v445_v55 = vld [vmem:[#allocation5 + $0x5a0] sm:$0xff] }
 0x1c9   :  { %5348 = vrcp.f32 %v6493_v46 }
 0x1ca   :  { %8218 = vst [vmem:[#allocation194_spill] sm:$0xff] %v6516_v48  ;;  %8219 = vst [vmem:[#allocation195_spill] sm:$0xff] %v6521_v51 }
 0x1cb   :  { %4529 = vmatpush1.bf16.msra.mxu1 %v6471_v54  ;;  %8222 = vst [vmem:[#allocation198_spill] sm:$0xff] %v6533_v19  ;;  %8225 = vst [vmem:[#allocation201_spill] sm:$0xff] %v6547_v60 }
 0x1cc   :  { %4531 = vmatprep.subr.bf16.mxu1 %v6477_v30 }
 0x1cd   :  { %4797 = vmatpush1.bf16.xpose.msra.mxu0 %v6097_v26  ;;  %v6509_v26 = vpack.c.bf16 %v698_v33, %v666_v44  ;;  %v832_v33 = vrot.slane %v6511_v35, %v6304_v24  ;;  %v1368_v44 = vpop.f32.mrb[7].mxu0 }
 0x1ce   :  { %4799 = vmatprep.subr.bf16.mxu0 %v6102_v49  ;;  %v828_v49 = vrot.slane %v6511_v35, %v6299_v58 }
 0x1cf   :  { %4533 = vmatpush1.bf16.msra.mxu1 %v6486_v39 }
 0x1d0   :  { %4535 = vmatprep.subr.bf16.mxu1 %v6489_v25  ;;  %v6524_v28 = vadd.f32 %v1366_v34, %v828_v49 }
 0x1d1   :  { %v5347_v38 = vpop.eup %5346 }
 0x1d2   :  { %v2663_v3 = vmul.f32 %v5347_v38, %v2567_v1  ;;  %8220 = vst [vmem:[#allocation196_spill] sm:$0xff] %v6524_v28  ;;  %v2568_v38 = vsub.f32 1.0, %v6483_v9  ;;  %v6528_v1 = vadd.f32 %v1368_v44, %v832_v33  ;;  %v7950_v6 = vand.u32 2147483647, %v6524_v28  ;;  %v350_v44 = vld [vmem:[#allocation5 + $0x2a8] sm:$0xff] }
 0x1d3   :  { %4537 = vmatpush1.bf16.msra.mxu1 %v6496_v5  ;;  %v5349_v23 = vpop.eup %5348  ;;  %vm2699_vm6 = vcmp.lt.f32.partialorder %v6524_v28, 0.0  ;;  %v357_v28 = vld [vmem:[#allocation5 + $0x2e0] sm:$0xff] }
 0x1d4   :  { %4539 = vmatprep.subr.bf16.mxu1 %v6500_v59  ;;  %v2727_v21 = vsub.f32 0.0, %v2663_v3  ;;  %8221 = vst [vmem:[#allocation197_spill] sm:$0xff] %v6528_v1  ;;  %v2664_v49 = vmul.f32 %v5349_v23, %v2568_v38  ;;  %v2123_v33 = vmul.f32 -2.0, %v7950_v6  ;;  %v446_v6 = vld [vmem:[#allocation5 + $0x5a8] sm:$0xff]  ;;  %vm2700_vm7 = vcmp.lt.f32.partialorder %v6528_v1, 0.0 }
 0x1d5   :  { %4801 = vmatpush1.bf16.xpose.msra.mxu0 %v6109_v63  ;;  %v6538_v63 = vpack.c.bf16 %v318_v53, %v286_v13  ;;  %v349_v53 = vld [vmem:[#allocation5 + $0x2a0] sm:$0xff] }
 0x1d6   :  { %4803 = vmatprep.subr.bf16.mxu0 %v6114_v36  ;;  %v6535_v34 = vsel %vm2695_vm4, %v2727_v21, %v2663_v3  ;;  %v7951_v36 = vand.u32 2147483647, %v6528_v1  ;;  %v2728_v17 = vsub.f32 0.0, %v2664_v49  ;;  %v2165_v29 = vmul.f32 1.442695, %v2123_v33  ;;  %v381_v21 = vld [vmem:[#allocation5 + $0x3a0] sm:$0xff] }
 0x1d7   :  { %4541 = vmatpush1.bf16.msra.mxu1 %v6505_v62  ;;  %8223 = vst [vmem:[#allocation199_spill] sm:$0xff] %v6535_v34  ;;  %8224 = vst [vmem:[#allocation200_spill] sm:$0xff] %v6538_v63  ;;  %v6552_v3 = vpack.c.bf16 %v382_v45, %v350_v44  ;;  %v414_v33 = vld [vmem:[#allocation5 + $0x4a8] sm:$0xff]  ;;  %v413_v45 = vld [vmem:[#allocation5 + $0x4a0] sm:$0xff] }
 0x1d8   :  { %4543 = vmatprep.subr.bf16.mxu1 %v6509_v26  ;;  %v2124_v23 = vmul.f32 -2.0, %v7951_v36  ;;  %v6549_v13 = vsel %vm2696_vm5, %v2728_v17, %v2664_v49  ;;  %5350 = vpow2.f32 %v2165_v29  ;;  %v6558_v17 = vpack.c.bf16 %v381_v21, %v349_v53  ;;  %v510_v49 = vld [vmem:[#allocation5 + $0x7a8] sm:$0xff]  ;;  %v477_v29 = vld [vmem:[#allocation5 + $0x6a0] sm:$0xff] }
 0x1d9   :  { %8226 = vst [vmem:[#allocation202_spill] sm:$0xff] %v6549_v13  ;;  %8227 = vst [vmem:[#allocation203_spill] sm:$0xff] %v6552_v3  ;;  %v6562_v22 = vpack.c.bf16 %v446_v6, %v414_v33  ;;  %v542_v53 = vld [vmem:[#allocation5 + $0x8a8] sm:$0xff]  ;;  %v573_v36 = vld [vmem:[#allocation5 + $0x9a0] sm:$0xff] }
 0x1da   :  { %v2167_v38 = vmul.f32 1.442695, %v2124_v23  ;;  %8228 = vst [vmem:[#allocation204_spill] sm:$0xff] %v6558_v17  ;;  %v509_v23 = vld [vmem:[#allocation5 + $0x7a0] sm:$0xff]  ;;  %v574_v21 = vld [vmem:[#allocation5 + $0x9a8] sm:$0xff] }
 0x1db   :  { %4545 = vmatpush1.bf16.msra.mxu1 %v6516_v48  ;;  %8229 = vst [vmem:[#allocation205_spill] sm:$0xff] %v6562_v22  ;;  %v6573_v6 = vpack.c.bf16 %v509_v23, %v477_v29  ;;  %v322_v13 = vld [vmem:[#allocation5 + $0x1c8] sm:$0xff] }
 0x1dc   :  { %4547 = vmatprep.subr.bf16.mxu1 %v6521_v51  ;;  %5352 = vpow2.f32 %v2167_v38  ;;  %v6622_v34 = vpack.c.bf16 %v322_v13, %v290_v16 }
 0x1dd   :  { %4805 = vmatpush1.bf16.xpose.msra.mxu0 %v6121_v12  ;;  %v478_v12 = vld [vmem:[#allocation5 + $0x6a8] sm:$0xff]  ;;  %8232 = vst [vmem:[#allocation208_spill] sm:$0xff] %v6573_v6 }
 0x1de   :  { %4807 = vmatprep.subr.bf16.mxu0 %v5777_v10  ;;  %v6565_v10 = vpack.c.bf16 %v445_v55, %v413_v45  ;;  %v6568_v44 = vpack.c.bf16 %v510_v49, %v478_v12  ;;  %v6578_v45 = vpack.c.bf16 %v574_v21, %v542_v53  ;;  %v541_v55 = vld [vmem:[#allocation5 + $0x8a0] sm:$0xff]  ;;  %v606_v49 = vld [vmem:[#allocation5 + $0xaa8] sm:$0xff]  ;;  %8243 = vst [vmem:[#allocation219_spill] sm:$0xff] %v6622_v34 }
 0x1df   :  { %4549 = vmatpush1.bf16.msra.mxu1 %v6533_v19  ;;  %v605_v53 = vld [vmem:[#allocation5 + $0xaa0] sm:$0xff] }
 0x1e0   :  { %4583 = vmatprep.subr.bf16.mxu1 %v6538_v63  ;;  %8230 = vst [vmem:[#allocation206_spill] sm:$0xff] %v6565_v10  ;;  %8231 = vst [vmem:[#allocation207_spill] sm:$0xff] %v6568_v44  ;;  %v637_v21 = vld [vmem:[#allocation5 + $0xba0] sm:$0xff]  ;;  %v844_v63 = vrot.slane %v6511_v35, %v6407_v50 }
 0x1e1   :  { %8233 = vst [vmem:[#allocation209_spill] sm:$0xff] %v6578_v45 }
 0x1e2   :  { %1578 = vmatmul.mubr.f32.vlgmr.msra.gmra.mrb[10].mxu1 %v6241_v14  ;;  %v6570_v38 = vpop.eup %5350 }
 0x1e3   :  { %4585 = vmatpush1.bf16.msra.mxu1 %v6547_v60  ;;  %1719 = vmatprep.mubr.f32.mxu1 %v8104_v32  ;;  %v6581_v12 = vadd.f32 1.0, %v6570_v38  ;;  %v734_v60 = vld [vmem:[#allocation5 + $0xea8] sm:$0xff] }
 0x1e4   :  { %4587 = vmatprep.subr.bf16.mxu1 %v6552_v3  ;;  %v6595_v3 = vpack.c.bf16 %v637_v21, %v605_v53  ;;  %v848_v53 = vrot.slane %v6511_v35, %v6414_v2 }
 0x1e5   :  { %5354 = vrcp.f32 %v6581_v12 }
 0x1e6   :  { %v6575_v33 = vpop.eup %5352  ;;  %8236 = vst [vmem:[#allocation212_spill] sm:$0xff] %v6595_v3 }
 0x1e7   :  { %4589 = vmatpush1.bf16.msra.mxu1 %v6558_v17  ;;  %v6588_v29 = vadd.f32 1.0, %v6575_v33  ;;  %v702_v17 = vld [vmem:[#allocation5 + $0xda8] sm:$0xff]  ;;  %v2572_v40 = vsub.f32 1.0, %v6575_v33 }
 0x1e8   :  { %4591 = vmatprep.subr.bf16.mxu1 %v6562_v22  ;;  %v638_v22 = vld [vmem:[#allocation5 + $0xba8] sm:$0xff] }
 0x1e9   :  { %v6591_v23 = vpack.c.bf16 %v638_v22, %v606_v49  ;;  %5356 = vrcp.f32 %v6588_v29  ;;  %v2571_v22 = vsub.f32 1.0, %v6570_v38 }
 0x1eb   :  { %4593 = vmatpush1.bf16.msra.mxu1 %v6565_v10  ;;  %v6585_v10 = vpack.c.bf16 %v573_v36, %v541_v55  ;;  %8235 = vst [vmem:[#allocation211_spill] sm:$0xff] %v6591_v23  ;;  %v669_v55 = vld [vmem:[#allocation5 + $0xca0] sm:$0xff] }
 0x1ec   :  { %4595 = vmatprep.subr.bf16.mxu1 %v6568_v44  ;;  %v670_v44 = vld [vmem:[#allocation5 + $0xca8] sm:$0xff] }
 0x1ed   :  { %8234 = vst [vmem:[#allocation210_spill] sm:$0xff] %v6585_v10  ;;  %v6598_v36 = vpack.c.bf16 %v702_v17, %v670_v44  ;;  %v733_v44 = vld [vmem:[#allocation5 + $0xea0] sm:$0xff] }
 0x1ef   :  { %4597 = vmatpush1.bf16.msra.mxu1 %v6573_v6  ;;  %8237 = vst [vmem:[#allocation213_spill] sm:$0xff] %v6598_v36  ;;  %v701_v6 = vld [vmem:[#allocation5 + $0xda0] sm:$0xff]  ;;  %v5355_v21 = vpop.eup %5354 }
 0x1f0   :  { %4599 = vmatprep.subr.bf16.mxu1 %v6578_v45  ;;  %v766_v45 = vld [vmem:[#allocation5 + $0xfa8] sm:$0xff]  ;;  %v6602_v49 = vpack.c.bf16 %v701_v6, %v669_v55 }
 0x1f1   :  { %v6609_v17 = vpack.c.bf16 %v766_v45, %v734_v60 }
 0x1f2   :  { %8238 = vst [vmem:[#allocation214_spill] sm:$0xff] %v6602_v49 }
 0x1f3   :  { %4601 = vmatpush1.bf16.msra.mxu1 %v6585_v10  ;;  %v1508_v10 = vpop.f32.mrb[8].mxu0  ;;  %8239 = vst [vmem:[#allocation215_spill] sm:$0xff] %v6609_v17  ;;  %v5357_v35 = vpop.eup %5356 }
 0x1f4   :  { %4603 = vmatprep.subr.bf16.mxu1 %v6591_v23  ;;  %v765_v23 = vld [vmem:[#allocation5 + $0xfa0] sm:$0xff]  ;;  %v1510_v20 = vpop.f32.mrb[9].mxu0  ;;  %v6611_v6 = vadd.f32 %v1508_v10, %v844_v63 }
 0x1f5   :  { %v6613_v55 = vadd.f32 %v1510_v20, %v848_v53  ;;  %v289_v63 = vld [vmem:[#allocation5 + $0xc0] sm:$0xff]  ;;  %v2668_v20 = vmul.f32 %v5357_v35, %v2572_v40  ;;  %v354_v53 = vld [vmem:[#allocation5 + $0x2c8] sm:$0xff] }
 0x1f6   :  { %8240 = vst [vmem:[#allocation216_spill] sm:$0xff] %v6611_v6  ;;  %v7968_v45 = vand.u32 2147483647, %v6611_v6  ;;  %v321_v10 = vld [vmem:[#allocation5 + $0x1c0] sm:$0xff]  ;;  %vm2703_vm8 = vcmp.lt.f32.partialorder %v6611_v6, 0.0 }
 0x1f7   :  { %4605 = vmatpush1.bf16.msra.mxu1 %v6595_v3  ;;  %v2667_v3 = vmul.f32 %v5355_v21, %v2571_v22  ;;  %8241 = vst [vmem:[#allocation217_spill] sm:$0xff] %v6613_v55  ;;  %v7970_v22 = vand.u32 2147483647, %v6613_v55  ;;  %v386_v21 = vld [vmem:[#allocation5 + $0x3c8] sm:$0xff]  ;;  %v6632_v16 = vpack.c.bf16 %v321_v10, %v289_v63  ;;  %v385_v35 = vld [vmem:[#allocation5 + $0x3c0] sm:$0xff]  ;;  %vm2704_vm9 = vcmp.lt.f32.partialorder %v6613_v55, 0.0 }
 0x1f8   :  { %4607 = vmatprep.subr.bf16.mxu1 %v6598_v36  ;;  %v6618_v36 = vpack.c.bf16 %v765_v23, %v733_v44  ;;  %v2127_v23 = vmul.f32 -2.0, %v7968_v45  ;;  %v2732_v44 = vsub.f32 0.0, %v2668_v20  ;;  %v6636_v13 = vpack.c.bf16 %v386_v21, %v354_v53  ;;  %v417_v53 = vld [vmem:[#allocation5 + $0x4c0] sm:$0xff]  ;;  %v482_v21 = vld [vmem:[#allocation5 + $0x6c8] sm:$0xff] }
 0x1f9   :  { %v2731_v60 = vsub.f32 0.0, %v2667_v3  ;;  %8245 = vst [vmem:[#allocation221_spill] sm:$0xff] %v6632_v16  ;;  %v774_v55 = vld [vmem:[#allocation5 + $0xfe8] sm:$0xff] }
 0x1fa   :  { %8242 = vst [vmem:[#allocation218_spill] sm:$0xff] %v6618_v36  ;;  %v2173_v40 = vmul.f32 1.442695, %v2127_v23  ;;  %8246 = vst [vmem:[#allocation222_spill] sm:$0xff] %v6636_v13 }
 0x1fb   :  { %4609 = vmatpush1.bf16.msra.mxu1 %v6602_v49  ;;  %v6625_v41 = vsel %vm2699_vm6, %v2731_v60, %v2667_v3  ;;  %v2128_v49 = vmul.f32 -2.0, %v7970_v22  ;;  %v353_v3 = vld [vmem:[#allocation5 + $0x2c0] sm:$0xff]  ;;  %v6638_v60 = vsel %vm2700_vm7, %v2732_v44, %v2668_v20 }
 0x1fc   :  { %4611 = vmatprep.subr.bf16.mxu1 %v6609_v17  ;;  %8244 = vst [vmem:[#allocation220_spill] sm:$0xff] %v6625_v41  ;;  %8247 = vst [vmem:[#allocation223_spill] sm:$0xff] %v6638_v60  ;;  %v418_v17 = vld [vmem:[#allocation5 + $0x4c8] sm:$0xff]  ;;  %5358 = vpow2.f32 %v2173_v40  ;;  %v6642_v63 = vpack.c.bf16 %v385_v35, %v353_v3  ;;  %v449_v20 = vld [vmem:[#allocation5 + $0x5c0] sm:$0xff] }
 0x1fd   :  { %v2175_v45 = vmul.f32 1.442695, %v2128_v49  ;;  %v450_v41 = vld [vmem:[#allocation5 + $0x5c8] sm:$0xff]  ;;  %v6649_v23 = vpack.c.bf16 %v449_v20, %v417_v53  ;;  %v481_v44 = vld [vmem:[#allocation5 + $0x6c0] sm:$0xff] }
 0x1fe   :  { %8248 = vst [vmem:[#allocation224_spill] sm:$0xff] %v6642_v63  ;;  %v6646_v10 = vpack.c.bf16 %v450_v41, %v418_v17  ;;  %v514_v49 = vld [vmem:[#allocation5 + $0x7c8] sm:$0xff]  ;;  %v513_v40 = vld [vmem:[#allocation5 + $0x7c0] sm:$0xff] }
 0x1ff   :  { %4613 = vmatpush1.bf16.msra.mxu1 %v6618_v36  ;;  %5360 = vpow2.f32 %v2175_v45  ;;  %8250 = vst [vmem:[#allocation226_spill] sm:$0xff] %v6649_v23  ;;  %v546_v3 = vld [vmem:[#allocation5 + $0x8c8] sm:$0xff]  ;;  %v6657_v41 = vpack.c.bf16 %v513_v40, %v481_v44  ;;  %v545_v53 = vld [vmem:[#allocation5 + $0x8c0] sm:$0xff] }
 0x200   :  { %4647 = vmatprep.subr.bf16.mxu1 %v6622_v34  ;;  %8249 = vst [vmem:[#allocation225_spill] sm:$0xff] %v6646_v10  ;;  %v578_v45 = vld [vmem:[#allocation5 + $0x9c8] sm:$0xff]  ;;  %v577_v20 = vld [vmem:[#allocation5 + $0x9c0] sm:$0xff] }
 0x201   :  { %8253 = vst [vmem:[#allocation229_spill] sm:$0xff] %v6657_v41  ;;  %v6660_v17 = vpack.c.bf16 %v578_v45, %v546_v3  ;;  %v609_v40 = vld [vmem:[#allocation5 + $0xac0] sm:$0xff] }
 0x202   :  { %1720 = vmatmul.mubr.f32.vlgmr.msra.gmra.mrb[12].mxu1 %v6241_v14  ;;  %v6652_v14 = vpack.c.bf16 %v514_v49, %v482_v21  ;;  %v610_v21 = vld [vmem:[#allocation5 + $0xac8] sm:$0xff]  ;;  %v641_v3 = vld [vmem:[#allocation5 + $0xbc0] sm:$0xff] }
 0x203   :  { %4649 = vmatpush1.bf16.msra.mxu1 %v6632_v16  ;;  %1861 = vmatprep.mubr.f32.mxu1 %v8104_v32  ;;  %8254 = vst [vmem:[#allocation230_spill] sm:$0xff] %v6660_v17  ;;  %v642_v49 = vld [vmem:[#allocation5 + $0xbc8] sm:$0xff] }
 0x204   :  { %4651 = vmatprep.subr.bf16.mxu1 %v6636_v13  ;;  %8251 = vst [vmem:[#allocation227_spill] sm:$0xff] %v6652_v14  ;;  %v6672_v44 = vpack.c.bf16 %v642_v49, %v610_v21  ;;  %v673_v21 = vld [vmem:[#allocation5 + $0xcc0] sm:$0xff]  ;;  %v738_v13 = vld [vmem:[#allocation5 + $0xec8] sm:$0xff] }
 0x205   :  { %v705_v49 = vld [vmem:[#allocation5 + $0xdc0] sm:$0xff]  ;;  %v770_v16 = vld [vmem:[#allocation5 + $0xfc8] sm:$0xff] }
 0x206   :  { %v6654_v35 = vpop.eup %5358  ;;  %8258 = vst [vmem:[#allocation234_spill] sm:$0xff] %v6672_v44 }
 0x207   :  { %4653 = vmatpush1.bf16.msra.mxu1 %v6642_v63  ;;  %8252 = vst [vmem:[#allocation228_spill] sm:$0xff] %v6654_v35  ;;  %v6668_v63 = vpack.c.bf16 %v577_v20, %v545_v53  ;;  %v6679_v53 = vpack.c.bf16 %v641_v3, %v609_v40  ;;  %v2575_v60 = vsub.f32 1.0, %v6654_v35 }
 0x208   :  { %4655 = vmatprep.subr.bf16.mxu1 %v6646_v10  ;;  %v6665_v10 = vadd.f32 1.0, %v6654_v35  ;;  %v294_v35 = vld [vmem:[#allocation5 + $0xe8] sm:$0xff] }
 0x209   :  { %v6662_v22 = vpop.eup %5360  ;;  %8257 = vst [vmem:[#allocation233_spill] sm:$0xff] %v6668_v63  ;;  %8260 = vst [vmem:[#allocation236_spill] sm:$0xff] %v6679_v53 }
 0x20a   :  { %8255 = vst [vmem:[#allocation231_spill] sm:$0xff] %v6662_v22  ;;  %8256 = vst [vmem:[#allocation232_spill] sm:$0xff] %v6665_v10  ;;  %5362 = vrcp.f32 %v6665_v10  ;;  %v6675_v45 = vadd.f32 1.0, %v6662_v22  ;;  %v6685_v10 = vld [vmem:[#allocation7 + $0x10] sm:$0xff] }
 0x20b   :  { %4657 = vmatpush1.bf16.msra.mxu1 %v6649_v23  ;;  %v706_v23 = vld [vmem:[#allocation5 + $0xdc8] sm:$0xff]  ;;  %v860_v40 = vrot.slane %v6685_v10, %v6299_v58  ;;  %v880_v51 = vrot.slane %v6685_v10, %v6414_v2 }
 0x20c   :  { %4659 = vmatprep.subr.bf16.mxu1 %v6652_v14  ;;  %8259 = vst [vmem:[#allocation235_spill] sm:$0xff] %v6675_v45  ;;  %v674_v14 = vld [vmem:[#allocation5 + $0xcc8] sm:$0xff]  ;;  %5364 = vrcp.f32 %v6675_v45 }
 0x20d   :  { %v6682_v20 = vpack.c.bf16 %v706_v23, %v674_v14  ;;  %v1650_v23 = vpop.f32.mrb[10].mxu0  ;;  %v864_v14 = vrot.slane %v6685_v10, %v6304_v24 }
 0x20e   :  { %v1652_v3 = vpop.f32.mrb[11].mxu0 }
 0x20f   :  { %4661 = vmatpush1.bf16.msra.mxu1 %v6657_v41  ;;  %v4185_v41 = vld [vmem:[#allocation10] ss:$0 sm:$0xff]  ;;  %8261 = vst [vmem:[#allocation237_spill] sm:$0xff] %v6682_v20 }
 0x210   :  { %4663 = vmatprep.subr.bf16.mxu1 %v6660_v17 }
 0x213   :  { %4665 = vmatpush1.bf16.msra.mxu1 %v6668_v63  ;;  %v6688_v63 = vpack.c.bf16 %v705_v49, %v673_v21  ;;  %v6697_v21 = vadd.f32 %v1650_v23, %v860_v40  ;;  %v6699_v49 = vadd.f32 %v1652_v3, %v864_v14  ;;  %v293_v40 = vld [vmem:[#allocation5 + $0xe0] sm:$0xff]  ;;  %v390_v3 = vld [vmem:[#allocation5 + $0x3e8] sm:$0xff] }
 0x214   :  { %4667 = vmatprep.subr.bf16.mxu1 %v6672_v44  ;;  %v5363_v44 = vpop.eup %5362  ;;  %v325_v23 = vld [vmem:[#allocation5 + $0x1e0] sm:$0xff] }
 0x215   :  { %v247_v17 = vpop.f32.mrb[0].mxu1  ;;  %8262 = vst [vmem:[#allocation238_spill] sm:$0xff] %v6688_v63  ;;  %v2671_v45 = vmul.f32 %v5363_v44, %v2575_v60  ;;  %v7997_v60 = vand.u32 2147483647, %v6699_v49  ;;  %v358_v44 = vld [vmem:[#allocation5 + $0x2e8] sm:$0xff]  ;;  %vm2707_vm11 = vcmp.lt.f32.partialorder %v6697_v21, 0.0 }
 0x216   :  { %v257_v34 = vadd.f32 %v4185_v41, %v247_v17  ;;  %v4249_v36 = vpop.f32.mrb[1].mxu1  ;;  %v6695_v41 = vpack.c.bf16 %v770_v16, %v738_v13  ;;  %v769_v17 = vld [vmem:[#allocation5 + $0xfc0] sm:$0xff]  ;;  %v7996_v16 = vand.u32 2147483647, %v6697_v21  ;;  %v5365_v13 = vpop.eup %5364  ;;  %vm2708_vm12 = vcmp.lt.f32.partialorder %v6699_v49, 0.0 }
 0x217   :  { %4669 = vmatpush1.bf16.msra.mxu1 %v6679_v53  ;;  %v737_v36 = vld [vmem:[#allocation5 + $0xec0] sm:$0xff]  ;;  %v326_v53 = vld [vmem:[#allocation5 + $0x1e8] sm:$0xff]  ;;  %v2735_v14 = vsub.f32 0.0, %v2671_v45  ;;  %v2132_v6 = vmul.f32 -2.0, %v7997_v60  ;;  %v6726_v60 = vld [vmem:[#allocation2] sm:$0xff] }
 0x218   :  { %5287 = vst [vmem:[#allocation11] sm:$0xff] %v257_v34  ;;  %4671 = vmatprep.subr.bf16.mxu1 %v6682_v20  ;;  %8263 = vst [vmem:[#allocation239_spill] sm:$0xff] %v6695_v41  ;;  %v6702_v1 = vpack.c.bf16 %v769_v17, %v737_v36  ;;  %v2576_v34 = vsub.f32 1.0, %v6662_v22  ;;  %v6708_v20 = vpack.c.bf16 %v326_v53, %v294_v35  ;;  %v2131_v17 = vmul.f32 -2.0, %v7996_v16 }
 0x219   :  { %v6718_v35 = vpack.c.bf16 %v325_v23, %v293_v40  ;;  %v6721_v22 = vpack.c.bf16 %v390_v3, %v358_v44  ;;  %v453_v44 = vld [vmem:[#allocation5 + $0x5e0] sm:$0xff]  ;;  %v486_v3 = vld [vmem:[#allocation5 + $0x6e8] sm:$0xff] }
 0x21a   :  { %8264 = vst [vmem:[#allocation240_spill] sm:$0xff] %v6702_v1  ;;  %8265 = vst [vmem:[#allocation241_spill] sm:$0xff] %v6708_v20  ;;  %v2672_v36 = vmul.f32 %v5365_v13, %v2576_v34  ;;  %v389_v34 = vld [vmem:[#allocation5 + $0x3e0] sm:$0xff]  ;;  %v2183_v13 = vmul.f32 1.442695, %v2132_v6 }
 0x21b   :  { %4673 = vmatpush1.bf16.msra.mxu1 %v6688_v63  ;;  %v6713_v63 = vsel %vm2703_vm8, %v2735_v14, %v2671_v45  ;;  %8267 = vst [vmem:[#allocation243_spill] sm:$0xff] %v6718_v35  ;;  %8268 = vst [vmem:[#allocation244_spill] sm:$0xff] %v6721_v22  ;;  %v422_v45 = vld [vmem:[#allocation5 + $0x4e8] sm:$0xff]  ;;  %v6730_v40 = vpack.c.bf16 %v389_v34, %v357_v28  ;;  %v421_v6 = vld [vmem:[#allocation5 + $0x4e0] sm:$0xff] }
 0x21c   :  { %4675 = vmatprep.subr.bf16.mxu1 %v6695_v41  ;;  %8266 = vst [vmem:[#allocation242_spill] sm:$0xff] %v6713_v63  ;;  %v2736_v53 = vsub.f32 0.0, %v2672_v36  ;;  %v2181_v41 = vmul.f32 1.442695, %v2131_v17  ;;  %v454_v14 = vld [vmem:[#allocation5 + $0x5e8] sm:$0xff]  ;;  %v485_v28 = vld [vmem:[#allocation5 + $0x6e0] sm:$0xff] }
 0x21d   :  { %8270 = vst [vmem:[#allocation246_spill] sm:$0xff] %v6730_v40  ;;  %v6734_v23 = vpack.c.bf16 %v454_v14, %v422_v45  ;;  %v582_v34 = vld [vmem:[#allocation5 + $0x9e8] sm:$0xff]  ;;  %v2233_v63 = vand.u32 2147483647, %v6376_v0 }
 0x21e   :  { %v6724_v16 = vsel %vm2704_vm9, %v2736_v53, %v2672_v36  ;;  %5366 = vpow2.f32 %v2181_v41  ;;  %v518_v36 = vld [vmem:[#allocation5 + $0x7e8] sm:$0xff]  ;;  %v6737_v41 = vpack.c.bf16 %v453_v44, %v421_v6  ;;  %v517_v53 = vld [vmem:[#allocation5 + $0x7e0] sm:$0xff] }
 0x21f   :  { %4677 = vmatpush1.bf16.msra.mxu1 %v6702_v1  ;;  %8269 = vst [vmem:[#allocation245_spill] sm:$0xff] %v6724_v16  ;;  %5368 = vpow2.f32 %v2183_v13  ;;  %8271 = vst [vmem:[#allocation247_spill] sm:$0xff] %v6734_v23  ;;  %v6740_v17 = vpack.c.bf16 %v518_v36, %v486_v3  ;;  %v6745_v45 = vpack.c.bf16 %v517_v53, %v485_v28  ;;  %v549_v6 = vld [vmem:[#allocation5 + $0x8e0] sm:$0xff]  ;;  %v614_v3 = vld [vmem:[#allocation5 + $0xae8] sm:$0xff]  ;;  %v6763_v53 = vsub.s32 1, %v6295_v4 }
 0x220   :  { %4711 = vmatprep.subr.bf16.mxu1 %v6708_v20  ;;  %8272 = vst [vmem:[#allocation248_spill] sm:$0xff] %v6737_v41  ;;  %v581_v44 = vld [vmem:[#allocation5 + $0x9e0] sm:$0xff]  ;;  %5370 = vlog2.f32 %v6385_v52  ;;  %v646_v36 = vld [vmem:[#allocation5 + $0xbe8] sm:$0xff]  ;;  %vm6804_vm10 = vcmp.lt.f32.partialorder %v2233_v63, 0.0004427343 }
 0x221   :  { %8273 = vst [vmem:[#allocation249_spill] sm:$0xff] %v6740_v17  ;;  %8275 = vst [vmem:[#allocation251_spill] sm:$0xff] %v6745_v45  ;;  %v6760_v28 = vpack.c.bf16 %v581_v44, %v549_v6  ;;  %v6767_v52 = vpack.c.bf16 %v646_v36, %v614_v3  ;;  %v6773_v6 = vld [vmem:[#allocation7] sm:$0xff] }
 0x222   :  { %1862 = vmatmul.mubr.f32.vlgmr.msra.gmra.mrb[14].mxu1 %v6726_v60  ;;  %v792_v3 = vrot.slane %v6773_v6, %v6763_v53  ;;  %v677_v20 = vld [vmem:[#allocation5 + $0xce0] sm:$0xff] }
 0x223   :  { %4713 = vmatpush1.bf16.msra.mxu1 %v6718_v35  ;;  %2003 = vmatprep.mubr.f32.mxu1 %v8104_v32  ;;  %v550_v32 = vld [vmem:[#allocation5 + $0x8e8] sm:$0xff]  ;;  %8278 = vst [vmem:[#allocation254_spill] sm:$0xff] %v6760_v28  ;;  %8279 = vst [vmem:[#allocation255_spill] sm:$0xff] %v6767_v52  ;;  %v709_v1 = vld [vmem:[#allocation5 + $0xde0] sm:$0xff] }
 0x224   :  { %4715 = vmatprep.subr.bf16.mxu1 %v6721_v22  ;;  %v6748_v14 = vpack.c.bf16 %v582_v34, %v550_v32  ;;  %v6757_v22 = vsub.s32 0, %v6295_v4  ;;  %v613_v32 = vld [vmem:[#allocation5 + $0xae0] sm:$0xff]  ;;  %v678_v35 = vld [vmem:[#allocation5 + $0xce8] sm:$0xff] }
 0x225   :  { %v645_v34 = vld [vmem:[#allocation5 + $0xbe0] sm:$0xff] }
 0x226   :  { %8276 = vst [vmem:[#allocation252_spill] sm:$0xff] %v6748_v14  ;;  %v788_v44 = vrot.slane %v6773_v6, %v6757_v22  ;;  %v6782_v36 = vpack.c.bf16 %v645_v34, %v613_v32  ;;  %v2239_v34 = vmul.f32 -0.5, %v6382_v15 }
 0x227   :  { %4717 = vmatpush1.bf16.msra.mxu1 %v6730_v40 }
 0x228   :  { %4719 = vmatprep.subr.bf16.mxu1 %v6734_v23  ;;  %v6742_v13 = vpop.eup %5366  ;;  %8281 = vst [vmem:[#allocation257_spill] sm:$0xff] %v6782_v36 }
 0x229   :  { %8274 = vst [vmem:[#allocation250_spill] sm:$0xff] %v6742_v13  ;;  %v6750_v40 = vpop.eup %5368  ;;  %v6754_v23 = vadd.f32 1.0, %v6742_v13  ;;  %v2579_v11 = vsub.f32 1.0, %v6742_v13  ;;  %v773_v13 = vld [vmem:[#allocation5 + $0xfe0] sm:$0xff] }
 0x22a   :  { %v5371_v19 = vpop.eup %5370  ;;  %v2580_v63 = vsub.f32 1.0, %v6750_v40 }
 0x22b   :  { %4721 = vmatpush1.bf16.msra.mxu1 %v6737_v41  ;;  %8277 = vst [vmem:[#allocation253_spill] sm:$0xff] %v6754_v23  ;;  %5372 = vrcp.f32 %v6754_v23  ;;  %v2230_v41 = vmul.f32 -0.5, %v6376_v0 }
 0x22c   :  { %4723 = vmatprep.subr.bf16.mxu1 %v6740_v17  ;;  %v6770_v17 = vadd.f32 1.0, %v6750_v40 }
 0x22d   :  { %v2231_v16 = vadd.f32 1.0, %v2230_v41  ;;  %v876_v41 = vrot.slane %v6685_v10, %v6407_v50  ;;  %v2240_v10 = vadd.f32 1.0, %v2239_v34 }
 0x22e   :  { %8280 = vst [vmem:[#allocation256_spill] sm:$0xff] %v6770_v17  ;;  %5374 = vrcp.f32 %v6770_v17  ;;  %v742_v17 = vld [vmem:[#allocation5 + $0xee8] sm:$0xff] }
 0x22f   :  { %4725 = vmatpush1.bf16.msra.mxu1 %v6745_v45  ;;  %v710_v45 = vld [vmem:[#allocation5 + $0xde8] sm:$0xff]  ;;  %5376 = vlog2.f32 %v6395_v43 }
 0x230   :  { %4727 = vmatprep.subr.bf16.mxu1 %v6748_v14  ;;  %v6785_v14 = vpack.c.bf16 %v710_v45, %v678_v35  ;;  %v6794_v35 = vpack.c.bf16 %v709_v1, %v677_v20  ;;  %v1792_v45 = vpop.f32.mrb[12].mxu0 }
 0x231   :  { %v6813_v48 = vadd.f32 %v1792_v45, %v876_v41 }
 0x232   :  { %8282 = vst [vmem:[#allocation258_spill] sm:$0xff] %v6785_v14  ;;  %8283 = vst [vmem:[#allocation259_spill] sm:$0xff] %v6794_v35 }
 0x233   :  { %4729 = vmatpush1.bf16.msra.mxu1 %v6760_v28  ;;  %vm2711_vm3 = vcmp.lt.f32.partialorder %v6813_v48, 0.0 }
 0x234   :  { %4731 = vmatprep.subr.bf16.mxu1 %v6767_v52  ;;  %v2229_v52 = vmul.f32 0.6931472, %v5371_v19 }
 0x235   :  { %v1011_v23 = vpop.f32.mrb[2].mxu1 }
 0x236   :  { %v6788_v43 = vadd.f32 %v1011_v23, %v788_v44  ;;  %v1013_v28 = vpop.f32.mrb[3].mxu1  ;;  %v6801_v23 = vpack.c.bf16 %v774_v55, %v742_v17  ;;  %v741_v44 = vld [vmem:[#allocation5 + $0xee0] sm:$0xff] }
 0x237   :  { %v6791_v32 = vadd.f32 %v1013_v28, %v792_v3  ;;  %4733 = vmatpush1.bf16.msra.mxu1 %v6782_v36  ;;  %v1794_v28 = vpop.f32.mrb[13].mxu0  ;;  %v5373_v3 = vpop.eup %5372  ;;  %v2232_v36 = vmul.f32 %v6376_v0, %v2231_v16  ;;  %v6818_v0 = vpack.c.bf16 %v773_v13, %v741_v44  ;;  %v2242_v44 = vand.u32 2147483647, %v6382_v15 }
 0x238   :  { %4735 = vmatprep.subr.bf16.mxu1 %v6785_v14  ;;  %8284 = vst [vmem:[#allocation260_spill] sm:$0xff] %v6801_v23  ;;  %v8287_v14 = vand.u32 2147483647, %v6788_v43  ;;  %v2675_v17 = vmul.f32 %v5373_v3, %v2579_v11  ;;  %v5375_v16 = vpop.eup %5374  ;;  %v8025_v11 = vand.u32 2147483647, %v6813_v48  ;;  %vm2689_vm1 = vcmp.lt.f32.partialorder %v6788_v43, 0.0 }
 0x239   :  { %v8022_v20 = vand.u32 2147483647, %v6791_v32  ;;  %8288 = vst [vmem:[#allocation261_spill] sm:$0xff] %v6818_v0  ;;  %v5377_v41 = vpop.eup %5376  ;;  %v2676_v3 = vmul.f32 %v5375_v16, %v2580_v63  ;;  %v2235_v13 = vsel %vm6804_vm10, %v2232_v36, %v2229_v52  ;;  %v8289_v52 = vand.u32 2147483647, %v6321_v42 }
 0x23a   :  { %v2113_v55 = vmul.f32 -2.0, %v8287_v14  ;;  %v2739_v14 = vsub.f32 0.0, %v2675_v17  ;;  %v2238_v63 = vmul.f32 0.6931472, %v5377_v41  ;;  %vm2243_vm13 = vcmp.lt.f32.partialorder %v2242_v44, 0.0004427343 }
 0x23b   :  { %v2114_v50 = vmul.f32 -2.0, %v8022_v20  ;;  %4737 = vmatpush1.bf16.msra.mxu1 %v6794_v35  ;;  %v6824_v20 = vadd.f32 %v1794_v28, %v880_v51  ;;  %v2740_v34 = vsub.f32 0.0, %v2676_v3  ;;  %v2241_v51 = vmul.f32 %v6382_v15, %v2240_v10 }
 0x23c   :  { %v2145_v19 = vmul.f32 1.442695, %v2113_v55  ;;  %4739 = vmatprep.subr.bf16.mxu1 %v6801_v23  ;;  %v6829_v35 = vsel %vm2707_vm11, %v2739_v14, %v2675_v17  ;;  %v2135_v55 = vmul.f32 -2.0, %v8025_v11  ;;  %v2499_v36 = vadd.f32 %v2235_v13, %v8289_v52 }
 0x23d   :  { %v2147_v45 = vmul.f32 1.442695, %v2114_v50  ;;  %v8024_v50 = vand.u32 2147483647, %v6824_v20  ;;  %v6840_v28 = vsel %vm2708_vm12, %v2740_v34, %v2676_v3  ;;  %v2244_v15 = vsel %vm2243_vm13, %v2241_v51, %v2238_v63 }
 0x23e   :  { %5378 = vpow2.f32 %v2145_v19  ;;  %8290 = vst [vmem:[#allocation262_spill] sm:$0xff] %v6840_v28  ;;  %v2189_v1 = vmul.f32 1.442695, %v2135_v55  ;;  %v4188_v19 = vadd.f32 -0.6931472, %v2499_v36  ;;  %v2266_v13 = vmul.f32 -0.5, %v6474_v47 }
 0x23f   :  { %5380 = vpow2.f32 %v2147_v45  ;;  %4741 = vmatpush1.bf16.msra.mxu1 %v6818_v0  ;;  %v2136_v17 = vmul.f32 -2.0, %v8024_v50  ;;  %v2269_v36 = vand.u32 2147483647, %v6474_v47  ;;  %vm2690_vm2 = vcmp.lt.f32.partialorder %v6791_v32, 0.0 }
 0x240   :  { %5031 = vmatprep.subr.bf16.mxu1 %v6448_v57  ;;  %5382 = vpow2.f32 %v2189_v1  ;;  %v8291_v57 = vand.u32 2147483647, %v6323_v7  ;;  %v2797_v41 = vrot.slane %v4188_v19, 4  ;;  %v2267_v52 = vadd.f32 1.0, %v2266_v13 }
 0x241   :  { %v2191_v16 = vmul.f32 1.442695, %v2136_v17  ;;  %v2275_v1 = vmul.f32 -0.5, %v6483_v9  ;;  %vm6890_vm14 = vcmp.lt.f32.partialorder %v2269_v36, 0.0004427343  ;;  %vm2712_vm5 = vcmp.lt.f32.partialorder %v6824_v20, 0.0 }
 0x242   :  { %2004 = vmatmul.mubr.f32.vlgmr.msra.gmra.mrb[16].mxu1 %v6726_v60  ;;  %v2500_v14 = vadd.f32 %v2244_v15, %v8291_v57  ;;  %v6856_v7 = vadd.f32 %v4188_v19, %v2797_v41 }
 0x243   :  { %5384 = vpow2.f32 %v2191_v16 }
 0x244   :  { %5386 = vlog2.f32 %v6481_v37  ;;  %v4189_v3 = vadd.f32 -0.6931472, %v2500_v14 }
 0x246   :  { %v2803_v51 = vrot.slane %v4189_v3, 4 }
 0x248   :  { %v5379_v10 = vpop.eup %5378  ;;  %5033 = vmatpush1.bf16.xpose.msra.mxu1 %v6455_v56  ;;  %v6859_v56 = vsub.s32 4, %v6295_v4 }
 0x249   :  { %v6849_v42 = vpop.eup %5380  ;;  %v2209_v45 = vadd.f32 1.0, %v5379_v10  ;;  %5035 = vmatprep.subr.bf16.mxu1 %v6459_v61  ;;  %v2212_v37 = vmul.f32 -0.5, %v5379_v10  ;;  %v6863_v61 = vsub.s32 5, %v6295_v4  ;;  %v2215_v19 = vand.u32 2147483647, %v5379_v10 }
 0x24a   :  { %v2218_v60 = vadd.f32 1.0, %v6849_v42  ;;  %v6854_v44 = vpop.eup %5382  ;;  %v2221_v34 = vmul.f32 -0.5, %v6849_v42  ;;  %v804_v15 = vrot.slane %v6773_v6, %v6859_v56  ;;  %v2224_v14 = vand.u32 2147483647, %v6849_v42 }
 0x24b   :  { %5388 = vlog2.f32 %v2209_v45  ;;  %v6866_v55 = vadd.f32 1.0, %v6854_v44  ;;  %v2213_v16 = vadd.f32 1.0, %v2212_v37  ;;  %v2562_v50 = vsub.f32 1.0, %v6849_v42 }
 0x24c   :  { %5390 = vrcp.f32 %v2209_v45  ;;  %v2222_v57 = vadd.f32 1.0, %v2221_v34  ;;  %v6885_v45 = vadd.f32 %v4189_v3, %v2803_v51  ;;  %v2561_v34 = vsub.f32 1.0, %v5379_v10 }
 0x24d   :  { %5392 = vlog2.f32 %v2218_v60  ;;  %v6868_v63 = vpop.eup %5384  ;;  %v2214_v51 = vmul.f32 %v5379_v10, %v2213_v16  ;;  %vm6898_vm15 = vcmp.lt.f32.partialorder %v2215_v19, 0.0004427343  ;;  %vm6905_vm0 = vcmp.lt.f32.partialorder %v2224_v14, 0.0004427343 }
 0x24e   :  { %5394 = vrcp.f32 %v2218_v60  ;;  %v5387_v4 = vpop.eup %5386  ;;  %v6883_v41 = vadd.f32 1.0, %v6868_v63  ;;  %v1934_v28 = vpop.f32.mrb[14].mxu0 }
 0x24f   :  { %5396 = vrcp.f32 %v6866_v55  ;;  %v6894_v37 = vmul.f32 0.6931472, %v5387_v4  ;;  %v2223_v4 = vmul.f32 %v6849_v42, %v2222_v57 }
 0x250   :  { %5037 = vmatpush1.bf16.xpose.msra.mxu1 %v6464_v18  ;;  %5398 = vlog2.f32 %v6493_v46  ;;  %v808_v18 = vrot.slane %v6773_v6, %v6863_v61  ;;  %v2276_v46 = vadd.f32 1.0, %v2275_v1 }
 0x251   :  { %5039 = vmatprep.subr.bf16.mxu1 %v6468_v31  ;;  %v6888_v31 = vmul.f32 %v6474_v47, %v2267_v52  ;;  %5400 = vrcp.f32 %v6883_v41 }
 0x255   :  { %v5389_v13 = vpop.eup %5388  ;;  %v1153_v6 = vpop.f32.mrb[4].mxu1 }
 0x256   :  { %v5391_v11 = vpop.eup %5390  ;;  %v2211_v3 = vmul.f32 0.6931472, %v5389_v13  ;;  %v6902_v52 = vadd.f32 %v1153_v6, %v804_v15  ;;  %v1155_v36 = vpop.f32.mrb[5].mxu1  ;;  %v2583_v15 = vsub.f32 1.0, %v6854_v44 }
 0x257   :  { %v5393_v1 = vpop.eup %5392  ;;  %v2657_v17 = vmul.f32 %v5391_v11, %v2561_v34  ;;  %v6909_v23 = vadd.f32 %v1155_v36, %v808_v18  ;;  %v6915_v6 = vpop.f32.mrb[15].mxu0  ;;  %v8298_v11 = vand.u32 2147483647, %v6788_v43  ;;  %v2278_v34 = vand.u32 2147483647, %v6483_v9 }
 0x258   :  { %v5395_v13 = vpop.eup %5394  ;;  %v2217_v10 = vsel %vm6898_vm15, %v2214_v51, %v2211_v3  ;;  %v2220_v16 = vmul.f32 0.6931472, %v5393_v1  ;;  %v8028_v19 = vand.u32 2147483647, %v6902_v52  ;;  %5041 = vmatpush1.bf16.xpose.msra.mxu1 %v6471_v54  ;;  %vm2693_vm7 = vcmp.lt.f32.partialorder %v6902_v52, 0.0 }
 0x259   :  { %v2497_v42 = vadd.f32 %v2217_v10, %v8298_v11  ;;  %v2721_v57 = vsub.f32 0.0, %v2657_v17  ;;  %v2658_v14 = vmul.f32 %v5395_v13, %v2562_v50  ;;  %v2086_v18 = vand.u32 2147483647, %v6909_v23  ;;  %5043 = vmatprep.subr.bf16.mxu1 %v6477_v30  ;;  %v5397_v54 = vpop.eup %5396  ;;  %v6932_v10 = vld [vmem:[#allocation7 + $0x18] sm:$0xff] }
 0x25a   :  { %v2226_v3 = vsel %vm6905_vm0, %v2223_v4, %v2220_v16  ;;  %v2117_v51 = vmul.f32 -2.0, %v8028_v19  ;;  %v8299_v50 = vand.u32 2147483647, %v6791_v32  ;;  %v5399_v30 = vpop.eup %5398  ;;  %v2679_v4 = vmul.f32 %v5397_v54, %v2583_v15 }
 0x25b   :  { %v4186_v47 = vadd.f32 -0.6931472, %v2497_v42  ;;  %v6928_v36 = vsel %vm2689_vm1, %v2721_v57, %v2657_v17  ;;  %v2722_v13 = vsub.f32 0.0, %v2658_v14  ;;  %v2118_v0 = vmul.f32 -2.0, %v2086_v18 }
 0x25c   :  { %v2498_v1 = vadd.f32 %v2226_v3, %v8299_v50  ;;  %v2153_v43 = vmul.f32 1.442695, %v2117_v51  ;;  %v2743_v42 = vsub.f32 0.0, %v2679_v4  ;;  %v892_v57 = vrot.slane %v6932_v10, %v6299_v58  ;;  %v5401_v3 = vpop.eup %5400 }
 0x25d   :  { %v2785_v16 = vrot.slane %v4186_v47, 4  ;;  %v6937_v19 = vsel %vm2690_vm2, %v2722_v13, %v2658_v14  ;;  %v2155_v17 = vmul.f32 1.442695, %v2118_v0  ;;  %v2271_v32 = vsel %vm6890_vm14, %v6888_v31, %v6894_v37 }
 0x25e   :  { %v4187_v11 = vadd.f32 -0.6931472, %v2498_v1  ;;  %8300 = vst [vmem:[#allocation263_spill] sm:$0xff] %v6937_v19  ;;  %5402 = vpow2.f32 %v2153_v43  ;;  %v2277_v15 = vmul.f32 %v6483_v9, %v2276_v46  ;;  %v2274_v14 = vmul.f32 0.6931472, %v5399_v30 }
 0x25f   :  { %v2786_v51 = vadd.f32 %v4186_v47, %v2785_v16  ;;  %5404 = vpow2.f32 %v2155_v17  ;;  %v6947_v50 = vsel %vm2711_vm3, %v2743_v42, %v2679_v4  ;;  %v2584_v1 = vsub.f32 1.0, %v6868_v63 }
 0x260   :  { %v2791_v54 = vrot.slane %v4187_v11, 4  ;;  %5045 = vmatpush1.bf16.xpose.msra.mxu1 %v6486_v39  ;;  %v2805_v58 = vrot.slane %v6885_v45, 2  ;;  %vm6952_vm4 = vcmp.lt.f32.partialorder %v2278_v34, 0.0004427343  ;;  %v8303_v9 = vrot.slane %v6856_v7, 2 }
 0x261   :  { %v2787_v13 = vrot.slane %v2786_v51, 2  ;;  %5047 = vmatprep.subr.bf16.mxu1 %v6489_v25  ;;  %v2680_v46 = vmul.f32 %v5401_v3, %v2584_v1  ;;  %v6960_v37 = vadd.f32 %v1934_v28, %v892_v57  ;;  %v8304_v47 = vand.u32 2147483647, %v6424_v27 }
 0x262   :  { %v2792_v31 = vadd.f32 %v4187_v11, %v2791_v54  ;;  %v2800_v60 = vadd.f32 %v8303_v9, %v6856_v7  ;;  %v2280_v34 = vsel %vm6952_vm4, %v2277_v15, %v2274_v14  ;;  %v896_v16 = vrot.slane %v6932_v10, %v6304_v24 }
 0x263   :  { %v2503_v39 = vadd.f32 %v2271_v32, %v8304_v47  ;;  %v2788_v30 = vadd.f32 %v2787_v13, %v2786_v51  ;;  %v2744_v4 = vsub.f32 0.0, %v2680_v46  ;;  %v8032_v25 = vand.u32 2147483647, %v6960_v37 }
 0x264   :  { %v2793_v0 = vrot.slane %v2792_v31, 2  ;;  %v2806_v7 = vadd.f32 %v2805_v58, %v6885_v45  ;;  %v2801_v17 = vrot.slane %v2800_v60, 1  ;;  %v8306_v32 = vand.u32 2147483647, %v6429_v8 }
 0x265   :  { %v2789_v28 = vrot.slane %v2788_v30, 1  ;;  %v6971_v27 = vsel %vm2712_vm5, %v2744_v4, %v2680_v46  ;;  %v2139_v42 = vmul.f32 -2.0, %v8032_v25  ;;  %v4192_v57 = vadd.f32 -0.6931472, %v2503_v39 }
 0x266   :  { %v2794_v11 = vadd.f32 %v2793_v0, %v2792_v31  ;;  %8305 = vst [vmem:[#allocation264_spill] sm:$0xff] %v6971_v27  ;;  %v2504_v51 = vadd.f32 %v2280_v34, %v8306_v32  ;;  %5406 = vlog2.f32 %v6581_v12  ;;  %v6981_v24 = vadd.f32 %v6915_v6, %v896_v16 }
 0x267   :  { %v2790_v3 = vadd.f32 %v2789_v28, %v2788_v30  ;;  %v2807_v45 = vrot.slane %v2806_v7, 1  ;;  %v2197_v58 = vmul.f32 1.442695, %v2139_v42  ;;  %v2802_v8 = vadd.f32 %v2801_v17, %v2800_v60  ;;  %v7003_v17 = vld [vmem:[#allocation7 + $0x8] sm:$0xff] }
 0x268   :  { %v2795_v15 = vrot.slane %v2794_v11, 1  ;;  %v6977_v54 = vpop.eup %5402  ;;  %5049 = vmatpush1.bf16.xpose.msra.mxu1 %v6496_v5  ;;  %v2821_v43 = vrot.slane %v4192_v57, 4  ;;  %v4193_v31 = vadd.f32 -0.6931472, %v2504_v51  ;;  %v2302_v12 = vmul.f32 -0.5, %v6570_v38 }
 0x269   :  { %v2245_v1 = vadd.f32 1.0, %v6977_v54  ;;  %5051 = vmatprep.subr.bf16.mxu1 %v6500_v59  ;;  %v6986_v13 = vpop.eup %5404  ;;  %v8030_v5 = vand.u32 2147483647, %v6981_v24  ;;  %v2808_v46 = vadd.f32 %v2807_v45, %v2806_v7  ;;  %v2248_v39 = vmul.f32 -0.5, %v6977_v54 }
 0x26a   :  { %v2796_v14 = vadd.f32 %v2795_v15, %v2794_v11  ;;  %v2254_v6 = vadd.f32 1.0, %v6986_v13  ;;  %v6992_v59 = vadd.f32 %v4192_v57, %v2821_v43  ;;  %v2827_v30 = vrot.slane %v4193_v31, 4 }
 0x26b   :  { %5408 = vlog2.f32 %v2245_v1  ;;  %v2303_v0 = vadd.f32 1.0, %v2302_v12  ;;  %v2257_v34 = vmul.f32 -0.5, %v6986_v13  ;;  %v2140_v4 = vmul.f32 -2.0, %v8030_v5 }
 0x26c   :  { %v2977_v9 = vadd.f32 %v2796_v14, %v2790_v3  ;;  %5410 = vrcp.f32 %v2245_v1  ;;  %v2305_v16 = vand.u32 2147483647, %v6570_v38  ;;  %v2311_v7 = vmul.f32 -0.5, %v6575_v33 }
 0x26d   :  { %5412 = vpow2.f32 %v2197_v58  ;;  %v2249_v11 = vadd.f32 1.0, %v2248_v39  ;;  %v820_v42 = vrot.slane %v7003_v17, %v6757_v22  ;;  %v2199_v57 = vmul.f32 1.442695, %v2140_v4 }
 0x26e   :  { %v2978_v47 = vadd.f32 %v2977_v9, %v2802_v8  ;;  %5414 = vlog2.f32 %v2254_v6  ;;  %v2823_v3 = vrot.slane %v6992_v59, 2  ;;  %v2251_v32 = vand.u32 2147483647, %v6977_v54 }
 0x26f   :  { %5416 = vrcp.f32 %v2254_v6  ;;  %v7012_v51 = vadd.f32 %v4193_v31, %v2827_v30  ;;  %v2258_v15 = vadd.f32 1.0, %v2257_v34  ;;  %vm7019_vm6 = vcmp.lt.f32.partialorder %v2305_v16, 0.0004427343 }
 0x270   :  { %v6994_v60 = vadd.f32 %v2978_v47, %v2808_v46  ;;  %5053 = vmatpush1.bf16.xpose.msra.mxu1 %v6505_v62  ;;  %v5407_v28 = vpop.eup %5406  ;;  %5418 = vlog2.f32 %v6588_v29  ;;  %v824_v62 = vrot.slane %v7003_v17, %v6763_v53  ;;  %v2565_v58 = vsub.f32 1.0, %v6977_v54 }
 0x271   :  { %5055 = vmatprep.subr.bf16.mxu1 %v6509_v26  ;;  %v7015_v26 = vmul.f32 %v6570_v38, %v2303_v0  ;;  %5420 = vpow2.f32 %v2199_v57  ;;  %v7017_v14 = vmul.f32 0.6931472, %v5407_v28  ;;  %v2312_v29 = vadd.f32 1.0, %v2311_v7  ;;  %v8309_v28 = vld [vmem:[#allocation186_spill] sm:$0xff] }
 0x272   :  { %v2250_v38 = vmul.f32 %v6977_v54, %v2249_v11  ;;  %v2260_v9 = vand.u32 2147483647, %v6986_v13  ;;  %v2076_v46 = vpop.f32.mrb[16].mxu0  ;;  %vm2252_vm8 = vcmp.lt.f32.partialorder %v2251_v32, 0.0004427343  ;;  %v2566_v30 = vsub.f32 1.0, %v6986_v13 }
 0x273   :  { %v2078_v34 = vpop.f32.mrb[17].mxu0  ;;  %v2259_v7 = vmul.f32 %v6986_v13, %v2258_v15  ;;  %v908_v11 = vrot.slane %v6932_v10, %v8309_v28  ;;  %v8311_v32 = vand.u32 2147483647, %v6902_v52  ;;  %vm2694_vm10 = vcmp.lt.f32.partialorder %v6909_v23, 0.0 }
 0x274   :  { %vm2261_vm9 = vcmp.lt.f32.partialorder %v2260_v9, 0.0004427343  ;;  %v2307_v23 = vsel %vm7019_vm6, %v7015_v26, %v7017_v14  ;;  %vm2715_vm12 = vcmp.lt.f32.partialorder %v6960_v37, 0.0  ;;  %vm2716_vm13 = vcmp.lt.f32.partialorder %v6981_v24, 0.0 }
 0x275   :  { %v5409_v45 = vpop.eup %5408  ;;  %v1295_v8 = vpop.f32.mrb[6].mxu1 }
 0x276   :  { %v5411_v43 = vpop.eup %5410  ;;  %v2247_v31 = vmul.f32 0.6931472, %v5409_v45  ;;  %v7027_v12 = vadd.f32 %v1295_v8, %v820_v42  ;;  %v1297_v6 = vpop.f32.mrb[7].mxu1  ;;  %v8310_v42 = vld [vmem:[#allocation194_spill] sm:$0xff] }
 0x277   :  { %v7029_v47 = vpop.eup %5412  ;;  %v2661_v39 = vmul.f32 %v5411_v43, %v2565_v58  ;;  %v7032_v0 = vadd.f32 %v1297_v6, %v824_v62  ;;  %v8312_v43 = vld [vmem:[#allocation195_spill] sm:$0xff] }
 0x278   :  { %v5415_v4 = vpop.eup %5414  ;;  %v2253_v16 = vsel %vm2252_vm8, %v2250_v38, %v2247_v31  ;;  %v8034_v54 = vand.u32 2147483647, %v7027_v12  ;;  %5057 = vmatpush1.bf16.xpose.msra.mxu1 %v8310_v42  ;;  %v7046_v15 = vadd.f32 1.0, %v7029_v47  ;;  %vm2697_vm0 = vcmp.lt.f32.partialorder %v7027_v12, 0.0 }
 0x279   :  { %v5417_v57 = vpop.eup %5416  ;;  %v2501_v45 = vadd.f32 %v2253_v16, %v8311_v32  ;;  %v2725_v58 = vsub.f32 0.0, %v2661_v39  ;;  %v2256_v8 = vmul.f32 0.6931472, %v5415_v4  ;;  %v8033_v62 = vand.u32 2147483647, %v7032_v0  ;;  %5059 = vmatprep.subr.bf16.mxu1 %v8312_v43 }
 0x27a   :  { %v2662_v31 = vmul.f32 %v5417_v57, %v2566_v30  ;;  %v2121_v13 = vmul.f32 -2.0, %v8034_v54  ;;  %5422 = vrcp.f32 %v7046_v15  ;;  %v5419_v42 = vpop.eup %5418  ;;  %vm2698_vm1 = vcmp.lt.f32.partialorder %v7032_v0, 0.0 }
 0x27b   :  { %v4190_v38 = vadd.f32 -0.6931472, %v2501_v45  ;;  %v7050_v6 = vsel %vm2693_vm7, %v2725_v58, %v2661_v39  ;;  %v2262_v16 = vsel %vm2261_vm9, %v2259_v7, %v2256_v8  ;;  %v2122_v4 = vmul.f32 -2.0, %v8033_v62  ;;  %v7060_v52 = vpop.eup %5420 }
 0x27c   :  { %v2502_v28 = vadd.f32 %v2262_v16, %v2086_v18  ;;  %v2726_v9 = vsub.f32 0.0, %v2662_v31  ;;  %v2161_v30 = vmul.f32 1.442695, %v2121_v13  ;;  %v7058_v45 = vadd.f32 %v2076_v46, %v908_v11  ;;  %v8314_v13 = vld [vmem:[#allocation198_spill] sm:$0xff] }
 0x27d   :  { %v2809_v57 = vrot.slane %v4190_v38, 4  ;;  %v2163_v32 = vmul.f32 1.442695, %v2122_v4  ;;  %v2314_v39 = vand.u32 2147483647, %v6575_v33  ;;  %v2824_v18 = vadd.f32 %v2823_v3, %v6992_v59 }
 0x27e   :  { %v4191_v7 = vadd.f32 -0.6931472, %v2502_v28  ;;  %v7063_v58 = vsel %vm2694_vm10, %v2726_v9, %v2662_v31  ;;  %5424 = vpow2.f32 %v2161_v30  ;;  %v7071_v46 = vadd.f32 1.0, %v7060_v52 }
 0x27f   :  { %8313 = vst [vmem:[#allocation186_spill] sm:$0xff] %v7063_v58  ;;  %v2810_v8 = vadd.f32 %v4190_v38, %v2809_v57  ;;  %5426 = vpow2.f32 %v2163_v32  ;;  %v912_v11 = vrot.slane %v6932_v10, %v6414_v2  ;;  %v2829_v31 = vrot.slane %v7012_v51, 2  ;;  %v8315_v38 = vld [vmem:[#allocation79_spill] sm:$0xff]  ;;  %v8318_v2 = vld [vmem:[#allocation196_spill] sm:$0xff] }
 0x280   :  { %v2815_v43 = vrot.slane %v4191_v7, 4  ;;  %5061 = vmatpush1.bf16.xpose.msra.mxu1 %v8314_v13  ;;  %v2313_v59 = vmul.f32 %v6575_v33, %v2312_v29  ;;  %v8029_v3 = vand.u32 2147483647, %v7058_v45  ;;  %v2310_v1 = vmul.f32 0.6931472, %v5419_v42 }
 0x281   :  { %v2811_v16 = vrot.slane %v2810_v8, 2  ;;  %5063 = vmatprep.subr.bf16.mxu1 %v8315_v38  ;;  %vm7080_vm11 = vcmp.lt.f32.partialorder %v2314_v39, 0.0004427343  ;;  %5428 = vrcp.f32 %v7071_v46  ;;  %v8319_v10 = vand.u32 2147483647, %v8318_v2 }
 0x282   :  { %v2816_v14 = vadd.f32 %v4191_v7, %v2815_v43  ;;  %v2587_v9 = vsub.f32 1.0, %v7029_v47  ;;  %v2143_v33 = vmul.f32 -2.0, %v8029_v3  ;;  %v7090_v30 = vadd.f32 %v2078_v34, %v912_v11 }
 0x283   :  { %v2507_v4 = vadd.f32 %v2307_v23, %v8319_v10  ;;  %v2812_v28 = vadd.f32 %v2811_v16, %v2810_v8  ;;  %v2825_v39 = vrot.slane %v2824_v18, 1  ;;  %v2830_v7 = vadd.f32 %v2829_v31, %v7012_v51 }
 0x284   :  { %v2817_v29 = vrot.slane %v2816_v14, 2  ;;  %v2205_v57 = vmul.f32 1.442695, %v2143_v33  ;;  %v5423_v32 = vpop.eup %5422  ;;  %v2316_v43 = vsel %vm7080_vm11, %v2313_v59, %v2310_v1  ;;  %v8031_v10 = vand.u32 2147483647, %v7090_v30  ;;  %v8320_v33 = vld [vmem:[#allocation197_spill] sm:$0xff] }
 0x285   :  { %v2813_v42 = vrot.slane %v2812_v28, 1  ;;  %v4196_v23 = vadd.f32 -0.6931472, %v2507_v4  ;;  %v2683_v16 = vmul.f32 %v5423_v32, %v2587_v9  ;;  %v8321_v3 = vand.u32 2147483647, %v8320_v33  ;;  %v8322_v33 = vld [vmem:[#allocation232_spill] sm:$0xff] }
 0x286   :  { %v2818_v13 = vadd.f32 %v2817_v29, %v2816_v14  ;;  %5430 = vpow2.f32 %v2205_v57  ;;  %v2831_v31 = vrot.slane %v2830_v7, 1  ;;  %v2826_v1 = vadd.f32 %v2825_v39, %v2824_v18 }
 0x287   :  { %v2814_v8 = vadd.f32 %v2813_v42, %v2812_v28  ;;  %v2508_v5 = vadd.f32 %v2316_v43, %v8321_v3  ;;  %v2845_v14 = vrot.slane %v4196_v23, 4  ;;  %v2588_v4 = vsub.f32 1.0, %v7060_v52 }
 0x288   :  { %v5425_v38 = vpop.eup %5424  ;;  %v2819_v2 = vrot.slane %v2818_v13, 1  ;;  %v2747_v3 = vsub.f32 0.0, %v2683_v16  ;;  %v2832_v42 = vadd.f32 %v2831_v31, %v2830_v7  ;;  %vm2719_vm3 = vcmp.lt.f32.partialorder %v7058_v45, 0.0 }
 0x289   :  { %v7096_v34 = vpop.eup %5426  ;;  %v2980_v11 = vadd.f32 %v6994_v60, %v2814_v8  ;;  %v2281_v51 = vadd.f32 1.0, %v5425_v38  ;;  %v2144_v60 = vmul.f32 -2.0, %v8031_v10  ;;  %v4197_v29 = vadd.f32 -0.6931472, %v2508_v5 }
 0x28a   :  { %v2820_v26 = vadd.f32 %v2819_v2, %v2818_v13  ;;  %v2290_v59 = vadd.f32 1.0, %v7096_v34  ;;  %v2284_v32 = vmul.f32 -0.5, %v5425_v38  ;;  %v7106_v18 = vadd.f32 %v4196_v23, %v2845_v14  ;;  %v8323_v23 = vld [vmem:[#allocation235_spill] sm:$0xff] }
 0x28b   :  { %5432 = vlog2.f32 %v2281_v51  ;;  %v5429_v28 = vpop.eup %5428  ;;  %v7108_v39 = vsel %vm2715_vm12, %v2747_v3, %v2683_v16  ;;  %v2293_v8 = vmul.f32 -0.5, %v7096_v34  ;;  %v2207_v2 = vmul.f32 1.442695, %v2144_v60  ;;  %v8325_v3 = vld [vmem:[#allocation228_spill] sm:$0xff] }
 0x28c   :  { %v2981_v9 = vadd.f32 %v2980_v11, %v2820_v26  ;;  %5434 = vrcp.f32 %v2281_v51  ;;  %v2684_v43 = vmul.f32 %v5429_v28, %v2588_v4  ;;  %v2851_v5 = vrot.slane %v4197_v29, 4 }
 0x28d   :  { %5436 = vlog2.f32 %v2290_v59  ;;  %v2285_v51 = vadd.f32 1.0, %v2284_v32  ;;  %v2287_v31 = vand.u32 2147483647, %v5425_v38  ;;  %v836_v16 = vrot.slane %v7003_v17, %v6859_v56 }
 0x28e   :  { %v2982_v57 = vadd.f32 %v2981_v9, %v2826_v1  ;;  %5438 = vrcp.f32 %v2290_v59  ;;  %v2748_v7 = vsub.f32 0.0, %v2684_v43  ;;  %v2296_v26 = vand.u32 2147483647, %v7096_v34 }
 0x28f   :  { %5440 = vlog2.f32 %v8322_v33  ;;  %v840_v59 = vrot.slane %v7003_v17, %v6863_v61  ;;  %v2847_v4 = vrot.slane %v7106_v18, 2  ;;  %v2294_v28 = vadd.f32 1.0, %v2293_v8 }
 0x290   :  { %v7110_v13 = vadd.f32 %v2982_v57, %v2832_v42  ;;  %v7114_v11 = vpop.eup %5430  ;;  %5442 = vlog2.f32 %v8323_v23  ;;  %v7123_v1 = vsel %vm2716_vm13, %v2748_v7, %v2684_v43  ;;  %v7129_v60 = vadd.f32 %v4197_v29, %v2851_v5 }
 0x291   :  { %8324 = vst [vmem:[#allocation194_spill] sm:$0xff] %v7123_v1  ;;  %v7126_v14 = vadd.f32 1.0, %v7114_v11  ;;  %5444 = vpow2.f32 %v2207_v2  ;;  %v2338_v42 = vmul.f32 -0.5, %v8325_v3  ;;  %v2569_v57 = vsub.f32 1.0, %v5425_v38 }
 0x292   :  { %v2286_v43 = vmul.f32 %v5425_v38, %v2285_v51  ;;  %vm2288_vm14 = vcmp.lt.f32.partialorder %v2287_v31, 0.0004427343  ;;  %vm7135_vm15 = vcmp.lt.f32.partialorder %v2296_v26, 0.0004427343  ;;  %v2570_v29 = vsub.f32 1.0, %v7096_v34 }
 0x293   :  { %5446 = vrcp.f32 %v7126_v14  ;;  %v8328_v51 = vand.u32 2147483647, %v7027_v12  ;;  %vm2720_vm5 = vcmp.lt.f32.partialorder %v7090_v30, 0.0 }
 0x295   :  { %v5433_v9 = vpop.eup %5432  ;;  %v1437_v32 = vpop.f32.mrb[8].mxu1 }
 0x296   :  { %v5435_v33 = vpop.eup %5434  ;;  %v2283_v17 = vmul.f32 0.6931472, %v5433_v9  ;;  %v7133_v7 = vadd.f32 %v1437_v32, %v836_v16  ;;  %v1439_v23 = vpop.f32.mrb[9].mxu1  ;;  %v2295_v9 = vmul.f32 %v7096_v34, %v2294_v28  ;;  %v2341_v32 = vand.u32 2147483647, %v8325_v3 }
 0x297   :  { %v5437_v10 = vpop.eup %5436  ;;  %v2665_v25 = vmul.f32 %v5435_v33, %v2569_v57  ;;  %v7140_v2 = vadd.f32 %v1439_v23, %v840_v59 }
 0x298   :  { %v5439_v5 = vpop.eup %5438  ;;  %v2289_v62 = vsel %vm2288_vm14, %v2286_v43, %v2283_v17  ;;  %v2292_v54 = vmul.f32 0.6931472, %v5437_v10  ;;  %v8035_v38 = vand.u32 2147483647, %v7133_v7  ;;  %vm7168_vm2 = vcmp.lt.f32.partialorder %v2341_v32, 0.0004427343 }
 0x299   :  { %v2505_v31 = vadd.f32 %v2289_v62, %v8328_v51  ;;  %v2729_v16 = vsub.f32 0.0, %v2665_v25  ;;  %v2666_v57 = vmul.f32 %v5439_v5, %v2570_v29  ;;  %v8036_v26 = vand.u32 2147483647, %v7140_v2  ;;  %v5441_v34 = vpop.eup %5440 }
 0x29a   :  { %v2298_v59 = vsel %vm7135_vm15, %v2295_v9, %v2292_v54  ;;  %v2125_v10 = vmul.f32 -2.0, %v8035_v38  ;;  %v8329_v62 = vand.u32 2147483647, %v7032_v0  ;;  %v5443_v23 = vpop.eup %5442  ;;  %v2591_v54 = vsub.f32 1.0, %v7114_v11 }
 0x29b   :  { %v4194_v28 = vadd.f32 -0.6931472, %v2505_v31  ;;  %v7153_v33 = vsel %vm2697_vm0, %v2729_v16, %v2665_v25  ;;  %v2730_v43 = vsub.f32 0.0, %v2666_v57  ;;  %v2126_v12 = vmul.f32 -2.0, %v8036_v26  ;;  %v7163_v51 = vpop.eup %5444  ;;  %v8331_v31 = vld [vmem:[#allocation231_spill] sm:$0xff] }
 0x29c   :  { %v2506_v17 = vadd.f32 %v2298_v59, %v8329_v62  ;;  %v2169_v29 = vmul.f32 1.442695, %v2125_v10  ;;  %v2339_v25 = vadd.f32 1.0, %v2338_v42  ;;  %v2347_v16 = vmul.f32 -0.5, %v8331_v31 }
 0x29d   :  { %v2833_v8 = vrot.slane %v4194_v28, 4  ;;  %v7161_v9 = vsel %vm2698_vm1, %v2730_v43, %v2666_v57  ;;  %v2171_v59 = vmul.f32 1.442695, %v2126_v12  ;;  %v5447_v62 = vpop.eup %5446  ;;  %v2848_v0 = vadd.f32 %v2847_v4, %v7106_v18 }
 0x29e   :  { %v4195_v5 = vadd.f32 -0.6931472, %v2506_v17  ;;  %8330 = vst [vmem:[#allocation195_spill] sm:$0xff] %v7161_v9  ;;  %5448 = vpow2.f32 %v2169_v29  ;;  %v2853_v26 = vrot.slane %v7129_v60, 2  ;;  %v2687_v57 = vmul.f32 %v5447_v62, %v2591_v54 }
 0x29f   :  { %v2834_v10 = vadd.f32 %v4194_v28, %v2833_v8  ;;  %5450 = vpow2.f32 %v2171_v59  ;;  %v7174_v42 = vadd.f32 1.0, %v7163_v51  ;;  %v2337_v29 = vmul.f32 0.6931472, %v5441_v34 }
 0x2a0   :  { %v2839_v38 = vrot.slane %v4195_v5, 4  ;;  %v2340_v18 = vmul.f32 %v8325_v3, %v2339_v25  ;;  %v2348_v4 = vadd.f32 1.0, %v2347_v16  ;;  %v2751_v28 = vsub.f32 0.0, %v2687_v57 }
 0x2a1   :  { %v2835_v17 = vrot.slane %v2834_v10, 2  ;;  %v2350_v32 = vand.u32 2147483647, %v8331_v31  ;;  %5452 = vrcp.f32 %v7174_v42  ;;  %v2854_v54 = vadd.f32 %v2853_v26, %v7129_v60  ;;  %v8336_v60 = vld [vmem:[#allocation216_spill] sm:$0xff] }
 0x2a2   :  { %v2840_v43 = vadd.f32 %v4195_v5, %v2839_v38  ;;  %v7180_v59 = vsel %vm2719_vm3, %v2751_v28, %v2687_v57  ;;  %v2849_v62 = vrot.slane %v2848_v0, 1  ;;  %v2343_v34 = vsel %vm7168_vm2, %v2340_v18, %v2337_v29 }
 0x2a3   :  { %v2836_v12 = vadd.f32 %v2835_v17, %v2834_v10  ;;  %v2346_v9 = vmul.f32 0.6931472, %v5443_v23  ;;  %v2349_v3 = vmul.f32 %v8331_v31, %v2348_v4  ;;  %vm7185_vm4 = vcmp.lt.f32.partialorder %v2350_v32, 0.0004427343 }
 0x2a4   :  { %v2841_v8 = vrot.slane %v2840_v43, 2  ;;  %v2855_v27 = vrot.slane %v2854_v54, 1  ;;  %v8337_v26 = vand.u32 2147483647, %v8336_v60  ;;  %v2850_v29 = vadd.f32 %v2849_v62, %v2848_v0  ;;  %v8338_v60 = vld [vmem:[#allocation217_spill] sm:$0xff] }
 0x2a5   :  { %v2837_v38 = vrot.slane %v2836_v12, 1  ;;  %v2352_v23 = vsel %vm7185_vm4, %v2349_v3, %v2346_v9  ;;  %v2592_v4 = vsub.f32 1.0, %v7163_v51  ;;  %vm2701_vm8 = vcmp.lt.f32.partialorder %v7133_v7, 0.0 }
 0x2a6   :  { %v2842_v5 = vadd.f32 %v2841_v8, %v2840_v43  ;;  %v2511_v57 = vadd.f32 %v2343_v34, %v8337_v26  ;;  %v8339_v34 = vand.u32 2147483647, %v8338_v60  ;;  %vm2702_vm9 = vcmp.lt.f32.partialorder %v7140_v2, 0.0 }
 0x2a7   :  { %v2838_v25 = vadd.f32 %v2837_v38, %v2836_v12  ;;  %v2856_v12 = vadd.f32 %v2855_v27, %v2854_v54 }
 0x2a8   :  { %v2843_v10 = vrot.slane %v2842_v5, 1  ;;  %v5449_v17 = vpop.eup %5448  ;;  %v4200_v38 = vadd.f32 -0.6931472, %v2511_v57  ;;  %v2512_v26 = vadd.f32 %v2352_v23, %v8339_v34 }
 0x2a9   :  { %v2984_v43 = vadd.f32 %v7110_v13, %v2838_v25  ;;  %v2317_v8 = vadd.f32 1.0, %v5449_v17  ;;  %v5451_v1 = vpop.eup %5450  ;;  %v2323_v54 = vand.u32 2147483647, %v5449_v17 }
 0x2aa   :  { %v2844_v28 = vadd.f32 %v2843_v10, %v2842_v5  ;;  %v2326_v18 = vadd.f32 1.0, %v5451_v1  ;;  %v2320_v5 = vmul.f32 -0.5, %v5449_v17  ;;  %v2329_v9 = vmul.f32 -0.5, %v5451_v1  ;;  %v7200_v10 = vld [vmem:[#allocation7 + $0x10] sm:$0xff] }
 0x2ab   :  { %5454 = vlog2.f32 %v2317_v8  ;;  %v5453_v32 = vpop.eup %5452  ;;  %v2869_v3 = vrot.slane %v4200_v38, 4  ;;  %v4201_v25 = vadd.f32 -0.6931472, %v2512_v26  ;;  %v852_v57 = vrot.slane %v7200_v10, %v6757_v22 }
 0x2ac   :  { %v2985_v31 = vadd.f32 %v2984_v43, %v2844_v28  ;;  %5456 = vrcp.f32 %v2317_v8  ;;  %v2688_v62 = vmul.f32 %v5453_v32, %v2592_v4  ;;  %v2321_v27 = vadd.f32 1.0, %v2320_v5  ;;  %v8342_v32 = vld [vmem:[#allocation256_spill] sm:$0xff] }
 0x2ad   :  { %5458 = vlog2.f32 %v2326_v18  ;;  %v2332_v43 = vand.u32 2147483647, %v5451_v1  ;;  %v856_v28 = vrot.slane %v7200_v10, %v6763_v53  ;;  %v2330_v23 = vadd.f32 1.0, %v2329_v9 }
 0x2ae   :  { %v2986_v13 = vadd.f32 %v2985_v31, %v2850_v29  ;;  %5460 = vrcp.f32 %v2326_v18  ;;  %v2752_v16 = vsub.f32 0.0, %v2688_v62  ;;  %v8341_v29 = vld [vmem:[#allocation253_spill] sm:$0xff]  ;;  %v2870_v18 = vadd.f32 %v4200_v38, %v2869_v3 }
 0x2af   :  { %5462 = vlog2.f32 %v8341_v29  ;;  %v2875_v4 = vrot.slane %v4201_v25, 4  ;;  %vm2324_vm6 = vcmp.lt.f32.partialorder %v2323_v54, 0.0004427343  ;;  %vm7212_vm7 = vcmp.lt.f32.partialorder %v2332_v43, 0.0004427343  ;;  %v8346_v43 = vld [vmem:[#allocation250_spill] sm:$0xff] }
 0x2b0   :  { %v7197_v0 = vadd.f32 %v2986_v13, %v2856_v12  ;;  %v7206_v8 = vsel %vm2720_vm5, %v2752_v16, %v2688_v62  ;;  %v2573_v12 = vsub.f32 1.0, %v5449_v17  ;;  %5464 = vlog2.f32 %v8342_v32 }
 0x2b1   :  { %8340 = vst [vmem:[#allocation198_spill] sm:$0xff] %v7206_v8  ;;  %v2322_v13 = vmul.f32 %v5449_v17, %v2321_v27  ;;  %v2574_v9 = vsub.f32 1.0, %v5451_v1  ;;  %v2331_v8 = vmul.f32 %v5451_v1, %v2330_v23  ;;  %v8345_v17 = vand.u32 2147483647, %v7133_v7 }
 0x2b2   :  { %v8347_v23 = vand.u32 2147483647, %v7140_v2 }
 0x2b5   :  { %v5455_v31 = vpop.eup %5454  ;;  %v1579_v60 = vpop.f32.mrb[10].mxu1 }
 0x2b6   :  { %v5457_v34 = vpop.eup %5456  ;;  %v2319_v26 = vmul.f32 0.6931472, %v5455_v31  ;;  %v7210_v5 = vadd.f32 %v1579_v60, %v852_v57  ;;  %v1581_v58 = vpop.f32.mrb[11].mxu1  ;;  %v2374_v60 = vmul.f32 -0.5, %v8346_v43 }
 0x2b7   :  { %v5459_v19 = vpop.eup %5458  ;;  %v2669_v62 = vmul.f32 %v5457_v34, %v2573_v12  ;;  %v7216_v38 = vadd.f32 %v1581_v58, %v856_v28 }
 0x2b8   :  { %v5461_v3 = vpop.eup %5460  ;;  %v2325_v29 = vsel %vm2324_vm6, %v2322_v13, %v2319_v26  ;;  %v2328_v32 = vmul.f32 0.6931472, %v5459_v19  ;;  %v8038_v31 = vand.u32 2147483647, %v7210_v5  ;;  %v2876_v13 = vadd.f32 %v4201_v25, %v2875_v4 }
 0x2b9   :  { %v2509_v27 = vadd.f32 %v2325_v29, %v8345_v17  ;;  %v2733_v54 = vsub.f32 0.0, %v2669_v62  ;;  %v2670_v57 = vmul.f32 %v5461_v3, %v2574_v9  ;;  %v8037_v12 = vand.u32 2147483647, %v7216_v38 }
 0x2ba   :  { %v2334_v58 = vsel %vm7212_vm7, %v2331_v8, %v2328_v32  ;;  %v2129_v19 = vmul.f32 -2.0, %v8038_v31  ;;  %v2871_v3 = vrot.slane %v2870_v18, 2  ;;  %v5463_v32 = vpop.eup %5462  ;;  %v2375_v17 = vadd.f32 1.0, %v2374_v60 }
 0x2bb   :  { %v4198_v1 = vadd.f32 -0.6931472, %v2509_v27  ;;  %v7228_v28 = vsel %vm2701_vm8, %v2733_v54, %v2669_v62  ;;  %v2510_v34 = vadd.f32 %v2334_v58, %v8347_v23  ;;  %v2734_v26 = vsub.f32 0.0, %v2670_v57  ;;  %v5465_v54 = vpop.eup %5464 }
 0x2bc   :  { %v2177_v9 = vmul.f32 1.442695, %v2129_v19  ;;  %v2130_v7 = vmul.f32 -2.0, %v8037_v12  ;;  %v2383_v62 = vmul.f32 -0.5, %v6750_v40  ;;  %v2377_v25 = vand.u32 2147483647, %v8346_v43 }
 0x2bd   :  { %v2857_v16 = vrot.slane %v4198_v1, 4  ;;  %v4199_v8 = vadd.f32 -0.6931472, %v2510_v34  ;;  %v7235_v29 = vsel %vm2702_vm9, %v2734_v26, %v2670_v57  ;;  %v2877_v58 = vrot.slane %v2876_v13, 2 }
 0x2be   :  { %8348 = vst [vmem:[#allocation79_spill] sm:$0xff] %v7235_v29  ;;  %5466 = vpow2.f32 %v2177_v9  ;;  %v2179_v27 = vmul.f32 1.442695, %v2130_v7  ;;  %v2872_v12 = vadd.f32 %v2871_v3, %v2870_v18  ;;  %v2373_v31 = vmul.f32 0.6931472, %v5463_v32 }
 0x2bf   :  { %v2858_v4 = vadd.f32 %v4198_v1, %v2857_v16  ;;  %v2863_v2 = vrot.slane %v4199_v8, 4  ;;  %v2376_v57 = vmul.f32 %v8346_v43, %v2375_v17  ;;  %v2384_v34 = vadd.f32 1.0, %v2383_v62 }
 0x2c0   :  { %5468 = vpow2.f32 %v2179_v27  ;;  %vm7240_vm10 = vcmp.lt.f32.partialorder %v2377_v25, 0.0004427343  ;;  %v2386_v9 = vand.u32 2147483647, %v6750_v40  ;;  %v2878_v29 = vadd.f32 %v2877_v58, %v2876_v13 }
 0x2c1   :  { %v2859_v19 = vrot.slane %v2858_v4, 2  ;;  %v2864_v23 = vadd.f32 %v4199_v8, %v2863_v2  ;;  %v2379_v27 = vsel %vm7240_vm10, %v2376_v57, %v2373_v31  ;;  %v2382_v8 = vmul.f32 0.6931472, %v5465_v54 }
 0x2c2   :  { %v2385_v18 = vmul.f32 %v6750_v40, %v2384_v34  ;;  %v2873_v3 = vrot.slane %v2872_v12, 1  ;;  %vm7248_vm11 = vcmp.lt.f32.partialorder %v2386_v9, 0.0004427343  ;;  %v2879_v25 = vrot.slane %v2878_v29, 1 }
 0x2c3   :  { %v2860_v26 = vadd.f32 %v2859_v19, %v2858_v4  ;;  %v2865_v7 = vrot.slane %v2864_v23, 2  ;;  %v8353_v4 = vand.u32 2147483647, %v6697_v21  ;;  %vm2705_vm14 = vcmp.lt.f32.partialorder %v7210_v5, 0.0 }
 0x2c4   :  { %v2388_v40 = vsel %vm7248_vm11, %v2385_v18, %v2382_v8  ;;  %v2874_v54 = vadd.f32 %v2873_v3, %v2872_v12  ;;  %v2880_v34 = vadd.f32 %v2879_v25, %v2878_v29  ;;  %v868_v18 = vrot.slane %v7200_v10, %v6859_v56 }
 0x2c5   :  { %v2861_v1 = vrot.slane %v2860_v26, 1  ;;  %v2866_v16 = vadd.f32 %v2865_v7, %v2864_v23  ;;  %v2515_v13 = vadd.f32 %v2379_v27, %v8353_v4  ;;  %v872_v3 = vrot.slane %v7200_v10, %v6863_v61 }
 0x2c6   :  { %vm2706_vm15 = vcmp.lt.f32.partialorder %v7216_v38, 0.0 }
 0x2c7   :  { %v2862_v43 = vadd.f32 %v2861_v1, %v2860_v26  ;;  %v2867_v17 = vrot.slane %v2866_v16, 1  ;;  %v4204_v60 = vadd.f32 -0.6931472, %v2515_v13  ;;  %v8354_v26 = vand.u32 2147483647, %v6699_v49 }
 0x2c8   :  { %v5467_v62 = vpop.eup %5466 }
 0x2c9   :  { %v2988_v2 = vadd.f32 %v7197_v0, %v2862_v43  ;;  %v2868_v58 = vadd.f32 %v2867_v17, %v2866_v16  ;;  %v2353_v19 = vadd.f32 1.0, %v5467_v62  ;;  %v2516_v9 = vadd.f32 %v2388_v40, %v8354_v26 }
 0x2ca   :  { %v5469_v31 = vpop.eup %5468  ;;  %v2356_v7 = vmul.f32 -0.5, %v5467_v62  ;;  %v2893_v16 = vrot.slane %v4204_v60, 4  ;;  %v2359_v12 = vand.u32 2147483647, %v5467_v62  ;;  %v2577_v25 = vsub.f32 1.0, %v5467_v62 }
 0x2cb   :  { %v2989_v23 = vadd.f32 %v2988_v2, %v2868_v58  ;;  %5470 = vlog2.f32 %v2353_v19  ;;  %v2362_v57 = vadd.f32 1.0, %v5469_v31  ;;  %v2365_v1 = vmul.f32 -0.5, %v5469_v31 }
 0x2cc   :  { %5472 = vrcp.f32 %v2353_v19  ;;  %v4205_v27 = vadd.f32 -0.6931472, %v2516_v9  ;;  %v2357_v8 = vadd.f32 1.0, %v2356_v7  ;;  %v2368_v29 = vand.u32 2147483647, %v5469_v31 }
 0x2cd   :  { %v2990_v21 = vadd.f32 %v2989_v23, %v2874_v54  ;;  %5474 = vlog2.f32 %v2362_v57  ;;  %v2366_v49 = vadd.f32 1.0, %v2365_v1  ;;  %v2894_v32 = vadd.f32 %v4204_v60, %v2893_v16 }
 0x2ce   :  { %5476 = vrcp.f32 %v2362_v57  ;;  %v2899_v17 = vrot.slane %v4205_v27, 4  ;;  %v2358_v58 = vmul.f32 %v5467_v62, %v2357_v8  ;;  %vm2360_vm12 = vcmp.lt.f32.partialorder %v2359_v12, 0.0004427343 }
 0x2cf   :  { %v7259_v0 = vadd.f32 %v2990_v21, %v2880_v34  ;;  %5478 = vlog2.f32 %v6866_v55  ;;  %vm7269_vm13 = vcmp.lt.f32.partialorder %v2368_v29, 0.0004427343  ;;  %v2578_v55 = vsub.f32 1.0, %v5469_v31 }
 0x2d0   :  { %5480 = vlog2.f32 %v6883_v41  ;;  %v2367_v26 = vmul.f32 %v5469_v31, %v2366_v49  ;;  %v8357_v62 = vand.u32 2147483647, %v7210_v5  ;;  %v2410_v8 = vmul.f32 -0.5, %v6854_v44 }
 0x2d2   :  { %v2411_v10 = vadd.f32 1.0, %v2410_v8 }
 0x2d5   :  { %v5471_v43 = vpop.eup %5470  ;;  %v1721_v4 = vpop.f32.mrb[12].mxu1 }
 0x2d6   :  { %v5473_v13 = vpop.eup %5472  ;;  %v2355_v2 = vmul.f32 0.6931472, %v5471_v43  ;;  %v7267_v19 = vadd.f32 %v1721_v4, %v868_v18  ;;  %v1723_v40 = vpop.f32.mrb[13].mxu1 }
 0x2d7   :  { %v5475_v54 = vpop.eup %5474  ;;  %v2673_v23 = vmul.f32 %v5473_v13, %v2577_v25  ;;  %v7273_v57 = vadd.f32 %v1723_v40, %v872_v3  ;;  %v8358_v3 = vand.u32 2147483647, %v7216_v38  ;;  %v2900_v25 = vadd.f32 %v4205_v27, %v2899_v17 }
 0x2d8   :  { %v5477_v34 = vpop.eup %5476  ;;  %v2361_v60 = vsel %vm2360_vm12, %v2358_v58, %v2355_v2  ;;  %v2364_v41 = vmul.f32 0.6931472, %v5475_v54  ;;  %v2101_v9 = vand.u32 2147483647, %v7267_v19  ;;  %v2895_v13 = vrot.slane %v2894_v32, 2 }
 0x2d9   :  { %v2513_v21 = vadd.f32 %v2361_v60, %v8357_v62  ;;  %v2737_v7 = vsub.f32 0.0, %v2673_v23  ;;  %v2674_v1 = vmul.f32 %v5477_v34, %v2578_v55  ;;  %v2102_v16 = vand.u32 2147483647, %v7273_v57  ;;  %v5479_v54 = vpop.eup %5478 }
 0x2da   :  { %v2370_v12 = vsel %vm7269_vm13, %v2367_v26, %v2364_v41  ;;  %v2133_v18 = vmul.f32 -2.0, %v2101_v9  ;;  %v5481_v34 = vpop.eup %5480  ;;  %v2413_v27 = vand.u32 2147483647, %v6854_v44  ;;  %v2901_v60 = vrot.slane %v2900_v25, 2 }
 0x2db   :  { %v4202_v31 = vadd.f32 -0.6931472, %v2513_v21  ;;  %v7285_v29 = vsel %vm2705_vm14, %v2737_v7, %v2673_v23  ;;  %v2514_v49 = vadd.f32 %v2370_v12, %v8358_v3  ;;  %v2738_v43 = vsub.f32 0.0, %v2674_v1 }
 0x2dc   :  { %v2185_v4 = vmul.f32 1.442695, %v2133_v18  ;;  %v2134_v5 = vmul.f32 -2.0, %v2102_v16  ;;  %v2419_v23 = vmul.f32 -0.5, %v6868_v63  ;;  %v2896_v62 = vadd.f32 %v2895_v13, %v2894_v32 }
 0x2dd   :  { %v2881_v2 = vrot.slane %v4202_v31, 4  ;;  %v4203_v58 = vadd.f32 -0.6931472, %v2514_v49  ;;  %v7292_v40 = vsel %vm2706_vm15, %v2738_v43, %v2674_v1  ;;  %v2409_v21 = vmul.f32 0.6931472, %v5479_v54 }
 0x2de   :  { %5482 = vpow2.f32 %v2185_v4  ;;  %v2187_v55 = vmul.f32 1.442695, %v2134_v5  ;;  %v2412_v7 = vmul.f32 %v6854_v44, %v2411_v10  ;;  %v2420_v1 = vadd.f32 1.0, %v2419_v23 }
 0x2df   :  { %v2882_v17 = vadd.f32 %v4202_v31, %v2881_v2  ;;  %v2887_v38 = vrot.slane %v4203_v58, 4  ;;  %vm7297_vm0 = vcmp.lt.f32.partialorder %v2413_v27, 0.0004427343  ;;  %v2422_v18 = vand.u32 2147483647, %v6868_v63 }
 0x2e0   :  { %5484 = vpow2.f32 %v2187_v55  ;;  %v2902_v49 = vadd.f32 %v2901_v60, %v2900_v25  ;;  %v2415_v4 = vsel %vm7297_vm0, %v2412_v7, %v2409_v21  ;;  %v2418_v5 = vmul.f32 0.6931472, %v5481_v34 }
 0x2e1   :  { %v2883_v41 = vrot.slane %v2882_v17, 2  ;;  %v2888_v26 = vadd.f32 %v4203_v58, %v2887_v38  ;;  %v2421_v32 = vmul.f32 %v6868_v63, %v2420_v1  ;;  %v2897_v13 = vrot.slane %v2896_v62, 1 }
 0x2e2   :  { %vm7305_vm1 = vcmp.lt.f32.partialorder %v2422_v18, 0.0004427343  ;;  %v2903_v10 = vrot.slane %v2902_v49, 1  ;;  %v8363_v23 = vand.u32 2147483647, %v6813_v48  ;;  %vm2709_vm4 = vcmp.lt.f32.partialorder %v7267_v19, 0.0 }
 0x2e3   :  { %v2884_v12 = vadd.f32 %v2883_v41, %v2882_v17  ;;  %v2889_v3 = vrot.slane %v2888_v26, 2  ;;  %v2424_v63 = vsel %vm7305_vm1, %v2421_v32, %v2418_v5  ;;  %v2898_v34 = vadd.f32 %v2897_v13, %v2896_v62 }
 0x2e4   :  { %v2519_v25 = vadd.f32 %v2415_v4, %v8363_v23  ;;  %v8364_v7 = vand.u32 2147483647, %v6824_v20  ;;  %vm2710_vm5 = vcmp.lt.f32.partialorder %v7273_v57, 0.0 }
 0x2e5   :  { %v2885_v31 = vrot.slane %v2884_v12, 1  ;;  %v2890_v43 = vadd.f32 %v2889_v3, %v2888_v26  ;;  %v2904_v26 = vadd.f32 %v2903_v10, %v2902_v49 }
 0x2e6   :  { %v4208_v21 = vadd.f32 -0.6931472, %v2519_v25  ;;  %v2520_v1 = vadd.f32 %v2424_v63, %v8364_v7 }
 0x2e7   :  { %v2886_v44 = vadd.f32 %v2885_v31, %v2884_v12  ;;  %v2891_v58 = vrot.slane %v2890_v43, 1 }
 0x2e8   :  { %v5483_v54 = vpop.eup %5482  ;;  %v2917_v18 = vrot.slane %v4208_v21, 4  ;;  %v4209_v3 = vadd.f32 -0.6931472, %v2520_v1 }
 0x2e9   :  { %v2992_v55 = vadd.f32 %v7259_v0, %v2886_v44  ;;  %v2892_v27 = vadd.f32 %v2891_v58, %v2890_v43  ;;  %v2389_v17 = vadd.f32 1.0, %v5483_v54  ;;  %v2392_v8 = vmul.f32 -0.5, %v5483_v54  ;;  %v7318_v43 = vld [vmem:[#allocation7 + $0x18] sm:$0xff] }
 0x2ea   :  { %v5485_v38 = vpop.eup %5484  ;;  %v2395_v62 = vand.u32 2147483647, %v5483_v54  ;;  %v884_v49 = vrot.slane %v7318_v43, %v6757_v22  ;;  %v888_v20 = vrot.slane %v7318_v43, %v6763_v53  ;;  %v2918_v13 = vadd.f32 %v4208_v21, %v2917_v18 }
 0x2eb   :  { %v2993_v60 = vadd.f32 %v2992_v55, %v2892_v27  ;;  %5486 = vlog2.f32 %v2389_v17  ;;  %v2398_v41 = vadd.f32 1.0, %v5485_v38  ;;  %v2401_v12 = vmul.f32 -0.5, %v5485_v38 }
 0x2ec   :  { %5488 = vrcp.f32 %v2389_v17  ;;  %v2393_v31 = vadd.f32 1.0, %v2392_v8  ;;  %v2404_v4 = vand.u32 2147483647, %v5485_v38  ;;  %v2923_v44 = vrot.slane %v4209_v3, 4 }
 0x2ed   :  { %v2994_v48 = vadd.f32 %v2993_v60, %v2898_v34  ;;  %5490 = vlog2.f32 %v2398_v41  ;;  %v2402_v5 = vadd.f32 1.0, %v2401_v12  ;;  %v2581_v2 = vsub.f32 1.0, %v5483_v54 }
 0x2ee   :  { %5492 = vrcp.f32 %v2398_v41  ;;  %v2394_v25 = vmul.f32 %v5483_v54, %v2393_v31  ;;  %vm2396_vm2 = vcmp.lt.f32.partialorder %v2395_v62, 0.0004427343  ;;  %vm7328_vm3 = vcmp.lt.f32.partialorder %v2404_v4, 0.0004427343 }
 0x2ef   :  { %v7316_v0 = vadd.f32 %v2994_v48, %v2904_v26  ;;  %5494 = vlog2.f32 %v7046_v15  ;;  %v2582_v15 = vsub.f32 1.0, %v5485_v38  ;;  %v2403_v26 = vmul.f32 %v5485_v38, %v2402_v5 }
 0x2f0   :  { %5496 = vlog2.f32 %v7071_v46  ;;  %v2446_v8 = vmul.f32 -0.5, %v7029_v47 }
 0x2f5   :  { %v5487_v32 = vpop.eup %5486  ;;  %v1863_v58 = vpop.f32.mrb[14].mxu1 }
 0x2f6   :  { %v5489_v10 = vpop.eup %5488  ;;  %v2391_v23 = vmul.f32 0.6931472, %v5487_v32  ;;  %v7326_v55 = vadd.f32 %v1863_v58, %v884_v49  ;;  %v1865_v27 = vpop.f32.mrb[15].mxu1  ;;  %v2924_v49 = vadd.f32 %v4209_v3, %v2923_v44  ;;  %v2449_v3 = vand.u32 2147483647, %v7029_v47 }
 0x2f7   :  { %v5491_v17 = vpop.eup %5490  ;;  %v2677_v63 = vmul.f32 %v5489_v10, %v2581_v2  ;;  %v7332_v34 = vadd.f32 %v1865_v27, %v888_v20  ;;  %v2919_v20 = vrot.slane %v2918_v13, 2  ;;  %v2447_v10 = vadd.f32 1.0, %v2446_v8 }
 0x2f8   :  { %v5493_v60 = vpop.eup %5492  ;;  %v2397_v41 = vsel %vm2396_vm2, %v2394_v25, %v2391_v23  ;;  %v2400_v46 = vmul.f32 0.6931472, %v5491_v17  ;;  %v2105_v21 = vand.u32 2147483647, %v7326_v55  ;;  %v2455_v23 = vmul.f32 -0.5, %v7060_v52 }
 0x2f9   :  { %v2517_v54 = vadd.f32 %v2397_v41, %v2101_v9  ;;  %v2741_v7 = vsub.f32 0.0, %v2677_v63  ;;  %v2678_v1 = vmul.f32 %v5493_v60, %v2582_v15  ;;  %v2106_v48 = vand.u32 2147483647, %v7332_v34  ;;  %v5495_v58 = vpop.eup %5494 }
 0x2fa   :  { %v2406_v12 = vsel %vm7328_vm3, %v2403_v26, %v2400_v46  ;;  %v2137_v18 = vmul.f32 -2.0, %v2105_v21  ;;  %v2925_v27 = vrot.slane %v2924_v49, 2  ;;  %v2920_v53 = vadd.f32 %v2919_v20, %v2918_v13 }
 0x2fb   :  { %v4206_v38 = vadd.f32 -0.6931472, %v2517_v54  ;;  %v7344_v31 = vsel %vm2709_vm4, %v2741_v7, %v2677_v63  ;;  %v2518_v9 = vadd.f32 %v2406_v12, %v2102_v16  ;;  %v2742_v62 = vsub.f32 0.0, %v2678_v1  ;;  %v5497_v16 = vpop.eup %5496 }
 0x2fc   :  { %v2193_v4 = vmul.f32 1.442695, %v2137_v18  ;;  %v2138_v19 = vmul.f32 -2.0, %v2106_v48  ;;  %v2445_v15 = vmul.f32 0.6931472, %v5495_v58  ;;  %v2448_v60 = vmul.f32 %v7029_v47, %v2447_v10 }
 0x2fd   :  { %v2905_v5 = vrot.slane %v4206_v38, 4  ;;  %v4207_v32 = vadd.f32 -0.6931472, %v2518_v9  ;;  %v7351_v2 = vsel %vm2710_vm5, %v2742_v62, %v2678_v1  ;;  %v2456_v41 = vadd.f32 1.0, %v2455_v23 }
 0x2fe   :  { %5498 = vpow2.f32 %v2193_v4  ;;  %v2195_v25 = vmul.f32 1.442695, %v2138_v19  ;;  %vm7356_vm6 = vcmp.lt.f32.partialorder %v2449_v3, 0.0004427343  ;;  %v2458_v54 = vand.u32 2147483647, %v7060_v52 }
 0x2ff   :  { %v2906_v44 = vadd.f32 %v4206_v38, %v2905_v5  ;;  %v2911_v57 = vrot.slane %v4207_v32, 4  ;;  %v2926_v1 = vadd.f32 %v2925_v27, %v2924_v49  ;;  %v2451_v18 = vsel %vm7356_vm6, %v2448_v60, %v2445_v15 }
 0x300   :  { %5500 = vpow2.f32 %v2195_v25  ;;  %v2454_v38 = vmul.f32 0.6931472, %v5497_v16  ;;  %v2457_v13 = vmul.f32 %v7060_v52, %v2456_v41  ;;  %v2921_v9 = vrot.slane %v2920_v53, 1 }
 0x301   :  { %v2907_v17 = vrot.slane %v2906_v44, 2  ;;  %v2912_v63 = vadd.f32 %v4207_v32, %v2911_v57  ;;  %vm7364_vm7 = vcmp.lt.f32.partialorder %v2458_v54, 0.0004427343  ;;  %v2927_v20 = vrot.slane %v2926_v1, 1 }
 0x302   :  { %v8371_v5 = vand.u32 2147483647, %v6960_v37  ;;  %v2460_v52 = vsel %vm7364_vm7, %v2457_v13, %v2454_v38  ;;  %v2922_v25 = vadd.f32 %v2921_v9, %v2920_v53  ;;  %v8372_v27 = vand.u32 2147483647, %v6981_v24 }
 0x303   :  { %v2908_v26 = vadd.f32 %v2907_v17, %v2906_v44  ;;  %v2913_v7 = vrot.slane %v2912_v63, 2  ;;  %v2928_v44 = vadd.f32 %v2927_v20, %v2926_v1  ;;  %vm2713_vm10 = vcmp.lt.f32.partialorder %v7326_v55, 0.0 }
 0x304   :  { %v2523_v49 = vadd.f32 %v2451_v18, %v8371_v5  ;;  %v2524_v17 = vadd.f32 %v2460_v52, %v8372_v27  ;;  %vm2714_vm11 = vcmp.lt.f32.partialorder %v7332_v34, 0.0 }
 0x305   :  { %v2909_v8 = vrot.slane %v2908_v26, 1  ;;  %v2914_v12 = vadd.f32 %v2913_v7, %v2912_v63  ;;  %v904_v7 = vrot.slane %v7318_v43, %v6863_v61 }
 0x306   :  { %v4212_v57 = vadd.f32 -0.6931472, %v2523_v49  ;;  %v4213_v41 = vadd.f32 -0.6931472, %v2524_v17 }
 0x307   :  { %v2910_v47 = vadd.f32 %v2909_v8, %v2908_v26  ;;  %v2915_v4 = vrot.slane %v2914_v12, 1  ;;  %v900_v26 = vrot.slane %v7318_v43, %v6859_v56 }
 0x308   :  { %v5499_v19 = vpop.eup %5498  ;;  %v2941_v60 = vrot.slane %v4212_v57, 4 }
 0x309   :  { %v2996_v32 = vadd.f32 %v7316_v0, %v2910_v47  ;;  %v2916_v58 = vadd.f32 %v2915_v4, %v2914_v12  ;;  %v2425_v10 = vadd.f32 1.0, %v5499_v19  ;;  %v2428_v63 = vmul.f32 -0.5, %v5499_v19 }
 0x30a   :  { %v5501_v23 = vpop.eup %5500  ;;  %v2431_v53 = vand.u32 2147483647, %v5499_v19  ;;  %v2942_v8 = vadd.f32 %v4212_v57, %v2941_v60  ;;  %v2947_v12 = vrot.slane %v4213_v41, 4  ;;  %v2585_v18 = vsub.f32 1.0, %v5499_v19 }
 0x30b   :  { %v2997_v16 = vadd.f32 %v2996_v32, %v2916_v58  ;;  %5502 = vlog2.f32 %v2425_v10  ;;  %v2434_v3 = vadd.f32 1.0, %v5501_v23  ;;  %v2437_v15 = vmul.f32 -0.5, %v5501_v23 }
 0x30c   :  { %5504 = vrcp.f32 %v2425_v10  ;;  %v2429_v46 = vadd.f32 1.0, %v2428_v63  ;;  %v2440_v54 = vand.u32 2147483647, %v5501_v23  ;;  %vm2432_vm8 = vcmp.lt.f32.partialorder %v2431_v53, 0.0004427343 }
 0x30d   :  { %v2998_v37 = vadd.f32 %v2997_v16, %v2922_v25  ;;  %5506 = vlog2.f32 %v2434_v3  ;;  %v2438_v24 = vadd.f32 1.0, %v2437_v15  ;;  %v2586_v61 = vsub.f32 1.0, %v5501_v23 }
 0x30e   :  { %5508 = vrcp.f32 %v2434_v3  ;;  %v2430_v47 = vmul.f32 %v5499_v19, %v2429_v46  ;;  %vm7384_vm9 = vcmp.lt.f32.partialorder %v2440_v54, 0.0004427343  ;;  %v2948_v3 = vadd.f32 %v4213_v41, %v2947_v12 }
 0x30f   :  { %v7375_v0 = vadd.f32 %v2998_v37, %v2928_v44  ;;  %5510 = vlog2.f32 %v7126_v14  ;;  %v2439_v58 = vmul.f32 %v5501_v23, %v2438_v24  ;;  %v2943_v41 = vrot.slane %v2942_v8, 2 }
 0x310   :  { %5512 = vlog2.f32 %v7174_v42  ;;  %v2491_v42 = vmul.f32 -0.5, %v7163_v51 }
 0x315   :  { %v5503_v1 = vpop.eup %5502  ;;  %v2005_v38 = vpop.f32.mrb[16].mxu1 }
 0x316   :  { %v5505_v13 = vpop.eup %5504  ;;  %v2427_v9 = vmul.f32 0.6931472, %v5503_v1  ;;  %v7382_v62 = vadd.f32 %v2005_v38, %v900_v26  ;;  %v2007_v4 = vpop.f32.mrb[17].mxu1  ;;  %v2482_v26 = vmul.f32 -0.5, %v7114_v11  ;;  %v2944_v1 = vadd.f32 %v2943_v41, %v2942_v8 }
 0x317   :  { %v5507_v56 = vpop.eup %5506  ;;  %v2681_v20 = vmul.f32 %v5505_v13, %v2585_v18  ;;  %v7388_v43 = vadd.f32 %v2007_v4, %v904_v7  ;;  %v2949_v7 = vrot.slane %v2948_v3, 2 }
 0x318   :  { %v5509_v49 = vpop.eup %5508  ;;  %v2433_v14 = vsel %vm2432_vm8, %v2430_v47, %v2427_v9  ;;  %v2436_v32 = vmul.f32 0.6931472, %v5507_v56  ;;  %v2109_v10 = vand.u32 2147483647, %v7382_v62  ;;  %v2483_v12 = vadd.f32 1.0, %v2482_v26 }
 0x319   :  { %v2521_v19 = vadd.f32 %v2433_v14, %v2105_v21  ;;  %v2745_v52 = vsub.f32 0.0, %v2681_v20  ;;  %v2682_v25 = vmul.f32 %v5509_v49, %v2586_v61  ;;  %v2110_v16 = vand.u32 2147483647, %v7388_v43  ;;  %v5511_v53 = vpop.eup %5510 }
 0x31a   :  { %v2442_v44 = vsel %vm7384_vm9, %v2439_v58, %v2436_v32  ;;  %v2141_v57 = vmul.f32 -2.0, %v2109_v10  ;;  %v2950_v13 = vadd.f32 %v2949_v7, %v2948_v3  ;;  %v2485_v9 = vand.u32 2147483647, %v7114_v11 }
 0x31b   :  { %v4210_v27 = vadd.f32 -0.6931472, %v2521_v19  ;;  %v7399_v23 = vsel %vm2713_vm10, %v2745_v52, %v2681_v20  ;;  %v2522_v17 = vadd.f32 %v2442_v44, %v2106_v48  ;;  %v2746_v21 = vsub.f32 0.0, %v2682_v25  ;;  %v5513_v20 = vpop.eup %5512 }
 0x31c   :  { %v2201_v37 = vmul.f32 1.442695, %v2141_v57  ;;  %v2142_v55 = vmul.f32 -2.0, %v2110_v16  ;;  %v2492_v47 = vadd.f32 1.0, %v2491_v42  ;;  %v2945_v5 = vrot.slane %v2944_v1, 1 }
 0x31d   :  { %v2929_v63 = vrot.slane %v4210_v27, 4  ;;  %v4211_v15 = vadd.f32 -0.6931472, %v2522_v17  ;;  %v7407_v60 = vsel %vm2714_vm11, %v2746_v21, %v2682_v25  ;;  %v2494_v61 = vand.u32 2147483647, %v7163_v51 }
 0x31e   :  { %5514 = vpow2.f32 %v2201_v37  ;;  %v2203_v46 = vmul.f32 1.442695, %v2142_v55  ;;  %v2481_v49 = vmul.f32 0.6931472, %v5511_v53  ;;  %v2484_v14 = vmul.f32 %v7114_v11, %v2483_v12 }
 0x31f   :  { %v2930_v48 = vadd.f32 %v4210_v27, %v2929_v63  ;;  %v2935_v54 = vrot.slane %v4211_v15, 4  ;;  %v2951_v8 = vrot.slane %v2950_v13, 1  ;;  %vm7414_vm12 = vcmp.lt.f32.partialorder %v2485_v9, 0.0004427343 }
 0x320   :  { %5516 = vpow2.f32 %v2203_v46  ;;  %v2493_v25 = vmul.f32 %v7163_v51, %v2492_v47  ;;  %v2490_v3 = vmul.f32 0.6931472, %v5513_v20  ;;  %v2946_v21 = vadd.f32 %v2945_v5, %v2944_v1 }
 0x321   :  { %v2931_v34 = vrot.slane %v2930_v48, 2  ;;  %v2936_v24 = vadd.f32 %v4211_v15, %v2935_v54  ;;  %vm2495_vm13 = vcmp.lt.f32.partialorder %v2494_v61, 0.0004427343  ;;  %v2487_v11 = vsel %vm7414_vm12, %v2484_v14, %v2481_v49 }
 0x322   :  { %v2952_v63 = vadd.f32 %v2951_v8, %v2950_v13  ;;  %v2496_v15 = vsel %vm2495_vm13, %v2493_v25, %v2490_v3  ;;  %v8377_v51 = vand.u32 2147483647, %v7058_v45  ;;  %v8378_v26 = vand.u32 2147483647, %v7090_v30 }
 0x323   :  { %v2932_v18 = vadd.f32 %v2931_v34, %v2930_v48  ;;  %v2937_v38 = vrot.slane %v2936_v24, 2  ;;  %vm2717_vm0 = vcmp.lt.f32.partialorder %v7382_v62, 0.0  ;;  %vm2718_vm1 = vcmp.lt.f32.partialorder %v7388_v43, 0.0 }
 0x324   :  { %v2527_v46 = vadd.f32 %v2487_v11, %v8377_v51  ;;  %v2528_v48 = vadd.f32 %v2496_v15, %v8378_v26 }
 0x325   :  { %v2933_v4 = vrot.slane %v2932_v18, 1  ;;  %v2938_v56 = vadd.f32 %v2937_v38, %v2936_v24 }
 0x326   :  { %v4216_v7 = vadd.f32 -0.6931472, %v2527_v46  ;;  %v4217_v24 = vadd.f32 -0.6931472, %v2528_v48 }
 0x327   :  { %v2934_v32 = vadd.f32 %v2933_v4, %v2932_v18  ;;  %v2939_v58 = vrot.slane %v2938_v56, 1 }
 0x328   :  { %v5515_v19 = vpop.eup %5514  ;;  %v2965_v9 = vrot.slane %v4216_v7, 4  ;;  %v2971_v30 = vrot.slane %v4217_v24, 4 }
 0x329   :  { %v3000_v44 = vadd.f32 %v7375_v0, %v2934_v32  ;;  %v2940_v57 = vadd.f32 %v2939_v58, %v2938_v56  ;;  %v2461_v27 = vadd.f32 1.0, %v5515_v19  ;;  %v2464_v0 = vmul.f32 -0.5, %v5515_v19 }
 0x32a   :  { %v5517_v17 = vpop.eup %5516  ;;  %v2467_v34 = vand.u32 2147483647, %v5515_v19  ;;  %v2589_v18 = vsub.f32 1.0, %v5515_v19  ;;  %v2966_v52 = vadd.f32 %v4216_v7, %v2965_v9 }
 0x32b   :  { %v3001_v37 = vadd.f32 %v3000_v44, %v2940_v57  ;;  %5518 = vlog2.f32 %v2461_v27  ;;  %v2470_v55 = vadd.f32 1.0, %v5517_v17  ;;  %v2473_v54 = vmul.f32 -0.5, %v5517_v17 }
 0x32c   :  { %5520 = vrcp.f32 %v2461_v27  ;;  %v2465_v42 = vadd.f32 1.0, %v2464_v0  ;;  %v2476_v38 = vand.u32 2147483647, %v5517_v17  ;;  %vm2468_vm14 = vcmp.lt.f32.partialorder %v2467_v34, 0.0004427343 }
 0x32d   :  { %v3002_v41 = vadd.f32 %v3001_v37, %v2946_v21  ;;  %5522 = vlog2.f32 %v2470_v55  ;;  %v2474_v1 = vadd.f32 1.0, %v2473_v54  ;;  %v2590_v20 = vsub.f32 1.0, %v5517_v17 }
 0x32e   :  { %5524 = vrcp.f32 %v2470_v55  ;;  %v2466_v45 = vmul.f32 %v5515_v19, %v2465_v42  ;;  %vm2477_vm15 = vcmp.lt.f32.partialorder %v2476_v38, 0.0004427343  ;;  %v2972_v27 = vadd.f32 %v4217_v24, %v2971_v30 }
 0x32f   :  { %v3003_v53 = vadd.f32 %v3002_v41, %v2952_v63  ;;  %v2475_v14 = vmul.f32 %v5517_v17, %v2474_v1 }
 0x330   :  { %v2973_v63 = vrot.slane %v2972_v27, 2 }
 0x332   :  { %v2974_v0 = vadd.f32 %v2973_v63, %v2972_v27  ;;  %v8387_v27 = vld [vmem:[#allocation202_spill] sm:$0xff]  ;;  %v8392_v63 = vld [vmem:[#allocation79_spill] sm:$0xff] }
 0x334   :  { %v2975_v43 = vrot.slane %v2974_v0, 1 }
 0x335   :  { %v5519_v12 = vpop.eup %5518 }
 0x336   :  { %v5521_v13 = vpop.eup %5520  ;;  %v2463_v47 = vmul.f32 0.6931472, %v5519_v12  ;;  %v2976_v12 = vadd.f32 %v2975_v43, %v2974_v0  ;;  %v8396_v0 = vld [vmem:[#allocation198_spill] sm:$0xff]  ;;  %v8402_v43 = vld [vmem:[#allocation83_spill] sm:$0xff] }
 0x337   :  { %v5523_v4 = vpop.eup %5522  ;;  %v2685_v56 = vmul.f32 %v5521_v13, %v2589_v18 }
 0x338   :  { %v5525_v5 = vpop.eup %5524  ;;  %v2469_v61 = vsel %vm2468_vm14, %v2466_v45, %v2463_v47  ;;  %v2472_v49 = vmul.f32 0.6931472, %v5523_v4  ;;  %v8379_v47 = vld [vmem:[#allocation192_spill] sm:$0xff] }
 0x339   :  { %v2525_v32 = vadd.f32 %v2469_v61, %v2109_v10  ;;  %v2749_v58 = vsub.f32 0.0, %v2685_v56  ;;  %v2686_v8 = vmul.f32 %v5525_v5, %v2590_v20  ;;  %v2967_v10 = vrot.slane %v2966_v52, 2  ;;  %v8381_v5 = vld [vmem:[#allocation220_spill] sm:$0xff] }
 0x33a   :  { %v2478_v25 = vsel %vm2477_vm15, %v2475_v14, %v2472_v49 }
 0x33b   :  { %v4214_v19 = vadd.f32 -0.6931472, %v2525_v32  ;;  %v2781_v3 = vsel %vm2717_vm0, %v2749_v58, %v2685_v56  ;;  %v2526_v44 = vadd.f32 %v2478_v25, %v2110_v16  ;;  %v2750_v57 = vsub.f32 0.0, %v2686_v8  ;;  %v8380_v56 = vld [vmem:[#allocation199_spill] sm:$0xff] }
 0x33c   :  { %v2968_v62 = vadd.f32 %v2967_v10, %v2966_v52  ;;  %v8390_v10 = vld [vmem:[#allocation223_spill] sm:$0xff] }
 0x33d   :  { %v2953_v17 = vrot.slane %v4214_v19, 4  ;;  %v4215_v21 = vadd.f32 -0.6931472, %v2526_v44  ;;  %v2782_v11 = vsel %vm2718_vm1, %v2750_v57, %v2686_v8  ;;  %v8386_v44 = vld [vmem:[#allocation186_spill] sm:$0xff] }
 0x33e   :  { %v2969_v16 = vrot.slane %v2968_v62, 1 }
 0x33f   :  { %v2954_v37 = vadd.f32 %v4214_v19, %v2953_v17  ;;  %v2959_v55 = vrot.slane %v4215_v21, 4  ;;  %v8385_v19 = vld [vmem:[#allocation262_spill] sm:$0xff] }
 0x340   :  { %v2970_v24 = vadd.f32 %v2969_v16, %v2968_v62  ;;  %v8393_v62 = vld [vmem:[#allocation16_spill] sm:$0xff]  ;;  %v8398_v16 = vld [vmem:[#allocation81_spill] sm:$0xff] }
 0x341   :  { %v2955_v15 = vrot.slane %v2954_v37, 2  ;;  %v2960_v41 = vadd.f32 %v4215_v21, %v2959_v55 }
 0x343   :  { %v2956_v51 = vadd.f32 %v2955_v15, %v2954_v37  ;;  %v2961_v46 = vrot.slane %v2960_v41, 2 }
 0x345   :  { %v2957_v26 = vrot.slane %v2956_v51, 1  ;;  %v2962_v48 = vadd.f32 %v2961_v46, %v2960_v41  ;;  %v8395_v46 = vld [vmem:[#allocation245_spill] sm:$0xff] }
 0x347   :  { %v2958_v54 = vadd.f32 %v2957_v26, %v2956_v51  ;;  %v2963_v7 = vrot.slane %v2962_v48, 1  ;;  %v8394_v51 = vld [vmem:[#allocation80_spill] sm:$0xff] }
 0x349   :  { %v3004_v42 = vadd.f32 %v3003_v53, %v2958_v54  ;;  %v2964_v34 = vadd.f32 %v2963_v7, %v2962_v48  ;;  %v8397_v48 = vld [vmem:[#allocation17_spill] sm:$0xff]  ;;  %v8399_v54 = vld [vmem:[#allocation18_spill] sm:$0xff]  ;;  %v8401_v7 = vld [vmem:[#allocation19_spill] sm:$0xff] }
 0x34b   :  { %v3005_v1 = vadd.f32 %v3004_v42, %v2964_v34  ;;  %v8403_v42 = vld [vmem:[#allocation20_spill] sm:$0xff] }
 0x34c   :  { %v8404_v34 = vld [vmem:[#allocation84_spill] sm:$0xff] }
 0x34d   :  { %v3006_v18 = vadd.f32 %v3005_v1, %v2970_v24  ;;  %v8405_v24 = vld [vmem:[#allocation21_spill] sm:$0xff] }
 0x34e   :  { %v8406_v1 = vld [vmem:[#allocation85_spill] sm:$0xff] }
 0x34f   :  { %v3007_v38 = vadd.f32 %v3006_v18, %v2976_v12  ;;  %v8407_v12 = vld [vmem:[#allocation22_spill] sm:$0xff] }
 0x350   :  { %v8408_v18 = vld [vmem:[#allocation86_spill] sm:$0xff] }
 0x351   :  { %v3011_v13 = vrot.slane %v3007_v38, %v6757_v22  ;;  %v8382_v22 = vld [vmem:[#allocation242_spill] sm:$0xff]  ;;  %v8409_v38 = vld [vmem:[#allocation23_spill] sm:$0xff] }
 0x353   :  { %v3012_v9 = vmul.f32 %v3011_v13, %v6928_v36  ;;  %v7435_v45 = vmul.f32 %v3011_v13, %v8379_v47  ;;  %v7438_v4 = vmul.f32 %v3011_v13, %v7050_v6  ;;  %v7441_v20 = vmul.f32 %v3011_v13, %v8380_v56  ;;  %v8412_v47 = vld [vmem:[#allocation88_spill] sm:$0xff]  ;;  %v8413_v56 = vld [vmem:[#allocation25_spill] sm:$0xff] }
 0x354   :  { %v7444_v53 = vmul.f32 %v3011_v13, %v7153_v33  ;;  %v7447_v30 = vmul.f32 %v3011_v13, %v8381_v5  ;;  %v7450_v61 = vmul.f32 %v3011_v13, %v7228_v28  ;;  %v7453_v36 = vmul.f32 %v3011_v13, %v8382_v22  ;;  %v8414_v5 = vld [vmem:[#allocation89_spill] sm:$0xff]  ;;  %v8415_v22 = vld [vmem:[#allocation26_spill] sm:$0xff] }
 0x355   :  { %v3028_v49 = vmul.f32 %v3011_v13, %v7285_v29  ;;  %v3030_v6 = vmul.f32 %v3011_v13, %v6829_v35  ;;  %v7458_v14 = vmul.f32 %v3011_v13, %v7344_v31  ;;  %v7461_v32 = vmul.f32 %v3011_v13, %v6947_v50  ;;  %v8383_v29 = vld [vmem:[#allocation263_spill] sm:$0xff]  ;;  %v8384_v31 = vld [vmem:[#allocation193_spill] sm:$0xff] }
 0x356   :  { %v7464_v33 = vmul.f32 %v3011_v13, %v7399_v23  ;;  %v7467_v58 = vmul.f32 %v3011_v13, %v7108_v39  ;;  %v7469_v28 = vmul.f32 %v3011_v13, %v2781_v3  ;;  %v7472_v8 = vmul.f32 %v3011_v13, %v7180_v59  ;;  %v8388_v3 = vld [vmem:[#allocation264_spill] sm:$0xff]  ;;  %v8389_v59 = vld [vmem:[#allocation195_spill] sm:$0xff] }
 0x357   :  { %v3013_v52 = vmul.f32 %v3011_v13, %v8383_v29  ;;  %v3029_v35 = vmul.f32 %v3011_v13, %v7292_v40  ;;  %v3015_v25 = vmul.f32 %v3011_v13, %v8384_v31  ;;  %v3031_v50 = vmul.f32 %v3011_v13, %v8385_v19  ;;  %v8417_v29 = vld [vmem:[#allocation27_spill] sm:$0xff]  ;;  %v8420_v31 = vld [vmem:[#allocation92_spill] sm:$0xff]  ;;  %v8422_v19 = vld [vmem:[#allocation93_spill] sm:$0xff] }
 0x358   :  { %v3017_v57 = vmul.f32 %v3011_v13, %v8386_v44  ;;  %v3033_v23 = vmul.f32 %v3011_v13, %v7351_v2  ;;  %v7481_v39 = vmul.f32 %v3011_v13, %v8387_v27  ;;  %v7484_v17 = vmul.f32 %v3011_v13, %v8388_v3  ;;  %v8391_v2 = vld [vmem:[#allocation194_spill] sm:$0xff]  ;;  %v8425_v27 = vld [vmem:[#allocation111_spill] sm:$0xff]  ;;  %v8426_v3 = vld [vmem:[#allocation200_spill] sm:$0xff] }
 0x359   :  { %3109 = vmatprep.mubr.f32.mxu0 %v3013_v52  ;;  %3669 = vmatprep.mubr.f32.mxu1 %v3029_v35  ;;  %v7487_v21 = vmul.f32 %v3011_v13, %v8389_v59  ;;  %v7490_v40 = vmul.f32 %v3011_v13, %v7407_v60  ;;  %v7493_v37 = vmul.f32 %v3011_v13, %v8390_v10  ;;  %v8418_v52 = vld [vmem:[#allocation91_spill] sm:$0xff]  ;;  %v8419_v35 = vld [vmem:[#allocation28_spill] sm:$0xff]  ;;  %v8424_v44 = vld [vmem:[#allocation94_spill] sm:$0xff] }
 0x35a   :  { %3110 = vmatmul.mubr.f32.vlgmr.msra.gmra.mrb[18].mxu0 %v3012_v9  ;;  %3670 = vmatmul.mubr.f32.vlgmr.msra.gmra.mrb[18].mxu1 %v3028_v49  ;;  %v7496_v55 = vmul.f32 %v3011_v13, %v8391_v2  ;;  %v7499_v15 = vmul.f32 %v3011_v13, %v8392_v63  ;;  %v7501_v41 = vmul.f32 %v3011_v13, %v2782_v11  ;;  %v8400_v11 = vld [vmem:[#allocation82_spill] sm:$0xff]  ;;  %v8411_v9 = vld [vmem:[#allocation24_spill] sm:$0xff]  ;;  %v8427_v59 = vld [vmem:[#allocation113_spill] sm:$0xff] }
 0x35b   :  { %4809 = vmatpush1.bf16.xpose.msra.mxu0 %v8393_v62  ;;  %5065 = vmatpush1.bf16.xpose.msra.mxu1 %v8394_v51  ;;  %v7506_v60 = vmul.f32 %v3011_v13, %v8395_v46  ;;  %v7509_v26 = vmul.f32 %v3011_v13, %v8396_v0  ;;  %v8410_v13 = vld [vmem:[#allocation87_spill] sm:$0xff]  ;;  %v8416_v49 = vld [vmem:[#allocation90_spill] sm:$0xff]  ;;  %v8428_v10 = vld [vmem:[#allocation201_spill] sm:$0xff] }
 0x35c   :  { %3179 = vmatprep.mubr.f32.mxu0 %v3015_v25  ;;  %3739 = vmatprep.mubr.f32.mxu1 %v3031_v50  ;;  %v8421_v25 = vld [vmem:[#allocation29_spill] sm:$0xff]  ;;  %v8423_v50 = vld [vmem:[#allocation30_spill] sm:$0xff]  ;;  %v8429_v2 = vld [vmem:[#allocation115_spill] sm:$0xff] }
 0x35d   :  { %4811 = vmatprep.subr.bf16.mxu0 %v8397_v48  ;;  %5067 = vmatprep.subr.bf16.mxu1 %v8398_v16  ;;  %v8430_v63 = vld [vmem:[#allocation203_spill] sm:$0xff]  ;;  %v8431_v62 = vld [vmem:[#allocation117_spill] sm:$0xff]  ;;  %v8432_v51 = vld [vmem:[#allocation204_spill] sm:$0xff] }
 0x35e   :  { %v8433_v46 = vld [vmem:[#allocation119_spill] sm:$0xff]  ;;  %v8434_v0 = vld [vmem:[#allocation205_spill] sm:$0xff]  ;;  %v8440_v16 = vld [vmem:[#allocation208_spill] sm:$0xff] }
 0x35f   :  { %v8438_v48 = vld [vmem:[#allocation207_spill] sm:$0xff] }
 0x363   :  { %4813 = vmatpush1.bf16.xpose.msra.mxu0 %v8399_v54  ;;  %5069 = vmatpush1.bf16.xpose.msra.mxu1 %v8400_v11  ;;  %v8441_v54 = vld [vmem:[#allocation127_spill] sm:$0xff]  ;;  %v8442_v11 = vld [vmem:[#allocation209_spill] sm:$0xff] }
 0x364   :  { %4815 = vmatprep.subr.bf16.mxu0 %v8401_v7  ;;  %5071 = vmatprep.subr.bf16.mxu1 %v8402_v43  ;;  %v8443_v7 = vld [vmem:[#allocation129_spill] sm:$0xff]  ;;  %v8444_v43 = vld [vmem:[#allocation210_spill] sm:$0xff] }
 0x36b   :  { %4817 = vmatpush1.bf16.xpose.msra.mxu0 %v8403_v42  ;;  %5073 = vmatpush1.bf16.xpose.msra.mxu1 %v8404_v34  ;;  %v8445_v42 = vld [vmem:[#allocation131_spill] sm:$0xff] }
 0x36c   :  { %4819 = vmatprep.subr.bf16.mxu0 %v8405_v24  ;;  %5075 = vmatprep.subr.bf16.mxu1 %v8406_v1  ;;  %v8446_v34 = vld [vmem:[#allocation211_spill] sm:$0xff]  ;;  %v8447_v24 = vld [vmem:[#allocation133_spill] sm:$0xff]  ;;  %v8448_v1 = vld [vmem:[#allocation212_spill] sm:$0xff] }
 0x373   :  { %4821 = vmatpush1.bf16.xpose.msra.mxu0 %v8407_v12  ;;  %5077 = vmatpush1.bf16.xpose.msra.mxu1 %v8408_v18  ;;  %v8449_v12 = vld [vmem:[#allocation135_spill] sm:$0xff]  ;;  %v8450_v18 = vld [vmem:[#allocation213_spill] sm:$0xff] }
 0x374   :  { %4823 = vmatprep.subr.bf16.mxu0 %v8409_v38  ;;  %5079 = vmatprep.subr.bf16.mxu1 %v8410_v13  ;;  %v8451_v38 = vld [vmem:[#allocation137_spill] sm:$0xff]  ;;  %v8452_v13 = vld [vmem:[#allocation214_spill] sm:$0xff] }
 0x37b   :  { %4825 = vmatpush1.bf16.xpose.msra.mxu0 %v8411_v9  ;;  %5081 = vmatpush1.bf16.xpose.msra.mxu1 %v8412_v47  ;;  %v8453_v9 = vld [vmem:[#allocation139_spill] sm:$0xff] }
 0x37c   :  { %4827 = vmatprep.subr.bf16.mxu0 %v8413_v56  ;;  %5083 = vmatprep.subr.bf16.mxu1 %v8414_v5  ;;  %v8454_v47 = vld [vmem:[#allocation215_spill] sm:$0xff]  ;;  %v8455_v56 = vld [vmem:[#allocation141_spill] sm:$0xff]  ;;  %v8456_v5 = vld [vmem:[#allocation218_spill] sm:$0xff] }
 0x383   :  { %4829 = vmatpush1.bf16.xpose.msra.mxu0 %v8415_v22  ;;  %5085 = vmatpush1.bf16.xpose.msra.mxu1 %v8416_v49  ;;  %v8457_v22 = vld [vmem:[#allocation31_spill] sm:$0xff] }
 0x384   :  { %4831 = vmatprep.subr.bf16.mxu0 %v8417_v29  ;;  %5087 = vmatprep.subr.bf16.mxu1 %v8418_v52  ;;  %v8458_v49 = vld [vmem:[#allocation95_spill] sm:$0xff]  ;;  %v8459_v29 = vld [vmem:[#allocation32_spill] sm:$0xff] }
 0x385   :  { %v8460_v52 = vld [vmem:[#allocation96_spill] sm:$0xff] }
 0x38b   :  { %4833 = vmatpush1.bf16.xpose.msra.mxu0 %v8419_v35  ;;  %5089 = vmatpush1.bf16.xpose.msra.mxu1 %v8420_v31  ;;  %v8461_v35 = vld [vmem:[#allocation33_spill] sm:$0xff] }
 0x38c   :  { %4835 = vmatprep.subr.bf16.mxu0 %v8421_v25  ;;  %5091 = vmatprep.subr.bf16.mxu1 %v8422_v19  ;;  %v8462_v31 = vld [vmem:[#allocation97_spill] sm:$0xff]  ;;  %v8463_v25 = vld [vmem:[#allocation34_spill] sm:$0xff] }
 0x38d   :  { %v8464_v19 = vld [vmem:[#allocation98_spill] sm:$0xff] }
 0x393   :  { %4837 = vmatpush1.bf16.xpose.msra.mxu0 %v8423_v50  ;;  %5093 = vmatpush1.bf16.xpose.msra.mxu1 %v8424_v44  ;;  %v8465_v50 = vld [vmem:[#allocation35_spill] sm:$0xff]  ;;  %v8468_v44 = vld [vmem:[#allocation100_spill] sm:$0xff] }
 0x394   :  { %4839 = vmatprep.subr.bf16.mxu0 %v8425_v27  ;;  %5095 = vmatprep.subr.bf16.mxu1 %v8426_v3  ;;  %v8470_v27 = vld [vmem:[#allocation101_spill] sm:$0xff]  ;;  %v8472_v3 = vld [vmem:[#allocation102_spill] sm:$0xff] }
 0x39a   :  { %3180 = vmatmul.mubr.f32.vlgmr.msra.gmra.mrb[18].mxu0 %v7435_v45  ;;  %3740 = vmatmul.mubr.f32.vlgmr.msra.gmra.mrb[18].mxu1 %v3030_v6  ;;  %v8435_v45 = vld [vmem:[#allocation121_spill] sm:$0xff]  ;;  %v8436_v6 = vld [vmem:[#allocation206_spill] sm:$0xff] }
 0x39b   :  { %4841 = vmatpush1.bf16.xpose.msra.mxu0 %v8427_v59  ;;  %3249 = vmatprep.mubr.f32.mxu0 %v3017_v57  ;;  %v8437_v57 = vld [vmem:[#allocation123_spill] sm:$0xff] }
 0x39c   :  { %5097 = vmatpush1.bf16.xpose.msra.mxu1 %v8428_v10  ;;  %3809 = vmatprep.mubr.f32.mxu1 %v3033_v23  ;;  %v8439_v23 = vld [vmem:[#allocation125_spill] sm:$0xff]  ;;  %v8473_v59 = vld [vmem:[#allocation39_spill] sm:$0xff] }
 0x39d   :  { %4843 = vmatprep.subr.bf16.mxu0 %v8429_v2  ;;  %5099 = vmatprep.subr.bf16.mxu1 %v8430_v63  ;;  %v8474_v10 = vld [vmem:[#allocation103_spill] sm:$0xff]  ;;  %v8475_v2 = vld [vmem:[#allocation40_spill] sm:$0xff] }
 0x39e   :  { %v8476_v63 = vld [vmem:[#allocation104_spill] sm:$0xff] }
 0x3a3   :  { %4845 = vmatpush1.bf16.xpose.msra.mxu0 %v8431_v62  ;;  %v8477_v62 = vld [vmem:[#allocation41_spill] sm:$0xff] }
 0x3a4   :  { %5101 = vmatpush1.bf16.xpose.msra.mxu1 %v8432_v51  ;;  %4847 = vmatprep.subr.bf16.mxu0 %v8433_v46  ;;  %v8478_v51 = vld [vmem:[#allocation105_spill] sm:$0xff]  ;;  %v8479_v46 = vld [vmem:[#allocation42_spill] sm:$0xff] }
 0x3a5   :  { %5103 = vmatprep.subr.bf16.mxu1 %v8434_v0  ;;  %v8480_v0 = vld [vmem:[#allocation106_spill] sm:$0xff] }
 0x3ab   :  { %4849 = vmatpush1.bf16.xpose.msra.mxu0 %v8435_v45  ;;  %v8481_v45 = vld [vmem:[#allocation43_spill] sm:$0xff] }
 0x3ac   :  { %5105 = vmatpush1.bf16.xpose.msra.mxu1 %v8436_v6  ;;  %4851 = vmatprep.subr.bf16.mxu0 %v8437_v57  ;;  %v8482_v6 = vld [vmem:[#allocation107_spill] sm:$0xff]  ;;  %v8483_v57 = vld [vmem:[#allocation44_spill] sm:$0xff] }
 0x3ad   :  { %5107 = vmatprep.subr.bf16.mxu1 %v8438_v48  ;;  %v8484_v48 = vld [vmem:[#allocation108_spill] sm:$0xff] }
 0x3b3   :  { %4853 = vmatpush1.bf16.xpose.msra.mxu0 %v8439_v23  ;;  %v8485_v23 = vld [vmem:[#allocation45_spill] sm:$0xff] }
 0x3b4   :  { %5109 = vmatpush1.bf16.xpose.msra.mxu1 %v8440_v16  ;;  %4855 = vmatprep.subr.bf16.mxu0 %v8441_v54  ;;  %v8486_v16 = vld [vmem:[#allocation109_spill] sm:$0xff]  ;;  %v8487_v54 = vld [vmem:[#allocation46_spill] sm:$0xff] }
 0x3b5   :  { %5111 = vmatprep.subr.bf16.mxu1 %v8442_v11  ;;  %v8488_v11 = vld [vmem:[#allocation110_spill] sm:$0xff] }
 0x3bb   :  { %4857 = vmatpush1.bf16.xpose.msra.mxu0 %v8443_v7  ;;  %v8489_v7 = vld [vmem:[#allocation143_spill] sm:$0xff] }
 0x3bc   :  { %5113 = vmatpush1.bf16.xpose.msra.mxu1 %v8444_v43  ;;  %4859 = vmatprep.subr.bf16.mxu0 %v8445_v42  ;;  %v8490_v43 = vld [vmem:[#allocation219_spill] sm:$0xff]  ;;  %v8491_v42 = vld [vmem:[#allocation145_spill] sm:$0xff] }
 0x3bd   :  { %5115 = vmatprep.subr.bf16.mxu1 %v8446_v34  ;;  %v8492_v34 = vld [vmem:[#allocation221_spill] sm:$0xff] }
 0x3c3   :  { %4861 = vmatpush1.bf16.xpose.msra.mxu0 %v8447_v24  ;;  %v8493_v24 = vld [vmem:[#allocation147_spill] sm:$0xff] }
 0x3c4   :  { %5117 = vmatpush1.bf16.xpose.msra.mxu1 %v8448_v1  ;;  %4863 = vmatprep.subr.bf16.mxu0 %v8449_v12  ;;  %v8494_v1 = vld [vmem:[#allocation222_spill] sm:$0xff]  ;;  %v8495_v12 = vld [vmem:[#allocation149_spill] sm:$0xff] }
 0x3c5   :  { %5119 = vmatprep.subr.bf16.mxu1 %v8450_v18  ;;  %v8496_v18 = vld [vmem:[#allocation224_spill] sm:$0xff] }
 0x3cb   :  { %4865 = vmatpush1.bf16.xpose.msra.mxu0 %v8451_v38  ;;  %v8497_v38 = vld [vmem:[#allocation151_spill] sm:$0xff] }
 0x3cc   :  { %5121 = vmatpush1.bf16.xpose.msra.mxu1 %v8452_v13  ;;  %4867 = vmatprep.subr.bf16.mxu0 %v8453_v9  ;;  %v8500_v13 = vld [vmem:[#allocation226_spill] sm:$0xff]  ;;  %v8502_v9 = vld [vmem:[#allocation227_spill] sm:$0xff] }
 0x3cd   :  { %5123 = vmatprep.subr.bf16.mxu1 %v8454_v47  ;;  %v8504_v47 = vld [vmem:[#allocation229_spill] sm:$0xff] }
 0x3d3   :  { %4869 = vmatpush1.bf16.xpose.msra.mxu0 %v8455_v56  ;;  %v8505_v56 = vld [vmem:[#allocation159_spill] sm:$0xff] }
 0x3d4   :  { %5125 = vmatpush1.bf16.xpose.msra.mxu1 %v8456_v5  ;;  %4871 = vmatprep.subr.bf16.mxu0 %v8457_v22  ;;  %v8506_v5 = vld [vmem:[#allocation230_spill] sm:$0xff]  ;;  %v8507_v22 = vld [vmem:[#allocation161_spill] sm:$0xff] }
 0x3d5   :  { %5127 = vmatprep.subr.bf16.mxu1 %v8458_v49  ;;  %v8508_v49 = vld [vmem:[#allocation233_spill] sm:$0xff] }
 0x3da   :  { %3250 = vmatmul.mubr.f32.vlgmr.msra.gmra.mrb[18].mxu0 %v7438_v4  ;;  %v8466_v4 = vld [vmem:[#allocation99_spill] sm:$0xff] }
 0x3db   :  { %3810 = vmatmul.mubr.f32.vlgmr.msra.gmra.mrb[18].mxu1 %v7458_v14  ;;  %4873 = vmatpush1.bf16.xpose.msra.mxu0 %v8459_v29  ;;  %v8467_v14 = vld [vmem:[#allocation36_spill] sm:$0xff]  ;;  %v8509_v29 = vld [vmem:[#allocation163_spill] sm:$0xff] }
 0x3dc   :  { %3319 = vmatprep.mubr.f32.mxu0 %v7481_v39  ;;  %5129 = vmatpush1.bf16.xpose.msra.mxu1 %v8460_v52  ;;  %v8469_v39 = vld [vmem:[#allocation37_spill] sm:$0xff]  ;;  %v8510_v52 = vld [vmem:[#allocation234_spill] sm:$0xff] }
 0x3dd   :  { %3879 = vmatprep.mubr.f32.mxu1 %v7484_v17  ;;  %4875 = vmatprep.subr.bf16.mxu0 %v8461_v35  ;;  %v8471_v17 = vld [vmem:[#allocation38_spill] sm:$0xff]  ;;  %v8511_v35 = vld [vmem:[#allocation165_spill] sm:$0xff] }
 0x3de   :  { %5131 = vmatprep.subr.bf16.mxu1 %v8462_v31  ;;  %v8512_v31 = vld [vmem:[#allocation236_spill] sm:$0xff] }
 0x3e3   :  { %4877 = vmatpush1.bf16.xpose.msra.mxu0 %v8463_v25  ;;  %v8513_v25 = vld [vmem:[#allocation167_spill] sm:$0xff] }
 0x3e4   :  { %5133 = vmatpush1.bf16.xpose.msra.mxu1 %v8464_v19  ;;  %4879 = vmatprep.subr.bf16.mxu0 %v8465_v50  ;;  %v8514_v19 = vld [vmem:[#allocation237_spill] sm:$0xff] }
 0x3e5   :  { %5135 = vmatprep.subr.bf16.mxu1 %v8466_v4  ;;  %v8515_v50 = vld [vmem:[#allocation169_spill] sm:$0xff]  ;;  %v8516_v4 = vld [vmem:[#allocation238_spill] sm:$0xff] }
 0x3eb   :  { %4881 = vmatpush1.bf16.xpose.msra.mxu0 %v8467_v14  ;;  %v8517_v14 = vld [vmem:[#allocation171_spill] sm:$0xff] }
 0x3ec   :  { %5137 = vmatpush1.bf16.xpose.msra.mxu1 %v8468_v44  ;;  %4883 = vmatprep.subr.bf16.mxu0 %v8469_v39  ;;  %v8518_v44 = vld [vmem:[#allocation239_spill] sm:$0xff]  ;;  %v8519_v39 = vld [vmem:[#allocation172_spill] sm:$0xff] }
 0x3ed   :  { %5139 = vmatprep.subr.bf16.mxu1 %v8470_v27  ;;  %v8520_v27 = vld [vmem:[#allocation240_spill] sm:$0xff] }
 0x3f3   :  { %4885 = vmatpush1.bf16.xpose.msra.mxu0 %v8471_v17  ;;  %v8521_v17 = vld [vmem:[#allocation47_spill] sm:$0xff] }
 0x3f4   :  { %5141 = vmatpush1.bf16.xpose.msra.mxu1 %v8472_v3  ;;  %4887 = vmatprep.subr.bf16.mxu0 %v8473_v59  ;;  %v8522_v3 = vld [vmem:[#allocation112_spill] sm:$0xff] }
 0x3f5   :  { %5143 = vmatprep.subr.bf16.mxu1 %v8474_v10  ;;  %v8523_v59 = vld [vmem:[#allocation48_spill] sm:$0xff]  ;;  %v8524_v10 = vld [vmem:[#allocation114_spill] sm:$0xff] }
 0x3fb   :  { %4889 = vmatpush1.bf16.xpose.msra.mxu0 %v8475_v2  ;;  %v8525_v2 = vld [vmem:[#allocation49_spill] sm:$0xff] }
 0x3fc   :  { %5145 = vmatpush1.bf16.xpose.msra.mxu1 %v8476_v63  ;;  %4891 = vmatprep.subr.bf16.mxu0 %v8477_v62  ;;  %v8526_v63 = vld [vmem:[#allocation116_spill] sm:$0xff]  ;;  %v8527_v62 = vld [vmem:[#allocation50_spill] sm:$0xff] }
 0x3fd   :  { %5147 = vmatprep.subr.bf16.mxu1 %v8478_v51  ;;  %v8528_v51 = vld [vmem:[#allocation118_spill] sm:$0xff] }
 0x403   :  { %4893 = vmatpush1.bf16.xpose.msra.mxu0 %v8479_v46  ;;  %v8529_v46 = vld [vmem:[#allocation51_spill] sm:$0xff] }
 0x404   :  { %5149 = vmatpush1.bf16.xpose.msra.mxu1 %v8480_v0  ;;  %4895 = vmatprep.subr.bf16.mxu0 %v8481_v45  ;;  %v8532_v0 = vld [vmem:[#allocation122_spill] sm:$0xff]  ;;  %v8534_v45 = vld [vmem:[#allocation124_spill] sm:$0xff] }
 0x405   :  { %5151 = vmatprep.subr.bf16.mxu1 %v8482_v6  ;;  %v8536_v6 = vld [vmem:[#allocation126_spill] sm:$0xff] }
 0x40b   :  { %4897 = vmatpush1.bf16.xpose.msra.mxu0 %v8483_v57  ;;  %v8537_v57 = vld [vmem:[#allocation55_spill] sm:$0xff] }
 0x40c   :  { %5153 = vmatpush1.bf16.xpose.msra.mxu1 %v8484_v48  ;;  %4899 = vmatprep.subr.bf16.mxu0 %v8485_v23  ;;  %v8538_v48 = vld [vmem:[#allocation128_spill] sm:$0xff] }
 0x40d   :  { %5155 = vmatprep.subr.bf16.mxu1 %v8486_v16  ;;  %v8539_v23 = vld [vmem:[#allocation56_spill] sm:$0xff]  ;;  %v8540_v16 = vld [vmem:[#allocation130_spill] sm:$0xff] }
 0x413   :  { %4901 = vmatpush1.bf16.xpose.msra.mxu0 %v8487_v54  ;;  %v8541_v54 = vld [vmem:[#allocation57_spill] sm:$0xff] }
 0x414   :  { %5157 = vmatpush1.bf16.xpose.msra.mxu1 %v8488_v11  ;;  %4903 = vmatprep.subr.bf16.mxu0 %v8489_v7  ;;  %v8542_v11 = vld [vmem:[#allocation132_spill] sm:$0xff]  ;;  %v8543_v7 = vld [vmem:[#allocation58_spill] sm:$0xff] }
 0x415   :  { %5159 = vmatprep.subr.bf16.mxu1 %v8490_v43  ;;  %v8544_v43 = vld [vmem:[#allocation134_spill] sm:$0xff] }
 0x41a   :  { %3320 = vmatmul.mubr.f32.vlgmr.msra.gmra.mrb[18].mxu0 %v7441_v20  ;;  %v8498_v20 = vld [vmem:[#allocation225_spill] sm:$0xff] }
 0x41b   :  { %3880 = vmatmul.mubr.f32.vlgmr.msra.gmra.mrb[18].mxu1 %v7461_v32  ;;  %4905 = vmatpush1.bf16.xpose.msra.mxu0 %v8491_v42  ;;  %v8499_v32 = vld [vmem:[#allocation153_spill] sm:$0xff]  ;;  %v8545_v42 = vld [vmem:[#allocation59_spill] sm:$0xff] }
 0x41c   :  { %3389 = vmatprep.mubr.f32.mxu0 %v7487_v21  ;;  %5161 = vmatpush1.bf16.xpose.msra.mxu1 %v8492_v34  ;;  %v8501_v21 = vld [vmem:[#allocation155_spill] sm:$0xff]  ;;  %v8546_v34 = vld [vmem:[#allocation136_spill] sm:$0xff] }
 0x41d   :  { %3949 = vmatprep.mubr.f32.mxu1 %v7490_v40  ;;  %4907 = vmatprep.subr.bf16.mxu0 %v8493_v24  ;;  %v8503_v40 = vld [vmem:[#allocation157_spill] sm:$0xff]  ;;  %v8547_v24 = vld [vmem:[#allocation60_spill] sm:$0xff] }
 0x41e   :  { %5163 = vmatprep.subr.bf16.mxu1 %v8494_v1  ;;  %v8548_v1 = vld [vmem:[#allocation138_spill] sm:$0xff] }
 0x423   :  { %4909 = vmatpush1.bf16.xpose.msra.mxu0 %v8495_v12  ;;  %v8549_v12 = vld [vmem:[#allocation61_spill] sm:$0xff] }
 0x424   :  { %5165 = vmatpush1.bf16.xpose.msra.mxu1 %v8496_v18  ;;  %4911 = vmatprep.subr.bf16.mxu0 %v8497_v38  ;;  %v8550_v18 = vld [vmem:[#allocation140_spill] sm:$0xff]  ;;  %v8551_v38 = vld [vmem:[#allocation62_spill] sm:$0xff] }
 0x425   :  { %5167 = vmatprep.subr.bf16.mxu1 %v8498_v20  ;;  %v8552_v20 = vld [vmem:[#allocation142_spill] sm:$0xff] }
 0x42b   :  { %4913 = vmatpush1.bf16.xpose.msra.mxu0 %v8499_v32  ;;  %v8553_v32 = vld [vmem:[#allocation175_spill] sm:$0xff] }
 0x42c   :  { %5169 = vmatpush1.bf16.xpose.msra.mxu1 %v8500_v13  ;;  %4915 = vmatprep.subr.bf16.mxu0 %v8501_v21  ;;  %v8554_v13 = vld [vmem:[#allocation241_spill] sm:$0xff]  ;;  %v8555_v21 = vld [vmem:[#allocation176_spill] sm:$0xff] }
 0x42d   :  { %5171 = vmatprep.subr.bf16.mxu1 %v8502_v9  ;;  %v8556_v9 = vld [vmem:[#allocation243_spill] sm:$0xff] }
 0x433   :  { %4917 = vmatpush1.bf16.xpose.msra.mxu0 %v8503_v40  ;;  %v8557_v40 = vld [vmem:[#allocation177_spill] sm:$0xff] }
 0x434   :  { %5173 = vmatpush1.bf16.xpose.msra.mxu1 %v8504_v47  ;;  %4919 = vmatprep.subr.bf16.mxu0 %v8505_v56  ;;  %v8558_v47 = vld [vmem:[#allocation244_spill] sm:$0xff]  ;;  %v8559_v56 = vld [vmem:[#allocation178_spill] sm:$0xff] }
 0x435   :  { %5175 = vmatprep.subr.bf16.mxu1 %v8506_v5  ;;  %v8560_v5 = vld [vmem:[#allocation246_spill] sm:$0xff] }
 0x43b   :  { %4921 = vmatpush1.bf16.xpose.msra.mxu0 %v8507_v22  ;;  %v8561_v22 = vld [vmem:[#allocation179_spill] sm:$0xff] }
 0x43c   :  { %5177 = vmatpush1.bf16.xpose.msra.mxu1 %v8508_v49  ;;  %4923 = vmatprep.subr.bf16.mxu0 %v8509_v29  ;;  %v8564_v49 = vld [vmem:[#allocation248_spill] sm:$0xff]  ;;  %v8566_v29 = vld [vmem:[#allocation249_spill] sm:$0xff] }
 0x43d   :  { %5179 = vmatprep.subr.bf16.mxu1 %v8510_v52  ;;  %v8568_v52 = vld [vmem:[#allocation251_spill] sm:$0xff] }
 0x443   :  { %4925 = vmatpush1.bf16.xpose.msra.mxu0 %v8511_v35  ;;  %v8569_v35 = vld [vmem:[#allocation183_spill] sm:$0xff] }
 0x444   :  { %5181 = vmatpush1.bf16.xpose.msra.mxu1 %v8512_v31  ;;  %4927 = vmatprep.subr.bf16.mxu0 %v8513_v25  ;;  %v8570_v31 = vld [vmem:[#allocation252_spill] sm:$0xff] }
 0x445   :  { %5183 = vmatprep.subr.bf16.mxu1 %v8514_v19  ;;  %v8571_v25 = vld [vmem:[#allocation184_spill] sm:$0xff]  ;;  %v8572_v19 = vld [vmem:[#allocation254_spill] sm:$0xff] }
 0x44b   :  { %4929 = vmatpush1.bf16.xpose.msra.mxu0 %v8515_v50  ;;  %v8573_v50 = vld [vmem:[#allocation185_spill] sm:$0xff] }
 0x44c   :  { %5185 = vmatpush1.bf16.xpose.msra.mxu1 %v8516_v4  ;;  %4931 = vmatprep.subr.bf16.mxu0 %v8517_v14  ;;  %v8574_v4 = vld [vmem:[#allocation255_spill] sm:$0xff] }
 0x44d   :  { %5187 = vmatprep.subr.bf16.mxu1 %v8518_v44  ;;  %v8575_v14 = vld [vmem:[#allocation187_spill] sm:$0xff]  ;;  %v8576_v44 = vld [vmem:[#allocation257_spill] sm:$0xff] }
 0x453   :  { %4933 = vmatpush1.bf16.xpose.msra.mxu0 %v8519_v39  ;;  %v8577_v39 = vld [vmem:[#allocation188_spill] sm:$0xff] }
 0x454   :  { %5189 = vmatpush1.bf16.xpose.msra.mxu1 %v8520_v27  ;;  %4935 = vmatprep.subr.bf16.mxu0 %v8521_v17  ;;  %v8578_v27 = vld [vmem:[#allocation258_spill] sm:$0xff]  ;;  %v8579_v17 = vld [vmem:[#allocation189_spill] sm:$0xff] }
 0x455   :  { %5191 = vmatprep.subr.bf16.mxu1 %v8522_v3  ;;  %v8580_v3 = vld [vmem:[#allocation259_spill] sm:$0xff] }
 0x45a   :  { %3390 = vmatmul.mubr.f32.vlgmr.msra.gmra.mrb[18].mxu0 %v7444_v53  ;;  %v8530_v53 = vld [vmem:[#allocation120_spill] sm:$0xff] }
 0x45b   :  { %3950 = vmatmul.mubr.f32.vlgmr.msra.gmra.mrb[18].mxu1 %v7464_v33  ;;  %4937 = vmatpush1.bf16.xpose.msra.mxu0 %v8523_v59  ;;  %v8531_v33 = vld [vmem:[#allocation52_spill] sm:$0xff]  ;;  %v8581_v59 = vld [vmem:[#allocation190_spill] sm:$0xff] }
 0x45c   :  { %3459 = vmatprep.mubr.f32.mxu0 %v7493_v37  ;;  %5193 = vmatpush1.bf16.xpose.msra.mxu1 %v8524_v10  ;;  %v8533_v37 = vld [vmem:[#allocation53_spill] sm:$0xff]  ;;  %v8582_v10 = vld [vmem:[#allocation260_spill] sm:$0xff] }
 0x45d   :  { %4019 = vmatprep.mubr.f32.mxu1 %v7496_v55  ;;  %4939 = vmatprep.subr.bf16.mxu0 %v8525_v2  ;;  %v8535_v55 = vld [vmem:[#allocation54_spill] sm:$0xff]  ;;  %v8583_v2 = vld [vmem:[#allocation191_spill] sm:$0xff] }
 0x45e   :  { %5195 = vmatprep.subr.bf16.mxu1 %v8526_v63  ;;  %v8584_v63 = vld [vmem:[#allocation261_spill] sm:$0xff] }
 0x463   :  { %4941 = vmatpush1.bf16.xpose.msra.mxu0 %v8527_v62  ;;  %v8585_v62 = vld [vmem:[#allocation63_spill] sm:$0xff] }
 0x464   :  { %5197 = vmatpush1.bf16.xpose.msra.mxu1 %v8528_v51  ;;  %4943 = vmatprep.subr.bf16.mxu0 %v8529_v46  ;;  %v8586_v51 = vld [vmem:[#allocation144_spill] sm:$0xff] }
 0x465   :  { %5199 = vmatprep.subr.bf16.mxu1 %v8530_v53  ;;  %v8587_v46 = vld [vmem:[#allocation64_spill] sm:$0xff]  ;;  %v8588_v53 = vld [vmem:[#allocation146_spill] sm:$0xff] }
 0x46b   :  { %4945 = vmatpush1.bf16.xpose.msra.mxu0 %v8531_v33  ;;  %v8589_v33 = vld [vmem:[#allocation65_spill] sm:$0xff] }
 0x46c   :  { %5201 = vmatpush1.bf16.xpose.msra.mxu1 %v8532_v0  ;;  %4947 = vmatprep.subr.bf16.mxu0 %v8533_v37  ;;  %v8590_v0 = vld [vmem:[#allocation148_spill] sm:$0xff]  ;;  %v8591_v37 = vld [vmem:[#allocation66_spill] sm:$0xff] }
 0x46d   :  { %5203 = vmatprep.subr.bf16.mxu1 %v8534_v45  ;;  %v8592_v45 = vld [vmem:[#allocation150_spill] sm:$0xff] }
 0x473   :  { %4949 = vmatpush1.bf16.xpose.msra.mxu0 %v8535_v55  ;;  %v8593_v55 = vld [vmem:[#allocation67_spill] sm:$0xff] }
 0x474   :  { %5205 = vmatpush1.bf16.xpose.msra.mxu1 %v8536_v6  ;;  %4951 = vmatprep.subr.bf16.mxu0 %v8537_v57  ;;  %v8596_v6 = vld [vmem:[#allocation154_spill] sm:$0xff]  ;;  %v8598_v57 = vld [vmem:[#allocation156_spill] sm:$0xff] }
 0x475   :  { %5207 = vmatprep.subr.bf16.mxu1 %v8538_v48  ;;  %v8600_v48 = vld [vmem:[#allocation158_spill] sm:$0xff] }
 0x47b   :  { %4953 = vmatpush1.bf16.xpose.msra.mxu0 %v8539_v23  ;;  %v8601_v23 = vld [vmem:[#allocation71_spill] sm:$0xff] }
 0x47c   :  { %5209 = vmatpush1.bf16.xpose.msra.mxu1 %v8540_v16  ;;  %4955 = vmatprep.subr.bf16.mxu0 %v8541_v54  ;;  %v8602_v16 = vld [vmem:[#allocation160_spill] sm:$0xff] }
 0x47d   :  { %5211 = vmatprep.subr.bf16.mxu1 %v8542_v11  ;;  %v8603_v54 = vld [vmem:[#allocation72_spill] sm:$0xff]  ;;  %v8604_v11 = vld [vmem:[#allocation162_spill] sm:$0xff] }
 0x483   :  { %4957 = vmatpush1.bf16.xpose.msra.mxu0 %v8543_v7  ;;  %v8605_v7 = vld [vmem:[#allocation73_spill] sm:$0xff] }
 0x484   :  { %5213 = vmatpush1.bf16.xpose.msra.mxu1 %v8544_v43  ;;  %4959 = vmatprep.subr.bf16.mxu0 %v8545_v42  ;;  %v8606_v43 = vld [vmem:[#allocation164_spill] sm:$0xff]  ;;  %v8607_v42 = vld [vmem:[#allocation74_spill] sm:$0xff] }
 0x485   :  { %5215 = vmatprep.subr.bf16.mxu1 %v8546_v34  ;;  %v8608_v34 = vld [vmem:[#allocation166_spill] sm:$0xff] }
 0x48b   :  { %4961 = vmatpush1.bf16.xpose.msra.mxu0 %v8547_v24  ;;  %v8609_v24 = vld [vmem:[#allocation75_spill] sm:$0xff] }
 0x48c   :  { %5217 = vmatpush1.bf16.xpose.msra.mxu1 %v8548_v1  ;;  %4963 = vmatprep.subr.bf16.mxu0 %v8549_v12  ;;  %v8610_v1 = vld [vmem:[#allocation168_spill] sm:$0xff] }
 0x48d   :  { %5219 = vmatprep.subr.bf16.mxu1 %v8550_v18  ;;  %v8611_v12 = vld [vmem:[#allocation76_spill] sm:$0xff]  ;;  %v8612_v18 = vld [vmem:[#allocation170_spill] sm:$0xff] }
 0x493   :  { %4965 = vmatpush1.bf16.xpose.msra.mxu0 %v8551_v38  ;;  %v8613_v38 = vld [vmem:[#allocation77_spill] sm:$0xff] }
 0x494   :  { %5221 = vmatpush1.bf16.xpose.msra.mxu1 %v8552_v20  ;;  %4967 = vmatprep.subr.bf16.mxu0 %v8553_v32  ;;  %v8614_v20 = vld [vmem:[#allocation173_spill] sm:$0xff]  ;;  %v8615_v32 = vld [vmem:[#allocation78_spill] sm:$0xff] }
 0x495   :  { %5223 = vmatprep.subr.bf16.mxu1 %v8554_v13  ;;  %v8616_v13 = vld [vmem:[#allocation174_spill] sm:$0xff] }
 0x49a   :  { %3460 = vmatmul.mubr.f32.vlgmr.msra.gmra.mrb[18].mxu0 %v7447_v30  ;;  %v8562_v30 = vld [vmem:[#allocation247_spill] sm:$0xff] }
 0x49b   :  { %4020 = vmatmul.mubr.f32.vlgmr.msra.gmra.mrb[18].mxu1 %v7467_v58  ;;  %4969 = vmatpush1.bf16.xpose.msra.mxu0 %v8555_v21  ;;  %v8563_v58 = vld [vmem:[#allocation180_spill] sm:$0xff] }
 0x49c   :  { %3529 = vmatprep.mubr.f32.mxu0 %v7499_v15  ;;  %5225 = vmatpush1.bf16.xpose.msra.mxu1 %v8556_v9  ;;  %v8565_v15 = vld [vmem:[#allocation181_spill] sm:$0xff]  ;;  %v5288_v9 = vld [vmem:[#allocation11] sm:$0xff] }
 0x49d   :  { %4089 = vmatprep.mubr.f32.mxu1 %v7501_v41  ;;  %4971 = vmatprep.subr.bf16.mxu0 %v8557_v40  ;;  %v8567_v41 = vld [vmem:[#allocation182_spill] sm:$0xff] }
 0x49e   :  { %5227 = vmatprep.subr.bf16.mxu1 %v8558_v47 }
 0x4a3   :  { %4973 = vmatpush1.bf16.xpose.msra.mxu0 %v8559_v56 }
 0x4a4   :  { %5229 = vmatpush1.bf16.xpose.msra.mxu1 %v8560_v5  ;;  %4975 = vmatprep.subr.bf16.mxu0 %v8561_v22 }
 0x4a5   :  { %5231 = vmatprep.subr.bf16.mxu1 %v8562_v30 }
 0x4ab   :  { %4977 = vmatpush1.bf16.xpose.msra.mxu0 %v8563_v58 }
 0x4ac   :  { %5233 = vmatpush1.bf16.xpose.msra.mxu1 %v8564_v49  ;;  %4979 = vmatprep.subr.bf16.mxu0 %v8565_v15 }
 0x4ad   :  { %5235 = vmatprep.subr.bf16.mxu1 %v8566_v29 }
 0x4b3   :  { %4981 = vmatpush1.bf16.xpose.msra.mxu0 %v8567_v41 }
 0x4b4   :  { %5237 = vmatpush1.bf16.xpose.msra.mxu1 %v8568_v52  ;;  %4983 = vmatprep.subr.bf16.mxu0 %v8569_v35 }
 0x4b5   :  { %5239 = vmatprep.subr.bf16.mxu1 %v8570_v31 }
 0x4bb   :  { %4985 = vmatpush1.bf16.xpose.msra.mxu0 %v8571_v25 }
 0x4bc   :  { %5241 = vmatpush1.bf16.xpose.msra.mxu1 %v8572_v19  ;;  %4987 = vmatprep.subr.bf16.mxu0 %v8573_v50 }
 0x4bd   :  { %5243 = vmatprep.subr.bf16.mxu1 %v8574_v4 }
 0x4c3   :  { %4989 = vmatpush1.bf16.xpose.msra.mxu0 %v8575_v14 }
 0x4c4   :  { %5245 = vmatpush1.bf16.xpose.msra.mxu1 %v8576_v44  ;;  %4991 = vmatprep.subr.bf16.mxu0 %v8577_v39 }
 0x4c5   :  { %5247 = vmatprep.subr.bf16.mxu1 %v8578_v27 }
 0x4cb   :  { %4993 = vmatpush1.bf16.xpose.msra.mxu0 %v8579_v17 }
 0x4cc   :  { %5249 = vmatpush1.bf16.xpose.msra.mxu1 %v8580_v3  ;;  %4995 = vmatprep.subr.bf16.mxu0 %v8581_v59 }
 0x4cd   :  { %5251 = vmatprep.subr.bf16.mxu1 %v8582_v10 }
 0x4d3   :  { %4997 = vmatpush1.bf16.xpose.msra.mxu0 %v8583_v2 }
 0x4d4   :  { %5253 = vmatpush1.bf16.xpose.msra.mxu1 %v8584_v63  ;;  %4999 = vmatprep.subr.bf16.mxu0 %v8585_v62 }
 0x4d5   :  { %5255 = vmatprep.subr.bf16.mxu1 %v8586_v51 }
 0x4da   :  { %3530 = vmatmul.mubr.f32.vlgmr.msra.gmra.mrb[18].mxu0 %v7450_v61  ;;  %v8594_v61 = vld [vmem:[#allocation152_spill] sm:$0xff] }
 0x4db   :  { %4090 = vmatmul.mubr.f32.vlgmr.msra.gmra.mrb[18].mxu1 %v7469_v28  ;;  %5001 = vmatpush1.bf16.xpose.msra.mxu0 %v8587_v46  ;;  %v8595_v28 = vld [vmem:[#allocation68_spill] sm:$0xff] }
 0x4dc   :  { %3599 = vmatprep.mubr.f32.mxu0 %v7506_v60  ;;  %5257 = vmatpush1.bf16.xpose.msra.mxu1 %v8588_v53  ;;  %v8597_v60 = vld [vmem:[#allocation69_spill] sm:$0xff] }
 0x4dd   :  { %4159 = vmatprep.mubr.f32.mxu1 %v7509_v26  ;;  %5003 = vmatprep.subr.bf16.mxu0 %v8589_v33  ;;  %v8599_v26 = vld [vmem:[#allocation70_spill] sm:$0xff] }
 0x4de   :  { %5259 = vmatprep.subr.bf16.mxu1 %v8590_v0 }
 0x4e3   :  { %5005 = vmatpush1.bf16.xpose.msra.mxu0 %v8591_v37 }
 0x4e4   :  { %5261 = vmatpush1.bf16.xpose.msra.mxu1 %v8592_v45  ;;  %5007 = vmatprep.subr.bf16.mxu0 %v8593_v55 }
 0x4e5   :  { %5263 = vmatprep.subr.bf16.mxu1 %v8594_v61 }
 0x4eb   :  { %5009 = vmatpush1.bf16.xpose.msra.mxu0 %v8595_v28 }
 0x4ec   :  { %5265 = vmatpush1.bf16.xpose.msra.mxu1 %v8596_v6  ;;  %5011 = vmatprep.subr.bf16.mxu0 %v8597_v60 }
 0x4ed   :  { %5267 = vmatprep.subr.bf16.mxu1 %v8598_v57 }
 0x4f3   :  { %5013 = vmatpush1.bf16.xpose.msra.mxu0 %v8599_v26 }
 0x4f4   :  { %5269 = vmatpush1.bf16.xpose.msra.mxu1 %v8600_v48  ;;  %5015 = vmatprep.subr.bf16.mxu0 %v8601_v23 }
 0x4f5   :  { %5271 = vmatprep.subr.bf16.mxu1 %v8602_v16 }
 0x4fb   :  { %5017 = vmatpush1.bf16.xpose.msra.mxu0 %v8603_v54 }
 0x4fc   :  { %5273 = vmatpush1.bf16.xpose.msra.mxu1 %v8604_v11  ;;  %5019 = vmatprep.subr.bf16.mxu0 %v8605_v7 }
 0x4fd   :  { %5275 = vmatprep.subr.bf16.mxu1 %v8606_v43 }
 0x503   :  { %5021 = vmatpush1.bf16.xpose.msra.mxu0 %v8607_v42 }
 0x504   :  { %5277 = vmatpush1.bf16.xpose.msra.mxu1 %v8608_v34  ;;  %5023 = vmatprep.subr.bf16.mxu0 %v8609_v24 }
 0x505   :  { %5279 = vmatprep.subr.bf16.mxu1 %v8610_v1 }
 0x50b   :  { %5025 = vmatpush1.bf16.xpose.msra.mxu0 %v8611_v12 }
 0x50c   :  { %5281 = vmatpush1.bf16.xpose.msra.mxu1 %v8612_v18  ;;  %5027 = vmatprep.subr.bf16.mxu0 %v8613_v38 }
 0x50d   :  { %5283 = vmatprep.subr.bf16.mxu1 %v8614_v20 }
 0x513   :  { %5029 = vmatpush1.bf16.xpose.msra.mxu0 %v8615_v32 }
 0x514   :  { %5285 = vmatpush1.bf16.xpose.msra.mxu1 %v8616_v13 }
 0x51a   :  { %3600 = vmatmul.mubr.f32.vlgmr.msra.gmra.mrb[18].mxu0 %v7453_v36 }
 0x51b   :  { %4160 = vmatmul.mubr.f32.vlgmr.msra.gmra.mrb[18].mxu1 %v7472_v8 }
 0x5ed   :  { %v3601_v21 = vpop.f32.mrb[18].mxu0 }
 0x5ee   :  { %v5289_v40 = vadd.f32 %v5288_v9, %v3601_v21  ;;  %v4161_v47 = vpop.f32.mrb[18].mxu1  ;;  %v3603_v56 = vpop.f32.mrb[19].mxu0 }
 0x5ef   :  { %v4163_v5 = vpop.f32.mrb[19].mxu1 }
 0x5f0   :  { %v5292_v22 = vadd.f32 %v5289_v40, %v4161_v47 }
 0x5f2   :  { %4166 = vst [vmem:[#allocation11] sm:$0xff] %v5292_v22 }
 0x5f3   :  { %5653 = shalt.err (!%p5650_p2)
}
 0x5f4   :  { %s5654_s6 = scalar_lea.hbm %s7771_s5, 128 }
 0x5f5   :  { %p5655_p3 = scmp.ne.s32.totalorder %s7771_s5, %s5654_s6  ;;  %p5658_p4 = scmp.lt.u32.totalorder %s5654_s6, %s7771_s5 }
 0x5f7   :  { %p5660_p5 = pnand %p5658_p4, %p5655_p3 }
 0x5f9   :  { %5663 = shalt.err (!%p5660_p5)
}
 0x5fa   :  { %4176 = dma.vmem_to_hbm [thread:$0]  %s4174_s28, 128, %s7771_s5, [#allocation4]  }
 0x5fb   :  { %5670 = dma.done.wait [#allocation4], 128  }
 0x5fc   :  { %5671 = vsyncadd [#allocation4], 4294967168 }
 0x5fd   :  { %4180 = vsyncpa [#allocation3], 1 }
 0x5fe   :  { %4181 = vsyncpa [#allocation6], 1 }
 0x5ff   :  { %4182 = vsyncpa [#allocation9], 1 }
 0x600   :  { %4183 = vsyncpa [#allocation4], 1 }

</bundles_post_ra>
